<compile_context>
chip_gen: v7x
topology: tpu7x:2x2x1
jax: 0.10.0
libtpu: 0.0.40
codegen_flags: <defaults>
</compile_context>

<pallas_src>
import functools

import jax
import jax.numpy as jnp
from jax.experimental import pallas as pl
from jax.experimental.pallas import tpu as pltpu

EPS = 1e-5     # nn.BatchNorm2d default eps
CHUNK = 512    # in-kernel lane-chunk width (bounds vreg pressure; all-static)


def _round_up(x, m):
    return ((x + m - 1) // m) * m


def _vmem_limit_bytes():
    # ~3/4 of physical VMEM per generation; conservative fallback if the query
    # is unavailable.  The kernels below use well under 1 MiB at batch=2, so
    # this is headroom for larger batches, not a requirement.
    try:
        cap = int(pltpu.get_tpu_info().vmem_capacity_bytes)
        if cap > 0:
            return min(cap * 3 // 4, 112 * 1024 * 1024)
    except Exception:
        pass
    return 48 * 1024 * 1024


_VMEM_LIMIT = _vmem_limit_bytes()


def _cparams():
    return pltpu.CompilerParams(vmem_limit_bytes=_VMEM_LIMIT)


# ----------------------------- Pallas kernels -------------------------------

def _conv_bn_relu_kernel(x_ref, w_ref, g_ref, b_ref, mask_ref, o_ref, y_scr,
                         *, k, wf, m_valid):
    """Whole conv + training-mode BN + ReLU layer in one invocation.

    x_ref:    (Cin_p, Mx)          bf16  frame-flat input, zero-padded tail
    w_ref:    (k*k, Cout_p, Cin_p) bf16  per-tap weight matrices, (ki, kj) order
    g_ref:    (Cout_p, 1)          f32   BN gamma (zero on padded channels)
    b_ref:    (Cout_p, 1)          f32   BN beta
    mask_ref: (1, Mout)            f32   1.0 on valid output positions
    o_ref:    (Cout_p, Mout)       bf16  frame-flat output (garbage on invalid)
    y_scr:    (Cout_p, Mout)       f32   VMEM-resident pre-BN conv output
    """
    cout_p, mout = o_ref.shape
    ssum = jnp.zeros((cout_p, 1), jnp.float32)
    ssq = jnp.zeros((cout_p, 1), jnp.float32)

    # Pass 1: k*k shifted MXU matmuls (in-kernel im2col) + masked batch stats.
    c0 = 0
    while c0 < mout:
        cw = min(CHUNK, mout - c0)
        y = jnp.zeros((cout_p, cw), jnp.float32)
        for ki in range(k):
            for kj in range(k):
                xs = x_ref[:, pl.ds(c0 + ki * wf + kj, cw)]   # static offsets
                y = y + jnp.dot(w_ref[ki * k + kj], xs,
                                preferred_element_type=jnp.float32)
        y_scr[:, pl.ds(c0, cw)] = y
        ym = y * mask_ref[:, pl.ds(c0, cw)]
        ssum = ssum + jnp.sum(ym, axis=-1, keepdims=True)
        ssq = ssq + jnp.sum(ym * y, axis=-1, keepdims=True)
        c0 += cw

    # Training-mode BatchNorm (biased batch variance) folded into scale/shift.
    inv_m = 1.0 / m_valid
    mean = ssum * inv_m
    var = jnp.maximum(ssq * inv_m - mean * mean, 0.0)   # clamp cancellation
    scale = g_ref[...] * jax.lax.rsqrt(var + EPS)
    shift = b_ref[...] - mean * scale

    # Pass 2: BN + ReLU straight out of the VMEM y slab, lane-dense bf16 store.
    c0 = 0
    while c0 < mout:
        cw = min(CHUNK, mout - c0)
        yv = y_scr[:, pl.ds(c0, cw)]
        o_ref[:, pl.ds(c0, cw)] = jnp.maximum(
            yv * scale + shift, 0.0).astype(o_ref.dtype)
        c0 += cw


def _fc_kernel(w_ref, x_ref, b_ref, o_ref):
    """out.T = W @ feat.T + b   (classes on sublanes, batch on lanes)."""
    o_ref[...] = (jnp.dot(w_ref[...], x_ref[...],
                          preferred_element_type=jnp.float32) + b_ref[...])


# ------------------------------ layer wrappers -------------------------------

def conv_bn_relu(act, w_oihw, gamma, beta, k, pad):
    """act: (Cin_p, N, H, W) bf16 -> (Cout_p, N, Ho, Wo) bf16."""
    Cin_p, N, H, W = act.shape
    Cout, Cin = w_oihw.shape[0], w_oihw.shape[1]
    Cout_p = _round_up(Cout, 8)
    Hf, Wf = H + 2 * pad, W + 2 * pad
    Ho, Wo = Hf - k + 1, Wf - k + 1
    Mframe = N * Hf * Wf
    Mout = _round_up(Mframe, 128)
    max_off = (k - 1) * (Wf + 1)
    Mx = _round_up(Mout + max_off, 128)

    x = act
    if pad:
        x = jnp.pad(x, ((0, 0), (0, 0), (pad, pad), (pad, pad)))
    x = jnp.pad(x.reshape(Cin_p, Mframe), ((0, 0), (0, Mx - Mframe)))

    wpad = jnp.zeros((Cout_p, Cin_p, k, k),
                     jnp.float32).at[:Cout, :Cin].set(w_oihw)
    wt = jnp.transpose(wpad, (2, 3, 0, 1)).reshape(k * k, Cout_p, Cin_p)
    wt = wt.astype(jnp.bfloat16)
    g = jnp.zeros((Cout_p, 1), jnp.float32).at[:Cout, 0].set(gamma)
    b = jnp.zeros((Cout_p, 1), jnp.float32).at[:Cout, 0].set(beta)

    # Validity mask over frame-flat output positions (h < Ho, w < Wo).
    midx = jnp.arange(Mout, dtype=jnp.int32)
    mask = ((midx < Mframe)
            & (((midx // Wf) % Hf) < Ho)
            & ((midx % Wf) < Wo)).astype(jnp.float32)[None, :]

    kern = functools.partial(_conv_bn_relu_kernel, k=k, wf=Wf,
                             m_valid=float(N * Ho * Wo))
    out = pl.pallas_call(
        kern,
        out_shape=jax.ShapeDtypeStruct((Cout_p, Mout), jnp.bfloat16),
        scratch_shapes=[pltpu.VMEM((Cout_p, Mout), jnp.float32)],
        compiler_params=_cparams(),
    )(x, wt, g, b, mask)
    # TODO(synk): for large batches, chunk the M axis over a grid (the VMEM-
    # resident y slab grows as ~Cout_p * N * Hf * Wf * 4 bytes).
    return out[:, :Mframe].reshape(Cout_p, N, Hf, Wf)[:, :, :Ho, :Wo]


def fc_layer(a5, wf_, bf_):
    """a5: (24, N, 10, 10) bf16.  PyTorch flatten order is (c, h, w)-major."""
    N = a5.shape[1]
    F = 24 * 10 * 10
    feat_t = jnp.transpose(a5, (0, 2, 3, 1)).reshape(F, N)   # tiny bf16 transpose
    Np = _round_up(N, 128)
    feat_t = jnp.pad(feat_t, ((0, 0), (0, Np - N)))
    Op = _round_up(10, 8)
    wmat = jnp.zeros((Op, F), jnp.float32).at[:10].set(wf_).astype(jnp.bfloat16)
    bias = jnp.zeros((Op, 1), jnp.float32).at[:10, 0].set(bf_)
    out_t = pl.pallas_call(
        _fc_kernel,
        out_shape=jax.ShapeDtypeStruct((Op, Np), jnp.float32),
        compiler_params=_cparams(),
    )(wmat, feat_t, bias)
    return jnp.transpose(out_t[:10, :N], (1, 0))


# ------------------------------ forward pass ---------------------------------

def network_forward(x_nchw, p):
    act = jnp.transpose(x_nchw, (1, 0, 2, 3))                     # (3,  N, 32, 32)
    cpad = _round_up(act.shape[0], 8) - act.shape[0]
    act = jnp.pad(act, ((0, cpad), (0, 0), (0, 0), (0, 0)))       # (8,  N, 32, 32)
    act = act.astype(jnp.bfloat16)
    act = conv_bn_relu(act, p["w1"], p["g1"], p["be1"], 3, 0)     # (8,  N, 30, 30)
    act = conv_bn_relu(act, p["w2"], p["g2"], p["be2"], 3, 0)     # (16, N, 28, 28)
    # 2x2 stride-2 max-pool on the tiny bf16 map (XLA glue).
    # TODO(synk): fold the pool into conv2's kernel epilogue.
    act = jnp.maximum(
        jnp.maximum(act[:, :, 0::2, 0::2], act[:, :, 0::2, 1::2]),
        jnp.maximum(act[:, :, 1::2, 0::2], act[:, :, 1::2, 1::2]))  # (16, N, 14, 14)
    act = conv_bn_relu(act, p["w4"], p["g4"], p["be4"], 5, 1)     # (24, N, 12, 12)
    act = conv_bn_relu(act, p["w5"], p["g5"], p["be5"], 5, 1)     # (24, N, 10, 10)
    return fc_layer(act, p["wf"], p["bf"])                        # (N, 10)


def init_params(key):
    ks = jax.random.split(key, 6)

    def conv_w(k, o, i, s):
        return 0.1 * jax.random.normal(k, (o, i, s, s), jnp.float32)

    # Conv biases are omitted: with training-mode BatchNorm the additive conv
    # bias cancels exactly in (y - mean), so it has no effect on the output.
    return {
        "w1": conv_w(ks[0], 6, 3, 3),
        "g1": jnp.ones((6,), jnp.float32), "be1": jnp.zeros((6,), jnp.float32),
        "w2": conv_w(ks[1], 12, 6, 3),
        "g2": jnp.ones((12,), jnp.float32), "be2": jnp.zeros((12,), jnp.float32),
        "w4": conv_w(ks[2], 24, 12, 5),
        "g4": jnp.ones((24,), jnp.float32), "be4": jnp.zeros((24,), jnp.float32),
        "w5": conv_w(ks[3], 24, 24, 5),
        "g5": jnp.ones((24,), jnp.float32), "be5": jnp.zeros((24,), jnp.float32),
        "wf": 0.02 * jax.random.normal(ks[4], (10, 2400), jnp.float32),
        "bf": 0.01 * jax.random.normal(ks[5], (10,), jnp.float32),
    }


if __name__ == "__main__":
    key = jax.random.PRNGKey(0)
    kx, kp = jax.random.split(key)
    # 32x32 spatial input so the FC sees 24*10*10 features (as the module implies)
    x = jax.random.normal(kx, (2, 3, 32, 32), jnp.float32)
    params = init_params(kp)

    out = jax.jit(network_forward)(x, params)
    out = jax.block_until_ready(out)
    assert out.shape == (2, 10)
    assert bool(jnp.all(jnp.isfinite(out)))
    print("KERNEL_OK")
</pallas_src>

<mosaic_0001>
module attributes {stable_mosaic.version = 11 : i64} {
  func.func @_conv_bn_relu_kernel(%arg0: memref<8x2176xbf16, #tpu.memory_space<vmem>>, %arg1: memref<9x8x8xbf16, #tpu.memory_space<vmem>>, %arg2: memref<8x1xf32, #tpu.memory_space<vmem>>, %arg3: memref<8x1xf32, #tpu.memory_space<vmem>>, %arg4: memref<1x2048xf32, #tpu.memory_space<vmem>>, %arg5: memref<8x2048xbf16, #tpu.memory_space<vmem>>, %arg6: memref<8x2048xf32, #tpu.memory_space<vmem>>) attributes {dimension_semantics = [], scalar_prefetch = 0 : i64, scratch_operands = 1 : i64, tpu.core_type = #tpu.core_type<tc>} {
    %cst = arith.constant 0.000000e+00 : f32
    %0 = vector.broadcast %cst : f32 to vector<8x1xf32>
    %cst_0 = arith.constant 0.000000e+00 : f32
    %1 = vector.broadcast %cst_0 : f32 to vector<8x1xf32>
    %cst_1 = arith.constant 0.000000e+00 : f32
    %2 = vector.broadcast %cst_1 : f32 to vector<8x512xf32>
    %c0 = arith.constant 0 : index
    %c0_2 = arith.constant 0 : index
    %3 = vector.load %arg0[%c0, %c0_2] : memref<8x2176xbf16, #tpu.memory_space<vmem>>, vector<8x512xbf16>
    %c0_3 = arith.constant 0 : index
    %c0_4 = arith.constant 0 : index
    %c0_5 = arith.constant 0 : index
    %4 = vector.load %arg1[%c0_3, %c0_4, %c0_5] : memref<9x8x8xbf16, #tpu.memory_space<vmem>>, vector<1x8x8xbf16>
    %5 = vector.shape_cast %4 : vector<1x8x8xbf16> to vector<8x8xbf16>
    %cst_6 = arith.constant dense<0.000000e+00> : vector<8x512xf32>
    %6 = tpu.matmul %5, %3, %cst_6 {dimension_numbers = #tpu.dot_dimension_numbers<[1], [0], [0], [1], [0, 0, 1, 1], [], []>} : vector<8x8xbf16>, vector<8x512xbf16>, vector<8x512xf32> -> vector<8x512xf32>
    %7 = arith.addf %2, %6 : vector<8x512xf32>
    %c0_7 = arith.constant 0 : index
    %c1 = arith.constant 1 : index
    %8 = vector.load %arg0[%c0_7, %c1] : memref<8x2176xbf16, #tpu.memory_space<vmem>>, vector<8x512xbf16>
    %c1_8 = arith.constant 1 : index
    %c0_9 = arith.constant 0 : index
    %c0_10 = arith.constant 0 : index
    %9 = vector.load %arg1[%c1_8, %c0_9, %c0_10] : memref<9x8x8xbf16, #tpu.memory_space<vmem>>, vector<1x8x8xbf16>
    %10 = vector.shape_cast %9 : vector<1x8x8xbf16> to vector<8x8xbf16>
    %cst_11 = arith.constant dense<0.000000e+00> : vector<8x512xf32>
    %11 = tpu.matmul %10, %8, %cst_11 {dimension_numbers = #tpu.dot_dimension_numbers<[1], [0], [0], [1], [0, 0, 1, 1], [], []>} : vector<8x8xbf16>, vector<8x512xbf16>, vector<8x512xf32> -> vector<8x512xf32>
    %12 = arith.addf %7, %11 : vector<8x512xf32>
    %c0_12 = arith.constant 0 : index
    %c2 = arith.constant 2 : index
    %13 = vector.load %arg0[%c0_12, %c2] : memref<8x2176xbf16, #tpu.memory_space<vmem>>, vector<8x512xbf16>
    %c2_13 = arith.constant 2 : index
    %c0_14 = arith.constant 0 : index
    %c0_15 = arith.constant 0 : index
    %14 = vector.load %arg1[%c2_13, %c0_14, %c0_15] : memref<9x8x8xbf16, #tpu.memory_space<vmem>>, vector<1x8x8xbf16>
    %15 = vector.shape_cast %14 : vector<1x8x8xbf16> to vector<8x8xbf16>
    %cst_16 = arith.constant dense<0.000000e+00> : vector<8x512xf32>
    %16 = tpu.matmul %15, %13, %cst_16 {dimension_numbers = #tpu.dot_dimension_numbers<[1], [0], [0], [1], [0, 0, 1, 1], [], []>} : vector<8x8xbf16>, vector<8x512xbf16>, vector<8x512xf32> -> vector<8x512xf32>
    %17 = arith.addf %12, %16 : vector<8x512xf32>
    %c0_17 = arith.constant 0 : index
    %c32 = arith.constant 32 : index
    %18 = vector.load %arg0[%c0_17, %c32] : memref<8x2176xbf16, #tpu.memory_space<vmem>>, vector<8x512xbf16>
    %c3 = arith.constant 3 : index
    %c0_18 = arith.constant 0 : index
    %c0_19 = arith.constant 0 : index
    %19 = vector.load %arg1[%c3, %c0_18, %c0_19] : memref<9x8x8xbf16, #tpu.memory_space<vmem>>, vector<1x8x8xbf16>
    %20 = vector.shape_cast %19 : vector<1x8x8xbf16> to vector<8x8xbf16>
    %cst_20 = arith.constant dense<0.000000e+00> : vector<8x512xf32>
    %21 = tpu.matmul %20, %18, %cst_20 {dimension_numbers = #tpu.dot_dimension_numbers<[1], [0], [0], [1], [0, 0, 1, 1], [], []>} : vector<8x8xbf16>, vector<8x512xbf16>, vector<8x512xf32> -> vector<8x512xf32>
    %22 = arith.addf %17, %21 : vector<8x512xf32>
    %c0_21 = arith.constant 0 : index
    %c33 = arith.constant 33 : index
    %23 = vector.load %arg0[%c0_21, %c33] : memref<8x2176xbf16, #tpu.memory_space<vmem>>, vector<8x512xbf16>
    %c4 = arith.constant 4 : index
    %c0_22 = arith.constant 0 : index
    %c0_23 = arith.constant 0 : index
    %24 = vector.load %arg1[%c4, %c0_22, %c0_23] : memref<9x8x8xbf16, #tpu.memory_space<vmem>>, vector<1x8x8xbf16>
    %25 = vector.shape_cast %24 : vector<1x8x8xbf16> to vector<8x8xbf16>
    %cst_24 = arith.constant dense<0.000000e+00> : vector<8x512xf32>
    %26 = tpu.matmul %25, %23, %cst_24 {dimension_numbers = #tpu.dot_dimension_numbers<[1], [0], [0], [1], [0, 0, 1, 1], [], []>} : vector<8x8xbf16>, vector<8x512xbf16>, vector<8x512xf32> -> vector<8x512xf32>
    %27 = arith.addf %22, %26 : vector<8x512xf32>
    %c0_25 = arith.constant 0 : index
    %c34 = arith.constant 34 : index
    %28 = vector.load %arg0[%c0_25, %c34] : memref<8x2176xbf16, #tpu.memory_space<vmem>>, vector<8x512xbf16>
    %c5 = arith.constant 5 : index
    %c0_26 = arith.constant 0 : index
    %c0_27 = arith.constant 0 : index
    %29 = vector.load %arg1[%c5, %c0_26, %c0_27] : memref<9x8x8xbf16, #tpu.memory_space<vmem>>, vector<1x8x8xbf16>
    %30 = vector.shape_cast %29 : vector<1x8x8xbf16> to vector<8x8xbf16>
    %cst_28 = arith.constant dense<0.000000e+00> : vector<8x512xf32>
    %31 = tpu.matmul %30, %28, %cst_28 {dimension_numbers = #tpu.dot_dimension_numbers<[1], [0], [0], [1], [0, 0, 1, 1], [], []>} : vector<8x8xbf16>, vector<8x512xbf16>, vector<8x512xf32> -> vector<8x512xf32>
    %32 = arith.addf %27, %31 : vector<8x512xf32>
    %c0_29 = arith.constant 0 : index
    %c64 = arith.constant 64 : index
    %33 = vector.load %arg0[%c0_29, %c64] : memref<8x2176xbf16, #tpu.memory_space<vmem>>, vector<8x512xbf16>
    %c6 = arith.constant 6 : index
    %c0_30 = arith.constant 0 : index
    %c0_31 = arith.constant 0 : index
    %34 = vector.load %arg1[%c6, %c0_30, %c0_31] : memref<9x8x8xbf16, #tpu.memory_space<vmem>>, vector<1x8x8xbf16>
    %35 = vector.shape_cast %34 : vector<1x8x8xbf16> to vector<8x8xbf16>
    %cst_32 = arith.constant dense<0.000000e+00> : vector<8x512xf32>
    %36 = tpu.matmul %35, %33, %cst_32 {dimension_numbers = #tpu.dot_dimension_numbers<[1], [0], [0], [1], [0, 0, 1, 1], [], []>} : vector<8x8xbf16>, vector<8x512xbf16>, vector<8x512xf32> -> vector<8x512xf32>
    %37 = arith.addf %32, %36 : vector<8x512xf32>
    %c0_33 = arith.constant 0 : index
    %c65 = arith.constant 65 : index
    %38 = vector.load %arg0[%c0_33, %c65] : memref<8x2176xbf16, #tpu.memory_space<vmem>>, vector<8x512xbf16>
    %c7 = arith.constant 7 : index
    %c0_34 = arith.constant 0 : index
    %c0_35 = arith.constant 0 : index
    %39 = vector.load %arg1[%c7, %c0_34, %c0_35] : memref<9x8x8xbf16, #tpu.memory_space<vmem>>, vector<1x8x8xbf16>
    %40 = vector.shape_cast %39 : vector<1x8x8xbf16> to vector<8x8xbf16>
    %cst_36 = arith.constant dense<0.000000e+00> : vector<8x512xf32>
    %41 = tpu.matmul %40, %38, %cst_36 {dimension_numbers = #tpu.dot_dimension_numbers<[1], [0], [0], [1], [0, 0, 1, 1], [], []>} : vector<8x8xbf16>, vector<8x512xbf16>, vector<8x512xf32> -> vector<8x512xf32>
    %42 = arith.addf %37, %41 : vector<8x512xf32>
    %c0_37 = arith.constant 0 : index
    %c66 = arith.constant 66 : index
    %43 = vector.load %arg0[%c0_37, %c66] : memref<8x2176xbf16, #tpu.memory_space<vmem>>, vector<8x512xbf16>
    %c8 = arith.constant 8 : index
    %c0_38 = arith.constant 0 : index
    %c0_39 = arith.constant 0 : index
    %44 = vector.load %arg1[%c8, %c0_38, %c0_39] : memref<9x8x8xbf16, #tpu.memory_space<vmem>>, vector<1x8x8xbf16>
    %45 = vector.shape_cast %44 : vector<1x8x8xbf16> to vector<8x8xbf16>
    %cst_40 = arith.constant dense<0.000000e+00> : vector<8x512xf32>
    %46 = tpu.matmul %45, %43, %cst_40 {dimension_numbers = #tpu.dot_dimension_numbers<[1], [0], [0], [1], [0, 0, 1, 1], [], []>} : vector<8x8xbf16>, vector<8x512xbf16>, vector<8x512xf32> -> vector<8x512xf32>
    %47 = arith.addf %42, %46 : vector<8x512xf32>
    %c0_41 = arith.constant 0 : index
    %c0_42 = arith.constant 0 : index
    %48 = vector.load %arg6[%c0_41, %c0_42] : memref<8x2048xf32, #tpu.memory_space<vmem>>, vector<8x512xf32>
    tpu.vector_store %arg6[%c0_41, %c0_42], %47 {strides = array<i32>} : memref<8x2048xf32, #tpu.memory_space<vmem>>, vector<8x512xf32>,
    %c0_43 = arith.constant 0 : index
    %c0_44 = arith.constant 0 : index
    %49 = vector.load %arg4[%c0_43, %c0_44] : memref<1x2048xf32, #tpu.memory_space<vmem>>, vector<1x512xf32>
    %50 = vector.broadcast %49 : vector<1x512xf32> to vector<8x512xf32>
    %51 = arith.mulf %47, %50 : vector<8x512xf32>
    %cst_45 = arith.constant dense<0.000000e+00> : vector<8xf32>
    %52 = vector.multi_reduction <add>, %51, %cst_45 [1] : vector<8x512xf32> to vector<8xf32>
    %53 = vector.shape_cast %52 : vector<8xf32> to vector<8x1xf32>
    %54 = arith.addf %0, %53 : vector<8x1xf32>
    %55 = arith.mulf %51, %47 : vector<8x512xf32>
    %cst_46 = arith.constant dense<0.000000e+00> : vector<8xf32>
    %56 = vector.multi_reduction <add>, %55, %cst_46 [1] : vector<8x512xf32> to vector<8xf32>
    %57 = vector.shape_cast %56 : vector<8xf32> to vector<8x1xf32>
    %58 = arith.addf %1, %57 : vector<8x1xf32>
    %cst_47 = arith.constant 0.000000e+00 : f32
    %59 = vector.broadcast %cst_47 : f32 to vector<8x512xf32>
    %c0_48 = arith.constant 0 : index
    %c512 = arith.constant 512 : index
    %60 = vector.load %arg0[%c0_48, %c512] : memref<8x2176xbf16, #tpu.memory_space<vmem>>, vector<8x512xbf16>
    %c0_49 = arith.constant 0 : index
    %c0_50 = arith.constant 0 : index
    %c0_51 = arith.constant 0 : index
    %61 = vector.load %arg1[%c0_49, %c0_50, %c0_51] : memref<9x8x8xbf16, #tpu.memory_space<vmem>>, vector<1x8x8xbf16>
    %62 = vector.shape_cast %61 : vector<1x8x8xbf16> to vector<8x8xbf16>
    %cst_52 = arith.constant dense<0.000000e+00> : vector<8x512xf32>
    %63 = tpu.matmul %62, %60, %cst_52 {dimension_numbers = #tpu.dot_dimension_numbers<[1], [0], [0], [1], [0, 0, 1, 1], [], []>} : vector<8x8xbf16>, vector<8x512xbf16>, vector<8x512xf32> -> vector<8x512xf32>
    %64 = arith.addf %59, %63 : vector<8x512xf32>
    %c0_53 = arith.constant 0 : index
    %c513 = arith.constant 513 : index
    %65 = vector.load %arg0[%c0_53, %c513] : memref<8x2176xbf16, #tpu.memory_space<vmem>>, vector<8x512xbf16>
    %c1_54 = arith.constant 1 : index
    %c0_55 = arith.constant 0 : index
    %c0_56 = arith.constant 0 : index
    %66 = vector.load %arg1[%c1_54, %c0_55, %c0_56] : memref<9x8x8xbf16, #tpu.memory_space<vmem>>, vector<1x8x8xbf16>
    %67 = vector.shape_cast %66 : vector<1x8x8xbf16> to vector<8x8xbf16>
    %cst_57 = arith.constant dense<0.000000e+00> : vector<8x512xf32>
    %68 = tpu.matmul %67, %65, %cst_57 {dimension_numbers = #tpu.dot_dimension_numbers<[1], [0], [0], [1], [0, 0, 1, 1], [], []>} : vector<8x8xbf16>, vector<8x512xbf16>, vector<8x512xf32> -> vector<8x512xf32>
    %69 = arith.addf %64, %68 : vector<8x512xf32>
    %c0_58 = arith.constant 0 : index
    %c514 = arith.constant 514 : index
    %70 = vector.load %arg0[%c0_58, %c514] : memref<8x2176xbf16, #tpu.memory_space<vmem>>, vector<8x512xbf16>
    %c2_59 = arith.constant 2 : index
    %c0_60 = arith.constant 0 : index
    %c0_61 = arith.constant 0 : index
    %71 = vector.load %arg1[%c2_59, %c0_60, %c0_61] : memref<9x8x8xbf16, #tpu.memory_space<vmem>>, vector<1x8x8xbf16>
    %72 = vector.shape_cast %71 : vector<1x8x8xbf16> to vector<8x8xbf16>
    %cst_62 = arith.constant dense<0.000000e+00> : vector<8x512xf32>
    %73 = tpu.matmul %72, %70, %cst_62 {dimension_numbers = #tpu.dot_dimension_numbers<[1], [0], [0], [1], [0, 0, 1, 1], [], []>} : vector<8x8xbf16>, vector<8x512xbf16>, vector<8x512xf32> -> vector<8x512xf32>
    %74 = arith.addf %69, %73 : vector<8x512xf32>
    %c0_63 = arith.constant 0 : index
    %c544 = arith.constant 544 : index
    %75 = vector.load %arg0[%c0_63, %c544] : memref<8x2176xbf16, #tpu.memory_space<vmem>>, vector<8x512xbf16>
    %c3_64 = arith.constant 3 : index
    %c0_65 = arith.constant 0 : index
    %c0_66 = arith.constant 0 : index
    %76 = vector.load %arg1[%c3_64, %c0_65, %c0_66] : memref<9x8x8xbf16, #tpu.memory_space<vmem>>, vector<1x8x8xbf16>
    %77 = vector.shape_cast %76 : vector<1x8x8xbf16> to vector<8x8xbf16>
    %cst_67 = arith.constant dense<0.000000e+00> : vector<8x512xf32>
    %78 = tpu.matmul %77, %75, %cst_67 {dimension_numbers = #tpu.dot_dimension_numbers<[1], [0], [0], [1], [0, 0, 1, 1], [], []>} : vector<8x8xbf16>, vector<8x512xbf16>, vector<8x512xf32> -> vector<8x512xf32>
    %79 = arith.addf %74, %78 : vector<8x512xf32>
    %c0_68 = arith.constant 0 : index
    %c545 = arith.constant 545 : index
    %80 = vector.load %arg0[%c0_68, %c545] : memref<8x2176xbf16, #tpu.memory_space<vmem>>, vector<8x512xbf16>
    %c4_69 = arith.constant 4 : index
    %c0_70 = arith.constant 0 : index
    %c0_71 = arith.constant 0 : index
    %81 = vector.load %arg1[%c4_69, %c0_70, %c0_71] : memref<9x8x8xbf16, #tpu.memory_space<vmem>>, vector<1x8x8xbf16>
    %82 = vector.shape_cast %81 : vector<1x8x8xbf16> to vector<8x8xbf16>
    %cst_72 = arith.constant dense<0.000000e+00> : vector<8x512xf32>
    %83 = tpu.matmul %82, %80, %cst_72 {dimension_numbers = #tpu.dot_dimension_numbers<[1], [0], [0], [1], [0, 0, 1, 1], [], []>} : vector<8x8xbf16>, vector<8x512xbf16>, vector<8x512xf32> -> vector<8x512xf32>
    %84 = arith.addf %79, %83 : vector<8x512xf32>
    %c0_73 = arith.constant 0 : index
    %c546 = arith.constant 546 : index
    %85 = vector.load %arg0[%c0_73, %c546] : memref<8x2176xbf16, #tpu.memory_space<vmem>>, vector<8x512xbf16>
    %c5_74 = arith.constant 5 : index
    %c0_75 = arith.constant 0 : index
    %c0_76 = arith.constant 0 : index
    %86 = vector.load %arg1[%c5_74, %c0_75, %c0_76] : memref<9x8x8xbf16, #tpu.memory_space<vmem>>, vector<1x8x8xbf16>
    %87 = vector.shape_cast %86 : vector<1x8x8xbf16> to vector<8x8xbf16>
    %cst_77 = arith.constant dense<0.000000e+00> : vector<8x512xf32>
    %88 = tpu.matmul %87, %85, %cst_77 {dimension_numbers = #tpu.dot_dimension_numbers<[1], [0], [0], [1], [0, 0, 1, 1], [], []>} : vector<8x8xbf16>, vector<8x512xbf16>, vector<8x512xf32> -> vector<8x512xf32>
    %89 = arith.addf %84, %88 : vector<8x512xf32>
    %c0_78 = arith.constant 0 : index
    %c576 = arith.constant 576 : index
    %90 = vector.load %arg0[%c0_78, %c576] : memref<8x2176xbf16, #tpu.memory_space<vmem>>, vector<8x512xbf16>
    %c6_79 = arith.constant 6 : index
    %c0_80 = arith.constant 0 : index
    %c0_81 = arith.constant 0 : index
    %91 = vector.load %arg1[%c6_79, %c0_80, %c0_81] : memref<9x8x8xbf16, #tpu.memory_space<vmem>>, vector<1x8x8xbf16>
    %92 = vector.shape_cast %91 : vector<1x8x8xbf16> to vector<8x8xbf16>
    %cst_82 = arith.constant dense<0.000000e+00> : vector<8x512xf32>
    %93 = tpu.matmul %92, %90, %cst_82 {dimension_numbers = #tpu.dot_dimension_numbers<[1], [0], [0], [1], [0, 0, 1, 1], [], []>} : vector<8x8xbf16>, vector<8x512xbf16>, vector<8x512xf32> -> vector<8x512xf32>
    %94 = arith.addf %89, %93 : vector<8x512xf32>
    %c0_83 = arith.constant 0 : index
    %c577 = arith.constant 577 : index
    %95 = vector.load %arg0[%c0_83, %c577] : memref<8x2176xbf16, #tpu.memory_space<vmem>>, vector<8x512xbf16>
    %c7_84 = arith.constant 7 : index
    %c0_85 = arith.constant 0 : index
    %c0_86 = arith.constant 0 : index
    %96 = vector.load %arg1[%c7_84, %c0_85, %c0_86] : memref<9x8x8xbf16, #tpu.memory_space<vmem>>, vector<1x8x8xbf16>
    %97 = vector.shape_cast %96 : vector<1x8x8xbf16> to vector<8x8xbf16>
    %cst_87 = arith.constant dense<0.000000e+00> : vector<8x512xf32>
    %98 = tpu.matmul %97, %95, %cst_87 {dimension_numbers = #tpu.dot_dimension_numbers<[1], [0], [0], [1], [0, 0, 1, 1], [], []>} : vector<8x8xbf16>, vector<8x512xbf16>, vector<8x512xf32> -> vector<8x512xf32>
    %99 = arith.addf %94, %98 : vector<8x512xf32>
    %c0_88 = arith.constant 0 : index
    %c578 = arith.constant 578 : index
    %100 = vector.load %arg0[%c0_88, %c578] : memref<8x2176xbf16, #tpu.memory_space<vmem>>, vector<8x512xbf16>
    %c8_89 = arith.constant 8 : index
    %c0_90 = arith.constant 0 : index
    %c0_91 = arith.constant 0 : index
    %101 = vector.load %arg1[%c8_89, %c0_90, %c0_91] : memref<9x8x8xbf16, #tpu.memory_space<vmem>>, vector<1x8x8xbf16>
    %102 = vector.shape_cast %101 : vector<1x8x8xbf16> to vector<8x8xbf16>
    %cst_92 = arith.constant dense<0.000000e+00> : vector<8x512xf32>
    %103 = tpu.matmul %102, %100, %cst_92 {dimension_numbers = #tpu.dot_dimension_numbers<[1], [0], [0], [1], [0, 0, 1, 1], [], []>} : vector<8x8xbf16>, vector<8x512xbf16>, vector<8x512xf32> -> vector<8x512xf32>
    %104 = arith.addf %99, %103 : vector<8x512xf32>
    %c0_93 = arith.constant 0 : index
    %c512_94 = arith.constant 512 : index
    %105 = vector.load %arg6[%c0_93, %c512_94] : memref<8x2048xf32, #tpu.memory_space<vmem>>, vector<8x512xf32>
    tpu.vector_store %arg6[%c0_93, %c512_94], %104 {strides = array<i32>} : memref<8x2048xf32, #tpu.memory_space<vmem>>, vector<8x512xf32>,
    %c0_95 = arith.constant 0 : index
    %c512_96 = arith.constant 512 : index
    %106 = vector.load %arg4[%c0_95, %c512_96] : memref<1x2048xf32, #tpu.memory_space<vmem>>, vector<1x512xf32>
    %107 = vector.broadcast %106 : vector<1x512xf32> to vector<8x512xf32>
    %108 = arith.mulf %104, %107 : vector<8x512xf32>
    %cst_97 = arith.constant dense<0.000000e+00> : vector<8xf32>
    %109 = vector.multi_reduction <add>, %108, %cst_97 [1] : vector<8x512xf32> to vector<8xf32>
    %110 = vector.shape_cast %109 : vector<8xf32> to vector<8x1xf32>
    %111 = arith.addf %54, %110 : vector<8x1xf32>
    %112 = arith.mulf %108, %104 : vector<8x512xf32>
    %cst_98 = arith.constant dense<0.000000e+00> : vector<8xf32>
    %113 = vector.multi_reduction <add>, %112, %cst_98 [1] : vector<8x512xf32> to vector<8xf32>
    %114 = vector.shape_cast %113 : vector<8xf32> to vector<8x1xf32>
    %115 = arith.addf %58, %114 : vector<8x1xf32>
    %cst_99 = arith.constant 0.000000e+00 : f32
    %116 = vector.broadcast %cst_99 : f32 to vector<8x512xf32>
    %c0_100 = arith.constant 0 : index
    %c1024 = arith.constant 1024 : index
    %117 = vector.load %arg0[%c0_100, %c1024] : memref<8x2176xbf16, #tpu.memory_space<vmem>>, vector<8x512xbf16>
    %c0_101 = arith.constant 0 : index
    %c0_102 = arith.constant 0 : index
    %c0_103 = arith.constant 0 : index
    %118 = vector.load %arg1[%c0_101, %c0_102, %c0_103] : memref<9x8x8xbf16, #tpu.memory_space<vmem>>, vector<1x8x8xbf16>
    %119 = vector.shape_cast %118 : vector<1x8x8xbf16> to vector<8x8xbf16>
    %cst_104 = arith.constant dense<0.000000e+00> : vector<8x512xf32>
    %120 = tpu.matmul %119, %117, %cst_104 {dimension_numbers = #tpu.dot_dimension_numbers<[1], [0], [0], [1], [0, 0, 1, 1], [], []>} : vector<8x8xbf16>, vector<8x512xbf16>, vector<8x512xf32> -> vector<8x512xf32>
    %121 = arith.addf %116, %120 : vector<8x512xf32>
    %c0_105 = arith.constant 0 : index
    %c1025 = arith.constant 1025 : index
    %122 = vector.load %arg0[%c0_105, %c1025] : memref<8x2176xbf16, #tpu.memory_space<vmem>>, vector<8x512xbf16>
    %c1_106 = arith.constant 1 : index
    %c0_107 = arith.constant 0 : index
    %c0_108 = arith.constant 0 : index
    %123 = vector.load %arg1[%c1_106, %c0_107, %c0_108] : memref<9x8x8xbf16, #tpu.memory_space<vmem>>, vector<1x8x8xbf16>
    %124 = vector.shape_cast %123 : vector<1x8x8xbf16> to vector<8x8xbf16>
    %cst_109 = arith.constant dense<0.000000e+00> : vector<8x512xf32>
    %125 = tpu.matmul %124, %122, %cst_109 {dimension_numbers = #tpu.dot_dimension_numbers<[1], [0], [0], [1], [0, 0, 1, 1], [], []>} : vector<8x8xbf16>, vector<8x512xbf16>, vector<8x512xf32> -> vector<8x512xf32>
    %126 = arith.addf %121, %125 : vector<8x512xf32>
    %c0_110 = arith.constant 0 : index
    %c1026 = arith.constant 1026 : index
    %127 = vector.load %arg0[%c0_110, %c1026] : memref<8x2176xbf16, #tpu.memory_space<vmem>>, vector<8x512xbf16>
    %c2_111 = arith.constant 2 : index
    %c0_112 = arith.constant 0 : index
    %c0_113 = arith.constant 0 : index
    %128 = vector.load %arg1[%c2_111, %c0_112, %c0_113] : memref<9x8x8xbf16, #tpu.memory_space<vmem>>, vector<1x8x8xbf16>
    %129 = vector.shape_cast %128 : vector<1x8x8xbf16> to vector<8x8xbf16>
    %cst_114 = arith.constant dense<0.000000e+00> : vector<8x512xf32>
    %130 = tpu.matmul %129, %127, %cst_114 {dimension_numbers = #tpu.dot_dimension_numbers<[1], [0], [0], [1], [0, 0, 1, 1], [], []>} : vector<8x8xbf16>, vector<8x512xbf16>, vector<8x512xf32> -> vector<8x512xf32>
    %131 = arith.addf %126, %130 : vector<8x512xf32>
    %c0_115 = arith.constant 0 : index
    %c1056 = arith.constant 1056 : index
    %132 = vector.load %arg0[%c0_115, %c1056] : memref<8x2176xbf16, #tpu.memory_space<vmem>>, vector<8x512xbf16>
    %c3_116 = arith.constant 3 : index
    %c0_117 = arith.constant 0 : index
    %c0_118 = arith.constant 0 : index
    %133 = vector.load %arg1[%c3_116, %c0_117, %c0_118] : memref<9x8x8xbf16, #tpu.memory_space<vmem>>, vector<1x8x8xbf16>
    %134 = vector.shape_cast %133 : vector<1x8x8xbf16> to vector<8x8xbf16>
    %cst_119 = arith.constant dense<0.000000e+00> : vector<8x512xf32>
    %135 = tpu.matmul %134, %132, %cst_119 {dimension_numbers = #tpu.dot_dimension_numbers<[1], [0], [0], [1], [0, 0, 1, 1], [], []>} : vector<8x8xbf16>, vector<8x512xbf16>, vector<8x512xf32> -> vector<8x512xf32>
    %136 = arith.addf %131, %135 : vector<8x512xf32>
    %c0_120 = arith.constant 0 : index
    %c1057 = arith.constant 1057 : index
    %137 = vector.load %arg0[%c0_120, %c1057] : memref<8x2176xbf16, #tpu.memory_space<vmem>>, vector<8x512xbf16>
    %c4_121 = arith.constant 4 : index
    %c0_122 = arith.constant 0 : index
    %c0_123 = arith.constant 0 : index
    %138 = vector.load %arg1[%c4_121, %c0_122, %c0_123] : memref<9x8x8xbf16, #tpu.memory_space<vmem>>, vector<1x8x8xbf16>
    %139 = vector.shape_cast %138 : vector<1x8x8xbf16> to vector<8x8xbf16>
    %cst_124 = arith.constant dense<0.000000e+00> : vector<8x512xf32>
    %140 = tpu.matmul %139, %137, %cst_124 {dimension_numbers = #tpu.dot_dimension_numbers<[1], [0], [0], [1], [0, 0, 1, 1], [], []>} : vector<8x8xbf16>, vector<8x512xbf16>, vector<8x512xf32> -> vector<8x512xf32>
    %141 = arith.addf %136, %140 : vector<8x512xf32>
    %c0_125 = arith.constant 0 : index
    %c1058 = arith.constant 1058 : index
    %142 = vector.load %arg0[%c0_125, %c1058] : memref<8x2176xbf16, #tpu.memory_space<vmem>>, vector<8x512xbf16>
    %c5_126 = arith.constant 5 : index
    %c0_127 = arith.constant 0 : index
    %c0_128 = arith.constant 0 : index
    %143 = vector.load %arg1[%c5_126, %c0_127, %c0_128] : memref<9x8x8xbf16, #tpu.memory_space<vmem>>, vector<1x8x8xbf16>
    %144 = vector.shape_cast %143 : vector<1x8x8xbf16> to vector<8x8xbf16>
    %cst_129 = arith.constant dense<0.000000e+00> : vector<8x512xf32>
    %145 = tpu.matmul %144, %142, %cst_129 {dimension_numbers = #tpu.dot_dimension_numbers<[1], [0], [0], [1], [0, 0, 1, 1], [], []>} : vector<8x8xbf16>, vector<8x512xbf16>, vector<8x512xf32> -> vector<8x512xf32>
    %146 = arith.addf %141, %145 : vector<8x512xf32>
    %c0_130 = arith.constant 0 : index
    %c1088 = arith.constant 1088 : index
    %147 = vector.load %arg0[%c0_130, %c1088] : memref<8x2176xbf16, #tpu.memory_space<vmem>>, vector<8x512xbf16>
    %c6_131 = arith.constant 6 : index
    %c0_132 = arith.constant 0 : index
    %c0_133 = arith.constant 0 : index
    %148 = vector.load %arg1[%c6_131, %c0_132, %c0_133] : memref<9x8x8xbf16, #tpu.memory_space<vmem>>, vector<1x8x8xbf16>
    %149 = vector.shape_cast %148 : vector<1x8x8xbf16> to vector<8x8xbf16>
    %cst_134 = arith.constant dense<0.000000e+00> : vector<8x512xf32>
    %150 = tpu.matmul %149, %147, %cst_134 {dimension_numbers = #tpu.dot_dimension_numbers<[1], [0], [0], [1], [0, 0, 1, 1], [], []>} : vector<8x8xbf16>, vector<8x512xbf16>, vector<8x512xf32> -> vector<8x512xf32>
    %151 = arith.addf %146, %150 : vector<8x512xf32>
    %c0_135 = arith.constant 0 : index
    %c1089 = arith.constant 1089 : index
    %152 = vector.load %arg0[%c0_135, %c1089] : memref<8x2176xbf16, #tpu.memory_space<vmem>>, vector<8x512xbf16>
    %c7_136 = arith.constant 7 : index
    %c0_137 = arith.constant 0 : index
    %c0_138 = arith.constant 0 : index
    %153 = vector.load %arg1[%c7_136, %c0_137, %c0_138] : memref<9x8x8xbf16, #tpu.memory_space<vmem>>, vector<1x8x8xbf16>
    %154 = vector.shape_cast %153 : vector<1x8x8xbf16> to vector<8x8xbf16>
    %cst_139 = arith.constant dense<0.000000e+00> : vector<8x512xf32>
    %155 = tpu.matmul %154, %152, %cst_139 {dimension_numbers = #tpu.dot_dimension_numbers<[1], [0], [0], [1], [0, 0, 1, 1], [], []>} : vector<8x8xbf16>, vector<8x512xbf16>, vector<8x512xf32> -> vector<8x512xf32>
    %156 = arith.addf %151, %155 : vector<8x512xf32>
    %c0_140 = arith.constant 0 : index
    %c1090 = arith.constant 1090 : index
    %157 = vector.load %arg0[%c0_140, %c1090] : memref<8x2176xbf16, #tpu.memory_space<vmem>>, vector<8x512xbf16>
    %c8_141 = arith.constant 8 : index
    %c0_142 = arith.constant 0 : index
    %c0_143 = arith.constant 0 : index
    %158 = vector.load %arg1[%c8_141, %c0_142, %c0_143] : memref<9x8x8xbf16, #tpu.memory_space<vmem>>, vector<1x8x8xbf16>
    %159 = vector.shape_cast %158 : vector<1x8x8xbf16> to vector<8x8xbf16>
    %cst_144 = arith.constant dense<0.000000e+00> : vector<8x512xf32>
    %160 = tpu.matmul %159, %157, %cst_144 {dimension_numbers = #tpu.dot_dimension_numbers<[1], [0], [0], [1], [0, 0, 1, 1], [], []>} : vector<8x8xbf16>, vector<8x512xbf16>, vector<8x512xf32> -> vector<8x512xf32>
    %161 = arith.addf %156, %160 : vector<8x512xf32>
    %c0_145 = arith.constant 0 : index
    %c1024_146 = arith.constant 1024 : index
    %162 = vector.load %arg6[%c0_145, %c1024_146] : memref<8x2048xf32, #tpu.memory_space<vmem>>, vector<8x512xf32>
    tpu.vector_store %arg6[%c0_145, %c1024_146], %161 {strides = array<i32>} : memref<8x2048xf32, #tpu.memory_space<vmem>>, vector<8x512xf32>,
    %c0_147 = arith.constant 0 : index
    %c1024_148 = arith.constant 1024 : index
    %163 = vector.load %arg4[%c0_147, %c1024_148] : memref<1x2048xf32, #tpu.memory_space<vmem>>, vector<1x512xf32>
    %164 = vector.broadcast %163 : vector<1x512xf32> to vector<8x512xf32>
    %165 = arith.mulf %161, %164 : vector<8x512xf32>
    %cst_149 = arith.constant dense<0.000000e+00> : vector<8xf32>
    %166 = vector.multi_reduction <add>, %165, %cst_149 [1] : vector<8x512xf32> to vector<8xf32>
    %167 = vector.shape_cast %166 : vector<8xf32> to vector<8x1xf32>
    %168 = arith.addf %111, %167 : vector<8x1xf32>
    %169 = arith.mulf %165, %161 : vector<8x512xf32>
    %cst_150 = arith.constant dense<0.000000e+00> : vector<8xf32>
    %170 = vector.multi_reduction <add>, %169, %cst_150 [1] : vector<8x512xf32> to vector<8xf32>
    %171 = vector.shape_cast %170 : vector<8xf32> to vector<8x1xf32>
    %172 = arith.addf %115, %171 : vector<8x1xf32>
    %cst_151 = arith.constant 0.000000e+00 : f32
    %173 = vector.broadcast %cst_151 : f32 to vector<8x512xf32>
    %c0_152 = arith.constant 0 : index
    %c1536 = arith.constant 1536 : index
    %174 = vector.load %arg0[%c0_152, %c1536] : memref<8x2176xbf16, #tpu.memory_space<vmem>>, vector<8x512xbf16>
    %c0_153 = arith.constant 0 : index
    %c0_154 = arith.constant 0 : index
    %c0_155 = arith.constant 0 : index
    %175 = vector.load %arg1[%c0_153, %c0_154, %c0_155] : memref<9x8x8xbf16, #tpu.memory_space<vmem>>, vector<1x8x8xbf16>
    %176 = vector.shape_cast %175 : vector<1x8x8xbf16> to vector<8x8xbf16>
    %cst_156 = arith.constant dense<0.000000e+00> : vector<8x512xf32>
    %177 = tpu.matmul %176, %174, %cst_156 {dimension_numbers = #tpu.dot_dimension_numbers<[1], [0], [0], [1], [0, 0, 1, 1], [], []>} : vector<8x8xbf16>, vector<8x512xbf16>, vector<8x512xf32> -> vector<8x512xf32>
    %178 = arith.addf %173, %177 : vector<8x512xf32>
    %c0_157 = arith.constant 0 : index
    %c1537 = arith.constant 1537 : index
    %179 = vector.load %arg0[%c0_157, %c1537] : memref<8x2176xbf16, #tpu.memory_space<vmem>>, vector<8x512xbf16>
    %c1_158 = arith.constant 1 : index
    %c0_159 = arith.constant 0 : index
    %c0_160 = arith.constant 0 : index
    %180 = vector.load %arg1[%c1_158, %c0_159, %c0_160] : memref<9x8x8xbf16, #tpu.memory_space<vmem>>, vector<1x8x8xbf16>
    %181 = vector.shape_cast %180 : vector<1x8x8xbf16> to vector<8x8xbf16>
    %cst_161 = arith.constant dense<0.000000e+00> : vector<8x512xf32>
    %182 = tpu.matmul %181, %179, %cst_161 {dimension_numbers = #tpu.dot_dimension_numbers<[1], [0], [0], [1], [0, 0, 1, 1], [], []>} : vector<8x8xbf16>, vector<8x512xbf16>, vector<8x512xf32> -> vector<8x512xf32>
    %183 = arith.addf %178, %182 : vector<8x512xf32>
    %c0_162 = arith.constant 0 : index
    %c1538 = arith.constant 1538 : index
    %184 = vector.load %arg0[%c0_162, %c1538] : memref<8x2176xbf16, #tpu.memory_space<vmem>>, vector<8x512xbf16>
    %c2_163 = arith.constant 2 : index
    %c0_164 = arith.constant 0 : index
    %c0_165 = arith.constant 0 : index
    %185 = vector.load %arg1[%c2_163, %c0_164, %c0_165] : memref<9x8x8xbf16, #tpu.memory_space<vmem>>, vector<1x8x8xbf16>
    %186 = vector.shape_cast %185 : vector<1x8x8xbf16> to vector<8x8xbf16>
    %cst_166 = arith.constant dense<0.000000e+00> : vector<8x512xf32>
    %187 = tpu.matmul %186, %184, %cst_166 {dimension_numbers = #tpu.dot_dimension_numbers<[1], [0], [0], [1], [0, 0, 1, 1], [], []>} : vector<8x8xbf16>, vector<8x512xbf16>, vector<8x512xf32> -> vector<8x512xf32>
    %188 = arith.addf %183, %187 : vector<8x512xf32>
    %c0_167 = arith.constant 0 : index
    %c1568 = arith.constant 1568 : index
    %189 = vector.load %arg0[%c0_167, %c1568] : memref<8x2176xbf16, #tpu.memory_space<vmem>>, vector<8x512xbf16>
    %c3_168 = arith.constant 3 : index
    %c0_169 = arith.constant 0 : index
    %c0_170 = arith.constant 0 : index
    %190 = vector.load %arg1[%c3_168, %c0_169, %c0_170] : memref<9x8x8xbf16, #tpu.memory_space<vmem>>, vector<1x8x8xbf16>
    %191 = vector.shape_cast %190 : vector<1x8x8xbf16> to vector<8x8xbf16>
    %cst_171 = arith.constant dense<0.000000e+00> : vector<8x512xf32>
    %192 = tpu.matmul %191, %189, %cst_171 {dimension_numbers = #tpu.dot_dimension_numbers<[1], [0], [0], [1], [0, 0, 1, 1], [], []>} : vector<8x8xbf16>, vector<8x512xbf16>, vector<8x512xf32> -> vector<8x512xf32>
    %193 = arith.addf %188, %192 : vector<8x512xf32>
    %c0_172 = arith.constant 0 : index
    %c1569 = arith.constant 1569 : index
    %194 = vector.load %arg0[%c0_172, %c1569] : memref<8x2176xbf16, #tpu.memory_space<vmem>>, vector<8x512xbf16>
    %c4_173 = arith.constant 4 : index
    %c0_174 = arith.constant 0 : index
    %c0_175 = arith.constant 0 : index
    %195 = vector.load %arg1[%c4_173, %c0_174, %c0_175] : memref<9x8x8xbf16, #tpu.memory_space<vmem>>, vector<1x8x8xbf16>
    %196 = vector.shape_cast %195 : vector<1x8x8xbf16> to vector<8x8xbf16>
    %cst_176 = arith.constant dense<0.000000e+00> : vector<8x512xf32>
    %197 = tpu.matmul %196, %194, %cst_176 {dimension_numbers = #tpu.dot_dimension_numbers<[1], [0], [0], [1], [0, 0, 1, 1], [], []>} : vector<8x8xbf16>, vector<8x512xbf16>, vector<8x512xf32> -> vector<8x512xf32>
    %198 = arith.addf %193, %197 : vector<8x512xf32>
    %c0_177 = arith.constant 0 : index
    %c1570 = arith.constant 1570 : index
    %199 = vector.load %arg0[%c0_177, %c1570] : memref<8x2176xbf16, #tpu.memory_space<vmem>>, vector<8x512xbf16>
    %c5_178 = arith.constant 5 : index
    %c0_179 = arith.constant 0 : index
    %c0_180 = arith.constant 0 : index
    %200 = vector.load %arg1[%c5_178, %c0_179, %c0_180] : memref<9x8x8xbf16, #tpu.memory_space<vmem>>, vector<1x8x8xbf16>
    %201 = vector.shape_cast %200 : vector<1x8x8xbf16> to vector<8x8xbf16>
    %cst_181 = arith.constant dense<0.000000e+00> : vector<8x512xf32>
    %202 = tpu.matmul %201, %199, %cst_181 {dimension_numbers = #tpu.dot_dimension_numbers<[1], [0], [0], [1], [0, 0, 1, 1], [], []>} : vector<8x8xbf16>, vector<8x512xbf16>, vector<8x512xf32> -> vector<8x512xf32>
    %203 = arith.addf %198, %202 : vector<8x512xf32>
    %c0_182 = arith.constant 0 : index
    %c1600 = arith.constant 1600 : index
    %204 = vector.load %arg0[%c0_182, %c1600] : memref<8x2176xbf16, #tpu.memory_space<vmem>>, vector<8x512xbf16>
    %c6_183 = arith.constant 6 : index
    %c0_184 = arith.constant 0 : index
    %c0_185 = arith.constant 0 : index
    %205 = vector.load %arg1[%c6_183, %c0_184, %c0_185] : memref<9x8x8xbf16, #tpu.memory_space<vmem>>, vector<1x8x8xbf16>
    %206 = vector.shape_cast %205 : vector<1x8x8xbf16> to vector<8x8xbf16>
    %cst_186 = arith.constant dense<0.000000e+00> : vector<8x512xf32>
    %207 = tpu.matmul %206, %204, %cst_186 {dimension_numbers = #tpu.dot_dimension_numbers<[1], [0], [0], [1], [0, 0, 1, 1], [], []>} : vector<8x8xbf16>, vector<8x512xbf16>, vector<8x512xf32> -> vector<8x512xf32>
    %208 = arith.addf %203, %207 : vector<8x512xf32>
    %c0_187 = arith.constant 0 : index
    %c1601 = arith.constant 1601 : index
    %209 = vector.load %arg0[%c0_187, %c1601] : memref<8x2176xbf16, #tpu.memory_space<vmem>>, vector<8x512xbf16>
    %c7_188 = arith.constant 7 : index
    %c0_189 = arith.constant 0 : index
    %c0_190 = arith.constant 0 : index
    %210 = vector.load %arg1[%c7_188, %c0_189, %c0_190] : memref<9x8x8xbf16, #tpu.memory_space<vmem>>, vector<1x8x8xbf16>
    %211 = vector.shape_cast %210 : vector<1x8x8xbf16> to vector<8x8xbf16>
    %cst_191 = arith.constant dense<0.000000e+00> : vector<8x512xf32>
    %212 = tpu.matmul %211, %209, %cst_191 {dimension_numbers = #tpu.dot_dimension_numbers<[1], [0], [0], [1], [0, 0, 1, 1], [], []>} : vector<8x8xbf16>, vector<8x512xbf16>, vector<8x512xf32> -> vector<8x512xf32>
    %213 = arith.addf %208, %212 : vector<8x512xf32>
    %c0_192 = arith.constant 0 : index
    %c1602 = arith.constant 1602 : index
    %214 = vector.load %arg0[%c0_192, %c1602] : memref<8x2176xbf16, #tpu.memory_space<vmem>>, vector<8x512xbf16>
    %c8_193 = arith.constant 8 : index
    %c0_194 = arith.constant 0 : index
    %c0_195 = arith.constant 0 : index
    %215 = vector.load %arg1[%c8_193, %c0_194, %c0_195] : memref<9x8x8xbf16, #tpu.memory_space<vmem>>, vector<1x8x8xbf16>
    %216 = vector.shape_cast %215 : vector<1x8x8xbf16> to vector<8x8xbf16>
    %cst_196 = arith.constant dense<0.000000e+00> : vector<8x512xf32>
    %217 = tpu.matmul %216, %214, %cst_196 {dimension_numbers = #tpu.dot_dimension_numbers<[1], [0], [0], [1], [0, 0, 1, 1], [], []>} : vector<8x8xbf16>, vector<8x512xbf16>, vector<8x512xf32> -> vector<8x512xf32>
    %218 = arith.addf %213, %217 : vector<8x512xf32>
    %c0_197 = arith.constant 0 : index
    %c1536_198 = arith.constant 1536 : index
    %219 = vector.load %arg6[%c0_197, %c1536_198] : memref<8x2048xf32, #tpu.memory_space<vmem>>, vector<8x512xf32>
    tpu.vector_store %arg6[%c0_197, %c1536_198], %218 {strides = array<i32>} : memref<8x2048xf32, #tpu.memory_space<vmem>>, vector<8x512xf32>,
    %c0_199 = arith.constant 0 : index
    %c1536_200 = arith.constant 1536 : index
    %220 = vector.load %arg4[%c0_199, %c1536_200] : memref<1x2048xf32, #tpu.memory_space<vmem>>, vector<1x512xf32>
    %221 = vector.broadcast %220 : vector<1x512xf32> to vector<8x512xf32>
    %222 = arith.mulf %218, %221 : vector<8x512xf32>
    %cst_201 = arith.constant dense<0.000000e+00> : vector<8xf32>
    %223 = vector.multi_reduction <add>, %222, %cst_201 [1] : vector<8x512xf32> to vector<8xf32>
    %224 = vector.shape_cast %223 : vector<8xf32> to vector<8x1xf32>
    %225 = arith.addf %168, %224 : vector<8x1xf32>
    %226 = arith.mulf %222, %218 : vector<8x512xf32>
    %cst_202 = arith.constant dense<0.000000e+00> : vector<8xf32>
    %227 = vector.multi_reduction <add>, %226, %cst_202 [1] : vector<8x512xf32> to vector<8xf32>
    %228 = vector.shape_cast %227 : vector<8xf32> to vector<8x1xf32>
    %229 = arith.addf %172, %228 : vector<8x1xf32>
    %cst_203 = arith.constant 5.55555569E-4 : f32
    %230 = vector.broadcast %cst_203 : f32 to vector<8x1xf32>
    %231 = arith.mulf %225, %230 : vector<8x1xf32>
    %cst_204 = arith.constant 5.55555569E-4 : f32
    %232 = vector.broadcast %cst_204 : f32 to vector<8x1xf32>
    %233 = arith.mulf %229, %232 : vector<8x1xf32>
    %234 = arith.mulf %231, %231 : vector<8x1xf32>
    %235 = arith.subf %233, %234 : vector<8x1xf32>
    %cst_205 = arith.constant 0.000000e+00 : f32
    %236 = vector.broadcast %cst_205 : f32 to vector<8x1xf32>
    %237 = arith.maximumf %235, %236 : vector<8x1xf32>
    %c0_206 = arith.constant 0 : index
    %c0_207 = arith.constant 0 : index
    %238 = vector.load %arg2[%c0_206, %c0_207] : memref<8x1xf32, #tpu.memory_space<vmem>>, vector<8x1xf32>
    %cst_208 = arith.constant 9.99999974E-6 : f32
    %239 = vector.broadcast %cst_208 : f32 to vector<8x1xf32>
    %240 = arith.addf %237, %239 : vector<8x1xf32>
    %241 = math.rsqrt %240 : vector<8x1xf32>
    %242 = arith.mulf %238, %241 : vector<8x1xf32>
    %c0_209 = arith.constant 0 : index
    %c0_210 = arith.constant 0 : index
    %243 = vector.load %arg3[%c0_209, %c0_210] : memref<8x1xf32, #tpu.memory_space<vmem>>, vector<8x1xf32>
    %244 = arith.mulf %231, %242 : vector<8x1xf32>
    %245 = arith.subf %243, %244 : vector<8x1xf32>
    %c0_211 = arith.constant 0 : index
    %c0_212 = arith.constant 0 : index
    %246 = vector.load %arg6[%c0_211, %c0_212] : memref<8x2048xf32, #tpu.memory_space<vmem>>, vector<8x512xf32>
    %247 = vector.broadcast %242 : vector<8x1xf32> to vector<8x512xf32>
    %248 = arith.mulf %246, %247 : vector<8x512xf32>
    %249 = vector.broadcast %245 : vector<8x1xf32> to vector<8x512xf32>
    %250 = arith.addf %248, %249 : vector<8x512xf32>
    %cst_213 = arith.constant 0.000000e+00 : f32
    %251 = vector.broadcast %cst_213 : f32 to vector<8x512xf32>
    %252 = arith.maximumf %250, %251 : vector<8x512xf32>
    %253 = arith.truncf %252 : vector<8x512xf32> to vector<8x512xbf16>
    %c0_214 = arith.constant 0 : index
    %c0_215 = arith.constant 0 : index
    %254 = vector.load %arg5[%c0_214, %c0_215] : memref<8x2048xbf16, #tpu.memory_space<vmem>>, vector<8x512xbf16>
    tpu.vector_store %arg5[%c0_214, %c0_215], %253 {strides = array<i32>} : memref<8x2048xbf16, #tpu.memory_space<vmem>>, vector<8x512xbf16>,
    %c0_216 = arith.constant 0 : index
    %c512_217 = arith.constant 512 : index
    %255 = vector.load %arg6[%c0_216, %c512_217] : memref<8x2048xf32, #tpu.memory_space<vmem>>, vector<8x512xf32>
    %256 = vector.broadcast %242 : vector<8x1xf32> to vector<8x512xf32>
    %257 = arith.mulf %255, %256 : vector<8x512xf32>
    %258 = vector.broadcast %245 : vector<8x1xf32> to vector<8x512xf32>
    %259 = arith.addf %257, %258 : vector<8x512xf32>
    %cst_218 = arith.constant 0.000000e+00 : f32
    %260 = vector.broadcast %cst_218 : f32 to vector<8x512xf32>
    %261 = arith.maximumf %259, %260 : vector<8x512xf32>
    %262 = arith.truncf %261 : vector<8x512xf32> to vector<8x512xbf16>
    %c0_219 = arith.constant 0 : index
    %c512_220 = arith.constant 512 : index
    %263 = vector.load %arg5[%c0_219, %c512_220] : memref<8x2048xbf16, #tpu.memory_space<vmem>>, vector<8x512xbf16>
    tpu.vector_store %arg5[%c0_219, %c512_220], %262 {strides = array<i32>} : memref<8x2048xbf16, #tpu.memory_space<vmem>>, vector<8x512xbf16>,
    %c0_221 = arith.constant 0 : index
    %c1024_222 = arith.constant 1024 : index
    %264 = vector.load %arg6[%c0_221, %c1024_222] : memref<8x2048xf32, #tpu.memory_space<vmem>>, vector<8x512xf32>
    %265 = vector.broadcast %242 : vector<8x1xf32> to vector<8x512xf32>
    %266 = arith.mulf %264, %265 : vector<8x512xf32>
    %267 = vector.broadcast %245 : vector<8x1xf32> to vector<8x512xf32>
    %268 = arith.addf %266, %267 : vector<8x512xf32>
    %cst_223 = arith.constant 0.000000e+00 : f32
    %269 = vector.broadcast %cst_223 : f32 to vector<8x512xf32>
    %270 = arith.maximumf %268, %269 : vector<8x512xf32>
    %271 = arith.truncf %270 : vector<8x512xf32> to vector<8x512xbf16>
    %c0_224 = arith.constant 0 : index
    %c1024_225 = arith.constant 1024 : index
    %272 = vector.load %arg5[%c0_224, %c1024_225] : memref<8x2048xbf16, #tpu.memory_space<vmem>>, vector<8x512xbf16>
    tpu.vector_store %arg5[%c0_224, %c1024_225], %271 {strides = array<i32>} : memref<8x2048xbf16, #tpu.memory_space<vmem>>, vector<8x512xbf16>,
    %c0_226 = arith.constant 0 : index
    %c1536_227 = arith.constant 1536 : index
    %273 = vector.load %arg6[%c0_226, %c1536_227] : memref<8x2048xf32, #tpu.memory_space<vmem>>, vector<8x512xf32>
    %274 = vector.broadcast %242 : vector<8x1xf32> to vector<8x512xf32>
    %275 = arith.mulf %273, %274 : vector<8x512xf32>
    %276 = vector.broadcast %245 : vector<8x1xf32> to vector<8x512xf32>
    %277 = arith.addf %275, %276 : vector<8x512xf32>
    %cst_228 = arith.constant 0.000000e+00 : f32
    %278 = vector.broadcast %cst_228 : f32 to vector<8x512xf32>
    %279 = arith.maximumf %277, %278 : vector<8x512xf32>
    %280 = arith.truncf %279 : vector<8x512xf32> to vector<8x512xbf16>
    %c0_229 = arith.constant 0 : index
    %c1536_230 = arith.constant 1536 : index
    %281 = vector.load %arg5[%c0_229, %c1536_230] : memref<8x2048xbf16, #tpu.memory_space<vmem>>, vector<8x512xbf16>
    tpu.vector_store %arg5[%c0_229, %c1536_230], %280 {strides = array<i32>} : memref<8x2048xbf16, #tpu.memory_space<vmem>>, vector<8x512xbf16>,
    return
  }
}

module attributes {stable_mosaic.version = 11 : i64} {
  func.func @_conv_bn_relu_kernel(%arg0: memref<8x2048xbf16, #tpu.memory_space<vmem>>, %arg1: memref<9x16x8xbf16, #tpu.memory_space<vmem>>, %arg2: memref<16x1xf32, #tpu.memory_space<vmem>>, %arg3: memref<16x1xf32, #tpu.memory_space<vmem>>, %arg4: memref<1x1920xf32, #tpu.memory_space<vmem>>, %arg5: memref<16x1920xbf16, #tpu.memory_space<vmem>>, %arg6: memref<16x1920xf32, #tpu.memory_space<vmem>>) attributes {dimension_semantics = [], scalar_prefetch = 0 : i64, scratch_operands = 1 : i64, tpu.core_type = #tpu.core_type<tc>} {
    %cst = arith.constant 0.000000e+00 : f32
    %0 = vector.broadcast %cst : f32 to vector<16x1xf32>
    %cst_0 = arith.constant 0.000000e+00 : f32
    %1 = vector.broadcast %cst_0 : f32 to vector<16x1xf32>
    %cst_1 = arith.constant 0.000000e+00 : f32
    %2 = vector.broadcast %cst_1 : f32 to vector<16x512xf32>
    %c0 = arith.constant 0 : index
    %c0_2 = arith.constant 0 : index
    %3 = vector.load %arg0[%c0, %c0_2] : memref<8x2048xbf16, #tpu.memory_space<vmem>>, vector<8x512xbf16>
    %c0_3 = arith.constant 0 : index
    %c0_4 = arith.constant 0 : index
    %c0_5 = arith.constant 0 : index
    %4 = vector.load %arg1[%c0_3, %c0_4, %c0_5] : memref<9x16x8xbf16, #tpu.memory_space<vmem>>, vector<1x16x8xbf16>
    %5 = vector.shape_cast %4 : vector<1x16x8xbf16> to vector<16x8xbf16>
    %cst_6 = arith.constant dense<0.000000e+00> : vector<16x512xf32>
    %6 = tpu.matmul %5, %3, %cst_6 {dimension_numbers = #tpu.dot_dimension_numbers<[1], [0], [0], [1], [0, 0, 1, 1], [], []>} : vector<16x8xbf16>, vector<8x512xbf16>, vector<16x512xf32> -> vector<16x512xf32>
    %7 = arith.addf %2, %6 : vector<16x512xf32>
    %c0_7 = arith.constant 0 : index
    %c1 = arith.constant 1 : index
    %8 = vector.load %arg0[%c0_7, %c1] : memref<8x2048xbf16, #tpu.memory_space<vmem>>, vector<8x512xbf16>
    %c1_8 = arith.constant 1 : index
    %c0_9 = arith.constant 0 : index
    %c0_10 = arith.constant 0 : index
    %9 = vector.load %arg1[%c1_8, %c0_9, %c0_10] : memref<9x16x8xbf16, #tpu.memory_space<vmem>>, vector<1x16x8xbf16>
    %10 = vector.shape_cast %9 : vector<1x16x8xbf16> to vector<16x8xbf16>
    %cst_11 = arith.constant dense<0.000000e+00> : vector<16x512xf32>
    %11 = tpu.matmul %10, %8, %cst_11 {dimension_numbers = #tpu.dot_dimension_numbers<[1], [0], [0], [1], [0, 0, 1, 1], [], []>} : vector<16x8xbf16>, vector<8x512xbf16>, vector<16x512xf32> -> vector<16x512xf32>
    %12 = arith.addf %7, %11 : vector<16x512xf32>
    %c0_12 = arith.constant 0 : index
    %c2 = arith.constant 2 : index
    %13 = vector.load %arg0[%c0_12, %c2] : memref<8x2048xbf16, #tpu.memory_space<vmem>>, vector<8x512xbf16>
    %c2_13 = arith.constant 2 : index
    %c0_14 = arith.constant 0 : index
    %c0_15 = arith.constant 0 : index
    %14 = vector.load %arg1[%c2_13, %c0_14, %c0_15] : memref<9x16x8xbf16, #tpu.memory_space<vmem>>, vector<1x16x8xbf16>
    %15 = vector.shape_cast %14 : vector<1x16x8xbf16> to vector<16x8xbf16>
    %cst_16 = arith.constant dense<0.000000e+00> : vector<16x512xf32>
    %16 = tpu.matmul %15, %13, %cst_16 {dimension_numbers = #tpu.dot_dimension_numbers<[1], [0], [0], [1], [0, 0, 1, 1], [], []>} : vector<16x8xbf16>, vector<8x512xbf16>, vector<16x512xf32> -> vector<16x512xf32>
    %17 = arith.addf %12, %16 : vector<16x512xf32>
    %c0_17 = arith.constant 0 : index
    %c30 = arith.constant 30 : index
    %18 = vector.load %arg0[%c0_17, %c30] : memref<8x2048xbf16, #tpu.memory_space<vmem>>, vector<8x512xbf16>
    %c3 = arith.constant 3 : index
    %c0_18 = arith.constant 0 : index
    %c0_19 = arith.constant 0 : index
    %19 = vector.load %arg1[%c3, %c0_18, %c0_19] : memref<9x16x8xbf16, #tpu.memory_space<vmem>>, vector<1x16x8xbf16>
    %20 = vector.shape_cast %19 : vector<1x16x8xbf16> to vector<16x8xbf16>
    %cst_20 = arith.constant dense<0.000000e+00> : vector<16x512xf32>
    %21 = tpu.matmul %20, %18, %cst_20 {dimension_numbers = #tpu.dot_dimension_numbers<[1], [0], [0], [1], [0, 0, 1, 1], [], []>} : vector<16x8xbf16>, vector<8x512xbf16>, vector<16x512xf32> -> vector<16x512xf32>
    %22 = arith.addf %17, %21 : vector<16x512xf32>
    %c0_21 = arith.constant 0 : index
    %c31 = arith.constant 31 : index
    %23 = vector.load %arg0[%c0_21, %c31] : memref<8x2048xbf16, #tpu.memory_space<vmem>>, vector<8x512xbf16>
    %c4 = arith.constant 4 : index
    %c0_22 = arith.constant 0 : index
    %c0_23 = arith.constant 0 : index
    %24 = vector.load %arg1[%c4, %c0_22, %c0_23] : memref<9x16x8xbf16, #tpu.memory_space<vmem>>, vector<1x16x8xbf16>
    %25 = vector.shape_cast %24 : vector<1x16x8xbf16> to vector<16x8xbf16>
    %cst_24 = arith.constant dense<0.000000e+00> : vector<16x512xf32>
    %26 = tpu.matmul %25, %23, %cst_24 {dimension_numbers = #tpu.dot_dimension_numbers<[1], [0], [0], [1], [0, 0, 1, 1], [], []>} : vector<16x8xbf16>, vector<8x512xbf16>, vector<16x512xf32> -> vector<16x512xf32>
    %27 = arith.addf %22, %26 : vector<16x512xf32>
    %c0_25 = arith.constant 0 : index
    %c32 = arith.constant 32 : index
    %28 = vector.load %arg0[%c0_25, %c32] : memref<8x2048xbf16, #tpu.memory_space<vmem>>, vector<8x512xbf16>
    %c5 = arith.constant 5 : index
    %c0_26 = arith.constant 0 : index
    %c0_27 = arith.constant 0 : index
    %29 = vector.load %arg1[%c5, %c0_26, %c0_27] : memref<9x16x8xbf16, #tpu.memory_space<vmem>>, vector<1x16x8xbf16>
    %30 = vector.shape_cast %29 : vector<1x16x8xbf16> to vector<16x8xbf16>
    %cst_28 = arith.constant dense<0.000000e+00> : vector<16x512xf32>
    %31 = tpu.matmul %30, %28, %cst_28 {dimension_numbers = #tpu.dot_dimension_numbers<[1], [0], [0], [1], [0, 0, 1, 1], [], []>} : vector<16x8xbf16>, vector<8x512xbf16>, vector<16x512xf32> -> vector<16x512xf32>
    %32 = arith.addf %27, %31 : vector<16x512xf32>
    %c0_29 = arith.constant 0 : index
    %c60 = arith.constant 60 : index
    %33 = vector.load %arg0[%c0_29, %c60] : memref<8x2048xbf16, #tpu.memory_space<vmem>>, vector<8x512xbf16>
    %c6 = arith.constant 6 : index
    %c0_30 = arith.constant 0 : index
    %c0_31 = arith.constant 0 : index
    %34 = vector.load %arg1[%c6, %c0_30, %c0_31] : memref<9x16x8xbf16, #tpu.memory_space<vmem>>, vector<1x16x8xbf16>
    %35 = vector.shape_cast %34 : vector<1x16x8xbf16> to vector<16x8xbf16>
    %cst_32 = arith.constant dense<0.000000e+00> : vector<16x512xf32>
    %36 = tpu.matmul %35, %33, %cst_32 {dimension_numbers = #tpu.dot_dimension_numbers<[1], [0], [0], [1], [0, 0, 1, 1], [], []>} : vector<16x8xbf16>, vector<8x512xbf16>, vector<16x512xf32> -> vector<16x512xf32>
    %37 = arith.addf %32, %36 : vector<16x512xf32>
    %c0_33 = arith.constant 0 : index
    %c61 = arith.constant 61 : index
    %38 = vector.load %arg0[%c0_33, %c61] : memref<8x2048xbf16, #tpu.memory_space<vmem>>, vector<8x512xbf16>
    %c7 = arith.constant 7 : index
    %c0_34 = arith.constant 0 : index
    %c0_35 = arith.constant 0 : index
    %39 = vector.load %arg1[%c7, %c0_34, %c0_35] : memref<9x16x8xbf16, #tpu.memory_space<vmem>>, vector<1x16x8xbf16>
    %40 = vector.shape_cast %39 : vector<1x16x8xbf16> to vector<16x8xbf16>
    %cst_36 = arith.constant dense<0.000000e+00> : vector<16x512xf32>
    %41 = tpu.matmul %40, %38, %cst_36 {dimension_numbers = #tpu.dot_dimension_numbers<[1], [0], [0], [1], [0, 0, 1, 1], [], []>} : vector<16x8xbf16>, vector<8x512xbf16>, vector<16x512xf32> -> vector<16x512xf32>
    %42 = arith.addf %37, %41 : vector<16x512xf32>
    %c0_37 = arith.constant 0 : index
    %c62 = arith.constant 62 : index
    %43 = vector.load %arg0[%c0_37, %c62] : memref<8x2048xbf16, #tpu.memory_space<vmem>>, vector<8x512xbf16>
    %c8 = arith.constant 8 : index
    %c0_38 = arith.constant 0 : index
    %c0_39 = arith.constant 0 : index
    %44 = vector.load %arg1[%c8, %c0_38, %c0_39] : memref<9x16x8xbf16, #tpu.memory_space<vmem>>, vector<1x16x8xbf16>
    %45 = vector.shape_cast %44 : vector<1x16x8xbf16> to vector<16x8xbf16>
    %cst_40 = arith.constant dense<0.000000e+00> : vector<16x512xf32>
    %46 = tpu.matmul %45, %43, %cst_40 {dimension_numbers = #tpu.dot_dimension_numbers<[1], [0], [0], [1], [0, 0, 1, 1], [], []>} : vector<16x8xbf16>, vector<8x512xbf16>, vector<16x512xf32> -> vector<16x512xf32>
    %47 = arith.addf %42, %46 : vector<16x512xf32>
    %c0_41 = arith.constant 0 : index
    %c0_42 = arith.constant 0 : index
    %48 = vector.load %arg6[%c0_41, %c0_42] : memref<16x1920xf32, #tpu.memory_space<vmem>>, vector<16x512xf32>
    tpu.vector_store %arg6[%c0_41, %c0_42], %47 {strides = array<i32>} : memref<16x1920xf32, #tpu.memory_space<vmem>>, vector<16x512xf32>,
    %c0_43 = arith.constant 0 : index
    %c0_44 = arith.constant 0 : index
    %49 = vector.load %arg4[%c0_43, %c0_44] : memref<1x1920xf32, #tpu.memory_space<vmem>>, vector<1x512xf32>
    %50 = vector.broadcast %49 : vector<1x512xf32> to vector<16x512xf32>
    %51 = arith.mulf %47, %50 : vector<16x512xf32>
    %cst_45 = arith.constant dense<0.000000e+00> : vector<16xf32>
    %52 = vector.multi_reduction <add>, %51, %cst_45 [1] : vector<16x512xf32> to vector<16xf32>
    %53 = vector.shape_cast %52 : vector<16xf32> to vector<16x1xf32>
    %54 = arith.addf %0, %53 : vector<16x1xf32>
    %55 = arith.mulf %51, %47 : vector<16x512xf32>
    %cst_46 = arith.constant dense<0.000000e+00> : vector<16xf32>
    %56 = vector.multi_reduction <add>, %55, %cst_46 [1] : vector<16x512xf32> to vector<16xf32>
    %57 = vector.shape_cast %56 : vector<16xf32> to vector<16x1xf32>
    %58 = arith.addf %1, %57 : vector<16x1xf32>
    %cst_47 = arith.constant 0.000000e+00 : f32
    %59 = vector.broadcast %cst_47 : f32 to vector<16x512xf32>
    %c0_48 = arith.constant 0 : index
    %c512 = arith.constant 512 : index
    %60 = vector.load %arg0[%c0_48, %c512] : memref<8x2048xbf16, #tpu.memory_space<vmem>>, vector<8x512xbf16>
    %c0_49 = arith.constant 0 : index
    %c0_50 = arith.constant 0 : index
    %c0_51 = arith.constant 0 : index
    %61 = vector.load %arg1[%c0_49, %c0_50, %c0_51] : memref<9x16x8xbf16, #tpu.memory_space<vmem>>, vector<1x16x8xbf16>
    %62 = vector.shape_cast %61 : vector<1x16x8xbf16> to vector<16x8xbf16>
    %cst_52 = arith.constant dense<0.000000e+00> : vector<16x512xf32>
    %63 = tpu.matmul %62, %60, %cst_52 {dimension_numbers = #tpu.dot_dimension_numbers<[1], [0], [0], [1], [0, 0, 1, 1], [], []>} : vector<16x8xbf16>, vector<8x512xbf16>, vector<16x512xf32> -> vector<16x512xf32>
    %64 = arith.addf %59, %63 : vector<16x512xf32>
    %c0_53 = arith.constant 0 : index
    %c513 = arith.constant 513 : index
    %65 = vector.load %arg0[%c0_53, %c513] : memref<8x2048xbf16, #tpu.memory_space<vmem>>, vector<8x512xbf16>
    %c1_54 = arith.constant 1 : index
    %c0_55 = arith.constant 0 : index
    %c0_56 = arith.constant 0 : index
    %66 = vector.load %arg1[%c1_54, %c0_55, %c0_56] : memref<9x16x8xbf16, #tpu.memory_space<vmem>>, vector<1x16x8xbf16>
    %67 = vector.shape_cast %66 : vector<1x16x8xbf16> to vector<16x8xbf16>
    %cst_57 = arith.constant dense<0.000000e+00> : vector<16x512xf32>
    %68 = tpu.matmul %67, %65, %cst_57 {dimension_numbers = #tpu.dot_dimension_numbers<[1], [0], [0], [1], [0, 0, 1, 1], [], []>} : vector<16x8xbf16>, vector<8x512xbf16>, vector<16x512xf32> -> vector<16x512xf32>
    %69 = arith.addf %64, %68 : vector<16x512xf32>
    %c0_58 = arith.constant 0 : index
    %c514 = arith.constant 514 : index
    %70 = vector.load %arg0[%c0_58, %c514] : memref<8x2048xbf16, #tpu.memory_space<vmem>>, vector<8x512xbf16>
    %c2_59 = arith.constant 2 : index
    %c0_60 = arith.constant 0 : index
    %c0_61 = arith.constant 0 : index
    %71 = vector.load %arg1[%c2_59, %c0_60, %c0_61] : memref<9x16x8xbf16, #tpu.memory_space<vmem>>, vector<1x16x8xbf16>
    %72 = vector.shape_cast %71 : vector<1x16x8xbf16> to vector<16x8xbf16>
    %cst_62 = arith.constant dense<0.000000e+00> : vector<16x512xf32>
    %73 = tpu.matmul %72, %70, %cst_62 {dimension_numbers = #tpu.dot_dimension_numbers<[1], [0], [0], [1], [0, 0, 1, 1], [], []>} : vector<16x8xbf16>, vector<8x512xbf16>, vector<16x512xf32> -> vector<16x512xf32>
    %74 = arith.addf %69, %73 : vector<16x512xf32>
    %c0_63 = arith.constant 0 : index
    %c542 = arith.constant 542 : index
    %75 = vector.load %arg0[%c0_63, %c542] : memref<8x2048xbf16, #tpu.memory_space<vmem>>, vector<8x512xbf16>
    %c3_64 = arith.constant 3 : index
    %c0_65 = arith.constant 0 : index
    %c0_66 = arith.constant 0 : index
    %76 = vector.load %arg1[%c3_64, %c0_65, %c0_66] : memref<9x16x8xbf16, #tpu.memory_space<vmem>>, vector<1x16x8xbf16>
    %77 = vector.shape_cast %76 : vector<1x16x8xbf16> to vector<16x8xbf16>
    %cst_67 = arith.constant dense<0.000000e+00> : vector<16x512xf32>
    %78 = tpu.matmul %77, %75, %cst_67 {dimension_numbers = #tpu.dot_dimension_numbers<[1], [0], [0], [1], [0, 0, 1, 1], [], []>} : vector<16x8xbf16>, vector<8x512xbf16>, vector<16x512xf32> -> vector<16x512xf32>
    %79 = arith.addf %74, %78 : vector<16x512xf32>
    %c0_68 = arith.constant 0 : index
    %c543 = arith.constant 543 : index
    %80 = vector.load %arg0[%c0_68, %c543] : memref<8x2048xbf16, #tpu.memory_space<vmem>>, vector<8x512xbf16>
    %c4_69 = arith.constant 4 : index
    %c0_70 = arith.constant 0 : index
    %c0_71 = arith.constant 0 : index
    %81 = vector.load %arg1[%c4_69, %c0_70, %c0_71] : memref<9x16x8xbf16, #tpu.memory_space<vmem>>, vector<1x16x8xbf16>
    %82 = vector.shape_cast %81 : vector<1x16x8xbf16> to vector<16x8xbf16>
    %cst_72 = arith.constant dense<0.000000e+00> : vector<16x512xf32>
    %83 = tpu.matmul %82, %80, %cst_72 {dimension_numbers = #tpu.dot_dimension_numbers<[1], [0], [0], [1], [0, 0, 1, 1], [], []>} : vector<16x8xbf16>, vector<8x512xbf16>, vector<16x512xf32> -> vector<16x512xf32>
    %84 = arith.addf %79, %83 : vector<16x512xf32>
    %c0_73 = arith.constant 0 : index
    %c544 = arith.constant 544 : index
    %85 = vector.load %arg0[%c0_73, %c544] : memref<8x2048xbf16, #tpu.memory_space<vmem>>, vector<8x512xbf16>
    %c5_74 = arith.constant 5 : index
    %c0_75 = arith.constant 0 : index
    %c0_76 = arith.constant 0 : index
    %86 = vector.load %arg1[%c5_74, %c0_75, %c0_76] : memref<9x16x8xbf16, #tpu.memory_space<vmem>>, vector<1x16x8xbf16>
    %87 = vector.shape_cast %86 : vector<1x16x8xbf16> to vector<16x8xbf16>
    %cst_77 = arith.constant dense<0.000000e+00> : vector<16x512xf32>
    %88 = tpu.matmul %87, %85, %cst_77 {dimension_numbers = #tpu.dot_dimension_numbers<[1], [0], [0], [1], [0, 0, 1, 1], [], []>} : vector<16x8xbf16>, vector<8x512xbf16>, vector<16x512xf32> -> vector<16x512xf32>
    %89 = arith.addf %84, %88 : vector<16x512xf32>
    %c0_78 = arith.constant 0 : index
    %c572 = arith.constant 572 : index
    %90 = vector.load %arg0[%c0_78, %c572] : memref<8x2048xbf16, #tpu.memory_space<vmem>>, vector<8x512xbf16>
    %c6_79 = arith.constant 6 : index
    %c0_80 = arith.constant 0 : index
    %c0_81 = arith.constant 0 : index
    %91 = vector.load %arg1[%c6_79, %c0_80, %c0_81] : memref<9x16x8xbf16, #tpu.memory_space<vmem>>, vector<1x16x8xbf16>
    %92 = vector.shape_cast %91 : vector<1x16x8xbf16> to vector<16x8xbf16>
    %cst_82 = arith.constant dense<0.000000e+00> : vector<16x512xf32>
    %93 = tpu.matmul %92, %90, %cst_82 {dimension_numbers = #tpu.dot_dimension_numbers<[1], [0], [0], [1], [0, 0, 1, 1], [], []>} : vector<16x8xbf16>, vector<8x512xbf16>, vector<16x512xf32> -> vector<16x512xf32>
    %94 = arith.addf %89, %93 : vector<16x512xf32>
    %c0_83 = arith.constant 0 : index
    %c573 = arith.constant 573 : index
    %95 = vector.load %arg0[%c0_83, %c573] : memref<8x2048xbf16, #tpu.memory_space<vmem>>, vector<8x512xbf16>
    %c7_84 = arith.constant 7 : index
    %c0_85 = arith.constant 0 : index
    %c0_86 = arith.constant 0 : index
    %96 = vector.load %arg1[%c7_84, %c0_85, %c0_86] : memref<9x16x8xbf16, #tpu.memory_space<vmem>>, vector<1x16x8xbf16>
    %97 = vector.shape_cast %96 : vector<1x16x8xbf16> to vector<16x8xbf16>
    %cst_87 = arith.constant dense<0.000000e+00> : vector<16x512xf32>
    %98 = tpu.matmul %97, %95, %cst_87 {dimension_numbers = #tpu.dot_dimension_numbers<[1], [0], [0], [1], [0, 0, 1, 1], [], []>} : vector<16x8xbf16>, vector<8x512xbf16>, vector<16x512xf32> -> vector<16x512xf32>
    %99 = arith.addf %94, %98 : vector<16x512xf32>
    %c0_88 = arith.constant 0 : index
    %c574 = arith.constant 574 : index
    %100 = vector.load %arg0[%c0_88, %c574] : memref<8x2048xbf16, #tpu.memory_space<vmem>>, vector<8x512xbf16>
    %c8_89 = arith.constant 8 : index
    %c0_90 = arith.constant 0 : index
    %c0_91 = arith.constant 0 : index
    %101 = vector.load %arg1[%c8_89, %c0_90, %c0_91] : memref<9x16x8xbf16, #tpu.memory_space<vmem>>, vector<1x16x8xbf16>
    %102 = vector.shape_cast %101 : vector<1x16x8xbf16> to vector<16x8xbf16>
    %cst_92 = arith.constant dense<0.000000e+00> : vector<16x512xf32>
    %103 = tpu.matmul %102, %100, %cst_92 {dimension_numbers = #tpu.dot_dimension_numbers<[1], [0], [0], [1], [0, 0, 1, 1], [], []>} : vector<16x8xbf16>, vector<8x512xbf16>, vector<16x512xf32> -> vector<16x512xf32>
    %104 = arith.addf %99, %103 : vector<16x512xf32>
    %c0_93 = arith.constant 0 : index
    %c512_94 = arith.constant 512 : index
    %105 = vector.load %arg6[%c0_93, %c512_94] : memref<16x1920xf32, #tpu.memory_space<vmem>>, vector<16x512xf32>
    tpu.vector_store %arg6[%c0_93, %c512_94], %104 {strides = array<i32>} : memref<16x1920xf32, #tpu.memory_space<vmem>>, vector<16x512xf32>,
    %c0_95 = arith.constant 0 : index
    %c512_96 = arith.constant 512 : index
    %106 = vector.load %arg4[%c0_95, %c512_96] : memref<1x1920xf32, #tpu.memory_space<vmem>>, vector<1x512xf32>
    %107 = vector.broadcast %106 : vector<1x512xf32> to vector<16x512xf32>
    %108 = arith.mulf %104, %107 : vector<16x512xf32>
    %cst_97 = arith.constant dense<0.000000e+00> : vector<16xf32>
    %109 = vector.multi_reduction <add>, %108, %cst_97 [1] : vector<16x512xf32> to vector<16xf32>
    %110 = vector.shape_cast %109 : vector<16xf32> to vector<16x1xf32>
    %111 = arith.addf %54, %110 : vector<16x1xf32>
    %112 = arith.mulf %108, %104 : vector<16x512xf32>
    %cst_98 = arith.constant dense<0.000000e+00> : vector<16xf32>
    %113 = vector.multi_reduction <add>, %112, %cst_98 [1] : vector<16x512xf32> to vector<16xf32>
    %114 = vector.shape_cast %113 : vector<16xf32> to vector<16x1xf32>
    %115 = arith.addf %58, %114 : vector<16x1xf32>
    %cst_99 = arith.constant 0.000000e+00 : f32
    %116 = vector.broadcast %cst_99 : f32 to vector<16x512xf32>
    %c0_100 = arith.constant 0 : index
    %c1024 = arith.constant 1024 : index
    %117 = vector.load %arg0[%c0_100, %c1024] : memref<8x2048xbf16, #tpu.memory_space<vmem>>, vector<8x512xbf16>
    %c0_101 = arith.constant 0 : index
    %c0_102 = arith.constant 0 : index
    %c0_103 = arith.constant 0 : index
    %118 = vector.load %arg1[%c0_101, %c0_102, %c0_103] : memref<9x16x8xbf16, #tpu.memory_space<vmem>>, vector<1x16x8xbf16>
    %119 = vector.shape_cast %118 : vector<1x16x8xbf16> to vector<16x8xbf16>
    %cst_104 = arith.constant dense<0.000000e+00> : vector<16x512xf32>
    %120 = tpu.matmul %119, %117, %cst_104 {dimension_numbers = #tpu.dot_dimension_numbers<[1], [0], [0], [1], [0, 0, 1, 1], [], []>} : vector<16x8xbf16>, vector<8x512xbf16>, vector<16x512xf32> -> vector<16x512xf32>
    %121 = arith.addf %116, %120 : vector<16x512xf32>
    %c0_105 = arith.constant 0 : index
    %c1025 = arith.constant 1025 : index
    %122 = vector.load %arg0[%c0_105, %c1025] : memref<8x2048xbf16, #tpu.memory_space<vmem>>, vector<8x512xbf16>
    %c1_106 = arith.constant 1 : index
    %c0_107 = arith.constant 0 : index
    %c0_108 = arith.constant 0 : index
    %123 = vector.load %arg1[%c1_106, %c0_107, %c0_108] : memref<9x16x8xbf16, #tpu.memory_space<vmem>>, vector<1x16x8xbf16>
    %124 = vector.shape_cast %123 : vector<1x16x8xbf16> to vector<16x8xbf16>
    %cst_109 = arith.constant dense<0.000000e+00> : vector<16x512xf32>
    %125 = tpu.matmul %124, %122, %cst_109 {dimension_numbers = #tpu.dot_dimension_numbers<[1], [0], [0], [1], [0, 0, 1, 1], [], []>} : vector<16x8xbf16>, vector<8x512xbf16>, vector<16x512xf32> -> vector<16x512xf32>
    %126 = arith.addf %121, %125 : vector<16x512xf32>
    %c0_110 = arith.constant 0 : index
    %c1026 = arith.constant 1026 : index
    %127 = vector.load %arg0[%c0_110, %c1026] : memref<8x2048xbf16, #tpu.memory_space<vmem>>, vector<8x512xbf16>
    %c2_111 = arith.constant 2 : index
    %c0_112 = arith.constant 0 : index
    %c0_113 = arith.constant 0 : index
    %128 = vector.load %arg1[%c2_111, %c0_112, %c0_113] : memref<9x16x8xbf16, #tpu.memory_space<vmem>>, vector<1x16x8xbf16>
    %129 = vector.shape_cast %128 : vector<1x16x8xbf16> to vector<16x8xbf16>
    %cst_114 = arith.constant dense<0.000000e+00> : vector<16x512xf32>
    %130 = tpu.matmul %129, %127, %cst_114 {dimension_numbers = #tpu.dot_dimension_numbers<[1], [0], [0], [1], [0, 0, 1, 1], [], []>} : vector<16x8xbf16>, vector<8x512xbf16>, vector<16x512xf32> -> vector<16x512xf32>
    %131 = arith.addf %126, %130 : vector<16x512xf32>
    %c0_115 = arith.constant 0 : index
    %c1054 = arith.constant 1054 : index
    %132 = vector.load %arg0[%c0_115, %c1054] : memref<8x2048xbf16, #tpu.memory_space<vmem>>, vector<8x512xbf16>
    %c3_116 = arith.constant 3 : index
    %c0_117 = arith.constant 0 : index
    %c0_118 = arith.constant 0 : index
    %133 = vector.load %arg1[%c3_116, %c0_117, %c0_118] : memref<9x16x8xbf16, #tpu.memory_space<vmem>>, vector<1x16x8xbf16>
    %134 = vector.shape_cast %133 : vector<1x16x8xbf16> to vector<16x8xbf16>
    %cst_119 = arith.constant dense<0.000000e+00> : vector<16x512xf32>
    %135 = tpu.matmul %134, %132, %cst_119 {dimension_numbers = #tpu.dot_dimension_numbers<[1], [0], [0], [1], [0, 0, 1, 1], [], []>} : vector<16x8xbf16>, vector<8x512xbf16>, vector<16x512xf32> -> vector<16x512xf32>
    %136 = arith.addf %131, %135 : vector<16x512xf32>
    %c0_120 = arith.constant 0 : index
    %c1055 = arith.constant 1055 : index
    %137 = vector.load %arg0[%c0_120, %c1055] : memref<8x2048xbf16, #tpu.memory_space<vmem>>, vector<8x512xbf16>
    %c4_121 = arith.constant 4 : index
    %c0_122 = arith.constant 0 : index
    %c0_123 = arith.constant 0 : index
    %138 = vector.load %arg1[%c4_121, %c0_122, %c0_123] : memref<9x16x8xbf16, #tpu.memory_space<vmem>>, vector<1x16x8xbf16>
    %139 = vector.shape_cast %138 : vector<1x16x8xbf16> to vector<16x8xbf16>
    %cst_124 = arith.constant dense<0.000000e+00> : vector<16x512xf32>
    %140 = tpu.matmul %139, %137, %cst_124 {dimension_numbers = #tpu.dot_dimension_numbers<[1], [0], [0], [1], [0, 0, 1, 1], [], []>} : vector<16x8xbf16>, vector<8x512xbf16>, vector<16x512xf32> -> vector<16x512xf32>
    %141 = arith.addf %136, %140 : vector<16x512xf32>
    %c0_125 = arith.constant 0 : index
    %c1056 = arith.constant 1056 : index
    %142 = vector.load %arg0[%c0_125, %c1056] : memref<8x2048xbf16, #tpu.memory_space<vmem>>, vector<8x512xbf16>
    %c5_126 = arith.constant 5 : index
    %c0_127 = arith.constant 0 : index
    %c0_128 = arith.constant 0 : index
    %143 = vector.load %arg1[%c5_126, %c0_127, %c0_128] : memref<9x16x8xbf16, #tpu.memory_space<vmem>>, vector<1x16x8xbf16>
    %144 = vector.shape_cast %143 : vector<1x16x8xbf16> to vector<16x8xbf16>
    %cst_129 = arith.constant dense<0.000000e+00> : vector<16x512xf32>
    %145 = tpu.matmul %144, %142, %cst_129 {dimension_numbers = #tpu.dot_dimension_numbers<[1], [0], [0], [1], [0, 0, 1, 1], [], []>} : vector<16x8xbf16>, vector<8x512xbf16>, vector<16x512xf32> -> vector<16x512xf32>
    %146 = arith.addf %141, %145 : vector<16x512xf32>
    %c0_130 = arith.constant 0 : index
    %c1084 = arith.constant 1084 : index
    %147 = vector.load %arg0[%c0_130, %c1084] : memref<8x2048xbf16, #tpu.memory_space<vmem>>, vector<8x512xbf16>
    %c6_131 = arith.constant 6 : index
    %c0_132 = arith.constant 0 : index
    %c0_133 = arith.constant 0 : index
    %148 = vector.load %arg1[%c6_131, %c0_132, %c0_133] : memref<9x16x8xbf16, #tpu.memory_space<vmem>>, vector<1x16x8xbf16>
    %149 = vector.shape_cast %148 : vector<1x16x8xbf16> to vector<16x8xbf16>
    %cst_134 = arith.constant dense<0.000000e+00> : vector<16x512xf32>
    %150 = tpu.matmul %149, %147, %cst_134 {dimension_numbers = #tpu.dot_dimension_numbers<[1], [0], [0], [1], [0, 0, 1, 1], [], []>} : vector<16x8xbf16>, vector<8x512xbf16>, vector<16x512xf32> -> vector<16x512xf32>
    %151 = arith.addf %146, %150 : vector<16x512xf32>
    %c0_135 = arith.constant 0 : index
    %c1085 = arith.constant 1085 : index
    %152 = vector.load %arg0[%c0_135, %c1085] : memref<8x2048xbf16, #tpu.memory_space<vmem>>, vector<8x512xbf16>
    %c7_136 = arith.constant 7 : index
    %c0_137 = arith.constant 0 : index
    %c0_138 = arith.constant 0 : index
    %153 = vector.load %arg1[%c7_136, %c0_137, %c0_138] : memref<9x16x8xbf16, #tpu.memory_space<vmem>>, vector<1x16x8xbf16>
    %154 = vector.shape_cast %153 : vector<1x16x8xbf16> to vector<16x8xbf16>
    %cst_139 = arith.constant dense<0.000000e+00> : vector<16x512xf32>
    %155 = tpu.matmul %154, %152, %cst_139 {dimension_numbers = #tpu.dot_dimension_numbers<[1], [0], [0], [1], [0, 0, 1, 1], [], []>} : vector<16x8xbf16>, vector<8x512xbf16>, vector<16x512xf32> -> vector<16x512xf32>
    %156 = arith.addf %151, %155 : vector<16x512xf32>
    %c0_140 = arith.constant 0 : index
    %c1086 = arith.constant 1086 : index
    %157 = vector.load %arg0[%c0_140, %c1086] : memref<8x2048xbf16, #tpu.memory_space<vmem>>, vector<8x512xbf16>
    %c8_141 = arith.constant 8 : index
    %c0_142 = arith.constant 0 : index
    %c0_143 = arith.constant 0 : index
    %158 = vector.load %arg1[%c8_141, %c0_142, %c0_143] : memref<9x16x8xbf16, #tpu.memory_space<vmem>>, vector<1x16x8xbf16>
    %159 = vector.shape_cast %158 : vector<1x16x8xbf16> to vector<16x8xbf16>
    %cst_144 = arith.constant dense<0.000000e+00> : vector<16x512xf32>
    %160 = tpu.matmul %159, %157, %cst_144 {dimension_numbers = #tpu.dot_dimension_numbers<[1], [0], [0], [1], [0, 0, 1, 1], [], []>} : vector<16x8xbf16>, vector<8x512xbf16>, vector<16x512xf32> -> vector<16x512xf32>
    %161 = arith.addf %156, %160 : vector<16x512xf32>
    %c0_145 = arith.constant 0 : index
    %c1024_146 = arith.constant 1024 : index
    %162 = vector.load %arg6[%c0_145, %c1024_146] : memref<16x1920xf32, #tpu.memory_space<vmem>>, vector<16x512xf32>
    tpu.vector_store %arg6[%c0_145, %c1024_146], %161 {strides = array<i32>} : memref<16x1920xf32, #tpu.memory_space<vmem>>, vector<16x512xf32>,
    %c0_147 = arith.constant 0 : index
    %c1024_148 = arith.constant 1024 : index
    %163 = vector.load %arg4[%c0_147, %c1024_148] : memref<1x1920xf32, #tpu.memory_space<vmem>>, vector<1x512xf32>
    %164 = vector.broadcast %163 : vector<1x512xf32> to vector<16x512xf32>
    %165 = arith.mulf %161, %164 : vector<16x512xf32>
    %cst_149 = arith.constant dense<0.000000e+00> : vector<16xf32>
    %166 = vector.multi_reduction <add>, %165, %cst_149 [1] : vector<16x512xf32> to vector<16xf32>
    %167 = vector.shape_cast %166 : vector<16xf32> to vector<16x1xf32>
    %168 = arith.addf %111, %167 : vector<16x1xf32>
    %169 = arith.mulf %165, %161 : vector<16x512xf32>
    %cst_150 = arith.constant dense<0.000000e+00> : vector<16xf32>
    %170 = vector.multi_reduction <add>, %169, %cst_150 [1] : vector<16x512xf32> to vector<16xf32>
    %171 = vector.shape_cast %170 : vector<16xf32> to vector<16x1xf32>
    %172 = arith.addf %115, %171 : vector<16x1xf32>
    %cst_151 = arith.constant 0.000000e+00 : f32
    %173 = vector.broadcast %cst_151 : f32 to vector<16x384xf32>
    %c0_152 = arith.constant 0 : index
    %c1536 = arith.constant 1536 : index
    %174 = vector.load %arg0[%c0_152, %c1536] : memref<8x2048xbf16, #tpu.memory_space<vmem>>, vector<8x384xbf16>
    %c0_153 = arith.constant 0 : index
    %c0_154 = arith.constant 0 : index
    %c0_155 = arith.constant 0 : index
    %175 = vector.load %arg1[%c0_153, %c0_154, %c0_155] : memref<9x16x8xbf16, #tpu.memory_space<vmem>>, vector<1x16x8xbf16>
    %176 = vector.shape_cast %175 : vector<1x16x8xbf16> to vector<16x8xbf16>
    %cst_156 = arith.constant dense<0.000000e+00> : vector<16x384xf32>
    %177 = tpu.matmul %176, %174, %cst_156 {dimension_numbers = #tpu.dot_dimension_numbers<[1], [0], [0], [1], [0, 0, 1, 1], [], []>} : vector<16x8xbf16>, vector<8x384xbf16>, vector<16x384xf32> -> vector<16x384xf32>
    %178 = arith.addf %173, %177 : vector<16x384xf32>
    %c0_157 = arith.constant 0 : index
    %c1537 = arith.constant 1537 : index
    %179 = vector.load %arg0[%c0_157, %c1537] : memref<8x2048xbf16, #tpu.memory_space<vmem>>, vector<8x384xbf16>
    %c1_158 = arith.constant 1 : index
    %c0_159 = arith.constant 0 : index
    %c0_160 = arith.constant 0 : index
    %180 = vector.load %arg1[%c1_158, %c0_159, %c0_160] : memref<9x16x8xbf16, #tpu.memory_space<vmem>>, vector<1x16x8xbf16>
    %181 = vector.shape_cast %180 : vector<1x16x8xbf16> to vector<16x8xbf16>
    %cst_161 = arith.constant dense<0.000000e+00> : vector<16x384xf32>
    %182 = tpu.matmul %181, %179, %cst_161 {dimension_numbers = #tpu.dot_dimension_numbers<[1], [0], [0], [1], [0, 0, 1, 1], [], []>} : vector<16x8xbf16>, vector<8x384xbf16>, vector<16x384xf32> -> vector<16x384xf32>
    %183 = arith.addf %178, %182 : vector<16x384xf32>
    %c0_162 = arith.constant 0 : index
    %c1538 = arith.constant 1538 : index
    %184 = vector.load %arg0[%c0_162, %c1538] : memref<8x2048xbf16, #tpu.memory_space<vmem>>, vector<8x384xbf16>
    %c2_163 = arith.constant 2 : index
    %c0_164 = arith.constant 0 : index
    %c0_165 = arith.constant 0 : index
    %185 = vector.load %arg1[%c2_163, %c0_164, %c0_165] : memref<9x16x8xbf16, #tpu.memory_space<vmem>>, vector<1x16x8xbf16>
    %186 = vector.shape_cast %185 : vector<1x16x8xbf16> to vector<16x8xbf16>
    %cst_166 = arith.constant dense<0.000000e+00> : vector<16x384xf32>
    %187 = tpu.matmul %186, %184, %cst_166 {dimension_numbers = #tpu.dot_dimension_numbers<[1], [0], [0], [1], [0, 0, 1, 1], [], []>} : vector<16x8xbf16>, vector<8x384xbf16>, vector<16x384xf32> -> vector<16x384xf32>
    %188 = arith.addf %183, %187 : vector<16x384xf32>
    %c0_167 = arith.constant 0 : index
    %c1566 = arith.constant 1566 : index
    %189 = vector.load %arg0[%c0_167, %c1566] : memref<8x2048xbf16, #tpu.memory_space<vmem>>, vector<8x384xbf16>
    %c3_168 = arith.constant 3 : index
    %c0_169 = arith.constant 0 : index
    %c0_170 = arith.constant 0 : index
    %190 = vector.load %arg1[%c3_168, %c0_169, %c0_170] : memref<9x16x8xbf16, #tpu.memory_space<vmem>>, vector<1x16x8xbf16>
    %191 = vector.shape_cast %190 : vector<1x16x8xbf16> to vector<16x8xbf16>
    %cst_171 = arith.constant dense<0.000000e+00> : vector<16x384xf32>
    %192 = tpu.matmul %191, %189, %cst_171 {dimension_numbers = #tpu.dot_dimension_numbers<[1], [0], [0], [1], [0, 0, 1, 1], [], []>} : vector<16x8xbf16>, vector<8x384xbf16>, vector<16x384xf32> -> vector<16x384xf32>
    %193 = arith.addf %188, %192 : vector<16x384xf32>
    %c0_172 = arith.constant 0 : index
    %c1567 = arith.constant 1567 : index
    %194 = vector.load %arg0[%c0_172, %c1567] : memref<8x2048xbf16, #tpu.memory_space<vmem>>, vector<8x384xbf16>
    %c4_173 = arith.constant 4 : index
    %c0_174 = arith.constant 0 : index
    %c0_175 = arith.constant 0 : index
    %195 = vector.load %arg1[%c4_173, %c0_174, %c0_175] : memref<9x16x8xbf16, #tpu.memory_space<vmem>>, vector<1x16x8xbf16>
    %196 = vector.shape_cast %195 : vector<1x16x8xbf16> to vector<16x8xbf16>
    %cst_176 = arith.constant dense<0.000000e+00> : vector<16x384xf32>
    %197 = tpu.matmul %196, %194, %cst_176 {dimension_numbers = #tpu.dot_dimension_numbers<[1], [0], [0], [1], [0, 0, 1, 1], [], []>} : vector<16x8xbf16>, vector<8x384xbf16>, vector<16x384xf32> -> vector<16x384xf32>
    %198 = arith.addf %193, %197 : vector<16x384xf32>
    %c0_177 = arith.constant 0 : index
    %c1568 = arith.constant 1568 : index
    %199 = vector.load %arg0[%c0_177, %c1568] : memref<8x2048xbf16, #tpu.memory_space<vmem>>, vector<8x384xbf16>
    %c5_178 = arith.constant 5 : index
    %c0_179 = arith.constant 0 : index
    %c0_180 = arith.constant 0 : index
    %200 = vector.load %arg1[%c5_178, %c0_179, %c0_180] : memref<9x16x8xbf16, #tpu.memory_space<vmem>>, vector<1x16x8xbf16>
    %201 = vector.shape_cast %200 : vector<1x16x8xbf16> to vector<16x8xbf16>
    %cst_181 = arith.constant dense<0.000000e+00> : vector<16x384xf32>
    %202 = tpu.matmul %201, %199, %cst_181 {dimension_numbers = #tpu.dot_dimension_numbers<[1], [0], [0], [1], [0, 0, 1, 1], [], []>} : vector<16x8xbf16>, vector<8x384xbf16>, vector<16x384xf32> -> vector<16x384xf32>
    %203 = arith.addf %198, %202 : vector<16x384xf32>
    %c0_182 = arith.constant 0 : index
    %c1596 = arith.constant 1596 : index
    %204 = vector.load %arg0[%c0_182, %c1596] : memref<8x2048xbf16, #tpu.memory_space<vmem>>, vector<8x384xbf16>
    %c6_183 = arith.constant 6 : index
    %c0_184 = arith.constant 0 : index
    %c0_185 = arith.constant 0 : index
    %205 = vector.load %arg1[%c6_183, %c0_184, %c0_185] : memref<9x16x8xbf16, #tpu.memory_space<vmem>>, vector<1x16x8xbf16>
    %206 = vector.shape_cast %205 : vector<1x16x8xbf16> to vector<16x8xbf16>
    %cst_186 = arith.constant dense<0.000000e+00> : vector<16x384xf32>
    %207 = tpu.matmul %206, %204, %cst_186 {dimension_numbers = #tpu.dot_dimension_numbers<[1], [0], [0], [1], [0, 0, 1, 1], [], []>} : vector<16x8xbf16>, vector<8x384xbf16>, vector<16x384xf32> -> vector<16x384xf32>
    %208 = arith.addf %203, %207 : vector<16x384xf32>
    %c0_187 = arith.constant 0 : index
    %c1597 = arith.constant 1597 : index
    %209 = vector.load %arg0[%c0_187, %c1597] : memref<8x2048xbf16, #tpu.memory_space<vmem>>, vector<8x384xbf16>
    %c7_188 = arith.constant 7 : index
    %c0_189 = arith.constant 0 : index
    %c0_190 = arith.constant 0 : index
    %210 = vector.load %arg1[%c7_188, %c0_189, %c0_190] : memref<9x16x8xbf16, #tpu.memory_space<vmem>>, vector<1x16x8xbf16>
    %211 = vector.shape_cast %210 : vector<1x16x8xbf16> to vector<16x8xbf16>
    %cst_191 = arith.constant dense<0.000000e+00> : vector<16x384xf32>
    %212 = tpu.matmul %211, %209, %cst_191 {dimension_numbers = #tpu.dot_dimension_numbers<[1], [0], [0], [1], [0, 0, 1, 1], [], []>} : vector<16x8xbf16>, vector<8x384xbf16>, vector<16x384xf32> -> vector<16x384xf32>
    %213 = arith.addf %208, %212 : vector<16x384xf32>
    %c0_192 = arith.constant 0 : index
    %c1598 = arith.constant 1598 : index
    %214 = vector.load %arg0[%c0_192, %c1598] : memref<8x2048xbf16, #tpu.memory_space<vmem>>, vector<8x384xbf16>
    %c8_193 = arith.constant 8 : index
    %c0_194 = arith.constant 0 : index
    %c0_195 = arith.constant 0 : index
    %215 = vector.load %arg1[%c8_193, %c0_194, %c0_195] : memref<9x16x8xbf16, #tpu.memory_space<vmem>>, vector<1x16x8xbf16>
    %216 = vector.shape_cast %215 : vector<1x16x8xbf16> to vector<16x8xbf16>
    %cst_196 = arith.constant dense<0.000000e+00> : vector<16x384xf32>
    %217 = tpu.matmul %216, %214, %cst_196 {dimension_numbers = #tpu.dot_dimension_numbers<[1], [0], [0], [1], [0, 0, 1, 1], [], []>} : vector<16x8xbf16>, vector<8x384xbf16>, vector<16x384xf32> -> vector<16x384xf32>
    %218 = arith.addf %213, %217 : vector<16x384xf32>
    %c0_197 = arith.constant 0 : index
    %c1536_198 = arith.constant 1536 : index
    %219 = vector.load %arg6[%c0_197, %c1536_198] : memref<16x1920xf32, #tpu.memory_space<vmem>>, vector<16x384xf32>
    tpu.vector_store %arg6[%c0_197, %c1536_198], %218 {strides = array<i32>} : memref<16x1920xf32, #tpu.memory_space<vmem>>, vector<16x384xf32>,
    %c0_199 = arith.constant 0 : index
    %c1536_200 = arith.constant 1536 : index
    %220 = vector.load %arg4[%c0_199, %c1536_200] : memref<1x1920xf32, #tpu.memory_space<vmem>>, vector<1x384xf32>
    %221 = vector.broadcast %220 : vector<1x384xf32> to vector<16x384xf32>
    %222 = arith.mulf %218, %221 : vector<16x384xf32>
    %cst_201 = arith.constant dense<0.000000e+00> : vector<16xf32>
    %223 = vector.multi_reduction <add>, %222, %cst_201 [1] : vector<16x384xf32> to vector<16xf32>
    %224 = vector.shape_cast %223 : vector<16xf32> to vector<16x1xf32>
    %225 = arith.addf %168, %224 : vector<16x1xf32>
    %226 = arith.mulf %222, %218 : vector<16x384xf32>
    %cst_202 = arith.constant dense<0.000000e+00> : vector<16xf32>
    %227 = vector.multi_reduction <add>, %226, %cst_202 [1] : vector<16x384xf32> to vector<16xf32>
    %228 = vector.shape_cast %227 : vector<16xf32> to vector<16x1xf32>
    %229 = arith.addf %172, %228 : vector<16x1xf32>
    %cst_203 = arith.constant 6.37755089E-4 : f32
    %230 = vector.broadcast %cst_203 : f32 to vector<16x1xf32>
    %231 = arith.mulf %225, %230 : vector<16x1xf32>
    %cst_204 = arith.constant 6.37755089E-4 : f32
    %232 = vector.broadcast %cst_204 : f32 to vector<16x1xf32>
    %233 = arith.mulf %229, %232 : vector<16x1xf32>
    %234 = arith.mulf %231, %231 : vector<16x1xf32>
    %235 = arith.subf %233, %234 : vector<16x1xf32>
    %cst_205 = arith.constant 0.000000e+00 : f32
    %236 = vector.broadcast %cst_205 : f32 to vector<16x1xf32>
    %237 = arith.maximumf %235, %236 : vector<16x1xf32>
    %c0_206 = arith.constant 0 : index
    %c0_207 = arith.constant 0 : index
    %238 = vector.load %arg2[%c0_206, %c0_207] : memref<16x1xf32, #tpu.memory_space<vmem>>, vector<16x1xf32>
    %cst_208 = arith.constant 9.99999974E-6 : f32
    %239 = vector.broadcast %cst_208 : f32 to vector<16x1xf32>
    %240 = arith.addf %237, %239 : vector<16x1xf32>
    %241 = math.rsqrt %240 : vector<16x1xf32>
    %242 = arith.mulf %238, %241 : vector<16x1xf32>
    %c0_209 = arith.constant 0 : index
    %c0_210 = arith.constant 0 : index
    %243 = vector.load %arg3[%c0_209, %c0_210] : memref<16x1xf32, #tpu.memory_space<vmem>>, vector<16x1xf32>
    %244 = arith.mulf %231, %242 : vector<16x1xf32>
    %245 = arith.subf %243, %244 : vector<16x1xf32>
    %c0_211 = arith.constant 0 : index
    %c0_212 = arith.constant 0 : index
    %246 = vector.load %arg6[%c0_211, %c0_212] : memref<16x1920xf32, #tpu.memory_space<vmem>>, vector<16x512xf32>
    %247 = vector.broadcast %242 : vector<16x1xf32> to vector<16x512xf32>
    %248 = arith.mulf %246, %247 : vector<16x512xf32>
    %249 = vector.broadcast %245 : vector<16x1xf32> to vector<16x512xf32>
    %250 = arith.addf %248, %249 : vector<16x512xf32>
    %cst_213 = arith.constant 0.000000e+00 : f32
    %251 = vector.broadcast %cst_213 : f32 to vector<16x512xf32>
    %252 = arith.maximumf %250, %251 : vector<16x512xf32>
    %253 = arith.truncf %252 : vector<16x512xf32> to vector<16x512xbf16>
    %c0_214 = arith.constant 0 : index
    %c0_215 = arith.constant 0 : index
    %254 = vector.load %arg5[%c0_214, %c0_215] : memref<16x1920xbf16, #tpu.memory_space<vmem>>, vector<16x512xbf16>
    tpu.vector_store %arg5[%c0_214, %c0_215], %253 {strides = array<i32>} : memref<16x1920xbf16, #tpu.memory_space<vmem>>, vector<16x512xbf16>,
    %c0_216 = arith.constant 0 : index
    %c512_217 = arith.constant 512 : index
    %255 = vector.load %arg6[%c0_216, %c512_217] : memref<16x1920xf32, #tpu.memory_space<vmem>>, vector<16x512xf32>
    %256 = vector.broadcast %242 : vector<16x1xf32> to vector<16x512xf32>
    %257 = arith.mulf %255, %256 : vector<16x512xf32>
    %258 = vector.broadcast %245 : vector<16x1xf32> to vector<16x512xf32>
    %259 = arith.addf %257, %258 : vector<16x512xf32>
    %cst_218 = arith.constant 0.000000e+00 : f32
    %260 = vector.broadcast %cst_218 : f32 to vector<16x512xf32>
    %261 = arith.maximumf %259, %260 : vector<16x512xf32>
    %262 = arith.truncf %261 : vector<16x512xf32> to vector<16x512xbf16>
    %c0_219 = arith.constant 0 : index
    %c512_220 = arith.constant 512 : index
    %263 = vector.load %arg5[%c0_219, %c512_220] : memref<16x1920xbf16, #tpu.memory_space<vmem>>, vector<16x512xbf16>
    tpu.vector_store %arg5[%c0_219, %c512_220], %262 {strides = array<i32>} : memref<16x1920xbf16, #tpu.memory_space<vmem>>, vector<16x512xbf16>,
    %c0_221 = arith.constant 0 : index
    %c1024_222 = arith.constant 1024 : index
    %264 = vector.load %arg6[%c0_221, %c1024_222] : memref<16x1920xf32, #tpu.memory_space<vmem>>, vector<16x512xf32>
    %265 = vector.broadcast %242 : vector<16x1xf32> to vector<16x512xf32>
    %266 = arith.mulf %264, %265 : vector<16x512xf32>
    %267 = vector.broadcast %245 : vector<16x1xf32> to vector<16x512xf32>
    %268 = arith.addf %266, %267 : vector<16x512xf32>
    %cst_223 = arith.constant 0.000000e+00 : f32
    %269 = vector.broadcast %cst_223 : f32 to vector<16x512xf32>
    %270 = arith.maximumf %268, %269 : vector<16x512xf32>
    %271 = arith.truncf %270 : vector<16x512xf32> to vector<16x512xbf16>
    %c0_224 = arith.constant 0 : index
    %c1024_225 = arith.constant 1024 : index
    %272 = vector.load %arg5[%c0_224, %c1024_225] : memref<16x1920xbf16, #tpu.memory_space<vmem>>, vector<16x512xbf16>
    tpu.vector_store %arg5[%c0_224, %c1024_225], %271 {strides = array<i32>} : memref<16x1920xbf16, #tpu.memory_space<vmem>>, vector<16x512xbf16>,
    %c0_226 = arith.constant 0 : index
    %c1536_227 = arith.constant 1536 : index
    %273 = vector.load %arg6[%c0_226, %c1536_227] : memref<16x1920xf32, #tpu.memory_space<vmem>>, vector<16x384xf32>
    %274 = vector.broadcast %242 : vector<16x1xf32> to vector<16x384xf32>
    %275 = arith.mulf %273, %274 : vector<16x384xf32>
    %276 = vector.broadcast %245 : vector<16x1xf32> to vector<16x384xf32>
    %277 = arith.addf %275, %276 : vector<16x384xf32>
    %cst_228 = arith.constant 0.000000e+00 : f32
    %278 = vector.broadcast %cst_228 : f32 to vector<16x384xf32>
    %279 = arith.maximumf %277, %278 : vector<16x384xf32>
    %280 = arith.truncf %279 : vector<16x384xf32> to vector<16x384xbf16>
    %c0_229 = arith.constant 0 : index
    %c1536_230 = arith.constant 1536 : index
    %281 = vector.load %arg5[%c0_229, %c1536_230] : memref<16x1920xbf16, #tpu.memory_space<vmem>>, vector<16x384xbf16>
    tpu.vector_store %arg5[%c0_229, %c1536_230], %280 {strides = array<i32>} : memref<16x1920xbf16, #tpu.memory_space<vmem>>, vector<16x384xbf16>,
    return
  }
}

module attributes {stable_mosaic.version = 11 : i64} {
  func.func @_conv_bn_relu_kernel(%arg0: memref<16x640xbf16, #tpu.memory_space<vmem>>, %arg1: memref<25x24x16xbf16, #tpu.memory_space<vmem>>, %arg2: memref<24x1xf32, #tpu.memory_space<vmem>>, %arg3: memref<24x1xf32, #tpu.memory_space<vmem>>, %arg4: memref<1x512xf32, #tpu.memory_space<vmem>>, %arg5: memref<24x512xbf16, #tpu.memory_space<vmem>>, %arg6: memref<24x512xf32, #tpu.memory_space<vmem>>) attributes {dimension_semantics = [], scalar_prefetch = 0 : i64, scratch_operands = 1 : i64, tpu.core_type = #tpu.core_type<tc>} {
    %cst = arith.constant 0.000000e+00 : f32
    %0 = vector.broadcast %cst : f32 to vector<24x1xf32>
    %cst_0 = arith.constant 0.000000e+00 : f32
    %1 = vector.broadcast %cst_0 : f32 to vector<24x1xf32>
    %cst_1 = arith.constant 0.000000e+00 : f32
    %2 = vector.broadcast %cst_1 : f32 to vector<24x512xf32>
    %c0 = arith.constant 0 : index
    %c0_2 = arith.constant 0 : index
    %3 = vector.load %arg0[%c0, %c0_2] : memref<16x640xbf16, #tpu.memory_space<vmem>>, vector<16x512xbf16>
    %c0_3 = arith.constant 0 : index
    %c0_4 = arith.constant 0 : index
    %c0_5 = arith.constant 0 : index
    %4 = vector.load %arg1[%c0_3, %c0_4, %c0_5] : memref<25x24x16xbf16, #tpu.memory_space<vmem>>, vector<1x24x16xbf16>
    %5 = vector.shape_cast %4 : vector<1x24x16xbf16> to vector<24x16xbf16>
    %cst_6 = arith.constant dense<0.000000e+00> : vector<24x512xf32>
    %6 = tpu.matmul %5, %3, %cst_6 {dimension_numbers = #tpu.dot_dimension_numbers<[1], [0], [0], [1], [0, 0, 1, 1], [], []>} : vector<24x16xbf16>, vector<16x512xbf16>, vector<24x512xf32> -> vector<24x512xf32>
    %7 = arith.addf %2, %6 : vector<24x512xf32>
    %c0_7 = arith.constant 0 : index
    %c1 = arith.constant 1 : index
    %8 = vector.load %arg0[%c0_7, %c1] : memref<16x640xbf16, #tpu.memory_space<vmem>>, vector<16x512xbf16>
    %c1_8 = arith.constant 1 : index
    %c0_9 = arith.constant 0 : index
    %c0_10 = arith.constant 0 : index
    %9 = vector.load %arg1[%c1_8, %c0_9, %c0_10] : memref<25x24x16xbf16, #tpu.memory_space<vmem>>, vector<1x24x16xbf16>
    %10 = vector.shape_cast %9 : vector<1x24x16xbf16> to vector<24x16xbf16>
    %cst_11 = arith.constant dense<0.000000e+00> : vector<24x512xf32>
    %11 = tpu.matmul %10, %8, %cst_11 {dimension_numbers = #tpu.dot_dimension_numbers<[1], [0], [0], [1], [0, 0, 1, 1], [], []>} : vector<24x16xbf16>, vector<16x512xbf16>, vector<24x512xf32> -> vector<24x512xf32>
    %12 = arith.addf %7, %11 : vector<24x512xf32>
    %c0_12 = arith.constant 0 : index
    %c2 = arith.constant 2 : index
    %13 = vector.load %arg0[%c0_12, %c2] : memref<16x640xbf16, #tpu.memory_space<vmem>>, vector<16x512xbf16>
    %c2_13 = arith.constant 2 : index
    %c0_14 = arith.constant 0 : index
    %c0_15 = arith.constant 0 : index
    %14 = vector.load %arg1[%c2_13, %c0_14, %c0_15] : memref<25x24x16xbf16, #tpu.memory_space<vmem>>, vector<1x24x16xbf16>
    %15 = vector.shape_cast %14 : vector<1x24x16xbf16> to vector<24x16xbf16>
    %cst_16 = arith.constant dense<0.000000e+00> : vector<24x512xf32>
    %16 = tpu.matmul %15, %13, %cst_16 {dimension_numbers = #tpu.dot_dimension_numbers<[1], [0], [0], [1], [0, 0, 1, 1], [], []>} : vector<24x16xbf16>, vector<16x512xbf16>, vector<24x512xf32> -> vector<24x512xf32>
    %17 = arith.addf %12, %16 : vector<24x512xf32>
    %c0_17 = arith.constant 0 : index
    %c3 = arith.constant 3 : index
    %18 = vector.load %arg0[%c0_17, %c3] : memref<16x640xbf16, #tpu.memory_space<vmem>>, vector<16x512xbf16>
    %c3_18 = arith.constant 3 : index
    %c0_19 = arith.constant 0 : index
    %c0_20 = arith.constant 0 : index
    %19 = vector.load %arg1[%c3_18, %c0_19, %c0_20] : memref<25x24x16xbf16, #tpu.memory_space<vmem>>, vector<1x24x16xbf16>
    %20 = vector.shape_cast %19 : vector<1x24x16xbf16> to vector<24x16xbf16>
    %cst_21 = arith.constant dense<0.000000e+00> : vector<24x512xf32>
    %21 = tpu.matmul %20, %18, %cst_21 {dimension_numbers = #tpu.dot_dimension_numbers<[1], [0], [0], [1], [0, 0, 1, 1], [], []>} : vector<24x16xbf16>, vector<16x512xbf16>, vector<24x512xf32> -> vector<24x512xf32>
    %22 = arith.addf %17, %21 : vector<24x512xf32>
    %c0_22 = arith.constant 0 : index
    %c4 = arith.constant 4 : index
    %23 = vector.load %arg0[%c0_22, %c4] : memref<16x640xbf16, #tpu.memory_space<vmem>>, vector<16x512xbf16>
    %c4_23 = arith.constant 4 : index
    %c0_24 = arith.constant 0 : index
    %c0_25 = arith.constant 0 : index
    %24 = vector.load %arg1[%c4_23, %c0_24, %c0_25] : memref<25x24x16xbf16, #tpu.memory_space<vmem>>, vector<1x24x16xbf16>
    %25 = vector.shape_cast %24 : vector<1x24x16xbf16> to vector<24x16xbf16>
    %cst_26 = arith.constant dense<0.000000e+00> : vector<24x512xf32>
    %26 = tpu.matmul %25, %23, %cst_26 {dimension_numbers = #tpu.dot_dimension_numbers<[1], [0], [0], [1], [0, 0, 1, 1], [], []>} : vector<24x16xbf16>, vector<16x512xbf16>, vector<24x512xf32> -> vector<24x512xf32>
    %27 = arith.addf %22, %26 : vector<24x512xf32>
    %c0_27 = arith.constant 0 : index
    %c16 = arith.constant 16 : index
    %28 = vector.load %arg0[%c0_27, %c16] : memref<16x640xbf16, #tpu.memory_space<vmem>>, vector<16x512xbf16>
    %c5 = arith.constant 5 : index
    %c0_28 = arith.constant 0 : index
    %c0_29 = arith.constant 0 : index
    %29 = vector.load %arg1[%c5, %c0_28, %c0_29] : memref<25x24x16xbf16, #tpu.memory_space<vmem>>, vector<1x24x16xbf16>
    %30 = vector.shape_cast %29 : vector<1x24x16xbf16> to vector<24x16xbf16>
    %cst_30 = arith.constant dense<0.000000e+00> : vector<24x512xf32>
    %31 = tpu.matmul %30, %28, %cst_30 {dimension_numbers = #tpu.dot_dimension_numbers<[1], [0], [0], [1], [0, 0, 1, 1], [], []>} : vector<24x16xbf16>, vector<16x512xbf16>, vector<24x512xf32> -> vector<24x512xf32>
    %32 = arith.addf %27, %31 : vector<24x512xf32>
    %c0_31 = arith.constant 0 : index
    %c17 = arith.constant 17 : index
    %33 = vector.load %arg0[%c0_31, %c17] : memref<16x640xbf16, #tpu.memory_space<vmem>>, vector<16x512xbf16>
    %c6 = arith.constant 6 : index
    %c0_32 = arith.constant 0 : index
    %c0_33 = arith.constant 0 : index
    %34 = vector.load %arg1[%c6, %c0_32, %c0_33] : memref<25x24x16xbf16, #tpu.memory_space<vmem>>, vector<1x24x16xbf16>
    %35 = vector.shape_cast %34 : vector<1x24x16xbf16> to vector<24x16xbf16>
    %cst_34 = arith.constant dense<0.000000e+00> : vector<24x512xf32>
    %36 = tpu.matmul %35, %33, %cst_34 {dimension_numbers = #tpu.dot_dimension_numbers<[1], [0], [0], [1], [0, 0, 1, 1], [], []>} : vector<24x16xbf16>, vector<16x512xbf16>, vector<24x512xf32> -> vector<24x512xf32>
    %37 = arith.addf %32, %36 : vector<24x512xf32>
    %c0_35 = arith.constant 0 : index
    %c18 = arith.constant 18 : index
    %38 = vector.load %arg0[%c0_35, %c18] : memref<16x640xbf16, #tpu.memory_space<vmem>>, vector<16x512xbf16>
    %c7 = arith.constant 7 : index
    %c0_36 = arith.constant 0 : index
    %c0_37 = arith.constant 0 : index
    %39 = vector.load %arg1[%c7, %c0_36, %c0_37] : memref<25x24x16xbf16, #tpu.memory_space<vmem>>, vector<1x24x16xbf16>
    %40 = vector.shape_cast %39 : vector<1x24x16xbf16> to vector<24x16xbf16>
    %cst_38 = arith.constant dense<0.000000e+00> : vector<24x512xf32>
    %41 = tpu.matmul %40, %38, %cst_38 {dimension_numbers = #tpu.dot_dimension_numbers<[1], [0], [0], [1], [0, 0, 1, 1], [], []>} : vector<24x16xbf16>, vector<16x512xbf16>, vector<24x512xf32> -> vector<24x512xf32>
    %42 = arith.addf %37, %41 : vector<24x512xf32>
    %c0_39 = arith.constant 0 : index
    %c19 = arith.constant 19 : index
    %43 = vector.load %arg0[%c0_39, %c19] : memref<16x640xbf16, #tpu.memory_space<vmem>>, vector<16x512xbf16>
    %c8 = arith.constant 8 : index
    %c0_40 = arith.constant 0 : index
    %c0_41 = arith.constant 0 : index
    %44 = vector.load %arg1[%c8, %c0_40, %c0_41] : memref<25x24x16xbf16, #tpu.memory_space<vmem>>, vector<1x24x16xbf16>
    %45 = vector.shape_cast %44 : vector<1x24x16xbf16> to vector<24x16xbf16>
    %cst_42 = arith.constant dense<0.000000e+00> : vector<24x512xf32>
    %46 = tpu.matmul %45, %43, %cst_42 {dimension_numbers = #tpu.dot_dimension_numbers<[1], [0], [0], [1], [0, 0, 1, 1], [], []>} : vector<24x16xbf16>, vector<16x512xbf16>, vector<24x512xf32> -> vector<24x512xf32>
    %47 = arith.addf %42, %46 : vector<24x512xf32>
    %c0_43 = arith.constant 0 : index
    %c20 = arith.constant 20 : index
    %48 = vector.load %arg0[%c0_43, %c20] : memref<16x640xbf16, #tpu.memory_space<vmem>>, vector<16x512xbf16>
    %c9 = arith.constant 9 : index
    %c0_44 = arith.constant 0 : index
    %c0_45 = arith.constant 0 : index
    %49 = vector.load %arg1[%c9, %c0_44, %c0_45] : memref<25x24x16xbf16, #tpu.memory_space<vmem>>, vector<1x24x16xbf16>
    %50 = vector.shape_cast %49 : vector<1x24x16xbf16> to vector<24x16xbf16>
    %cst_46 = arith.constant dense<0.000000e+00> : vector<24x512xf32>
    %51 = tpu.matmul %50, %48, %cst_46 {dimension_numbers = #tpu.dot_dimension_numbers<[1], [0], [0], [1], [0, 0, 1, 1], [], []>} : vector<24x16xbf16>, vector<16x512xbf16>, vector<24x512xf32> -> vector<24x512xf32>
    %52 = arith.addf %47, %51 : vector<24x512xf32>
    %c0_47 = arith.constant 0 : index
    %c32 = arith.constant 32 : index
    %53 = vector.load %arg0[%c0_47, %c32] : memref<16x640xbf16, #tpu.memory_space<vmem>>, vector<16x512xbf16>
    %c10 = arith.constant 10 : index
    %c0_48 = arith.constant 0 : index
    %c0_49 = arith.constant 0 : index
    %54 = vector.load %arg1[%c10, %c0_48, %c0_49] : memref<25x24x16xbf16, #tpu.memory_space<vmem>>, vector<1x24x16xbf16>
    %55 = vector.shape_cast %54 : vector<1x24x16xbf16> to vector<24x16xbf16>
    %cst_50 = arith.constant dense<0.000000e+00> : vector<24x512xf32>
    %56 = tpu.matmul %55, %53, %cst_50 {dimension_numbers = #tpu.dot_dimension_numbers<[1], [0], [0], [1], [0, 0, 1, 1], [], []>} : vector<24x16xbf16>, vector<16x512xbf16>, vector<24x512xf32> -> vector<24x512xf32>
    %57 = arith.addf %52, %56 : vector<24x512xf32>
    %c0_51 = arith.constant 0 : index
    %c33 = arith.constant 33 : index
    %58 = vector.load %arg0[%c0_51, %c33] : memref<16x640xbf16, #tpu.memory_space<vmem>>, vector<16x512xbf16>
    %c11 = arith.constant 11 : index
    %c0_52 = arith.constant 0 : index
    %c0_53 = arith.constant 0 : index
    %59 = vector.load %arg1[%c11, %c0_52, %c0_53] : memref<25x24x16xbf16, #tpu.memory_space<vmem>>, vector<1x24x16xbf16>
    %60 = vector.shape_cast %59 : vector<1x24x16xbf16> to vector<24x16xbf16>
    %cst_54 = arith.constant dense<0.000000e+00> : vector<24x512xf32>
    %61 = tpu.matmul %60, %58, %cst_54 {dimension_numbers = #tpu.dot_dimension_numbers<[1], [0], [0], [1], [0, 0, 1, 1], [], []>} : vector<24x16xbf16>, vector<16x512xbf16>, vector<24x512xf32> -> vector<24x512xf32>
    %62 = arith.addf %57, %61 : vector<24x512xf32>
    %c0_55 = arith.constant 0 : index
    %c34 = arith.constant 34 : index
    %63 = vector.load %arg0[%c0_55, %c34] : memref<16x640xbf16, #tpu.memory_space<vmem>>, vector<16x512xbf16>
    %c12 = arith.constant 12 : index
    %c0_56 = arith.constant 0 : index
    %c0_57 = arith.constant 0 : index
    %64 = vector.load %arg1[%c12, %c0_56, %c0_57] : memref<25x24x16xbf16, #tpu.memory_space<vmem>>, vector<1x24x16xbf16>
    %65 = vector.shape_cast %64 : vector<1x24x16xbf16> to vector<24x16xbf16>
    %cst_58 = arith.constant dense<0.000000e+00> : vector<24x512xf32>
    %66 = tpu.matmul %65, %63, %cst_58 {dimension_numbers = #tpu.dot_dimension_numbers<[1], [0], [0], [1], [0, 0, 1, 1], [], []>} : vector<24x16xbf16>, vector<16x512xbf16>, vector<24x512xf32> -> vector<24x512xf32>
    %67 = arith.addf %62, %66 : vector<24x512xf32>
    %c0_59 = arith.constant 0 : index
    %c35 = arith.constant 35 : index
    %68 = vector.load %arg0[%c0_59, %c35] : memref<16x640xbf16, #tpu.memory_space<vmem>>, vector<16x512xbf16>
    %c13 = arith.constant 13 : index
    %c0_60 = arith.constant 0 : index
    %c0_61 = arith.constant 0 : index
    %69 = vector.load %arg1[%c13, %c0_60, %c0_61] : memref<25x24x16xbf16, #tpu.memory_space<vmem>>, vector<1x24x16xbf16>
    %70 = vector.shape_cast %69 : vector<1x24x16xbf16> to vector<24x16xbf16>
    %cst_62 = arith.constant dense<0.000000e+00> : vector<24x512xf32>
    %71 = tpu.matmul %70, %68, %cst_62 {dimension_numbers = #tpu.dot_dimension_numbers<[1], [0], [0], [1], [0, 0, 1, 1], [], []>} : vector<24x16xbf16>, vector<16x512xbf16>, vector<24x512xf32> -> vector<24x512xf32>
    %72 = arith.addf %67, %71 : vector<24x512xf32>
    %c0_63 = arith.constant 0 : index
    %c36 = arith.constant 36 : index
    %73 = vector.load %arg0[%c0_63, %c36] : memref<16x640xbf16, #tpu.memory_space<vmem>>, vector<16x512xbf16>
    %c14 = arith.constant 14 : index
    %c0_64 = arith.constant 0 : index
    %c0_65 = arith.constant 0 : index
    %74 = vector.load %arg1[%c14, %c0_64, %c0_65] : memref<25x24x16xbf16, #tpu.memory_space<vmem>>, vector<1x24x16xbf16>
    %75 = vector.shape_cast %74 : vector<1x24x16xbf16> to vector<24x16xbf16>
    %cst_66 = arith.constant dense<0.000000e+00> : vector<24x512xf32>
    %76 = tpu.matmul %75, %73, %cst_66 {dimension_numbers = #tpu.dot_dimension_numbers<[1], [0], [0], [1], [0, 0, 1, 1], [], []>} : vector<24x16xbf16>, vector<16x512xbf16>, vector<24x512xf32> -> vector<24x512xf32>
    %77 = arith.addf %72, %76 : vector<24x512xf32>
    %c0_67 = arith.constant 0 : index
    %c48 = arith.constant 48 : index
    %78 = vector.load %arg0[%c0_67, %c48] : memref<16x640xbf16, #tpu.memory_space<vmem>>, vector<16x512xbf16>
    %c15 = arith.constant 15 : index
    %c0_68 = arith.constant 0 : index
    %c0_69 = arith.constant 0 : index
    %79 = vector.load %arg1[%c15, %c0_68, %c0_69] : memref<25x24x16xbf16, #tpu.memory_space<vmem>>, vector<1x24x16xbf16>
    %80 = vector.shape_cast %79 : vector<1x24x16xbf16> to vector<24x16xbf16>
    %cst_70 = arith.constant dense<0.000000e+00> : vector<24x512xf32>
    %81 = tpu.matmul %80, %78, %cst_70 {dimension_numbers = #tpu.dot_dimension_numbers<[1], [0], [0], [1], [0, 0, 1, 1], [], []>} : vector<24x16xbf16>, vector<16x512xbf16>, vector<24x512xf32> -> vector<24x512xf32>
    %82 = arith.addf %77, %81 : vector<24x512xf32>
    %c0_71 = arith.constant 0 : index
    %c49 = arith.constant 49 : index
    %83 = vector.load %arg0[%c0_71, %c49] : memref<16x640xbf16, #tpu.memory_space<vmem>>, vector<16x512xbf16>
    %c16_72 = arith.constant 16 : index
    %c0_73 = arith.constant 0 : index
    %c0_74 = arith.constant 0 : index
    %84 = vector.load %arg1[%c16_72, %c0_73, %c0_74] : memref<25x24x16xbf16, #tpu.memory_space<vmem>>, vector<1x24x16xbf16>
    %85 = vector.shape_cast %84 : vector<1x24x16xbf16> to vector<24x16xbf16>
    %cst_75 = arith.constant dense<0.000000e+00> : vector<24x512xf32>
    %86 = tpu.matmul %85, %83, %cst_75 {dimension_numbers = #tpu.dot_dimension_numbers<[1], [0], [0], [1], [0, 0, 1, 1], [], []>} : vector<24x16xbf16>, vector<16x512xbf16>, vector<24x512xf32> -> vector<24x512xf32>
    %87 = arith.addf %82, %86 : vector<24x512xf32>
    %c0_76 = arith.constant 0 : index
    %c50 = arith.constant 50 : index
    %88 = vector.load %arg0[%c0_76, %c50] : memref<16x640xbf16, #tpu.memory_space<vmem>>, vector<16x512xbf16>
    %c17_77 = arith.constant 17 : index
    %c0_78 = arith.constant 0 : index
    %c0_79 = arith.constant 0 : index
    %89 = vector.load %arg1[%c17_77, %c0_78, %c0_79] : memref<25x24x16xbf16, #tpu.memory_space<vmem>>, vector<1x24x16xbf16>
    %90 = vector.shape_cast %89 : vector<1x24x16xbf16> to vector<24x16xbf16>
    %cst_80 = arith.constant dense<0.000000e+00> : vector<24x512xf32>
    %91 = tpu.matmul %90, %88, %cst_80 {dimension_numbers = #tpu.dot_dimension_numbers<[1], [0], [0], [1], [0, 0, 1, 1], [], []>} : vector<24x16xbf16>, vector<16x512xbf16>, vector<24x512xf32> -> vector<24x512xf32>
    %92 = arith.addf %87, %91 : vector<24x512xf32>
    %c0_81 = arith.constant 0 : index
    %c51 = arith.constant 51 : index
    %93 = vector.load %arg0[%c0_81, %c51] : memref<16x640xbf16, #tpu.memory_space<vmem>>, vector<16x512xbf16>
    %c18_82 = arith.constant 18 : index
    %c0_83 = arith.constant 0 : index
    %c0_84 = arith.constant 0 : index
    %94 = vector.load %arg1[%c18_82, %c0_83, %c0_84] : memref<25x24x16xbf16, #tpu.memory_space<vmem>>, vector<1x24x16xbf16>
    %95 = vector.shape_cast %94 : vector<1x24x16xbf16> to vector<24x16xbf16>
    %cst_85 = arith.constant dense<0.000000e+00> : vector<24x512xf32>
    %96 = tpu.matmul %95, %93, %cst_85 {dimension_numbers = #tpu.dot_dimension_numbers<[1], [0], [0], [1], [0, 0, 1, 1], [], []>} : vector<24x16xbf16>, vector<16x512xbf16>, vector<24x512xf32> -> vector<24x512xf32>
    %97 = arith.addf %92, %96 : vector<24x512xf32>
    %c0_86 = arith.constant 0 : index
    %c52 = arith.constant 52 : index
    %98 = vector.load %arg0[%c0_86, %c52] : memref<16x640xbf16, #tpu.memory_space<vmem>>, vector<16x512xbf16>
    %c19_87 = arith.constant 19 : index
    %c0_88 = arith.constant 0 : index
    %c0_89 = arith.constant 0 : index
    %99 = vector.load %arg1[%c19_87, %c0_88, %c0_89] : memref<25x24x16xbf16, #tpu.memory_space<vmem>>, vector<1x24x16xbf16>
    %100 = vector.shape_cast %99 : vector<1x24x16xbf16> to vector<24x16xbf16>
    %cst_90 = arith.constant dense<0.000000e+00> : vector<24x512xf32>
    %101 = tpu.matmul %100, %98, %cst_90 {dimension_numbers = #tpu.dot_dimension_numbers<[1], [0], [0], [1], [0, 0, 1, 1], [], []>} : vector<24x16xbf16>, vector<16x512xbf16>, vector<24x512xf32> -> vector<24x512xf32>
    %102 = arith.addf %97, %101 : vector<24x512xf32>
    %c0_91 = arith.constant 0 : index
    %c64 = arith.constant 64 : index
    %103 = vector.load %arg0[%c0_91, %c64] : memref<16x640xbf16, #tpu.memory_space<vmem>>, vector<16x512xbf16>
    %c20_92 = arith.constant 20 : index
    %c0_93 = arith.constant 0 : index
    %c0_94 = arith.constant 0 : index
    %104 = vector.load %arg1[%c20_92, %c0_93, %c0_94] : memref<25x24x16xbf16, #tpu.memory_space<vmem>>, vector<1x24x16xbf16>
    %105 = vector.shape_cast %104 : vector<1x24x16xbf16> to vector<24x16xbf16>
    %cst_95 = arith.constant dense<0.000000e+00> : vector<24x512xf32>
    %106 = tpu.matmul %105, %103, %cst_95 {dimension_numbers = #tpu.dot_dimension_numbers<[1], [0], [0], [1], [0, 0, 1, 1], [], []>} : vector<24x16xbf16>, vector<16x512xbf16>, vector<24x512xf32> -> vector<24x512xf32>
    %107 = arith.addf %102, %106 : vector<24x512xf32>
    %c0_96 = arith.constant 0 : index
    %c65 = arith.constant 65 : index
    %108 = vector.load %arg0[%c0_96, %c65] : memref<16x640xbf16, #tpu.memory_space<vmem>>, vector<16x512xbf16>
    %c21 = arith.constant 21 : index
    %c0_97 = arith.constant 0 : index
    %c0_98 = arith.constant 0 : index
    %109 = vector.load %arg1[%c21, %c0_97, %c0_98] : memref<25x24x16xbf16, #tpu.memory_space<vmem>>, vector<1x24x16xbf16>
    %110 = vector.shape_cast %109 : vector<1x24x16xbf16> to vector<24x16xbf16>
    %cst_99 = arith.constant dense<0.000000e+00> : vector<24x512xf32>
    %111 = tpu.matmul %110, %108, %cst_99 {dimension_numbers = #tpu.dot_dimension_numbers<[1], [0], [0], [1], [0, 0, 1, 1], [], []>} : vector<24x16xbf16>, vector<16x512xbf16>, vector<24x512xf32> -> vector<24x512xf32>
    %112 = arith.addf %107, %111 : vector<24x512xf32>
    %c0_100 = arith.constant 0 : index
    %c66 = arith.constant 66 : index
    %113 = vector.load %arg0[%c0_100, %c66] : memref<16x640xbf16, #tpu.memory_space<vmem>>, vector<16x512xbf16>
    %c22 = arith.constant 22 : index
    %c0_101 = arith.constant 0 : index
    %c0_102 = arith.constant 0 : index
    %114 = vector.load %arg1[%c22, %c0_101, %c0_102] : memref<25x24x16xbf16, #tpu.memory_space<vmem>>, vector<1x24x16xbf16>
    %115 = vector.shape_cast %114 : vector<1x24x16xbf16> to vector<24x16xbf16>
    %cst_103 = arith.constant dense<0.000000e+00> : vector<24x512xf32>
    %116 = tpu.matmul %115, %113, %cst_103 {dimension_numbers = #tpu.dot_dimension_numbers<[1], [0], [0], [1], [0, 0, 1, 1], [], []>} : vector<24x16xbf16>, vector<16x512xbf16>, vector<24x512xf32> -> vector<24x512xf32>
    %117 = arith.addf %112, %116 : vector<24x512xf32>
    %c0_104 = arith.constant 0 : index
    %c67 = arith.constant 67 : index
    %118 = vector.load %arg0[%c0_104, %c67] : memref<16x640xbf16, #tpu.memory_space<vmem>>, vector<16x512xbf16>
    %c23 = arith.constant 23 : index
    %c0_105 = arith.constant 0 : index
    %c0_106 = arith.constant 0 : index
    %119 = vector.load %arg1[%c23, %c0_105, %c0_106] : memref<25x24x16xbf16, #tpu.memory_space<vmem>>, vector<1x24x16xbf16>
    %120 = vector.shape_cast %119 : vector<1x24x16xbf16> to vector<24x16xbf16>
    %cst_107 = arith.constant dense<0.000000e+00> : vector<24x512xf32>
    %121 = tpu.matmul %120, %118, %cst_107 {dimension_numbers = #tpu.dot_dimension_numbers<[1], [0], [0], [1], [0, 0, 1, 1], [], []>} : vector<24x16xbf16>, vector<16x512xbf16>, vector<24x512xf32> -> vector<24x512xf32>
    %122 = arith.addf %117, %121 : vector<24x512xf32>
    %c0_108 = arith.constant 0 : index
    %c68 = arith.constant 68 : index
    %123 = vector.load %arg0[%c0_108, %c68] : memref<16x640xbf16, #tpu.memory_space<vmem>>, vector<16x512xbf16>
    %c24 = arith.constant 24 : index
    %c0_109 = arith.constant 0 : index
    %c0_110 = arith.constant 0 : index
    %124 = vector.load %arg1[%c24, %c0_109, %c0_110] : memref<25x24x16xbf16, #tpu.memory_space<vmem>>, vector<1x24x16xbf16>
    %125 = vector.shape_cast %124 : vector<1x24x16xbf16> to vector<24x16xbf16>
    %cst_111 = arith.constant dense<0.000000e+00> : vector<24x512xf32>
    %126 = tpu.matmul %125, %123, %cst_111 {dimension_numbers = #tpu.dot_dimension_numbers<[1], [0], [0], [1], [0, 0, 1, 1], [], []>} : vector<24x16xbf16>, vector<16x512xbf16>, vector<24x512xf32> -> vector<24x512xf32>
    %127 = arith.addf %122, %126 : vector<24x512xf32>
    %c0_112 = arith.constant 0 : index
    %c0_113 = arith.constant 0 : index
    %128 = vector.load %arg6[%c0_112, %c0_113] : memref<24x512xf32, #tpu.memory_space<vmem>>, vector<24x512xf32>
    tpu.vector_store %arg6[%c0_112, %c0_113], %127 {strides = array<i32>} : memref<24x512xf32, #tpu.memory_space<vmem>>, vector<24x512xf32>,
    %c0_114 = arith.constant 0 : index
    %c0_115 = arith.constant 0 : index
    %129 = vector.load %arg4[%c0_114, %c0_115] : memref<1x512xf32, #tpu.memory_space<vmem>>, vector<1x512xf32>
    %130 = vector.broadcast %129 : vector<1x512xf32> to vector<24x512xf32>
    %131 = arith.mulf %127, %130 : vector<24x512xf32>
    %cst_116 = arith.constant dense<0.000000e+00> : vector<24xf32>
    %132 = vector.multi_reduction <add>, %131, %cst_116 [1] : vector<24x512xf32> to vector<24xf32>
    %133 = vector.shape_cast %132 : vector<24xf32> to vector<24x1xf32>
    %134 = arith.addf %0, %133 : vector<24x1xf32>
    %135 = arith.mulf %131, %127 : vector<24x512xf32>
    %cst_117 = arith.constant dense<0.000000e+00> : vector<24xf32>
    %136 = vector.multi_reduction <add>, %135, %cst_117 [1] : vector<24x512xf32> to vector<24xf32>
    %137 = vector.shape_cast %136 : vector<24xf32> to vector<24x1xf32>
    %138 = arith.addf %1, %137 : vector<24x1xf32>
    %cst_118 = arith.constant 0.00347222225 : f32
    %139 = vector.broadcast %cst_118 : f32 to vector<24x1xf32>
    %140 = arith.mulf %134, %139 : vector<24x1xf32>
    %cst_119 = arith.constant 0.00347222225 : f32
    %141 = vector.broadcast %cst_119 : f32 to vector<24x1xf32>
    %142 = arith.mulf %138, %141 : vector<24x1xf32>
    %143 = arith.mulf %140, %140 : vector<24x1xf32>
    %144 = arith.subf %142, %143 : vector<24x1xf32>
    %cst_120 = arith.constant 0.000000e+00 : f32
    %145 = vector.broadcast %cst_120 : f32 to vector<24x1xf32>
    %146 = arith.maximumf %144, %145 : vector<24x1xf32>
    %c0_121 = arith.constant 0 : index
    %c0_122 = arith.constant 0 : index
    %147 = vector.load %arg2[%c0_121, %c0_122] : memref<24x1xf32, #tpu.memory_space<vmem>>, vector<24x1xf32>
    %cst_123 = arith.constant 9.99999974E-6 : f32
    %148 = vector.broadcast %cst_123 : f32 to vector<24x1xf32>
    %149 = arith.addf %146, %148 : vector<24x1xf32>
    %150 = math.rsqrt %149 : vector<24x1xf32>
    %151 = arith.mulf %147, %150 : vector<24x1xf32>
    %c0_124 = arith.constant 0 : index
    %c0_125 = arith.constant 0 : index
    %152 = vector.load %arg3[%c0_124, %c0_125] : memref<24x1xf32, #tpu.memory_space<vmem>>, vector<24x1xf32>
    %153 = arith.mulf %140, %151 : vector<24x1xf32>
    %154 = arith.subf %152, %153 : vector<24x1xf32>
    %c0_126 = arith.constant 0 : index
    %c0_127 = arith.constant 0 : index
    %155 = vector.load %arg6[%c0_126, %c0_127] : memref<24x512xf32, #tpu.memory_space<vmem>>, vector<24x512xf32>
    %156 = vector.broadcast %151 : vector<24x1xf32> to vector<24x512xf32>
    %157 = arith.mulf %155, %156 : vector<24x512xf32>
    %158 = vector.broadcast %154 : vector<24x1xf32> to vector<24x512xf32>
    %159 = arith.addf %157, %158 : vector<24x512xf32>
    %cst_128 = arith.constant 0.000000e+00 : f32
    %160 = vector.broadcast %cst_128 : f32 to vector<24x512xf32>
    %161 = arith.maximumf %159, %160 : vector<24x512xf32>
    %162 = arith.truncf %161 : vector<24x512xf32> to vector<24x512xbf16>
    %c0_129 = arith.constant 0 : index
    %c0_130 = arith.constant 0 : index
    %163 = vector.load %arg5[%c0_129, %c0_130] : memref<24x512xbf16, #tpu.memory_space<vmem>>, vector<24x512xbf16>
    tpu.vector_store %arg5[%c0_129, %c0_130], %162 {strides = array<i32>} : memref<24x512xbf16, #tpu.memory_space<vmem>>, vector<24x512xbf16>,
    return
  }
}

module attributes {stable_mosaic.version = 11 : i64} {
  func.func @_conv_bn_relu_kernel(%arg0: memref<24x640xbf16, #tpu.memory_space<vmem>>, %arg1: memref<25x24x24xbf16, #tpu.memory_space<vmem>>, %arg2: memref<24x1xf32, #tpu.memory_space<vmem>>, %arg3: memref<24x1xf32, #tpu.memory_space<vmem>>, %arg4: memref<1x512xf32, #tpu.memory_space<vmem>>, %arg5: memref<24x512xbf16, #tpu.memory_space<vmem>>, %arg6: memref<24x512xf32, #tpu.memory_space<vmem>>) attributes {dimension_semantics = [], scalar_prefetch = 0 : i64, scratch_operands = 1 : i64, tpu.core_type = #tpu.core_type<tc>} {
    %cst = arith.constant 0.000000e+00 : f32
    %0 = vector.broadcast %cst : f32 to vector<24x1xf32>
    %cst_0 = arith.constant 0.000000e+00 : f32
    %1 = vector.broadcast %cst_0 : f32 to vector<24x1xf32>
    %cst_1 = arith.constant 0.000000e+00 : f32
    %2 = vector.broadcast %cst_1 : f32 to vector<24x512xf32>
    %c0 = arith.constant 0 : index
    %c0_2 = arith.constant 0 : index
    %3 = vector.load %arg0[%c0, %c0_2] : memref<24x640xbf16, #tpu.memory_space<vmem>>, vector<24x512xbf16>
    %c0_3 = arith.constant 0 : index
    %c0_4 = arith.constant 0 : index
    %c0_5 = arith.constant 0 : index
    %4 = vector.load %arg1[%c0_3, %c0_4, %c0_5] : memref<25x24x24xbf16, #tpu.memory_space<vmem>>, vector<1x24x24xbf16>
    %5 = vector.shape_cast %4 : vector<1x24x24xbf16> to vector<24x24xbf16>
    %cst_6 = arith.constant dense<0.000000e+00> : vector<24x512xf32>
    %6 = tpu.matmul %5, %3, %cst_6 {dimension_numbers = #tpu.dot_dimension_numbers<[1], [0], [0], [1], [0, 0, 1, 1], [], []>} : vector<24x24xbf16>, vector<24x512xbf16>, vector<24x512xf32> -> vector<24x512xf32>
    %7 = arith.addf %2, %6 : vector<24x512xf32>
    %c0_7 = arith.constant 0 : index
    %c1 = arith.constant 1 : index
    %8 = vector.load %arg0[%c0_7, %c1] : memref<24x640xbf16, #tpu.memory_space<vmem>>, vector<24x512xbf16>
    %c1_8 = arith.constant 1 : index
    %c0_9 = arith.constant 0 : index
    %c0_10 = arith.constant 0 : index
    %9 = vector.load %arg1[%c1_8, %c0_9, %c0_10] : memref<25x24x24xbf16, #tpu.memory_space<vmem>>, vector<1x24x24xbf16>
    %10 = vector.shape_cast %9 : vector<1x24x24xbf16> to vector<24x24xbf16>
    %cst_11 = arith.constant dense<0.000000e+00> : vector<24x512xf32>
    %11 = tpu.matmul %10, %8, %cst_11 {dimension_numbers = #tpu.dot_dimension_numbers<[1], [0], [0], [1], [0, 0, 1, 1], [], []>} : vector<24x24xbf16>, vector<24x512xbf16>, vector<24x512xf32> -> vector<24x512xf32>
    %12 = arith.addf %7, %11 : vector<24x512xf32>
    %c0_12 = arith.constant 0 : index
    %c2 = arith.constant 2 : index
    %13 = vector.load %arg0[%c0_12, %c2] : memref<24x640xbf16, #tpu.memory_space<vmem>>, vector<24x512xbf16>
    %c2_13 = arith.constant 2 : index
    %c0_14 = arith.constant 0 : index
    %c0_15 = arith.constant 0 : index
    %14 = vector.load %arg1[%c2_13, %c0_14, %c0_15] : memref<25x24x24xbf16, #tpu.memory_space<vmem>>, vector<1x24x24xbf16>
    %15 = vector.shape_cast %14 : vector<1x24x24xbf16> to vector<24x24xbf16>
    %cst_16 = arith.constant dense<0.000000e+00> : vector<24x512xf32>
    %16 = tpu.matmul %15, %13, %cst_16 {dimension_numbers = #tpu.dot_dimension_numbers<[1], [0], [0], [1], [0, 0, 1, 1], [], []>} : vector<24x24xbf16>, vector<24x512xbf16>, vector<24x512xf32> -> vector<24x512xf32>
    %17 = arith.addf %12, %16 : vector<24x512xf32>
    %c0_17 = arith.constant 0 : index
    %c3 = arith.constant 3 : index
    %18 = vector.load %arg0[%c0_17, %c3] : memref<24x640xbf16, #tpu.memory_space<vmem>>, vector<24x512xbf16>
    %c3_18 = arith.constant 3 : index
    %c0_19 = arith.constant 0 : index
    %c0_20 = arith.constant 0 : index
    %19 = vector.load %arg1[%c3_18, %c0_19, %c0_20] : memref<25x24x24xbf16, #tpu.memory_space<vmem>>, vector<1x24x24xbf16>
    %20 = vector.shape_cast %19 : vector<1x24x24xbf16> to vector<24x24xbf16>
    %cst_21 = arith.constant dense<0.000000e+00> : vector<24x512xf32>
    %21 = tpu.matmul %20, %18, %cst_21 {dimension_numbers = #tpu.dot_dimension_numbers<[1], [0], [0], [1], [0, 0, 1, 1], [], []>} : vector<24x24xbf16>, vector<24x512xbf16>, vector<24x512xf32> -> vector<24x512xf32>
    %22 = arith.addf %17, %21 : vector<24x512xf32>
    %c0_22 = arith.constant 0 : index
    %c4 = arith.constant 4 : index
    %23 = vector.load %arg0[%c0_22, %c4] : memref<24x640xbf16, #tpu.memory_space<vmem>>, vector<24x512xbf16>
    %c4_23 = arith.constant 4 : index
    %c0_24 = arith.constant 0 : index
    %c0_25 = arith.constant 0 : index
    %24 = vector.load %arg1[%c4_23, %c0_24, %c0_25] : memref<25x24x24xbf16, #tpu.memory_space<vmem>>, vector<1x24x24xbf16>
    %25 = vector.shape_cast %24 : vector<1x24x24xbf16> to vector<24x24xbf16>
    %cst_26 = arith.constant dense<0.000000e+00> : vector<24x512xf32>
    %26 = tpu.matmul %25, %23, %cst_26 {dimension_numbers = #tpu.dot_dimension_numbers<[1], [0], [0], [1], [0, 0, 1, 1], [], []>} : vector<24x24xbf16>, vector<24x512xbf16>, vector<24x512xf32> -> vector<24x512xf32>
    %27 = arith.addf %22, %26 : vector<24x512xf32>
    %c0_27 = arith.constant 0 : index
    %c14 = arith.constant 14 : index
    %28 = vector.load %arg0[%c0_27, %c14] : memref<24x640xbf16, #tpu.memory_space<vmem>>, vector<24x512xbf16>
    %c5 = arith.constant 5 : index
    %c0_28 = arith.constant 0 : index
    %c0_29 = arith.constant 0 : index
    %29 = vector.load %arg1[%c5, %c0_28, %c0_29] : memref<25x24x24xbf16, #tpu.memory_space<vmem>>, vector<1x24x24xbf16>
    %30 = vector.shape_cast %29 : vector<1x24x24xbf16> to vector<24x24xbf16>
    %cst_30 = arith.constant dense<0.000000e+00> : vector<24x512xf32>
    %31 = tpu.matmul %30, %28, %cst_30 {dimension_numbers = #tpu.dot_dimension_numbers<[1], [0], [0], [1], [0, 0, 1, 1], [], []>} : vector<24x24xbf16>, vector<24x512xbf16>, vector<24x512xf32> -> vector<24x512xf32>
    %32 = arith.addf %27, %31 : vector<24x512xf32>
    %c0_31 = arith.constant 0 : index
    %c15 = arith.constant 15 : index
    %33 = vector.load %arg0[%c0_31, %c15] : memref<24x640xbf16, #tpu.memory_space<vmem>>, vector<24x512xbf16>
    %c6 = arith.constant 6 : index
    %c0_32 = arith.constant 0 : index
    %c0_33 = arith.constant 0 : index
    %34 = vector.load %arg1[%c6, %c0_32, %c0_33] : memref<25x24x24xbf16, #tpu.memory_space<vmem>>, vector<1x24x24xbf16>
    %35 = vector.shape_cast %34 : vector<1x24x24xbf16> to vector<24x24xbf16>
    %cst_34 = arith.constant dense<0.000000e+00> : vector<24x512xf32>
    %36 = tpu.matmul %35, %33, %cst_34 {dimension_numbers = #tpu.dot_dimension_numbers<[1], [0], [0], [1], [0, 0, 1, 1], [], []>} : vector<24x24xbf16>, vector<24x512xbf16>, vector<24x512xf32> -> vector<24x512xf32>
    %37 = arith.addf %32, %36 : vector<24x512xf32>
    %c0_35 = arith.constant 0 : index
    %c16 = arith.constant 16 : index
    %38 = vector.load %arg0[%c0_35, %c16] : memref<24x640xbf16, #tpu.memory_space<vmem>>, vector<24x512xbf16>
    %c7 = arith.constant 7 : index
    %c0_36 = arith.constant 0 : index
    %c0_37 = arith.constant 0 : index
    %39 = vector.load %arg1[%c7, %c0_36, %c0_37] : memref<25x24x24xbf16, #tpu.memory_space<vmem>>, vector<1x24x24xbf16>
    %40 = vector.shape_cast %39 : vector<1x24x24xbf16> to vector<24x24xbf16>
    %cst_38 = arith.constant dense<0.000000e+00> : vector<24x512xf32>
    %41 = tpu.matmul %40, %38, %cst_38 {dimension_numbers = #tpu.dot_dimension_numbers<[1], [0], [0], [1], [0, 0, 1, 1], [], []>} : vector<24x24xbf16>, vector<24x512xbf16>, vector<24x512xf32> -> vector<24x512xf32>
    %42 = arith.addf %37, %41 : vector<24x512xf32>
    %c0_39 = arith.constant 0 : index
    %c17 = arith.constant 17 : index
    %43 = vector.load %arg0[%c0_39, %c17] : memref<24x640xbf16, #tpu.memory_space<vmem>>, vector<24x512xbf16>
    %c8 = arith.constant 8 : index
    %c0_40 = arith.constant 0 : index
    %c0_41 = arith.constant 0 : index
    %44 = vector.load %arg1[%c8, %c0_40, %c0_41] : memref<25x24x24xbf16, #tpu.memory_space<vmem>>, vector<1x24x24xbf16>
    %45 = vector.shape_cast %44 : vector<1x24x24xbf16> to vector<24x24xbf16>
    %cst_42 = arith.constant dense<0.000000e+00> : vector<24x512xf32>
    %46 = tpu.matmul %45, %43, %cst_42 {dimension_numbers = #tpu.dot_dimension_numbers<[1], [0], [0], [1], [0, 0, 1, 1], [], []>} : vector<24x24xbf16>, vector<24x512xbf16>, vector<24x512xf32> -> vector<24x512xf32>
    %47 = arith.addf %42, %46 : vector<24x512xf32>
    %c0_43 = arith.constant 0 : index
    %c18 = arith.constant 18 : index
    %48 = vector.load %arg0[%c0_43, %c18] : memref<24x640xbf16, #tpu.memory_space<vmem>>, vector<24x512xbf16>
    %c9 = arith.constant 9 : index
    %c0_44 = arith.constant 0 : index
    %c0_45 = arith.constant 0 : index
    %49 = vector.load %arg1[%c9, %c0_44, %c0_45] : memref<25x24x24xbf16, #tpu.memory_space<vmem>>, vector<1x24x24xbf16>
    %50 = vector.shape_cast %49 : vector<1x24x24xbf16> to vector<24x24xbf16>
    %cst_46 = arith.constant dense<0.000000e+00> : vector<24x512xf32>
    %51 = tpu.matmul %50, %48, %cst_46 {dimension_numbers = #tpu.dot_dimension_numbers<[1], [0], [0], [1], [0, 0, 1, 1], [], []>} : vector<24x24xbf16>, vector<24x512xbf16>, vector<24x512xf32> -> vector<24x512xf32>
    %52 = arith.addf %47, %51 : vector<24x512xf32>
    %c0_47 = arith.constant 0 : index
    %c28 = arith.constant 28 : index
    %53 = vector.load %arg0[%c0_47, %c28] : memref<24x640xbf16, #tpu.memory_space<vmem>>, vector<24x512xbf16>
    %c10 = arith.constant 10 : index
    %c0_48 = arith.constant 0 : index
    %c0_49 = arith.constant 0 : index
    %54 = vector.load %arg1[%c10, %c0_48, %c0_49] : memref<25x24x24xbf16, #tpu.memory_space<vmem>>, vector<1x24x24xbf16>
    %55 = vector.shape_cast %54 : vector<1x24x24xbf16> to vector<24x24xbf16>
    %cst_50 = arith.constant dense<0.000000e+00> : vector<24x512xf32>
    %56 = tpu.matmul %55, %53, %cst_50 {dimension_numbers = #tpu.dot_dimension_numbers<[1], [0], [0], [1], [0, 0, 1, 1], [], []>} : vector<24x24xbf16>, vector<24x512xbf16>, vector<24x512xf32> -> vector<24x512xf32>
    %57 = arith.addf %52, %56 : vector<24x512xf32>
    %c0_51 = arith.constant 0 : index
    %c29 = arith.constant 29 : index
    %58 = vector.load %arg0[%c0_51, %c29] : memref<24x640xbf16, #tpu.memory_space<vmem>>, vector<24x512xbf16>
    %c11 = arith.constant 11 : index
    %c0_52 = arith.constant 0 : index
    %c0_53 = arith.constant 0 : index
    %59 = vector.load %arg1[%c11, %c0_52, %c0_53] : memref<25x24x24xbf16, #tpu.memory_space<vmem>>, vector<1x24x24xbf16>
    %60 = vector.shape_cast %59 : vector<1x24x24xbf16> to vector<24x24xbf16>
    %cst_54 = arith.constant dense<0.000000e+00> : vector<24x512xf32>
    %61 = tpu.matmul %60, %58, %cst_54 {dimension_numbers = #tpu.dot_dimension_numbers<[1], [0], [0], [1], [0, 0, 1, 1], [], []>} : vector<24x24xbf16>, vector<24x512xbf16>, vector<24x512xf32> -> vector<24x512xf32>
    %62 = arith.addf %57, %61 : vector<24x512xf32>
    %c0_55 = arith.constant 0 : index
    %c30 = arith.constant 30 : index
    %63 = vector.load %arg0[%c0_55, %c30] : memref<24x640xbf16, #tpu.memory_space<vmem>>, vector<24x512xbf16>
    %c12 = arith.constant 12 : index
    %c0_56 = arith.constant 0 : index
    %c0_57 = arith.constant 0 : index
    %64 = vector.load %arg1[%c12, %c0_56, %c0_57] : memref<25x24x24xbf16, #tpu.memory_space<vmem>>, vector<1x24x24xbf16>
    %65 = vector.shape_cast %64 : vector<1x24x24xbf16> to vector<24x24xbf16>
    %cst_58 = arith.constant dense<0.000000e+00> : vector<24x512xf32>
    %66 = tpu.matmul %65, %63, %cst_58 {dimension_numbers = #tpu.dot_dimension_numbers<[1], [0], [0], [1], [0, 0, 1, 1], [], []>} : vector<24x24xbf16>, vector<24x512xbf16>, vector<24x512xf32> -> vector<24x512xf32>
    %67 = arith.addf %62, %66 : vector<24x512xf32>
    %c0_59 = arith.constant 0 : index
    %c31 = arith.constant 31 : index
    %68 = vector.load %arg0[%c0_59, %c31] : memref<24x640xbf16, #tpu.memory_space<vmem>>, vector<24x512xbf16>
    %c13 = arith.constant 13 : index
    %c0_60 = arith.constant 0 : index
    %c0_61 = arith.constant 0 : index
    %69 = vector.load %arg1[%c13, %c0_60, %c0_61] : memref<25x24x24xbf16, #tpu.memory_space<vmem>>, vector<1x24x24xbf16>
    %70 = vector.shape_cast %69 : vector<1x24x24xbf16> to vector<24x24xbf16>
    %cst_62 = arith.constant dense<0.000000e+00> : vector<24x512xf32>
    %71 = tpu.matmul %70, %68, %cst_62 {dimension_numbers = #tpu.dot_dimension_numbers<[1], [0], [0], [1], [0, 0, 1, 1], [], []>} : vector<24x24xbf16>, vector<24x512xbf16>, vector<24x512xf32> -> vector<24x512xf32>
    %72 = arith.addf %67, %71 : vector<24x512xf32>
    %c0_63 = arith.constant 0 : index
    %c32 = arith.constant 32 : index
    %73 = vector.load %arg0[%c0_63, %c32] : memref<24x640xbf16, #tpu.memory_space<vmem>>, vector<24x512xbf16>
    %c14_64 = arith.constant 14 : index
    %c0_65 = arith.constant 0 : index
    %c0_66 = arith.constant 0 : index
    %74 = vector.load %arg1[%c14_64, %c0_65, %c0_66] : memref<25x24x24xbf16, #tpu.memory_space<vmem>>, vector<1x24x24xbf16>
    %75 = vector.shape_cast %74 : vector<1x24x24xbf16> to vector<24x24xbf16>
    %cst_67 = arith.constant dense<0.000000e+00> : vector<24x512xf32>
    %76 = tpu.matmul %75, %73, %cst_67 {dimension_numbers = #tpu.dot_dimension_numbers<[1], [0], [0], [1], [0, 0, 1, 1], [], []>} : vector<24x24xbf16>, vector<24x512xbf16>, vector<24x512xf32> -> vector<24x512xf32>
    %77 = arith.addf %72, %76 : vector<24x512xf32>
    %c0_68 = arith.constant 0 : index
    %c42 = arith.constant 42 : index
    %78 = vector.load %arg0[%c0_68, %c42] : memref<24x640xbf16, #tpu.memory_space<vmem>>, vector<24x512xbf16>
    %c15_69 = arith.constant 15 : index
    %c0_70 = arith.constant 0 : index
    %c0_71 = arith.constant 0 : index
    %79 = vector.load %arg1[%c15_69, %c0_70, %c0_71] : memref<25x24x24xbf16, #tpu.memory_space<vmem>>, vector<1x24x24xbf16>
    %80 = vector.shape_cast %79 : vector<1x24x24xbf16> to vector<24x24xbf16>
    %cst_72 = arith.constant dense<0.000000e+00> : vector<24x512xf32>
    %81 = tpu.matmul %80, %78, %cst_72 {dimension_numbers = #tpu.dot_dimension_numbers<[1], [0], [0], [1], [0, 0, 1, 1], [], []>} : vector<24x24xbf16>, vector<24x512xbf16>, vector<24x512xf32> -> vector<24x512xf32>
    %82 = arith.addf %77, %81 : vector<24x512xf32>
    %c0_73 = arith.constant 0 : index
    %c43 = arith.constant 43 : index
    %83 = vector.load %arg0[%c0_73, %c43] : memref<24x640xbf16, #tpu.memory_space<vmem>>, vector<24x512xbf16>
    %c16_74 = arith.constant 16 : index
    %c0_75 = arith.constant 0 : index
    %c0_76 = arith.constant 0 : index
    %84 = vector.load %arg1[%c16_74, %c0_75, %c0_76] : memref<25x24x24xbf16, #tpu.memory_space<vmem>>, vector<1x24x24xbf16>
    %85 = vector.shape_cast %84 : vector<1x24x24xbf16> to vector<24x24xbf16>
    %cst_77 = arith.constant dense<0.000000e+00> : vector<24x512xf32>
    %86 = tpu.matmul %85, %83, %cst_77 {dimension_numbers = #tpu.dot_dimension_numbers<[1], [0], [0], [1], [0, 0, 1, 1], [], []>} : vector<24x24xbf16>, vector<24x512xbf16>, vector<24x512xf32> -> vector<24x512xf32>
    %87 = arith.addf %82, %86 : vector<24x512xf32>
    %c0_78 = arith.constant 0 : index
    %c44 = arith.constant 44 : index
    %88 = vector.load %arg0[%c0_78, %c44] : memref<24x640xbf16, #tpu.memory_space<vmem>>, vector<24x512xbf16>
    %c17_79 = arith.constant 17 : index
    %c0_80 = arith.constant 0 : index
    %c0_81 = arith.constant 0 : index
    %89 = vector.load %arg1[%c17_79, %c0_80, %c0_81] : memref<25x24x24xbf16, #tpu.memory_space<vmem>>, vector<1x24x24xbf16>
    %90 = vector.shape_cast %89 : vector<1x24x24xbf16> to vector<24x24xbf16>
    %cst_82 = arith.constant dense<0.000000e+00> : vector<24x512xf32>
    %91 = tpu.matmul %90, %88, %cst_82 {dimension_numbers = #tpu.dot_dimension_numbers<[1], [0], [0], [1], [0, 0, 1, 1], [], []>} : vector<24x24xbf16>, vector<24x512xbf16>, vector<24x512xf32> -> vector<24x512xf32>
    %92 = arith.addf %87, %91 : vector<24x512xf32>
    %c0_83 = arith.constant 0 : index
    %c45 = arith.constant 45 : index
    %93 = vector.load %arg0[%c0_83, %c45] : memref<24x640xbf16, #tpu.memory_space<vmem>>, vector<24x512xbf16>
    %c18_84 = arith.constant 18 : index
    %c0_85 = arith.constant 0 : index
    %c0_86 = arith.constant 0 : index
    %94 = vector.load %arg1[%c18_84, %c0_85, %c0_86] : memref<25x24x24xbf16, #tpu.memory_space<vmem>>, vector<1x24x24xbf16>
    %95 = vector.shape_cast %94 : vector<1x24x24xbf16> to vector<24x24xbf16>
    %cst_87 = arith.constant dense<0.000000e+00> : vector<24x512xf32>
    %96 = tpu.matmul %95, %93, %cst_87 {dimension_numbers = #tpu.dot_dimension_numbers<[1], [0], [0], [1], [0, 0, 1, 1], [], []>} : vector<24x24xbf16>, vector<24x512xbf16>, vector<24x512xf32> -> vector<24x512xf32>
    %97 = arith.addf %92, %96 : vector<24x512xf32>
    %c0_88 = arith.constant 0 : index
    %c46 = arith.constant 46 : index
    %98 = vector.load %arg0[%c0_88, %c46] : memref<24x640xbf16, #tpu.memory_space<vmem>>, vector<24x512xbf16>
    %c19 = arith.constant 19 : index
    %c0_89 = arith.constant 0 : index
    %c0_90 = arith.constant 0 : index
    %99 = vector.load %arg1[%c19, %c0_89, %c0_90] : memref<25x24x24xbf16, #tpu.memory_space<vmem>>, vector<1x24x24xbf16>
    %100 = vector.shape_cast %99 : vector<1x24x24xbf16> to vector<24x24xbf16>
    %cst_91 = arith.constant dense<0.000000e+00> : vector<24x512xf32>
    %101 = tpu.matmul %100, %98, %cst_91 {dimension_numbers = #tpu.dot_dimension_numbers<[1], [0], [0], [1], [0, 0, 1, 1], [], []>} : vector<24x24xbf16>, vector<24x512xbf16>, vector<24x512xf32> -> vector<24x512xf32>
    %102 = arith.addf %97, %101 : vector<24x512xf32>
    %c0_92 = arith.constant 0 : index
    %c56 = arith.constant 56 : index
    %103 = vector.load %arg0[%c0_92, %c56] : memref<24x640xbf16, #tpu.memory_space<vmem>>, vector<24x512xbf16>
    %c20 = arith.constant 20 : index
    %c0_93 = arith.constant 0 : index
    %c0_94 = arith.constant 0 : index
    %104 = vector.load %arg1[%c20, %c0_93, %c0_94] : memref<25x24x24xbf16, #tpu.memory_space<vmem>>, vector<1x24x24xbf16>
    %105 = vector.shape_cast %104 : vector<1x24x24xbf16> to vector<24x24xbf16>
    %cst_95 = arith.constant dense<0.000000e+00> : vector<24x512xf32>
    %106 = tpu.matmul %105, %103, %cst_95 {dimension_numbers = #tpu.dot_dimension_numbers<[1], [0], [0], [1], [0, 0, 1, 1], [], []>} : vector<24x24xbf16>, vector<24x512xbf16>, vector<24x512xf32> -> vector<24x512xf32>
    %107 = arith.addf %102, %106 : vector<24x512xf32>
    %c0_96 = arith.constant 0 : index
    %c57 = arith.constant 57 : index
    %108 = vector.load %arg0[%c0_96, %c57] : memref<24x640xbf16, #tpu.memory_space<vmem>>, vector<24x512xbf16>
    %c21 = arith.constant 21 : index
    %c0_97 = arith.constant 0 : index
    %c0_98 = arith.constant 0 : index
    %109 = vector.load %arg1[%c21, %c0_97, %c0_98] : memref<25x24x24xbf16, #tpu.memory_space<vmem>>, vector<1x24x24xbf16>
    %110 = vector.shape_cast %109 : vector<1x24x24xbf16> to vector<24x24xbf16>
    %cst_99 = arith.constant dense<0.000000e+00> : vector<24x512xf32>
    %111 = tpu.matmul %110, %108, %cst_99 {dimension_numbers = #tpu.dot_dimension_numbers<[1], [0], [0], [1], [0, 0, 1, 1], [], []>} : vector<24x24xbf16>, vector<24x512xbf16>, vector<24x512xf32> -> vector<24x512xf32>
    %112 = arith.addf %107, %111 : vector<24x512xf32>
    %c0_100 = arith.constant 0 : index
    %c58 = arith.constant 58 : index
    %113 = vector.load %arg0[%c0_100, %c58] : memref<24x640xbf16, #tpu.memory_space<vmem>>, vector<24x512xbf16>
    %c22 = arith.constant 22 : index
    %c0_101 = arith.constant 0 : index
    %c0_102 = arith.constant 0 : index
    %114 = vector.load %arg1[%c22, %c0_101, %c0_102] : memref<25x24x24xbf16, #tpu.memory_space<vmem>>, vector<1x24x24xbf16>
    %115 = vector.shape_cast %114 : vector<1x24x24xbf16> to vector<24x24xbf16>
    %cst_103 = arith.constant dense<0.000000e+00> : vector<24x512xf32>
    %116 = tpu.matmul %115, %113, %cst_103 {dimension_numbers = #tpu.dot_dimension_numbers<[1], [0], [0], [1], [0, 0, 1, 1], [], []>} : vector<24x24xbf16>, vector<24x512xbf16>, vector<24x512xf32> -> vector<24x512xf32>
    %117 = arith.addf %112, %116 : vector<24x512xf32>
    %c0_104 = arith.constant 0 : index
    %c59 = arith.constant 59 : index
    %118 = vector.load %arg0[%c0_104, %c59] : memref<24x640xbf16, #tpu.memory_space<vmem>>, vector<24x512xbf16>
    %c23 = arith.constant 23 : index
    %c0_105 = arith.constant 0 : index
    %c0_106 = arith.constant 0 : index
    %119 = vector.load %arg1[%c23, %c0_105, %c0_106] : memref<25x24x24xbf16, #tpu.memory_space<vmem>>, vector<1x24x24xbf16>
    %120 = vector.shape_cast %119 : vector<1x24x24xbf16> to vector<24x24xbf16>
    %cst_107 = arith.constant dense<0.000000e+00> : vector<24x512xf32>
    %121 = tpu.matmul %120, %118, %cst_107 {dimension_numbers = #tpu.dot_dimension_numbers<[1], [0], [0], [1], [0, 0, 1, 1], [], []>} : vector<24x24xbf16>, vector<24x512xbf16>, vector<24x512xf32> -> vector<24x512xf32>
    %122 = arith.addf %117, %121 : vector<24x512xf32>
    %c0_108 = arith.constant 0 : index
    %c60 = arith.constant 60 : index
    %123 = vector.load %arg0[%c0_108, %c60] : memref<24x640xbf16, #tpu.memory_space<vmem>>, vector<24x512xbf16>
    %c24 = arith.constant 24 : index
    %c0_109 = arith.constant 0 : index
    %c0_110 = arith.constant 0 : index
    %124 = vector.load %arg1[%c24, %c0_109, %c0_110] : memref<25x24x24xbf16, #tpu.memory_space<vmem>>, vector<1x24x24xbf16>
    %125 = vector.shape_cast %124 : vector<1x24x24xbf16> to vector<24x24xbf16>
    %cst_111 = arith.constant dense<0.000000e+00> : vector<24x512xf32>
    %126 = tpu.matmul %125, %123, %cst_111 {dimension_numbers = #tpu.dot_dimension_numbers<[1], [0], [0], [1], [0, 0, 1, 1], [], []>} : vector<24x24xbf16>, vector<24x512xbf16>, vector<24x512xf32> -> vector<24x512xf32>
    %127 = arith.addf %122, %126 : vector<24x512xf32>
    %c0_112 = arith.constant 0 : index
    %c0_113 = arith.constant 0 : index
    %128 = vector.load %arg6[%c0_112, %c0_113] : memref<24x512xf32, #tpu.memory_space<vmem>>, vector<24x512xf32>
    tpu.vector_store %arg6[%c0_112, %c0_113], %127 {strides = array<i32>} : memref<24x512xf32, #tpu.memory_space<vmem>>, vector<24x512xf32>,
    %c0_114 = arith.constant 0 : index
    %c0_115 = arith.constant 0 : index
    %129 = vector.load %arg4[%c0_114, %c0_115] : memref<1x512xf32, #tpu.memory_space<vmem>>, vector<1x512xf32>
    %130 = vector.broadcast %129 : vector<1x512xf32> to vector<24x512xf32>
    %131 = arith.mulf %127, %130 : vector<24x512xf32>
    %cst_116 = arith.constant dense<0.000000e+00> : vector<24xf32>
    %132 = vector.multi_reduction <add>, %131, %cst_116 [1] : vector<24x512xf32> to vector<24xf32>
    %133 = vector.shape_cast %132 : vector<24xf32> to vector<24x1xf32>
    %134 = arith.addf %0, %133 : vector<24x1xf32>
    %135 = arith.mulf %131, %127 : vector<24x512xf32>
    %cst_117 = arith.constant dense<0.000000e+00> : vector<24xf32>
    %136 = vector.multi_reduction <add>, %135, %cst_117 [1] : vector<24x512xf32> to vector<24xf32>
    %137 = vector.shape_cast %136 : vector<24xf32> to vector<24x1xf32>
    %138 = arith.addf %1, %137 : vector<24x1xf32>
    %cst_118 = arith.constant 5.000000e-03 : f32
    %139 = vector.broadcast %cst_118 : f32 to vector<24x1xf32>
    %140 = arith.mulf %134, %139 : vector<24x1xf32>
    %cst_119 = arith.constant 5.000000e-03 : f32
    %141 = vector.broadcast %cst_119 : f32 to vector<24x1xf32>
    %142 = arith.mulf %138, %141 : vector<24x1xf32>
    %143 = arith.mulf %140, %140 : vector<24x1xf32>
    %144 = arith.subf %142, %143 : vector<24x1xf32>
    %cst_120 = arith.constant 0.000000e+00 : f32
    %145 = vector.broadcast %cst_120 : f32 to vector<24x1xf32>
    %146 = arith.maximumf %144, %145 : vector<24x1xf32>
    %c0_121 = arith.constant 0 : index
    %c0_122 = arith.constant 0 : index
    %147 = vector.load %arg2[%c0_121, %c0_122] : memref<24x1xf32, #tpu.memory_space<vmem>>, vector<24x1xf32>
    %cst_123 = arith.constant 9.99999974E-6 : f32
    %148 = vector.broadcast %cst_123 : f32 to vector<24x1xf32>
    %149 = arith.addf %146, %148 : vector<24x1xf32>
    %150 = math.rsqrt %149 : vector<24x1xf32>
    %151 = arith.mulf %147, %150 : vector<24x1xf32>
    %c0_124 = arith.constant 0 : index
    %c0_125 = arith.constant 0 : index
    %152 = vector.load %arg3[%c0_124, %c0_125] : memref<24x1xf32, #tpu.memory_space<vmem>>, vector<24x1xf32>
    %153 = arith.mulf %140, %151 : vector<24x1xf32>
    %154 = arith.subf %152, %153 : vector<24x1xf32>
    %c0_126 = arith.constant 0 : index
    %c0_127 = arith.constant 0 : index
    %155 = vector.load %arg6[%c0_126, %c0_127] : memref<24x512xf32, #tpu.memory_space<vmem>>, vector<24x512xf32>
    %156 = vector.broadcast %151 : vector<24x1xf32> to vector<24x512xf32>
    %157 = arith.mulf %155, %156 : vector<24x512xf32>
    %158 = vector.broadcast %154 : vector<24x1xf32> to vector<24x512xf32>
    %159 = arith.addf %157, %158 : vector<24x512xf32>
    %cst_128 = arith.constant 0.000000e+00 : f32
    %160 = vector.broadcast %cst_128 : f32 to vector<24x512xf32>
    %161 = arith.maximumf %159, %160 : vector<24x512xf32>
    %162 = arith.truncf %161 : vector<24x512xf32> to vector<24x512xbf16>
    %c0_129 = arith.constant 0 : index
    %c0_130 = arith.constant 0 : index
    %163 = vector.load %arg5[%c0_129, %c0_130] : memref<24x512xbf16, #tpu.memory_space<vmem>>, vector<24x512xbf16>
    tpu.vector_store %arg5[%c0_129, %c0_130], %162 {strides = array<i32>} : memref<24x512xbf16, #tpu.memory_space<vmem>>, vector<24x512xbf16>,
    return
  }
}

module attributes {stable_mosaic.version = 11 : i64} {
  func.func @_fc_kernel(%arg0: memref<16x2400xbf16, #tpu.memory_space<vmem>>, %arg1: memref<2400x128xbf16, #tpu.memory_space<vmem>>, %arg2: memref<16x1xf32, #tpu.memory_space<vmem>>, %arg3: memref<16x128xf32, #tpu.memory_space<vmem>>) attributes {dimension_semantics = [], scalar_prefetch = 0 : i64, scratch_operands = 0 : i64, tpu.core_type = #tpu.core_type<tc>} {
    %c0 = arith.constant 0 : index
    %c0_0 = arith.constant 0 : index
    %0 = vector.load %arg0[%c0, %c0_0] : memref<16x2400xbf16, #tpu.memory_space<vmem>>, vector<16x2400xbf16>
    %c0_1 = arith.constant 0 : index
    %c0_2 = arith.constant 0 : index
    %1 = vector.load %arg1[%c0_1, %c0_2] : memref<2400x128xbf16, #tpu.memory_space<vmem>>, vector<2400x128xbf16>
    %cst = arith.constant dense<0.000000e+00> : vector<16x128xf32>
    %2 = tpu.matmul %0, %1, %cst {dimension_numbers = #tpu.dot_dimension_numbers<[1], [0], [0], [1], [0, 0, 1, 1], [], []>} : vector<16x2400xbf16>, vector<2400x128xbf16>, vector<16x128xf32> -> vector<16x128xf32>
    %c0_3 = arith.constant 0 : index
    %c0_4 = arith.constant 0 : index
    %3 = vector.load %arg2[%c0_3, %c0_4] : memref<16x1xf32, #tpu.memory_space<vmem>>, vector<16x1xf32>
    %4 = vector.broadcast %3 : vector<16x1xf32> to vector<16x128xf32>
    %5 = arith.addf %2, %4 : vector<16x128xf32>
    %c0_5 = arith.constant 0 : index
    %c0_6 = arith.constant 0 : index
    %6 = vector.load %arg3[%c0_5, %c0_6] : memref<16x128xf32, #tpu.memory_space<vmem>>, vector<16x128xf32>
    tpu.vector_store %arg3[%c0_5, %c0_6], %5 {strides = array<i32>} : memref<16x128xf32, #tpu.memory_space<vmem>>, vector<16x128xf32>,
    return
  }
}

</mosaic_0001>

<bundles_post_ra>
// kernel: network_forward.5
= control target key start
LH: loop header
LB: loop body
LE: loop exit
PB: predicated region body
PF: predicated region fallthrough
CT: control target
= control target key end

     0   :  { %v5054_v2 = vmov 0   ;;  %s5055_s22 = smov 127   ;;  %s5056_s25 = smov 126   ;;  %vm50_vm0 = vcmask 1039360   ;;  %vm59_vm1 = vcmask 1043456   ;;  %vm55_vm2 = vcmask 64512   ;;  %s6309_s0 = inlined_call_operand.vmem [shape: bf16[8,2176], index: 0, kind: input, shape index: {}]   ;;  %s6310_s1 = inlined_call_operand.vmem [shape: bf16[9,8,8], index: 1, kind: input, shape index: {}]   ;;  %s6311_s4 = inlined_call_operand.vmem [shape: f32[1,2048], index: 4, kind: input, shape index: {}]   ;;  %s6312_s2 = inlined_call_operand.vmem [shape: f32[8,1], index: 2, kind: input, shape index: {}]   ;;  %s6313_s3 = inlined_call_operand.vmem [shape: f32[8,1], index: 3, kind: input, shape index: {}]   ;;  %s6314_s5 = inlined_call_operand.vmem [shape: bf16[8,2048], index: 5, kind: output, shape index: {}]  }
   0x1   :  { %v22_v0 = vld [vmem:[%s6309_s0 + $0x8] sm:$0xff]  ;;  %v21_v1 = vld [vmem:[%s6309_s0] sm:$0xff]  ;;  %104 = vmatprep.mubr.bf16.mxu0 %v5054_v2  ;;  %145 = vmatprep.mubr.bf16.mxu1 %v5054_v2  ;;  %v5036_v7 = vld [vmem:[%s6309_s0 + $0x10] ss:$0 sps:$4 sm:$0xff]   ;;  %s5057_s26 = smov 96   ;;  %s5058_s27 = smov 95  }
   0x2   :  { %v5101_v3 = vcombine.low %v22_v0, %v22_v0  ;;  %v5103_v4 = vcombine.low %v21_v1, %v21_v1  ;;  %5030 = vset.pattern.permute.xlu1 %v5054_v2  ;;  %5031 = vset.pattern.permute.xlu0 %v5054_v2  ;;  %v5111_v5 = vcombine.high %v22_v0, %v22_v0  ;;  %s5059_s28 = smov 94   ;;  %s5060_s29 = smov 64   ;;  %v1123_v8 = vld [vmem:[%s6309_s0 + $0x10] sm:$0xff]  ;;  %v1124_v11 = vld [vmem:[%s6309_s0 + $0x18] sm:$0xff]  ;;  %v5211_v14 = vld [vmem:[%s6309_s0 + $0x20] ss:$0 sps:$4 sm:$0xff]  }
   0x3   :  { %v5113_v6 = vcombine.high %v21_v1, %v21_v1  ;;  %s5061_s30 = smov 63   ;;  %s5062_s6 = smov 62   ;;  %v5189_v9 = vcombine.low %v1123_v8, %v1123_v8  ;;  %v5191_v10 = vcombine.high %v1123_v8, %v1123_v8  ;;  %v5200_v12 = vcombine.low %v1124_v11, %v1124_v11  ;;  %v4549_v22 = vld [vmem:[%s6310_s1 + $0x4] sm:$0xf]  ;;  %v23_v37 = vld [vmem:[%s6310_s1] sm:$0xf] }
   0x4   :  { %44 = vrot.lane.b32.xlu1 %v5101_v3, %s5055_s22  ;;  %40 = vrot.lane.b32.xlu0 %v5103_v4, %s5055_s22  ;;  %v5202_v13 = vcombine.high %v1124_v11, %v1124_v11  ;;  %v158_v25 = vsel %vm59_vm1, %v5103_v4, 0  ;;  %vm263_vm3 = vcmask 1031168   ;;  %v164_v29 = vsel %vm59_vm1, %v5101_v3, 0  ;;  %v4563_v50 = vld [vmem:[%s6310_s1 + $0x8] sm:$0xf]  ;;  %v2207_v63 = vld [vmem:[%s6309_s0 + $0x20] sm:$0xff] }
   0x5   :  { %vm381_vm4 = vcmask 785408   ;;  %vm499_vm5 = vcmask 777216   ;;  %vm617_vm6 = vcmask 769024   ;;  %v4568_v0 = vld [vmem:[%s6310_s1 + $0xc] sm:$0xf]  ;;  %v5354_v8 = vcombine.high %v2207_v63, %v2207_v63 }
   0x6   :  { %v2208_v11 = vld [vmem:[%s6309_s0 + $0x28] sm:$0xff]  ;;  %vm735_vm7 = vcmask 523264   ;;  %vm853_vm8 = vcmask 515072   ;;  %vm971_vm9 = vcmask 506880  }
   0x8   :  { %46 = vrot.lane.b32.xlu1 %v5111_v5, %s5055_s22  ;;  %42 = vrot.lane.b32.xlu0 %v5113_v6, %s5055_s22 }
   0xc   :  { %48 = vrot.lane.b32.xlu0 %v5036_v7, %s5055_s22  ;;  %253 = vrot.lane.b32.xlu1 %v5103_v4, %s5056_s25 }
  0x10   :  { %255 = vrot.lane.b32.xlu0 %v5113_v6, %s5056_s25  ;;  %257 = vrot.lane.b32.xlu1 %v5101_v3, %s5056_s25 }
  0x14   :  { %259 = vrot.lane.b32.xlu0 %v5111_v5, %s5056_s25  ;;  %261 = vrot.lane.b32.xlu1 %v5036_v7, %s5056_s25 }
  0x18   :  { %371 = vrot.lane.b32.xlu0 %v5103_v4, %s5057_s26  ;;  %373 = vrot.lane.b32.xlu1 %v5113_v6, %s5057_s26 }
  0x1c   :  { %375 = vrot.lane.b32.xlu0 %v5101_v3, %s5057_s26  ;;  %377 = vrot.lane.b32.xlu1 %v5111_v5, %s5057_s26 }
  0x20   :  { %379 = vrot.lane.b32.xlu0 %v5036_v7, %s5057_s26  ;;  %489 = vrot.lane.b32.xlu1 %v5103_v4, %s5058_s27 }
  0x24   :  { %491 = vrot.lane.b32.xlu0 %v5113_v6, %s5058_s27  ;;  %493 = vrot.lane.b32.xlu1 %v5101_v3, %s5058_s27 }
  0x28   :  { %495 = vrot.lane.b32.xlu0 %v5111_v5, %s5058_s27  ;;  %497 = vrot.lane.b32.xlu1 %v5036_v7, %s5058_s27 }
  0x2c   :  { %607 = vrot.lane.b32.xlu0 %v5103_v4, %s5059_s28  ;;  %609 = vrot.lane.b32.xlu1 %v5113_v6, %s5059_s28 }
  0x30   :  { %611 = vrot.lane.b32.xlu0 %v5101_v3, %s5059_s28  ;;  %613 = vrot.lane.b32.xlu1 %v5111_v5, %s5059_s28 }
  0x34   :  { %615 = vrot.lane.b32.xlu0 %v5036_v7, %s5059_s28  ;;  %725 = vrot.lane.b32.xlu1 %v5103_v4, %s5060_s29 }
  0x38   :  { %727 = vrot.lane.b32.xlu0 %v5113_v6, %s5060_s29  ;;  %729 = vrot.lane.b32.xlu1 %v5101_v3, %s5060_s29 }
  0x3c   :  { %731 = vrot.lane.b32.xlu0 %v5111_v5, %s5060_s29  ;;  %733 = vrot.lane.b32.xlu1 %v5036_v7, %s5060_s29 }
  0x40   :  { %843 = vrot.lane.b32.xlu0 %v5103_v4, %s5061_s30  ;;  %845 = vrot.lane.b32.xlu1 %v5113_v6, %s5061_s30 }
  0x44   :  { %847 = vrot.lane.b32.xlu0 %v5101_v3, %s5061_s30  ;;  %849 = vrot.lane.b32.xlu1 %v5111_v5, %s5061_s30 }
  0x48   :  { %851 = vrot.lane.b32.xlu0 %v5036_v7, %s5061_s30  ;;  %961 = vrot.lane.b32.xlu1 %v5103_v4, %s5062_s6 }
  0x4c   :  { %963 = vrot.lane.b32.xlu0 %v5113_v6, %s5062_s6  ;;  %965 = vrot.lane.b32.xlu1 %v5101_v3, %s5062_s6 }
  0x50   :  { %967 = vrot.lane.b32.xlu0 %v5111_v5, %s5062_s6  ;;  %969 = vrot.lane.b32.xlu1 %v5036_v7, %s5062_s6 }
  0x54   :  { %1141 = vrot.lane.b32.xlu0 %v5189_v9, %s5055_s22  ;;  %1143 = vrot.lane.b32.xlu1 %v5191_v10, %s5055_s22 }
  0x58   :  { %1145 = vrot.lane.b32.xlu0 %v5200_v12, %s5055_s22  ;;  %1147 = vrot.lane.b32.xlu1 %v5202_v13, %s5055_s22 }
  0x5c   :  { %1149 = vrot.lane.b32.xlu0 %v5211_v14, %s5055_s22  ;;  %1350 = vrot.lane.b32.xlu1 %v5189_v9, %s5056_s25 }
  0x60   :  { %1352 = vrot.lane.b32.xlu0 %v5191_v10, %s5056_s25  ;;  %1354 = vrot.lane.b32.xlu1 %v5200_v12, %s5056_s25 }
  0x64   :  { %1356 = vrot.lane.b32.xlu0 %v5202_v13, %s5056_s25  ;;  %1358 = vrot.lane.b32.xlu1 %v5211_v14, %s5056_s25 }
  0x68   :  { %1466 = vrot.lane.b32.xlu0 %v5189_v9, %s5057_s26  ;;  %1468 = vrot.lane.b32.xlu1 %v5191_v10, %s5057_s26 }
  0x6c   :  { %1470 = vrot.lane.b32.xlu0 %v5200_v12, %s5057_s26  ;;  %1472 = vrot.lane.b32.xlu1 %v5202_v13, %s5057_s26 }
  0x70   :  { %1474 = vrot.lane.b32.xlu0 %v5211_v14, %s5057_s26  ;;  %1582 = vrot.lane.b32.xlu1 %v5189_v9, %s5058_s27 }
  0x74   :  { %1584 = vrot.lane.b32.xlu0 %v5191_v10, %s5058_s27  ;;  %1586 = vrot.lane.b32.xlu1 %v5200_v12, %s5058_s27 }
  0x76   :  { %v45_v15 = vpop.permute.xlu1 %44  ;;  %v41_v16 = vpop.permute.xlu0 %40 }
  0x78   :  { %1588 = vrot.lane.b32.xlu0 %v5202_v13, %s5058_s27  ;;  %1590 = vrot.lane.b32.xlu1 %v5211_v14, %s5058_s27 }
  0x7a   :  { %v47_v17 = vpop.permute.xlu1 %46  ;;  %v43_v18 = vpop.permute.xlu0 %42 }
  0x7b   :  { %v52_v19 = vsel %vm50_vm0, %v43_v18, %v45_v15  ;;  %v51_v20 = vsel %vm50_vm0, %v41_v16, %v43_v18  ;;  %v53_v23 = vsel %vm50_vm0, %v45_v15, %v47_v17 }
  0x7c   :  { %4555 = vmatprep.subr.msk.bf16.mxu0 %vm59_vm1, %v52_v19  ;;  %v61_v21 = vsel %vm59_vm1, %v51_v20, 0  ;;  %1698 = vrot.lane.b32.xlu0 %v5189_v9, %s5059_s28  ;;  %v67_v28 = vsel %vm59_vm1, %v53_v23, 0  ;;  %v5370_v19 = vcombine.high %v2208_v11, %v2208_v11  ;;  %v5383_v23 = vld [vmem:[%s6309_s0 + $0x30] ss:$0 sps:$4 sm:$0xff]  }
  0x7d   :  { %73 = vmatpush1.bf16.msra.mxu0 %v61_v21  ;;  %1700 = vrot.lane.b32.xlu1 %v5191_v10, %s5059_s28 }
  0x7e   :  { %v49_v24 = vpop.permute.xlu0 %48  ;;  %4559 = vmatprep.subr.msk.bf16.mxu0 %vm59_vm1, %v5113_v6  ;;  %v254_v26 = vpop.permute.xlu1 %253 }
  0x7f   :  { %v54_v27 = vsel %vm50_vm0, %v47_v17, %v49_v24  ;;  %v4573_v24 = vld [vmem:[%s6310_s1 + $0x10] sm:$0xf] }
  0x80   :  { %4556 = vmatmul.mubr.msk.bf16.vlgmr.msra.gmra.mrb[0].mxu0 %vm55_vm2, %v4549_v22  ;;  %4557 = vmatprep.subr.msk.bf16.mxu1 %vm59_vm1, %v54_v27 }
  0x81   :  { %114 = vmatpush1.bf16.msra.mxu1 %v67_v28  ;;  %170 = vmatpush1.bf16.msra.mxu0 %v158_v25 }
  0x82   :  { %4561 = vmatprep.subr.msk.bf16.mxu1 %vm59_vm1, %v5111_v5  ;;  %v256_v30 = vpop.permute.xlu0 %255  ;;  %v258_v31 = vpop.permute.xlu1 %257  ;;  %201 = vmatprep.mubr.bf16.mxu0 %v5054_v2  ;;  %v5346_v5 = vcombine.low %v2207_v63, %v2207_v63  ;;  %v4588_v63 = vld [vmem:[%s6310_s1 + $0x1c] sm:$0xf] }
  0x83   :  { %v265_v32 = vsel %vm263_vm3, %v256_v30, %v258_v31  ;;  %1702 = vrot.lane.b32.xlu0 %v5200_v12, %s5059_s28  ;;  %1704 = vrot.lane.b32.xlu1 %v5202_v13, %s5059_s28  ;;  %v264_v35 = vsel %vm263_vm3, %v254_v26, %v256_v30 }
  0x84   :  { %4558 = vmatmul.mubr.msk.bf16.vlgmr.msra.gmra.mrb[0].mxu1 %vm55_vm2, %v4549_v22  ;;  %4564 = vmatprep.subr.msk.bf16.mxu0 %vm59_vm1, %v265_v32  ;;  %v272_v38 = vsel %vm59_vm1, %v264_v35, 0 }
  0x85   :  { %211 = vmatpush1.bf16.msra.mxu1 %v164_v29  ;;  %242 = vmatprep.mubr.bf16.mxu1 %v5054_v2 }
  0x86   :  { %v260_v33 = vpop.permute.xlu0 %259  ;;  %v262_v34 = vpop.permute.xlu1 %261 }
  0x87   :  { %v267_v36 = vsel %vm263_vm3, %v260_v33, %v262_v34  ;;  %1706 = vrot.lane.b32.xlu0 %v5211_v14, %s5059_s28  ;;  %1814 = vrot.lane.b32.xlu1 %v5189_v9, %s5060_s29  ;;  %v266_v41 = vsel %vm263_vm3, %v258_v31, %v260_v33 }
  0x88   :  { %4566 = vmatprep.subr.msk.bf16.mxu1 %vm59_vm1, %v267_v36  ;;  %v278_v42 = vsel %vm59_vm1, %v266_v41, 0 }
  0x8a   :  { %v372_v39 = vpop.permute.xlu0 %371  ;;  %v374_v40 = vpop.permute.xlu1 %373 }
  0x8b   :  { %1816 = vrot.lane.b32.xlu0 %v5191_v10, %s5060_s29  ;;  %1818 = vrot.lane.b32.xlu1 %v5200_v12, %s5060_s29  ;;  %v382_v48 = vsel %vm381_vm4, %v372_v39, %v374_v40 }
  0x8c   :  { %4560 = vmatmul.mubr.msk.bf16.vlgmr.msra.gmra.mrb[0].mxu0 %vm55_vm2, %v23_v37  ;;  %v390_v51 = vsel %vm59_vm1, %v382_v48, 0 }
  0x8d   :  { %284 = vmatpush1.bf16.msra.mxu0 %v272_v38  ;;  %315 = vmatprep.mubr.bf16.mxu0 %v5054_v2 }
  0x8e   :  { %v376_v43 = vpop.permute.xlu0 %375  ;;  %v378_v44 = vpop.permute.xlu1 %377 }
  0x8f   :  { %v383_v45 = vsel %vm381_vm4, %v374_v40, %v376_v43  ;;  %1820 = vrot.lane.b32.xlu0 %v5202_v13, %s5060_s29  ;;  %1822 = vrot.lane.b32.xlu1 %v5211_v14, %s5060_s29  ;;  %v384_v54 = vsel %vm381_vm4, %v376_v43, %v378_v44 }
  0x90   :  { %4562 = vmatmul.mubr.msk.bf16.vlgmr.msra.gmra.mrb[0].mxu1 %vm55_vm2, %v23_v37  ;;  %4569 = vmatprep.subr.msk.bf16.mxu0 %vm59_vm1, %v383_v45  ;;  %v396_v56 = vsel %vm59_vm1, %v384_v54, 0  ;;  %v4578_v37 = vld [vmem:[%s6310_s1 + $0x14] sm:$0xf] }
  0x91   :  { %325 = vmatpush1.bf16.msra.mxu1 %v278_v42  ;;  %356 = vmatprep.mubr.bf16.mxu1 %v5054_v2 }
  0x92   :  { %v380_v46 = vpop.permute.xlu0 %379  ;;  %v490_v47 = vpop.permute.xlu1 %489 }
  0x93   :  { %v385_v49 = vsel %vm381_vm4, %v378_v44, %v380_v46  ;;  %1930 = vrot.lane.b32.xlu0 %v5189_v9, %s5061_s30  ;;  %1932 = vrot.lane.b32.xlu1 %v5191_v10, %s5061_s30 }
  0x94   :  { %4571 = vmatprep.subr.msk.bf16.mxu1 %vm59_vm1, %v385_v49 }
  0x96   :  { %v492_v52 = vpop.permute.xlu0 %491  ;;  %v494_v53 = vpop.permute.xlu1 %493 }
  0x97   :  { %v501_v55 = vsel %vm499_vm5, %v492_v52, %v494_v53  ;;  %1934 = vrot.lane.b32.xlu0 %v5200_v12, %s5061_s30  ;;  %1936 = vrot.lane.b32.xlu1 %v5202_v13, %s5061_s30  ;;  %v500_v62 = vsel %vm499_vm5, %v490_v47, %v492_v52 }
  0x98   :  { %4565 = vmatmul.mubr.msk.bf16.vlgmr.msra.gmra.mrb[0].mxu0 %vm55_vm2, %v4563_v50  ;;  %v508_v1 = vsel %vm59_vm1, %v500_v62, 0 }
  0x99   :  { %402 = vmatpush1.bf16.msra.mxu0 %v390_v51  ;;  %433 = vmatprep.mubr.bf16.mxu0 %v5054_v2 }
  0x9a   :  { %v496_v57 = vpop.permute.xlu0 %495  ;;  %4574 = vmatprep.subr.msk.bf16.mxu0 %vm59_vm1, %v501_v55  ;;  %v498_v58 = vpop.permute.xlu1 %497 }
  0x9b   :  { %v503_v59 = vsel %vm499_vm5, %v496_v57, %v498_v58  ;;  %1938 = vrot.lane.b32.xlu0 %v5211_v14, %s5061_s30  ;;  %2046 = vrot.lane.b32.xlu1 %v5189_v9, %s5062_s6  ;;  %v502_v6 = vsel %vm499_vm5, %v494_v53, %v496_v57 }
  0x9c   :  { %4567 = vmatmul.mubr.msk.bf16.vlgmr.msra.gmra.mrb[0].mxu1 %vm55_vm2, %v4563_v50  ;;  %v514_v15 = vsel %vm59_vm1, %v502_v6, 0  ;;  %v4583_v50 = vld [vmem:[%s6310_s1 + $0x18] sm:$0xf] }
  0x9d   :  { %443 = vmatpush1.bf16.msra.mxu1 %v396_v56  ;;  %474 = vmatprep.mubr.bf16.mxu1 %v5054_v2 }
  0x9e   :  { %4576 = vmatprep.subr.msk.bf16.mxu1 %vm59_vm1, %v503_v59  ;;  %v608_v60 = vpop.permute.xlu0 %607  ;;  %v610_v61 = vpop.permute.xlu1 %609 }
  0x9f   :  { %2048 = vrot.lane.b32.xlu0 %v5191_v10, %s5062_s6  ;;  %2050 = vrot.lane.b32.xlu1 %v5200_v12, %s5062_s6  ;;  %v618_v22 = vsel %vm617_vm6, %v608_v60, %v610_v61 }
  0xa0   :  { %v626_v25 = vsel %vm59_vm1, %v618_v22, 0 }
  0xa2   :  { %v612_v3 = vpop.permute.xlu0 %611  ;;  %v614_v4 = vpop.permute.xlu1 %613 }
  0xa3   :  { %v619_v7 = vsel %vm617_vm6, %v610_v61, %v612_v3  ;;  %2052 = vrot.lane.b32.xlu0 %v5202_v13, %s5062_s6  ;;  %2054 = vrot.lane.b32.xlu1 %v5211_v14, %s5062_s6  ;;  %v5368_v14 = vcombine.low %v2208_v11, %v2208_v11  ;;  %v620_v28 = vsel %vm617_vm6, %v612_v3, %v614_v4 }
  0xa4   :  { %4570 = vmatmul.mubr.msk.bf16.vlgmr.msra.gmra.mrb[0].mxu0 %vm55_vm2, %v4568_v0  ;;  %v632_v30 = vsel %vm59_vm1, %v620_v28, 0 }
  0xa5   :  { %520 = vmatpush1.bf16.msra.mxu0 %v508_v1  ;;  %551 = vmatprep.mubr.bf16.mxu0 %v5054_v2 }
  0xa6   :  { %4579 = vmatprep.subr.msk.bf16.mxu0 %vm59_vm1, %v619_v7  ;;  %v616_v16 = vpop.permute.xlu0 %615  ;;  %v726_v17 = vpop.permute.xlu1 %725 }
  0xa7   :  { %v621_v18 = vsel %vm617_vm6, %v614_v4, %v616_v16  ;;  %2225 = vrot.lane.b32.xlu0 %v5346_v5, %s5055_s22  ;;  %2227 = vrot.lane.b32.xlu1 %v5354_v8, %s5055_s22 }
  0xa8   :  { %4572 = vmatmul.mubr.msk.bf16.vlgmr.msra.gmra.mrb[0].mxu1 %vm55_vm2, %v4568_v0 }
  0xa9   :  { %561 = vmatpush1.bf16.msra.mxu1 %v514_v15  ;;  %592 = vmatprep.mubr.bf16.mxu1 %v5054_v2 }
  0xaa   :  { %4581 = vmatprep.subr.msk.bf16.mxu1 %vm59_vm1, %v621_v18  ;;  %v728_v20 = vpop.permute.xlu0 %727  ;;  %v730_v21 = vpop.permute.xlu1 %729 }
  0xab   :  { %2229 = vrot.lane.b32.xlu0 %v5368_v14, %s5055_s22  ;;  %2231 = vrot.lane.b32.xlu1 %v5370_v19, %s5055_s22  ;;  %v737_v29 = vsel %vm735_vm7, %v728_v20, %v730_v21  ;;  %v736_v36 = vsel %vm735_vm7, %v726_v17, %v728_v20 }
  0xac   :  { %v744_v38 = vsel %vm59_vm1, %v736_v36, 0 }
  0xae   :  { %v732_v26 = vpop.permute.xlu0 %731  ;;  %v734_v27 = vpop.permute.xlu1 %733 }
  0xaf   :  { %2233 = vrot.lane.b32.xlu0 %v5383_v23, %s5055_s22  ;;  %2434 = vrot.lane.b32.xlu1 %v5346_v5, %s5056_s25  ;;  %v739_v33 = vsel %vm735_vm7, %v732_v26, %v734_v27  ;;  %v738_v41 = vsel %vm735_vm7, %v730_v21, %v732_v26  ;;  %v4593_v21 = vld [vmem:[%s6310_s1 + $0x20] sm:$0xf] }
  0xb0   :  { %4575 = vmatmul.mubr.msk.bf16.vlgmr.msra.gmra.mrb[0].mxu0 %vm55_vm2, %v4573_v24  ;;  %v750_v43 = vsel %vm59_vm1, %v738_v41, 0 }
  0xb1   :  { %638 = vmatpush1.bf16.msra.mxu0 %v626_v25  ;;  %669 = vmatprep.mubr.bf16.mxu0 %v5054_v2 }
  0xb2   :  { %4584 = vmatprep.subr.msk.bf16.mxu0 %vm59_vm1, %v737_v29  ;;  %v844_v31 = vpop.permute.xlu0 %843  ;;  %v846_v32 = vpop.permute.xlu1 %845 }
  0xb3   :  { %2436 = vrot.lane.b32.xlu0 %v5354_v8, %s5056_s25  ;;  %2438 = vrot.lane.b32.xlu1 %v5368_v14, %s5056_s25  ;;  %v854_v49 = vsel %vm853_vm8, %v844_v31, %v846_v32 }
  0xb4   :  { %4577 = vmatmul.mubr.msk.bf16.vlgmr.msra.gmra.mrb[0].mxu1 %vm55_vm2, %v4573_v24  ;;  %v862_v51 = vsel %vm59_vm1, %v854_v49, 0 }
  0xb5   :  { %679 = vmatpush1.bf16.msra.mxu1 %v632_v30  ;;  %710 = vmatprep.mubr.bf16.mxu1 %v5054_v2  ;;  %v4598_v30 = vld [vmem:[%s6310_s1 + $0x4] sm:$0xf] }
  0xb6   :  { %4586 = vmatprep.subr.msk.bf16.mxu1 %vm59_vm1, %v739_v33  ;;  %v848_v34 = vpop.permute.xlu0 %847  ;;  %v850_v35 = vpop.permute.xlu1 %849 }
  0xb7   :  { %2440 = vrot.lane.b32.xlu0 %v5370_v19, %s5056_s25  ;;  %2442 = vrot.lane.b32.xlu1 %v5383_v23, %s5056_s25  ;;  %v855_v42 = vsel %vm853_vm8, %v846_v32, %v848_v34  ;;  %v856_v54 = vsel %vm853_vm8, %v848_v34, %v850_v35 }
  0xb8   :  { %v868_v56 = vsel %vm59_vm1, %v856_v54, 0  ;;  %v5633_v54 = vld [vmem:[%s6309_s0 + $0x40] ss:$0 sps:$4 sm:$0xff]  }
  0xba   :  { %v852_v39 = vpop.permute.xlu0 %851  ;;  %v962_v40 = vpop.permute.xlu1 %961 }
  0xbb   :  { %2550 = vrot.lane.b32.xlu0 %v5346_v5, %s5057_s26  ;;  %2552 = vrot.lane.b32.xlu1 %v5354_v8, %s5057_s26  ;;  %v857_v46 = vsel %vm853_vm8, %v850_v35, %v852_v39  ;;  %v1125_v39 = vld [vmem:[%s6310_s1] sm:$0xf] }
  0xbc   :  { %4580 = vmatmul.mubr.msk.bf16.vlgmr.msra.gmra.mrb[0].mxu0 %vm55_vm2, %v4578_v37 }
  0xbd   :  { %756 = vmatpush1.bf16.msra.mxu0 %v744_v38  ;;  %787 = vmatprep.mubr.bf16.mxu0 %v5054_v2  ;;  %v3294_v38 = vld [vmem:[%s6309_s0 + $0x30] sm:$0xff] }
  0xbe   :  { %4589 = vmatprep.subr.msk.bf16.mxu0 %vm59_vm1, %v855_v42  ;;  %v964_v44 = vpop.permute.xlu0 %963  ;;  %v966_v45 = vpop.permute.xlu1 %965  ;;  %v5583_v41 = vcombine.low %v3294_v38, %v3294_v38 }
  0xbf   :  { %2554 = vrot.lane.b32.xlu0 %v5368_v14, %s5057_s26  ;;  %2556 = vrot.lane.b32.xlu1 %v5370_v19, %s5057_s26  ;;  %v973_v55 = vsel %vm971_vm9, %v964_v44, %v966_v45  ;;  %v972_v62 = vsel %vm971_vm9, %v962_v40, %v964_v44  ;;  %v5595_v44 = vcombine.high %v3294_v38, %v3294_v38 }
  0xc0   :  { %4582 = vmatmul.mubr.msk.bf16.vlgmr.msra.gmra.mrb[0].mxu1 %vm55_vm2, %v4578_v37  ;;  %v980_v0 = vsel %vm59_vm1, %v972_v62, 0 }
  0xc1   :  { %797 = vmatpush1.bf16.msra.mxu1 %v750_v43  ;;  %828 = vmatprep.mubr.bf16.mxu1 %v5054_v2 }
  0xc2   :  { %4591 = vmatprep.subr.msk.bf16.mxu1 %vm59_vm1, %v857_v46  ;;  %v968_v47 = vpop.permute.xlu0 %967  ;;  %v970_v48 = vpop.permute.xlu1 %969 }
  0xc3   :  { %2558 = vrot.lane.b32.xlu0 %v5383_v23, %s5057_s26  ;;  %2666 = vrot.lane.b32.xlu1 %v5346_v5, %s5058_s27  ;;  %v975_v59 = vsel %vm971_vm9, %v968_v47, %v970_v48  ;;  %v974_v4 = vsel %vm971_vm9, %v966_v45, %v968_v47  ;;  %v3295_v45 = vld [vmem:[%s6309_s0 + $0x38] sm:$0xff] }
  0xc4   :  { %v986_v7 = vsel %vm59_vm1, %v974_v4, 0  ;;  %v5614_v49 = vcombine.low %v3295_v45, %v3295_v45 }
  0xc6   :  { %v1142_v52 = vpop.permute.xlu0 %1141  ;;  %v1144_v53 = vpop.permute.xlu1 %1143 }
  0xc7   :  { %2668 = vrot.lane.b32.xlu0 %v5354_v8, %s5058_s27  ;;  %2670 = vrot.lane.b32.xlu1 %v5368_v14, %s5058_s27  ;;  %v1151_v20 = vsel %vm50_vm0, %v1142_v52, %v1144_v53 }
  0xc8   :  { %4585 = vmatmul.mubr.msk.bf16.vlgmr.msra.gmra.mrb[0].mxu0 %vm55_vm2, %v4583_v50  ;;  %v1159_v22 = vsel %vm59_vm1, %v1151_v20, 0 }
  0xc9   :  { %874 = vmatpush1.bf16.msra.mxu0 %v862_v51  ;;  %905 = vmatprep.mubr.bf16.mxu0 %v5054_v2 }
  0xca   :  { %4594 = vmatprep.subr.msk.bf16.mxu0 %vm59_vm1, %v973_v55  ;;  %v1146_v57 = vpop.permute.xlu0 %1145  ;;  %v1148_v58 = vpop.permute.xlu1 %1147  ;;  %v4612_v55 = vld [vmem:[%s6310_s1 + $0x8] sm:$0xf] }
  0xcb   :  { %2672 = vrot.lane.b32.xlu0 %v5370_v19, %s5058_s27  ;;  %2674 = vrot.lane.b32.xlu1 %v5383_v23, %s5058_s27  ;;  %v1152_v6 = vsel %vm50_vm0, %v1144_v53, %v1146_v57  ;;  %v1153_v26 = vsel %vm50_vm0, %v1146_v57, %v1148_v58 }
  0xcc   :  { %4587 = vmatmul.mubr.msk.bf16.vlgmr.msra.gmra.mrb[0].mxu1 %vm55_vm2, %v4583_v50  ;;  %v1165_v27 = vsel %vm59_vm1, %v1153_v26, 0  ;;  %v5616_v50 = vcombine.high %v3295_v45, %v3295_v45  ;;  %v4632_v45 = vld [vmem:[%s6310_s1 + $0x18] sm:$0xf] }
  0xcd   :  { %915 = vmatpush1.bf16.msra.mxu1 %v868_v56  ;;  %946 = vmatprep.mubr.bf16.mxu1 %v5054_v2 }
  0xce   :  { %4596 = vmatprep.subr.msk.bf16.mxu1 %vm59_vm1, %v975_v59  ;;  %v1150_v60 = vpop.permute.xlu0 %1149  ;;  %v5461_v61 = vpop.permute.xlu1 %1350 }
  0xcf   :  { %2782 = vrot.lane.b32.xlu0 %v5346_v5, %s5059_s28  ;;  %2784 = vrot.lane.b32.xlu1 %v5354_v8, %s5059_s28  ;;  %v1154_v16 = vsel %vm50_vm0, %v1148_v58, %v1150_v60 }
  0xd2   :  { %v5472_v1 = vpop.permute.xlu0 %1352  ;;  %v5474_v3 = vpop.permute.xlu1 %1354 }
  0xd3   :  { %2786 = vrot.lane.b32.xlu0 %v5368_v14, %s5059_s28  ;;  %2788 = vrot.lane.b32.xlu1 %v5370_v19, %s5059_s28  ;;  %v1361_v33 = vsel %vm263_vm3, %v5472_v1, %v5474_v3 }
  0xd4   :  { %4590 = vmatmul.mubr.msk.bf16.vlgmr.msra.gmra.mrb[0].mxu0 %vm55_vm2, %v4588_v63 }
  0xd5   :  { %992 = vmatpush1.bf16.msra.mxu0 %v980_v0  ;;  %1023 = vmatprep.mubr.bf16.mxu0 %v5054_v2 }
  0xd6   :  { %4604 = vmatprep.subr.msk.bf16.mxu0 %vm59_vm1, %v1152_v6  ;;  %v5486_v11 = vpop.permute.xlu0 %1356  ;;  %v1359_v15 = vpop.permute.xlu1 %1358  ;;  %v4617_v6 = vld [vmem:[%s6310_s1 + $0xc] sm:$0xf] }
  0xd7   :  { %2790 = vrot.lane.b32.xlu0 %v5383_v23, %s5059_s28  ;;  %2898 = vrot.lane.b32.xlu1 %v5346_v5, %s5060_s29  ;;  %v1363_v34 = vsel %vm263_vm3, %v5486_v11, %v1359_v15  ;;  %v1362_v42 = vsel %vm263_vm3, %v5474_v3, %v5486_v11 }
  0xd8   :  { %4592 = vmatmul.mubr.msk.bf16.vlgmr.msra.gmra.mrb[0].mxu1 %vm55_vm2, %v4588_v63  ;;  %v1374_v48 = vsel %vm59_vm1, %v1362_v42, 0 }
  0xd9   :  { %1033 = vmatpush1.bf16.msra.mxu1 %v986_v7  ;;  %1064 = vmatprep.mubr.bf16.mxu1 %v5054_v2 }
  0xda   :  { %4606 = vmatprep.subr.msk.bf16.mxu1 %vm59_vm1, %v1154_v16  ;;  %v5496_v17 = vpop.permute.xlu0 %1466  ;;  %v5498_v18 = vpop.permute.xlu1 %1468 }
  0xdb   :  { %2900 = vrot.lane.b32.xlu0 %v5354_v8, %s5060_s29  ;;  %2902 = vrot.lane.b32.xlu1 %v5368_v14, %s5060_s29  ;;  %v1476_v53 = vsel %vm381_vm4, %v5496_v17, %v5498_v18 }
  0xdc   :  { %v1484_v57 = vsel %vm59_vm1, %v1476_v53, 0 }
  0xde   :  { %v5509_v24 = vpop.permute.xlu0 %1470  ;;  %v5511_v25 = vpop.permute.xlu1 %1472 }
  0xdf   :  { %2904 = vrot.lane.b32.xlu0 %v5370_v19, %s5060_s29  ;;  %2906 = vrot.lane.b32.xlu1 %v5383_v23, %s5060_s29  ;;  %v1477_v43 = vsel %vm381_vm4, %v5498_v18, %v5509_v24  ;;  %v1478_v59 = vsel %vm381_vm4, %v5509_v24, %v5511_v25 }
  0xe0   :  { %4595 = vmatmul.mubr.msk.bf16.vlgmr.msra.gmra.mrb[0].mxu0 %vm55_vm2, %v4593_v21  ;;  %v1490_v62 = vsel %vm59_vm1, %v1478_v59, 0  ;;  %v4637_v59 = vld [vmem:[%s6310_s1 + $0x1c] sm:$0xf] }
  0xe1   :  { %1171 = vmatpush1.bf16.msra.mxu0 %v1159_v22  ;;  %1202 = vmatprep.mubr.bf16.mxu0 %v5054_v2 }
  0xe2   :  { %4608 = vmatprep.subr.msk.bf16.mxu0 %vm59_vm1, %v5191_v10  ;;  %v1475_v28 = vpop.permute.xlu0 %1474  ;;  %v5523_v29 = vpop.permute.xlu1 %1582  ;;  %v1256_v10 = vsel %vm59_vm1, %v5189_v9, 0  ;;  %v1262_v9 = vsel %vm59_vm1, %v5200_v12, 0  ;;  %v1360_v12 = vsel %vm263_vm3, %v5461_v61, %v5472_v1 }
  0xe3   :  { %3014 = vrot.lane.b32.xlu0 %v5346_v5, %s5061_s30  ;;  %3016 = vrot.lane.b32.xlu1 %v5354_v8, %s5061_s30  ;;  %v1368_v40 = vsel %vm59_vm1, %v1360_v12, 0 }
  0xe4   :  { %4597 = vmatmul.mubr.msk.bf16.vlgmr.msra.gmra.mrb[0].mxu1 %vm55_vm2, %v4593_v21 }
  0xe5   :  { %1212 = vmatpush1.bf16.msra.mxu1 %v1165_v27  ;;  %1243 = vmatprep.mubr.bf16.mxu1 %v5054_v2 }
  0xe6   :  { %4610 = vmatprep.subr.msk.bf16.mxu1 %vm59_vm1, %v5202_v13  ;;  %v5538_v31 = vpop.permute.xlu0 %1584  ;;  %v5540_v32 = vpop.permute.xlu1 %1586 }
  0xe7   :  { %3018 = vrot.lane.b32.xlu0 %v5368_v14, %s5061_s30  ;;  %3020 = vrot.lane.b32.xlu1 %v5370_v19, %s5061_s30  ;;  %v1593_v60 = vsel %vm499_vm5, %v5538_v31, %v5540_v32  ;;  %v1592_v3 = vsel %vm499_vm5, %v5523_v29, %v5538_v31 }
  0xe8   :  { %4605 = vmatmul.mubr.msk.bf16.vlgmr.msra.gmra.mrb[4].mxu0 %vm55_vm2, %v4598_v30  ;;  %v1600_v11 = vsel %vm59_vm1, %v1592_v3, 0 }
  0xe9   :  { %1268 = vmatpush1.bf16.msra.mxu0 %v1256_v10  ;;  %1299 = vmatprep.mubr.bf16.mxu0 %v5054_v2 }
  0xea   :  { %4613 = vmatprep.subr.msk.bf16.mxu0 %vm59_vm1, %v1361_v33  ;;  %v5554_v13 = vpop.permute.xlu0 %1588  ;;  %v1591_v35 = vpop.permute.xlu1 %1590 }
  0xeb   :  { %3022 = vrot.lane.b32.xlu0 %v5383_v23, %s5061_s30  ;;  %3130 = vrot.lane.b32.xlu1 %v5346_v5, %s5062_s6  ;;  %v1595_v63 = vsel %vm499_vm5, %v5554_v13, %v1591_v35  ;;  %v1594_v15 = vsel %vm499_vm5, %v5540_v32, %v5554_v13  ;;  %v4627_v13 = vld [vmem:[%s6310_s1 + $0x14] sm:$0xf] }
  0xec   :  { %4607 = vmatmul.mubr.msk.bf16.vlgmr.msra.gmra.mrb[4].mxu1 %vm55_vm2, %v4598_v30  ;;  %v1606_v17 = vsel %vm59_vm1, %v1594_v15, 0 }
  0xed   :  { %1309 = vmatpush1.bf16.msra.mxu1 %v1262_v9  ;;  %1340 = vmatprep.mubr.bf16.mxu1 %v5054_v2 }
  0xee   :  { %4615 = vmatprep.subr.msk.bf16.mxu1 %vm59_vm1, %v1363_v34  ;;  %v5568_v36 = vpop.permute.xlu0 %1698 }
  0xef   :  { %v5570_v37 = vpop.permute.xlu1 %1700  ;;  %3132 = vrot.lane.b32.xlu0 %v5354_v8, %s5062_s6  ;;  %3134 = vrot.lane.b32.xlu1 %v5368_v14, %s5062_s6 }
  0xf0   :  { %v1708_v22 = vsel %vm617_vm6, %v5568_v36, %v5570_v37 }
  0xf1   :  { %v1716_v27 = vsel %vm59_vm1, %v1708_v22, 0 }
  0xf3   :  { %3136 = vrot.lane.b32.xlu0 %v5370_v19, %s5062_s6  ;;  %3138 = vrot.lane.b32.xlu1 %v5383_v23, %s5062_s6  ;;  %v1479_v23 = vsel %vm381_vm4, %v5511_v25, %v1475_v28  ;;  %v4622_v25 = vld [vmem:[%s6310_s1 + $0x10] sm:$0xf] }
  0xf4   :  { %4609 = vmatmul.mubr.msk.bf16.vlgmr.msra.gmra.mrb[4].mxu0 %vm55_vm2, %v1125_v39 }
  0xf5   :  { %1380 = vmatpush1.bf16.msra.mxu0 %v1368_v40  ;;  %1411 = vmatprep.mubr.bf16.mxu0 %v5054_v2  ;;  %v5602_v46 = vpop.permute.xlu0 %1702  ;;  %v5604_v47 = vpop.permute.xlu1 %1704 }
  0xf6   :  { %4618 = vmatprep.subr.msk.bf16.mxu0 %vm59_vm1, %v1477_v43  ;;  %v1709_v16 = vsel %vm617_vm6, %v5570_v37, %v5602_v46  ;;  %v1710_v28 = vsel %vm617_vm6, %v5602_v46, %v5604_v47 }
  0xf7   :  { %3311 = vrot.lane.b32.xlu0 %v5583_v41, %s5055_s22  ;;  %3313 = vrot.lane.b32.xlu1 %v5595_v44, %s5055_s22  ;;  %v1722_v30 = vsel %vm59_vm1, %v1710_v28, 0 }
  0xf8   :  { %4611 = vmatmul.mubr.msk.bf16.vlgmr.msra.gmra.mrb[4].mxu1 %vm55_vm2, %v1125_v39 }
  0xf9   :  { %1421 = vmatpush1.bf16.msra.mxu1 %v1374_v48  ;;  %1452 = vmatprep.mubr.bf16.mxu1 %v5054_v2  ;;  %v1707_v51 = vpop.permute.xlu0 %1706  ;;  %v5620_v52 = vpop.permute.xlu1 %1814 }
  0xfa   :  { %4620 = vmatprep.subr.msk.bf16.mxu1 %vm59_vm1, %v1479_v23  ;;  %v1711_v20 = vsel %vm617_vm6, %v5604_v47, %v1707_v51 }
  0xfb   :  { %3315 = vrot.lane.b32.xlu0 %v5614_v49, %s5055_s22  ;;  %3317 = vrot.lane.b32.xlu1 %v5616_v50, %s5055_s22 }
  0xfd   :  { %v5638_v56 = vpop.permute.xlu0 %1816  ;;  %v5641_v58 = vpop.permute.xlu1 %1818 }
  0xfe   :  { %v1825_v29 = vsel %vm735_vm7, %v5638_v56, %v5641_v58  ;;  %v1824_v33 = vsel %vm735_vm7, %v5620_v52, %v5638_v56 }
  0xff   :  { %3319 = vrot.lane.b32.xlu0 %v5633_v54, %s5055_s22  ;;  %3530 = vrot.lane.b32.xlu1 %v5583_v41, %s5056_s25  ;;  %v1832_v35 = vsel %vm59_vm1, %v1824_v33, 0 }
 0x100   :  { %4614 = vmatmul.mubr.msk.bf16.vlgmr.msra.gmra.mrb[4].mxu0 %vm55_vm2, %v4612_v55 }
 0x101   :  { %1496 = vmatpush1.bf16.msra.mxu0 %v1484_v57  ;;  %1527 = vmatprep.mubr.bf16.mxu0 %v5054_v2  ;;  %v5655_v61 = vpop.permute.xlu0 %1820  ;;  %v1823_v0 = vpop.permute.xlu1 %1822 }
 0x102   :  { %4623 = vmatprep.subr.msk.bf16.mxu0 %vm59_vm1, %v1593_v60  ;;  %v1827_v31 = vsel %vm735_vm7, %v5655_v61, %v1823_v0  ;;  %v1826_v12 = vsel %vm735_vm7, %v5641_v58, %v5655_v61 }
 0x103   :  { %3532 = vrot.lane.b32.xlu0 %v5595_v44, %s5056_s25  ;;  %3534 = vrot.lane.b32.xlu1 %v5614_v49, %s5056_s25  ;;  %v1838_v37 = vsel %vm59_vm1, %v1826_v12, 0  ;;  %v4661_v12 = vld [vmem:[%s6310_s1 + $0x8] sm:$0xf] }
 0x104   :  { %4616 = vmatmul.mubr.msk.bf16.vlgmr.msra.gmra.mrb[4].mxu1 %vm55_vm2, %v4612_v55 }
 0x105   :  { %1537 = vmatpush1.bf16.msra.mxu1 %v1490_v62  ;;  %1568 = vmatprep.mubr.bf16.mxu1 %v5054_v2  ;;  %v5667_v1 = vpop.permute.xlu0 %1930  ;;  %v5677_v4 = vpop.permute.xlu1 %1932 }
 0x106   :  { %4625 = vmatprep.subr.msk.bf16.mxu1 %vm59_vm1, %v1595_v63  ;;  %v1940_v42 = vsel %vm853_vm8, %v5667_v1, %v5677_v4 }
 0x107   :  { %3536 = vrot.lane.b32.xlu0 %v5616_v50, %s5056_s25  ;;  %3538 = vrot.lane.b32.xlu1 %v5633_v54, %s5056_s25  ;;  %v1948_v47 = vsel %vm59_vm1, %v1940_v42, 0 }
 0x109   :  { %v5682_v7 = vpop.permute.xlu0 %1934  ;;  %v5699_v18 = vpop.permute.xlu1 %1936 }
 0x10a   :  { %v1941_v36 = vsel %vm853_vm8, %v5677_v4, %v5682_v7  ;;  %v1942_v48 = vsel %vm853_vm8, %v5682_v7, %v5699_v18 }
 0x10b   :  { %3646 = vrot.lane.b32.xlu0 %v5583_v41, %s5057_s26  ;;  %3648 = vrot.lane.b32.xlu1 %v5595_v44, %s5057_s26  ;;  %v1954_v53 = vsel %vm59_vm1, %v1942_v48, 0 }
 0x10c   :  { %4619 = vmatmul.mubr.msk.bf16.vlgmr.msra.gmra.mrb[4].mxu0 %vm55_vm2, %v4617_v6 }
 0x10d   :  { %1612 = vmatpush1.bf16.msra.mxu0 %v1600_v11  ;;  %1643 = vmatprep.mubr.bf16.mxu0 %v5054_v2  ;;  %v1939_v21 = vpop.permute.xlu0 %1938  ;;  %v5717_v24 = vpop.permute.xlu1 %2046  ;;  %v4642_v11 = vld [vmem:[%s6310_s1 + $0x20] sm:$0xf] }
 0x10e   :  { %4628 = vmatprep.subr.msk.bf16.mxu0 %vm59_vm1, %v1709_v16  ;;  %v1943_v39 = vsel %vm853_vm8, %v5699_v18, %v1939_v21  ;;  %v4647_v21 = vld [vmem:[%s6310_s1 + $0x4] sm:$0xf] }
 0x10f   :  { %3650 = vrot.lane.b32.xlu0 %v5614_v49, %s5057_s26  ;;  %3652 = vrot.lane.b32.xlu1 %v5616_v50, %s5057_s26 }
 0x110   :  { %4621 = vmatmul.mubr.msk.bf16.vlgmr.msra.gmra.mrb[4].mxu1 %vm55_vm2, %v4617_v6 }
 0x111   :  { %1653 = vmatpush1.bf16.msra.mxu1 %v1606_v17  ;;  %1684 = vmatprep.mubr.bf16.mxu1 %v5054_v2  ;;  %v5722_v26 = vpop.permute.xlu0 %2048  ;;  %v5739_v10 = vpop.permute.xlu1 %2050 }
 0x112   :  { %4630 = vmatprep.subr.msk.bf16.mxu1 %vm59_vm1, %v1711_v20  ;;  %v2057_v23 = vsel %vm971_vm9, %v5722_v26, %v5739_v10  ;;  %v2056_v57 = vsel %vm971_vm9, %v5717_v24, %v5722_v26  ;;  %v2340_v24 = vsel %vm59_vm1, %v5346_v5, 0 }
 0x113   :  { %3654 = vrot.lane.b32.xlu0 %v5633_v54, %s5057_s26  ;;  %3762 = vrot.lane.b32.xlu1 %v5583_v41, %s5058_s27  ;;  %v2064_v60 = vsel %vm59_vm1, %v2056_v57, 0 }
 0x115   :  { %v5743_v32 = vpop.permute.xlu0 %2052  ;;  %v2055_v9 = vpop.permute.xlu1 %2054 }
 0x116   :  { %v2059_v55 = vsel %vm971_vm9, %v5743_v32, %v2055_v9  ;;  %v2058_v61 = vsel %vm971_vm9, %v5739_v10, %v5743_v32 }
 0x117   :  { %3764 = vrot.lane.b32.xlu0 %v5595_v44, %s5058_s27  ;;  %3766 = vrot.lane.b32.xlu1 %v5614_v49, %s5058_s27  ;;  %v2070_v1 = vsel %vm59_vm1, %v2058_v61, 0 }
 0x118   :  { %4624 = vmatmul.mubr.msk.bf16.vlgmr.msra.gmra.mrb[4].mxu0 %vm55_vm2, %v4622_v25 }
 0x119   :  { %1728 = vmatpush1.bf16.msra.mxu0 %v1716_v27  ;;  %1759 = vmatprep.mubr.bf16.mxu0 %v5054_v2  ;;  %v5762_v34 = vpop.permute.xlu0 %2225  ;;  %v2228_v38 = vpop.permute.xlu1 %2227 }
 0x11a   :  { %4633 = vmatprep.subr.msk.bf16.mxu0 %vm59_vm1, %v1825_v29  ;;  %v2235_v6 = vsel %vm50_vm0, %v5762_v34, %v2228_v38 }
 0x11b   :  { %3768 = vrot.lane.b32.xlu0 %v5616_v50, %s5058_s27  ;;  %3770 = vrot.lane.b32.xlu1 %v5633_v54, %s5058_s27  ;;  %v2243_v15 = vsel %vm59_vm1, %v2235_v6, 0 }
 0x11c   :  { %4626 = vmatmul.mubr.msk.bf16.vlgmr.msra.gmra.mrb[4].mxu1 %vm55_vm2, %v4622_v25  ;;  %v2346_v25 = vsel %vm59_vm1, %v5368_v14, 0  ;;  %v2209_v14 = vld [vmem:[%s6310_s1] sm:$0xf] }
 0x11d   :  { %1769 = vmatpush1.bf16.msra.mxu1 %v1722_v30  ;;  %1800 = vmatprep.mubr.bf16.mxu1 %v5054_v2  ;;  %v5781_v40 = vpop.permute.xlu0 %2229  ;;  %v2232_v43 = vpop.permute.xlu1 %2231 }
 0x11e   :  { %4635 = vmatprep.subr.msk.bf16.mxu1 %vm59_vm1, %v1827_v31  ;;  %v2236_v62 = vsel %vm50_vm0, %v2228_v38, %v5781_v40  ;;  %v2237_v17 = vsel %vm50_vm0, %v5781_v40, %v2232_v43 }
 0x11f   :  { %3878 = vrot.lane.b32.xlu0 %v5583_v41, %s5059_s28  ;;  %3880 = vrot.lane.b32.xlu1 %v5595_v44, %s5059_s28  ;;  %v2249_v20 = vsel %vm59_vm1, %v2237_v17, 0  ;;  %v4676_v17 = vld [vmem:[%s6310_s1 + $0x14] sm:$0xf] }
 0x121   :  { %v2234_v46 = vpop.permute.xlu0 %2233  ;;  %v5812_v51 = vpop.permute.xlu1 %2434 }
 0x122   :  { %v2238_v3 = vsel %vm50_vm0, %v2232_v43, %v2234_v46 }
 0x123   :  { %3882 = vrot.lane.b32.xlu0 %v5614_v49, %s5059_s28  ;;  %3884 = vrot.lane.b32.xlu1 %v5616_v50, %s5059_s28 }
 0x124   :  { %4629 = vmatmul.mubr.msk.bf16.vlgmr.msra.gmra.mrb[4].mxu0 %vm55_vm2, %v4627_v13 }
 0x125   :  { %1844 = vmatpush1.bf16.msra.mxu0 %v1832_v35  ;;  %1875 = vmatprep.mubr.bf16.mxu0 %v5054_v2  ;;  %v5815_v52 = vpop.permute.xlu0 %2436  ;;  %v5828_v56 = vpop.permute.xlu1 %2438 }
 0x126   :  { %4638 = vmatprep.subr.msk.bf16.mxu0 %vm59_vm1, %v1941_v36 }
 0x127   :  { %3886 = vrot.lane.b32.xlu0 %v5633_v54, %s5059_s28  ;;  %3994 = vrot.lane.b32.xlu1 %v5583_v41, %s5060_s29 }
 0x128   :  { %4631 = vmatmul.mubr.msk.bf16.vlgmr.msra.gmra.mrb[4].mxu1 %vm55_vm2, %v4627_v13 }
 0x129   :  { %1885 = vmatpush1.bf16.msra.mxu1 %v1838_v37  ;;  %1916 = vmatprep.mubr.bf16.mxu1 %v5054_v2  ;;  %v5833_v58 = vpop.permute.xlu0 %2440  ;;  %v2443_v63 = vpop.permute.xlu1 %2442 }
 0x12a   :  { %4640 = vmatprep.subr.msk.bf16.mxu1 %vm59_vm1, %v1943_v39  ;;  %v2447_v5 = vsel %vm263_vm3, %v5833_v58, %v2443_v63  ;;  %v2446_v10 = vsel %vm263_vm3, %v5828_v56, %v5833_v58 }
 0x12b   :  { %3996 = vrot.lane.b32.xlu0 %v5595_v44, %s5060_s29  ;;  %3998 = vrot.lane.b32.xlu1 %v5614_v49, %s5060_s29  ;;  %v2458_v33 = vsel %vm59_vm1, %v2446_v10, 0 }
 0x12d   :  { %v5854_v0 = vpop.permute.xlu0 %2550  ;;  %v2553_v4 = vpop.permute.xlu1 %2552 }
 0x12e   :  { %v2560_v35 = vsel %vm381_vm4, %v5854_v0, %v2553_v4 }
 0x12f   :  { %4000 = vrot.lane.b32.xlu0 %v5616_v50, %s5060_s29  ;;  %4002 = vrot.lane.b32.xlu1 %v5633_v54, %s5060_s29  ;;  %v2568_v37 = vsel %vm59_vm1, %v2560_v35, 0 }
 0x130   :  { %4634 = vmatmul.mubr.msk.bf16.vlgmr.msra.gmra.mrb[4].mxu0 %vm55_vm2, %v4632_v45 }
 0x131   :  { %1960 = vmatpush1.bf16.msra.mxu0 %v1948_v47  ;;  %1991 = vmatprep.mubr.bf16.mxu0 %v5054_v2  ;;  %v2555_v7 = vpop.permute.xlu0 %2554  ;;  %v2557_v16 = vpop.permute.xlu1 %2556 }
 0x132   :  { %4643 = vmatprep.subr.msk.bf16.mxu0 %vm59_vm1, %v2057_v23  ;;  %v2561_v31 = vsel %vm381_vm4, %v2553_v4, %v2555_v7  ;;  %v2562_v38 = vsel %vm381_vm4, %v2555_v7, %v2557_v16  ;;  %v4666_v23 = vld [vmem:[%s6310_s1 + $0xc] sm:$0xf] }
 0x133   :  { %4110 = vrot.lane.b32.xlu0 %v5583_v41, %s5061_s30  ;;  %4112 = vrot.lane.b32.xlu1 %v5595_v44, %s5061_s30  ;;  %v2574_v43 = vsel %vm59_vm1, %v2562_v38, 0  ;;  %v1083_v38 = vlaneseq }
 0x134   :  { %4636 = vmatmul.mubr.msk.bf16.vlgmr.msra.gmra.mrb[4].mxu1 %vm55_vm2, %v4632_v45 }
 0x135   :  { %2001 = vmatpush1.bf16.msra.mxu1 %v1954_v53  ;;  %2032 = vmatprep.mubr.bf16.mxu1 %v5054_v2  ;;  %v2559_v18 = vpop.permute.xlu0 %2558 }
 0x136   :  { %4645 = vmatprep.subr.msk.bf16.mxu1 %vm59_vm1, %v2059_v55  ;;  %v2563_v9 = vsel %vm381_vm4, %v2557_v16, %v2559_v18 }
 0x137   :  { %4114 = vrot.lane.b32.xlu0 %v5614_v49, %s5061_s30  ;;  %4116 = vrot.lane.b32.xlu1 %v5616_v50, %s5061_s30 }
 0x139   :  { %v2669_v22 = vpop.permute.xlu0 %2668 }
 0x13b   :  { %4118 = vrot.lane.b32.xlu0 %v5633_v54, %s5061_s30  ;;  %4226 = vrot.lane.b32.xlu1 %v5583_v41, %s5062_s6 }
 0x13c   :  { %4639 = vmatmul.mubr.msk.bf16.vlgmr.msra.gmra.mrb[4].mxu0 %vm55_vm2, %v4637_v59 }
 0x13d   :  { %2076 = vmatpush1.bf16.msra.mxu0 %v2064_v60  ;;  %2107 = vmatprep.mubr.bf16.mxu0 %v5054_v2  ;;  %v2673_v27 = vpop.permute.xlu0 %2672 }
 0x13e   :  { %4653 = vmatprep.subr.msk.bf16.mxu0 %vm59_vm1, %v2236_v62  ;;  %v4671_v62 = vld [vmem:[%s6310_s1 + $0x10] sm:$0xf] }
 0x13f   :  { %4228 = vrot.lane.b32.xlu0 %v5595_v44, %s5062_s6  ;;  %4230 = vrot.lane.b32.xlu1 %v5614_v49, %s5062_s6 }
 0x140   :  { %4641 = vmatmul.mubr.msk.bf16.vlgmr.msra.gmra.mrb[4].mxu1 %vm55_vm2, %v4637_v59 }
 0x141   :  { %2117 = vmatpush1.bf16.msra.mxu1 %v2070_v1  ;;  %2148 = vmatprep.mubr.bf16.mxu1 %v5054_v2  ;;  %v2783_v29 = vpop.permute.xlu0 %2782 }
 0x142   :  { %4655 = vmatprep.subr.msk.bf16.mxu1 %vm59_vm1, %v2238_v3 }
 0x143   :  { %4232 = vrot.lane.b32.xlu0 %v5616_v50, %s5062_s6  ;;  %4234 = vrot.lane.b32.xlu1 %v5633_v54, %s5062_s6  ;;  %v2667_v54 = vpop.permute.xlu1 %2666 }
 0x144   :  { %v2676_v47 = vsel %vm499_vm5, %v2667_v54, %v2669_v22 }
 0x145   :  { %v2787_v13 = vpop.permute.xlu0 %2786 }
 0x147   :  { %v2671_v26 = vpop.permute.xlu1 %2670 }
 0x148   :  { %4644 = vmatmul.mubr.msk.bf16.vlgmr.msra.gmra.mrb[4].mxu0 %vm55_vm2, %v4642_v11  ;;  %v2677_v39 = vsel %vm499_vm5, %v2669_v22, %v2671_v26 }
 0x149   :  { %2255 = vmatpush1.bf16.msra.mxu0 %v2243_v15  ;;  %2286 = vmatprep.mubr.bf16.mxu0 %v5054_v2  ;;  %v2791_v36 = vpop.permute.xlu0 %2790 }
 0x14a   :  { %4657 = vmatprep.subr.msk.bf16.mxu0 %vm59_vm1, %v5354_v8  ;;  %v2445_v8 = vsel %vm263_vm3, %v5815_v52, %v5828_v56 }
 0x14b   :  { %v2675_v28 = vpop.permute.xlu1 %2674 }
 0x14c   :  { %4646 = vmatmul.mubr.msk.bf16.vlgmr.msra.gmra.mrb[4].mxu1 %vm55_vm2, %v4642_v11  ;;  %v2679_v45 = vsel %vm499_vm5, %v2673_v27, %v2675_v28 }
 0x14d   :  { %2296 = vmatpush1.bf16.msra.mxu1 %v2249_v20  ;;  %2327 = vmatprep.mubr.bf16.mxu1 %v5054_v2  ;;  %v2901_v42 = vpop.permute.xlu0 %2900 }
 0x14e   :  { %4659 = vmatprep.subr.msk.bf16.mxu1 %vm59_vm1, %v5370_v19  ;;  %v2444_v19 = vsel %vm263_vm3, %v5812_v51, %v5815_v52  ;;  %v2684_v51 = vsel %vm59_vm1, %v2676_v47, 0  ;;  %v2678_v52 = vsel %vm499_vm5, %v2671_v26, %v2673_v27  ;;  %v4681_v27 = vld [vmem:[%s6310_s1 + $0x18] sm:$0xf] }
 0x14f   :  { %v2452_v30 = vsel %vm59_vm1, %v2444_v19, 0  ;;  %v2785_v32 = vpop.permute.xlu1 %2784  ;;  %v2690_v57 = vsel %vm59_vm1, %v2678_v52, 0 }
 0x150   :  { %4654 = vmatmul.mubr.msk.bf16.vlgmr.msra.gmra.mrb[8].mxu0 %vm55_vm2, %v4647_v21  ;;  %v2793_v53 = vsel %vm617_vm6, %v2785_v32, %v2787_v13  ;;  %v2792_v60 = vsel %vm617_vm6, %v2783_v29, %v2785_v32 }
 0x151   :  { %2352 = vmatpush1.bf16.msra.mxu0 %v2340_v24  ;;  %2383 = vmatprep.mubr.bf16.mxu0 %v5054_v2  ;;  %v2905_v48 = vpop.permute.xlu0 %2904  ;;  %v2800_v63 = vsel %vm59_vm1, %v2792_v60, 0 }
 0x152   :  { %4662 = vmatprep.subr.msk.bf16.mxu0 %vm59_vm1, %v2445_v8 }
 0x153   :  { %v2789_v34 = vpop.permute.xlu1 %2788 }
 0x154   :  { %4656 = vmatmul.mubr.msk.bf16.vlgmr.msra.gmra.mrb[8].mxu1 %vm55_vm2, %v4647_v21  ;;  %v2795_v58 = vsel %vm617_vm6, %v2789_v34, %v2791_v36  ;;  %v2794_v1 = vsel %vm617_vm6, %v2787_v13, %v2789_v34  ;;  %v4686_v34 = vld [vmem:[%s6310_s1 + $0x1c] sm:$0xf] }
 0x155   :  { %2393 = vmatpush1.bf16.msra.mxu1 %v2346_v25  ;;  %2424 = vmatprep.mubr.bf16.mxu1 %v5054_v2  ;;  %v3015_v56 = vpop.permute.xlu0 %3014  ;;  %v2806_v6 = vsel %vm59_vm1, %v2794_v1, 0 }
 0x156   :  { %4664 = vmatprep.subr.msk.bf16.mxu1 %vm59_vm1, %v2447_v5 }
 0x157   :  { %v2899_v40 = vpop.permute.xlu1 %2898 }
 0x158   :  { %v2908_v15 = vsel %vm735_vm7, %v2899_v40, %v2901_v42 }
 0x159   :  { %v3019_v61 = vpop.permute.xlu0 %3018  ;;  %v2916_v18 = vsel %vm59_vm1, %v2908_v15, 0 }
 0x15b   :  { %v2903_v46 = vpop.permute.xlu1 %2902 }
 0x15c   :  { %4658 = vmatmul.mubr.msk.bf16.vlgmr.msra.gmra.mrb[8].mxu0 %vm55_vm2, %v2209_v14  ;;  %v2909_v3 = vsel %vm735_vm7, %v2901_v42, %v2903_v46  ;;  %v2910_v54 = vsel %vm735_vm7, %v2903_v46, %v2905_v48 }
 0x15d   :  { %2464 = vmatpush1.bf16.msra.mxu0 %v2452_v30  ;;  %2495 = vmatprep.mubr.bf16.mxu0 %v5054_v2  ;;  %v3023_v4 = vpop.permute.xlu0 %3022  ;;  %v2922_v24 = vsel %vm59_vm1, %v2910_v54, 0 }
 0x15e   :  { %4667 = vmatprep.subr.msk.bf16.mxu0 %vm59_vm1, %v2561_v31 }
 0x15f   :  { %v2907_v55 = vpop.permute.xlu1 %2906 }
 0x160   :  { %4660 = vmatmul.mubr.msk.bf16.vlgmr.msra.gmra.mrb[8].mxu1 %vm55_vm2, %v2209_v14  ;;  %v2911_v7 = vsel %vm735_vm7, %v2905_v48, %v2907_v55 }
 0x161   :  { %2505 = vmatpush1.bf16.msra.mxu1 %v2458_v33  ;;  %2536 = vmatprep.mubr.bf16.mxu1 %v5054_v2  ;;  %v3133_v16 = vpop.permute.xlu0 %3132 }
 0x162   :  { %4669 = vmatprep.subr.msk.bf16.mxu1 %vm59_vm1, %v2563_v9 }
 0x163   :  { %v3017_v59 = vpop.permute.xlu1 %3016 }
 0x164   :  { %v3025_v21 = vsel %vm853_vm8, %v3017_v59, %v3019_v61  ;;  %v3024_v26 = vsel %vm853_vm8, %v3015_v56, %v3017_v59 }
 0x165   :  { %v3137_v22 = vpop.permute.xlu0 %3136  ;;  %v3032_v19 = vsel %vm59_vm1, %v3024_v26, 0 }
 0x167   :  { %v3021_v0 = vpop.permute.xlu1 %3020 }
 0x168   :  { %4663 = vmatmul.mubr.msk.bf16.vlgmr.msra.gmra.mrb[8].mxu0 %vm55_vm2, %v4661_v12  ;;  %v3027_v8 = vsel %vm853_vm8, %v3021_v0, %v3023_v4  ;;  %v3026_v14 = vsel %vm853_vm8, %v3019_v61, %v3021_v0 }
 0x169   :  { %2580 = vmatpush1.bf16.msra.mxu0 %v2568_v37  ;;  %2611 = vmatprep.mubr.bf16.mxu0 %v5054_v2  ;;  %v3312_v5 = vpop.permute.xlu0 %3311  ;;  %v3038_v10 = vsel %vm59_vm1, %v3026_v14, 0 }
 0x16a   :  { %4672 = vmatprep.subr.msk.bf16.mxu0 %vm59_vm1, %v2677_v39 }
 0x16b   :  { %v3131_v11 = vpop.permute.xlu1 %3130 }
 0x16c   :  { %4665 = vmatmul.mubr.msk.bf16.vlgmr.msra.gmra.mrb[8].mxu1 %vm55_vm2, %v4661_v12  ;;  %v3140_v33 = vsel %vm971_vm9, %v3131_v11, %v3133_v16 }
 0x16d   :  { %2621 = vmatpush1.bf16.msra.mxu1 %v2574_v43  ;;  %2652 = vmatprep.mubr.bf16.mxu1 %v5054_v2  ;;  %v3316_v30 = vpop.permute.xlu0 %3315  ;;  %v3148_v35 = vsel %vm59_vm1, %v3140_v33, 0  ;;  %v1084_v43 = vshrl.u32 %v1083_v38, 7 }
 0x16e   :  { %4674 = vmatprep.subr.msk.bf16.mxu1 %vm59_vm1, %v2679_v45 }
 0x16f   :  { %v3135_v20 = vpop.permute.xlu1 %3134  ;;  %v6024_v47 = vsub.s32 0, %v1084_v43  ;;  %v6032_v52 = vsub.s32 1, %v1084_v43  ;;  %v6046_v61 = vsub.s32 3, %v1084_v43 }
 0x170   :  { %v3141_v29 = vsel %vm971_vm9, %v3133_v16, %v3135_v20  ;;  %v3142_v12 = vsel %vm971_vm9, %v3135_v20, %v3137_v22 }
 0x171   :  { %v3320_v9 = vpop.permute.xlu0 %3319  ;;  %v3154_v39 = vsel %vm59_vm1, %v3142_v12, 0 }
 0x173   :  { %v3139_v25 = vpop.permute.xlu1 %3138 }
 0x174   :  { %4668 = vmatmul.mubr.msk.bf16.vlgmr.msra.gmra.mrb[8].mxu0 %vm55_vm2, %v4666_v23  ;;  %v3143_v31 = vsel %vm971_vm9, %v3137_v22, %v3139_v25 }
 0x175   :  { %2696 = vmatpush1.bf16.msra.mxu0 %v2684_v51  ;;  %2727 = vmatprep.mubr.bf16.mxu0 %v5054_v2  ;;  %v6009_v37 = vpop.permute.xlu0 %3532  ;;  %v1081_v51 = vld [vmem:[%s6311_s4] sm:$0xf] }
 0x176   :  { %4677 = vmatprep.subr.msk.bf16.mxu0 %vm59_vm1, %v2793_v53  ;;  %v1090_v60 = vrot.slane %v1081_v51, %v6032_v52 }
 0x177   :  { %v3314_v28 = vpop.permute.xlu1 %3313 }
 0x178   :  { %4670 = vmatmul.mubr.msk.bf16.vlgmr.msra.gmra.mrb[8].mxu1 %vm55_vm2, %v4666_v23  ;;  %v3322_v36 = vsel %vm50_vm0, %v3314_v28, %v3316_v30  ;;  %v3321_v46 = vsel %vm50_vm0, %v3312_v5, %v3314_v28  ;;  %v4691_v23 = vld [vmem:[%s6310_s1 + $0x20] sm:$0xf] }
 0x179   :  { %2737 = vmatpush1.bf16.msra.mxu1 %v2690_v57  ;;  %2768 = vmatprep.mubr.bf16.mxu1 %v5054_v2  ;;  %v6020_v45 = vpop.permute.xlu0 %3536  ;;  %v3329_v53 = vsel %vm59_vm1, %v3321_v46, 0  ;;  %v1086_v57 = vrot.slane %v1081_v51, %v6024_v47 }
 0x17a   :  { %4679 = vmatprep.subr.msk.bf16.mxu1 %vm59_vm1, %v2795_v58  ;;  %v6040_v58 = vsub.s32 2, %v1084_v43 }
 0x17b   :  { %v3318_v32 = vpop.permute.xlu1 %3317 }
 0x17c   :  { %v3324_v42 = vsel %vm50_vm0, %v3318_v32, %v3320_v9  ;;  %v3323_v55 = vsel %vm50_vm0, %v3316_v30, %v3318_v32  ;;  %v3293_v9 = vld [vmem:[%s6310_s1] sm:$0xf] }
 0x17d   :  { %v6036_v56 = vpop.permute.xlu0 %3646 }
 0x17f   :  { %v6001_v13 = vpop.permute.xlu1 %3530 }
 0x180   :  { %4673 = vmatmul.mubr.msk.bf16.vlgmr.msra.gmra.mrb[8].mxu0 %vm55_vm2, %v4671_v62 }
 0x181   :  { %2812 = vmatpush1.bf16.msra.mxu0 %v2800_v63  ;;  %2843 = vmatprep.mubr.bf16.mxu0 %v5054_v2  ;;  %v3651_v11 = vpop.permute.xlu0 %3650 }
 0x182   :  { %4682 = vmatprep.subr.msk.bf16.mxu0 %vm59_vm1, %v2909_v3  ;;  %v1094_v3 = vrot.slane %v1081_v51, %v6040_v58 }
 0x183   :  { %v6015_v40 = vpop.permute.xlu1 %3534 }
 0x184   :  { %4675 = vmatmul.mubr.msk.bf16.vlgmr.msra.gmra.mrb[8].mxu1 %vm55_vm2, %v4671_v62  ;;  %v3335_v62 = vsel %vm59_vm1, %v3323_v55, 0  ;;  %v3541_v22 = vsel %vm263_vm3, %v6009_v37, %v6015_v40  ;;  %v3542_v12 = vsel %vm263_vm3, %v6015_v40, %v6020_v45 }
 0x185   :  { %2853 = vmatpush1.bf16.msra.mxu1 %v2806_v6  ;;  %2884 = vmatprep.mubr.bf16.mxu1 %v5054_v2 }
 0x186   :  { %4684 = vmatprep.subr.msk.bf16.mxu1 %vm59_vm1, %v2911_v7  ;;  %v1098_v7 = vrot.slane %v1081_v51, %v6046_v61 }
 0x187   :  { %v3539_v48 = vpop.permute.xlu1 %3538 }
 0x188   :  { %v3543_v14 = vsel %vm263_vm3, %v6020_v45, %v3539_v48  ;;  %v4714_v45 = vld [vmem:[%s6310_s1 + $0x8] sm:$0xf] }
 0x18b   :  { %v6042_v59 = vpop.permute.xlu1 %3648 }
 0x18c   :  { %4678 = vmatmul.mubr.msk.bf16.vlgmr.msra.gmra.mrb[8].mxu0 %vm55_vm2, %v4676_v17  ;;  %v3656_v40 = vsel %vm381_vm4, %v6036_v56, %v6042_v59 }
 0x18d   :  { %2928 = vmatpush1.bf16.msra.mxu0 %v2916_v18  ;;  %2959 = vmatprep.mubr.bf16.mxu0 %v5054_v2  ;;  %v3664_v46 = vsel %vm59_vm1, %v3656_v40, 0 }
 0x18e   :  { %4687 = vmatprep.subr.msk.bf16.mxu0 %vm59_vm1, %v3025_v21 }
 0x18f   :  { %v3653_v18 = vpop.permute.xlu1 %3652 }
 0x190   :  { %4680 = vmatmul.mubr.msk.bf16.vlgmr.msra.gmra.mrb[8].mxu1 %vm55_vm2, %v4676_v17  ;;  %v3436_v17 = vsel %vm59_vm1, %v5583_v41, 0  ;;  %v3658_v48 = vsel %vm381_vm4, %v3651_v11, %v3653_v18 }
 0x191   :  { %2969 = vmatpush1.bf16.msra.mxu1 %v2922_v24  ;;  %3000 = vmatprep.mubr.bf16.mxu1 %v5054_v2  ;;  %v3670_v51 = vsel %vm59_vm1, %v3658_v48, 0  ;;  %v4744_v48 = vld [vmem:[%s6310_s1 + $0x20] sm:$0xf] }
 0x192   :  { %4689 = vmatprep.subr.msk.bf16.mxu1 %vm59_vm1, %v3027_v8 }
 0x198   :  { %4683 = vmatmul.mubr.msk.bf16.vlgmr.msra.gmra.mrb[8].mxu0 %vm55_vm2, %v4681_v27 }
 0x199   :  { %3044 = vmatpush1.bf16.msra.mxu0 %v3032_v19  ;;  %3075 = vmatprep.mubr.bf16.mxu0 %v5054_v2  ;;  %v3442_v19 = vsel %vm59_vm1, %v5614_v49, 0  ;;  %v3540_v49 = vsel %vm263_vm3, %v6001_v13, %v6009_v37  ;;  %v3554_v13 = vsel %vm59_vm1, %v3542_v12, 0 }
 0x19a   :  { %4692 = vmatprep.subr.msk.bf16.mxu0 %vm59_vm1, %v3141_v29 }
 0x19c   :  { %4685 = vmatmul.mubr.msk.bf16.vlgmr.msra.gmra.mrb[8].mxu1 %vm55_vm2, %v4681_v27 }
 0x19d   :  { %3085 = vmatpush1.bf16.msra.mxu1 %v3038_v10  ;;  %3116 = vmatprep.mubr.bf16.mxu1 %v5054_v2  ;;  %v3655_v10 = vpop.permute.xlu0 %3654 }
 0x19e   :  { %4694 = vmatprep.subr.msk.bf16.mxu1 %vm59_vm1, %v3143_v31  ;;  %v3763_v31 = vpop.permute.xlu1 %3762  ;;  %v3659_v38 = vsel %vm381_vm4, %v3653_v18, %v3655_v10  ;;  %v4724_v18 = vld [vmem:[%s6310_s1 + $0x10] sm:$0xf] }
 0x1a1   :  { %v3765_v33 = vpop.permute.xlu0 %3764 }
 0x1a4   :  { %4688 = vmatmul.mubr.msk.bf16.vlgmr.msra.gmra.mrb[8].mxu0 %vm55_vm2, %v4686_v34 }
 0x1a5   :  { %3160 = vmatpush1.bf16.msra.mxu0 %v3148_v35  ;;  %3191 = vmatprep.mubr.bf16.mxu0 %v5054_v2  ;;  %v3767_v35 = vpop.permute.xlu1 %3766  ;;  %v3769_v37 = vpop.permute.xlu0 %3768 }
 0x1a6   :  { %4702 = vmatprep.subr.msk.bf16.mxu0 %vm59_vm1, %v3322_v36  ;;  %v3657_v36 = vsel %vm381_vm4, %v6042_v59, %v3651_v11 }
 0x1a8   :  { %4690 = vmatmul.mubr.msk.bf16.vlgmr.msra.gmra.mrb[8].mxu1 %vm55_vm2, %v4686_v34  ;;  %v3548_v34 = vsel %vm59_vm1, %v3540_v49, 0 }
 0x1a9   :  { %3201 = vmatpush1.bf16.msra.mxu1 %v3154_v39  ;;  %3232 = vmatprep.mubr.bf16.mxu1 %v5054_v2  ;;  %v3771_v39 = vpop.permute.xlu1 %3770 }
 0x1aa   :  { %4704 = vmatprep.subr.msk.bf16.mxu1 %vm59_vm1, %v3324_v42  ;;  %v3879_v42 = vpop.permute.xlu0 %3878  ;;  %v3775_v56 = vsel %vm499_vm5, %v3769_v37, %v3771_v39 }
 0x1ad   :  { %v3881_v43 = vpop.permute.xlu1 %3880 }
 0x1b0   :  { %4693 = vmatmul.mubr.msk.bf16.vlgmr.msra.gmra.mrb[8].mxu0 %vm55_vm2, %v4691_v23 }
 0x1b1   :  { %3341 = vmatpush1.bf16.msra.mxu0 %v3329_v53  ;;  %3372 = vmatprep.mubr.bf16.mxu0 %v5054_v2  ;;  %v3883_v53 = vpop.permute.xlu0 %3882  ;;  %v3885_v55 = vpop.permute.xlu1 %3884 }
 0x1b2   :  { %4710 = vmatprep.subr.msk.bf16.mxu0 %vm59_vm1, %v5595_v44  ;;  %v4696_v44 = vld [vmem:[%s6310_s1 + $0x4] sm:$0xf] }
 0x1b3   :  { %v6051_v63 = vpop.f32.mrb[0].mxu0 }
 0x1b4   :  { %v1103_v0 = vmul.f32 %v1086_v57, %v6051_v63  ;;  %v6054_v1 = vpop.f32.mrb[1].mxu0  ;;  %4695 = vmatmul.mubr.msk.bf16.vlgmr.msra.gmra.mrb[8].mxu1 %vm55_vm2, %v4691_v23  ;;  %v3773_v23 = vsel %vm499_vm5, %v3765_v33, %v3767_v35  ;;  %v3772_v57 = vsel %vm499_vm5, %v3763_v31, %v3765_v33 }
 0x1b5   :  { %v1104_v4 = vmul.f32 %v1090_v60, %v6054_v1  ;;  %3382 = vmatpush1.bf16.msra.mxu1 %v3335_v62  ;;  %v1029_v6 = vpop.f32.mrb[2].mxu0  ;;  %3413 = vmatprep.mubr.bf16.mxu1 %v5054_v2  ;;  %v3887_v59 = vpop.permute.xlu0 %3886  ;;  %v4719_v62 = vld [vmem:[%s6310_s1 + $0xc] sm:$0xf] }
 0x1b6   :  { %v1113_v15 = vmul.f32 %v1103_v0, %v6051_v63  ;;  %v1030_v16 = vpop.f32.mrb[3].mxu0  ;;  %4712 = vmatprep.subr.msk.bf16.mxu1 %vm59_vm1, %v5616_v50  ;;  %v3995_v60 = vpop.permute.xlu1 %3994  ;;  %v3891_v11 = vsel %vm617_vm6, %v3885_v55, %v3887_v59 }
 0x1b7   :  { %v1107_v20 = vadd.f32 %v1104_v4, %v1103_v0  ;;  %v1114_v54 = vmul.f32 %v1104_v4, %v6054_v1  ;;  %v6070_v21 = vpop.f32.mrb[0].mxu1  ;;  %v3780_v0 = vsel %vm59_vm1, %v3772_v57, 0  ;;  %v3889_v4 = vsel %vm617_vm6, %v3881_v43, %v3883_v53 }
 0x1b8   :  { %v1105_v24 = vmul.f32 %v1094_v3, %v6070_v21  ;;  %v6076_v8 = vpop.f32.mrb[1].mxu1  ;;  %4703 = vmatmul.mubr.msk.bf16.vlgmr.msra.gmra.mrb[12].mxu0 %vm55_vm2, %v4696_v44  ;;  %v3774_v3 = vsel %vm499_vm5, %v3767_v35, %v3769_v37  ;;  %v3888_v16 = vsel %vm617_vm6, %v3879_v42, %v3881_v43  ;;  %v4739_v42 = vld [vmem:[%s6310_s1 + $0x1c] sm:$0xf] }
 0x1b9   :  { %v1117_v41 = vadd.f32 %v1114_v54, %v1113_v15  ;;  %v1106_v25 = vmul.f32 %v1098_v7, %v6076_v8  ;;  %v1070_v50 = vpop.f32.mrb[2].mxu1  ;;  %3448 = vmatpush1.bf16.msra.mxu0 %v3436_v17  ;;  %3479 = vmatprep.mubr.bf16.mxu0 %v5054_v2  ;;  %v3997_v6 = vpop.permute.xlu0 %3996  ;;  %v3786_v7 = vsel %vm59_vm1, %v3774_v3, 0  ;;  %v3890_v54 = vsel %vm617_vm6, %v3883_v53, %v3885_v55 }
 0x1ba   :  { %v1108_v26 = vadd.f32 %v1107_v20, %v1105_v24  ;;  %v1115_v5 = vmul.f32 %v1105_v24, %v6070_v21  ;;  %v1071_v27 = vpop.f32.mrb[3].mxu1  ;;  %4715 = vmatprep.subr.msk.bf16.mxu0 %vm59_vm1, %v3541_v22  ;;  %v3896_v20 = vsel %vm59_vm1, %v3888_v16, 0 }
 0x1bb   :  { %v1116_v28 = vmul.f32 %v1106_v25, %v6076_v8  ;;  %v4004_v27 = vsel %vm735_vm7, %v3995_v60, %v3997_v6 }
 0x1bc   :  { %v1118_v29 = vadd.f32 %v1117_v41, %v1115_v5  ;;  %4705 = vmatmul.mubr.msk.bf16.vlgmr.msra.gmra.mrb[12].mxu1 %vm55_vm2, %v4696_v44  ;;  %v1109_v30 = vadd.f32 %v1108_v26, %v1106_v25  ;;  %v3999_v44 = vpop.permute.xlu1 %3998  ;;  %v3902_v25 = vsel %vm59_vm1, %v3890_v54, 0 }
 0x1bd   :  { %3489 = vmatpush1.bf16.msra.mxu1 %v3442_v19  ;;  %3520 = vmatprep.mubr.bf16.mxu1 %v5054_v2  ;;  %v4001_v15 = vpop.permute.xlu0 %4000  ;;  %v4005_v22 = vsel %vm735_vm7, %v3997_v6, %v3999_v44  ;;  %v4729_v19 = vld [vmem:[%s6310_s1 + $0x14] sm:$0xf] }
 0x1be   :  { %1110 = vadd.xlane.f32.xlu0 %v1109_v30  ;;  %v1119_v32 = vadd.f32 %v1118_v29, %v1116_v28  ;;  %4717 = vmatprep.subr.msk.bf16.mxu1 %vm59_vm1, %v3543_v14  ;;  %v4012_v28 = vsel %vm59_vm1, %v4004_v27, 0  ;;  %v4006_v14 = vsel %vm735_vm7, %v3999_v44, %v4001_v15 }
 0x1bf   :  { %v4018_v31 = vsel %vm59_vm1, %v4006_v14, 0 }
 0x1c0   :  { %v4003_v17 = vpop.permute.xlu1 %4002 }
 0x1c1   :  { %v4111_v24 = vpop.permute.xlu0 %4110  ;;  %v4007_v50 = vsel %vm735_vm7, %v4001_v15, %v4003_v17 }
 0x1c2   :  { %1120 = vadd.xlane.f32.xlu0 %v1119_v32 }
 0x1c4   :  { %4711 = vmatmul.mubr.msk.bf16.vlgmr.msra.gmra.mrb[12].mxu0 %vm55_vm2, %v3293_v9  ;;  %v4113_v41 = vpop.permute.xlu1 %4112 }
 0x1c5   :  { %3560 = vmatpush1.bf16.msra.mxu0 %v3548_v34  ;;  %3591 = vmatprep.mubr.bf16.mxu0 %v5054_v2  ;;  %v4115_v26 = vpop.permute.xlu0 %4114  ;;  %v4734_v34 = vld [vmem:[%s6310_s1 + $0x18] sm:$0xf] }
 0x1c6   :  { %4720 = vmatprep.subr.msk.bf16.mxu0 %vm59_vm1, %v3657_v36  ;;  %v4121_v29 = vsel %vm853_vm8, %v4113_v41, %v4115_v26 }
 0x1c8   :  { %4713 = vmatmul.mubr.msk.bf16.vlgmr.msra.gmra.mrb[12].mxu1 %vm55_vm2, %v3293_v9  ;;  %v4117_v5 = vpop.permute.xlu1 %4116  ;;  %v4120_v9 = vsel %vm853_vm8, %v4111_v24, %v4113_v41 }
 0x1c9   :  { %3601 = vmatpush1.bf16.msra.mxu1 %v3554_v13  ;;  %3632 = vmatprep.mubr.bf16.mxu1 %v5054_v2  ;;  %v4119_v30 = vpop.permute.xlu0 %4118  ;;  %v4128_v35 = vsel %vm59_vm1, %v4120_v9, 0  ;;  %v4122_v12 = vsel %vm853_vm8, %v4115_v26, %v4117_v5 }
 0x1ca   :  { %4722 = vmatprep.subr.msk.bf16.mxu1 %vm59_vm1, %v3659_v38  ;;  %v4123_v32 = vsel %vm853_vm8, %v4117_v5, %v4119_v30  ;;  %v4134_v38 = vsel %vm59_vm1, %v4122_v12, 0 }
 0x1cc   :  { %v4227_v10 = vpop.permute.xlu1 %4226 }
 0x1cd   :  { %v4229_v49 = vpop.permute.xlu0 %4228 }
 0x1ce   :  { %v4236_v40 = vsel %vm971_vm9, %v4227_v10, %v4229_v49 }
 0x1cf   :  { %v4244_v43 = vsel %vm59_vm1, %v4236_v40, 0 }
 0x1d0   :  { %4716 = vmatmul.mubr.msk.bf16.vlgmr.msra.gmra.mrb[12].mxu0 %vm55_vm2, %v4714_v45  ;;  %v4231_v33 = vpop.permute.xlu1 %4230 }
 0x1d1   :  { %3676 = vmatpush1.bf16.msra.mxu0 %v3664_v46  ;;  %3707 = vmatprep.mubr.bf16.mxu0 %v5054_v2  ;;  %v4237_v36 = vsel %vm971_vm9, %v4229_v49, %v4231_v33  ;;  %v4233_v13 = vpop.permute.xlu0 %4232 }
 0x1d2   :  { %4725 = vmatprep.subr.msk.bf16.mxu0 %vm59_vm1, %v3773_v23  ;;  %v2165_v23 = vld [vmem:[%s6311_s4 + $0x4] sm:$0xf] }
 0x1d3   :  { %v2174_v53 = vrot.slane %v2165_v23, %v6032_v52 }
 0x1d4   :  { %4718 = vmatmul.mubr.msk.bf16.vlgmr.msra.gmra.mrb[12].mxu1 %vm55_vm2, %v4714_v45  ;;  %v4235_v37 = vpop.permute.xlu1 %4234  ;;  %v4238_v45 = vsel %vm971_vm9, %v4231_v33, %v4233_v13 }
 0x1d5   :  { %3717 = vmatpush1.bf16.msra.mxu1 %v3670_v51  ;;  %3748 = vmatprep.mubr.bf16.mxu1 %v5054_v2  ;;  %v4239_v39 = vsel %vm971_vm9, %v4233_v13, %v4235_v37  ;;  %v4250_v46 = vsel %vm59_vm1, %v4238_v45, 0  ;;  %v2170_v51 = vrot.slane %v2165_v23, %v6024_v47 }
 0x1d6   :  { %4727 = vmatprep.subr.msk.bf16.mxu1 %vm59_vm1, %v3775_v56 }
 0x1dc   :  { %4721 = vmatmul.mubr.msk.bf16.vlgmr.msra.gmra.mrb[12].mxu0 %vm55_vm2, %v4719_v62 }
 0x1dd   :  { %3792 = vmatpush1.bf16.msra.mxu0 %v3780_v0  ;;  %3823 = vmatprep.mubr.bf16.mxu0 %v5054_v2 }
 0x1de   :  { %4730 = vmatprep.subr.msk.bf16.mxu0 %vm59_vm1, %v3889_v4 }
 0x1e0   :  { %4723 = vmatmul.mubr.msk.bf16.vlgmr.msra.gmra.mrb[12].mxu1 %vm55_vm2, %v4719_v62  ;;  %v2182_v62 = vrot.slane %v2165_v23, %v6046_v61 }
 0x1e1   :  { %3833 = vmatpush1.bf16.msra.mxu1 %v3786_v7  ;;  %3864 = vmatprep.mubr.bf16.mxu1 %v5054_v2 }
 0x1e2   :  { %4732 = vmatprep.subr.msk.bf16.mxu1 %vm59_vm1, %v3891_v11 }
 0x1e8   :  { %4726 = vmatmul.mubr.msk.bf16.vlgmr.msra.gmra.mrb[12].mxu0 %vm55_vm2, %v4724_v18 }
 0x1e9   :  { %3908 = vmatpush1.bf16.msra.mxu0 %v3896_v20  ;;  %3939 = vmatprep.mubr.bf16.mxu0 %v5054_v2 }
 0x1ea   :  { %4735 = vmatprep.subr.msk.bf16.mxu0 %vm59_vm1, %v4005_v22 }
 0x1ec   :  { %4728 = vmatmul.mubr.msk.bf16.vlgmr.msra.gmra.mrb[12].mxu1 %vm55_vm2, %v4724_v18 }
 0x1ed   :  { %3949 = vmatpush1.bf16.msra.mxu1 %v3902_v25  ;;  %3980 = vmatprep.mubr.bf16.mxu1 %v5054_v2 }
 0x1ee   :  { %4737 = vmatprep.subr.msk.bf16.mxu1 %vm59_vm1, %v4007_v50  ;;  %v3249_v50 = vld [vmem:[%s6311_s4 + $0x8] sm:$0xf] }
 0x1ef   :  { %v3254_v26 = vrot.slane %v3249_v50, %v6024_v47  ;;  %v3258_v5 = vrot.slane %v3249_v50, %v6032_v52  ;;  %v3262_v14 = vrot.slane %v3249_v50, %v6040_v58  ;;  %v3266_v10 = vrot.slane %v3249_v50, %v6046_v61 }
 0x1f4   :  { %4731 = vmatmul.mubr.msk.bf16.vlgmr.msra.gmra.mrb[12].mxu0 %vm55_vm2, %v4729_v19 }
 0x1f5   :  { %4024 = vmatpush1.bf16.msra.mxu0 %v4012_v28  ;;  %4055 = vmatprep.mubr.bf16.mxu0 %v5054_v2 }
 0x1f6   :  { %4740 = vmatprep.subr.msk.bf16.mxu0 %vm59_vm1, %v4121_v29 }
 0x1f8   :  { %4733 = vmatmul.mubr.msk.bf16.vlgmr.msra.gmra.mrb[12].mxu1 %vm55_vm2, %v4729_v19 }
 0x1f9   :  { %4065 = vmatpush1.bf16.msra.mxu1 %v4018_v31  ;;  %4096 = vmatprep.mubr.bf16.mxu1 %v5054_v2 }
 0x1fa   :  { %4742 = vmatprep.subr.msk.bf16.mxu1 %vm59_vm1, %v4123_v32 }
 0x200   :  { %4736 = vmatmul.mubr.msk.bf16.vlgmr.msra.gmra.mrb[12].mxu0 %vm55_vm2, %v4734_v34 }
 0x201   :  { %4140 = vmatpush1.bf16.msra.mxu0 %v4128_v35  ;;  %4171 = vmatprep.mubr.bf16.mxu0 %v5054_v2 }
 0x202   :  { %4745 = vmatprep.subr.msk.bf16.mxu0 %vm59_vm1, %v4237_v36 }
 0x204   :  { %4738 = vmatmul.mubr.msk.bf16.vlgmr.msra.gmra.mrb[12].mxu1 %vm55_vm2, %v4734_v34 }
 0x205   :  { %4181 = vmatpush1.bf16.msra.mxu1 %v4134_v38  ;;  %4212 = vmatprep.mubr.bf16.mxu1 %v5054_v2 }
 0x206   :  { %4747 = vmatprep.subr.msk.bf16.mxu1 %vm59_vm1, %v4239_v39 }
 0x20c   :  { %4741 = vmatmul.mubr.msk.bf16.vlgmr.msra.gmra.mrb[12].mxu0 %vm55_vm2, %v4739_v42 }
 0x20d   :  { %4256 = vmatpush1.bf16.msra.mxu0 %v4244_v43  ;;  %4287 = vmatprep.mubr.bf16.mxu0 %v5054_v2 }
 0x210   :  { %4743 = vmatmul.mubr.msk.bf16.vlgmr.msra.gmra.mrb[12].mxu1 %vm55_vm2, %v4739_v42 }
 0x211   :  { %4297 = vmatpush1.bf16.msra.mxu1 %v4250_v46  ;;  %4328 = vmatprep.mubr.bf16.mxu1 %v5054_v2  ;;  %v2178_v2 = vrot.slane %v2165_v23, %v6040_v58  ;;  %v4345_v46 = vld [vmem:[%s6311_s4 + $0xc] sm:$0xf] }
 0x212   :  { %v4354_v23 = vrot.slane %v4345_v46, %v6032_v52 }
 0x218   :  { %4746 = vmatmul.mubr.msk.bf16.vlgmr.msra.gmra.mrb[12].mxu0 %vm55_vm2, %v4744_v48 }
 0x21b   :  { %v6208_v55 = vpop.f32.mrb[4].mxu0 }
 0x21c   :  { %v2187_v56 = vmul.f32 %v2170_v51, %v6208_v55  ;;  %v6211_v57 = vpop.f32.mrb[5].mxu0  ;;  %4748 = vmatmul.mubr.msk.bf16.vlgmr.msra.gmra.mrb[12].mxu1 %vm55_vm2, %v4744_v48  ;;  %v4350_v48 = vrot.slane %v4345_v46, %v6024_v47 }
 0x21d   :  { %v2188_v59 = vmul.f32 %v2174_v53, %v6211_v57  ;;  %v2113_v60 = vpop.f32.mrb[6].mxu0 }
 0x21e   :  { %v2197_v0 = vmul.f32 %v2187_v56, %v6208_v55  ;;  %v2114_v3 = vpop.f32.mrb[7].mxu0 }
 0x21f   :  { %v2191_v4 = vadd.f32 %v2188_v59, %v2187_v56  ;;  %v2198_v6 = vmul.f32 %v2188_v59, %v6211_v57  ;;  %v6219_v7 = vpop.f32.mrb[4].mxu1 }
 0x220   :  { %v2189_v44 = vmul.f32 %v2178_v2, %v6219_v7  ;;  %v6222_v11 = vpop.f32.mrb[5].mxu1  ;;  %v4358_v2 = vrot.slane %v4345_v46, %v6040_v58 }
 0x221   :  { %v2201_v15 = vadd.f32 %v2198_v6, %v2197_v0  ;;  %v2190_v16 = vmul.f32 %v2182_v62, %v6222_v11  ;;  %v2154_v17 = vpop.f32.mrb[6].mxu1  ;;  %v4362_v62 = vrot.slane %v4345_v46, %v6046_v61 }
 0x222   :  { %v2192_v18 = vadd.f32 %v2191_v4, %v2189_v44  ;;  %v2199_v20 = vmul.f32 %v2189_v44, %v6219_v7  ;;  %v2155_v54 = vpop.f32.mrb[7].mxu1 }
 0x223   :  { %v2200_v22 = vmul.f32 %v2190_v16, %v6222_v11 }
 0x224   :  { %v2202_v24 = vadd.f32 %v2201_v15, %v2199_v20  ;;  %v2193_v41 = vadd.f32 %v2192_v18, %v2190_v16 }
 0x226   :  { %2194 = vadd.xlane.f32.xlu1 %v2193_v41  ;;  %v2203_v25 = vadd.f32 %v2202_v24, %v2200_v22 }
 0x228   :  { %2204 = vadd.xlane.f32.xlu0 %v2203_v25 }
 0x24b   :  { %v1111_v41 = vpop.xlane.xlu0 %1110 }
 0x24f   :  { %v1121_v25 = vpop.xlane.xlu0 %1120 }
 0x283   :  { %v6232_v27 = vpop.f32.mrb[8].mxu0 }
 0x284   :  { %v3271_v19 = vmul.f32 %v3254_v26, %v6232_v27  ;;  %v6235_v28 = vpop.f32.mrb[9].mxu0 }
 0x285   :  { %v3272_v29 = vmul.f32 %v3258_v5, %v6235_v28  ;;  %v3197_v30 = vpop.f32.mrb[10].mxu0 }
 0x286   :  { %v3281_v31 = vmul.f32 %v3271_v19, %v6232_v27  ;;  %v3198_v32 = vpop.f32.mrb[11].mxu0 }
 0x287   :  { %v3275_v49 = vadd.f32 %v3272_v29, %v3271_v19  ;;  %v3282_v33 = vmul.f32 %v3272_v29, %v6235_v28  ;;  %v6242_v9 = vpop.f32.mrb[8].mxu1 }
 0x288   :  { %v3273_v34 = vmul.f32 %v3262_v14, %v6242_v9  ;;  %v6245_v35 = vpop.f32.mrb[9].mxu1 }
 0x289   :  { %v3285_v12 = vadd.f32 %v3282_v33, %v3281_v31  ;;  %v3274_v36 = vmul.f32 %v3266_v10, %v6245_v35  ;;  %v3238_v13 = vpop.f32.mrb[10].mxu1 }
 0x28a   :  { %v3276_v37 = vadd.f32 %v3275_v49, %v3273_v34  ;;  %v3283_v38 = vmul.f32 %v3273_v34, %v6242_v9  ;;  %v3239_v39 = vpop.f32.mrb[11].mxu1 }
 0x28b   :  { %v3284_v40 = vmul.f32 %v3274_v36, %v6245_v35  ;;  %v4392_v39 = vld [vmem:[%s6312_s2] sm:$0xff] }
 0x28c   :  { %v3286_v42 = vadd.f32 %v3285_v12, %v3283_v38  ;;  %v3277_v43 = vadd.f32 %v3276_v37, %v3274_v36 }
 0x28e   :  { %3278 = vadd.xlane.f32.xlu1 %v3277_v43  ;;  %v3287_v45 = vadd.f32 %v3286_v42, %v3284_v40  ;;  %v4396_v43 = vld [vmem:[%s6313_s3] sm:$0xff] }
 0x290   :  { %3288 = vadd.xlane.f32.xlu0 %v3287_v45 }
 0x2b3   :  { %v2195_v50 = vpop.xlane.xlu1 %2194 }
 0x2b4   :  { %v2196_v19 = vadd.f32 %v2195_v50, %v1111_v41 }
 0x2b5   :  { %v2205_v26 = vpop.xlane.xlu0 %2204 }
 0x2b6   :  { %v2206_v29 = vadd.f32 %v2205_v26, %v1121_v25 }
 0x2eb   :  { %v6255_v51 = vpop.f32.mrb[12].mxu0 }
 0x2ec   :  { %v4367_v53 = vmul.f32 %v4350_v48, %v6255_v51  ;;  %v6258_v56 = vpop.f32.mrb[13].mxu0 }
 0x2ed   :  { %v4368_v59 = vmul.f32 %v4354_v23, %v6258_v56  ;;  %v4293_v60 = vpop.f32.mrb[14].mxu0 }
 0x2ee   :  { %v4377_v0 = vmul.f32 %v4367_v53, %v6255_v51  ;;  %v4294_v3 = vpop.f32.mrb[15].mxu0 }
 0x2ef   :  { %v4371_v4 = vadd.f32 %v4368_v59, %v4367_v53  ;;  %v4378_v47 = vmul.f32 %v4368_v59, %v6258_v56  ;;  %v4330_v52 = vpop.f32.mrb[12].mxu1 }
 0x2f0   :  { %v4369_v6 = vmul.f32 %v4358_v2, %v4330_v52  ;;  %v4332_v44 = vpop.f32.mrb[13].mxu1 }
 0x2f1   :  { %v4381_v15 = vadd.f32 %v4378_v47, %v4377_v0  ;;  %v4370_v16 = vmul.f32 %v4362_v62, %v4332_v44  ;;  %v4334_v17 = vpop.f32.mrb[14].mxu1 }
 0x2f2   :  { %v4372_v18 = vadd.f32 %v4371_v4, %v4369_v6  ;;  %v4379_v20 = vmul.f32 %v4369_v6, %v4330_v52  ;;  %v4335_v58 = vpop.f32.mrb[15].mxu1 }
 0x2f3   :  { %v4380_v54 = vmul.f32 %v4370_v16, %v4332_v44 }
 0x2f4   :  { %v4382_v22 = vadd.f32 %v4381_v15, %v4379_v20  ;;  %v4373_v24 = vadd.f32 %v4372_v18, %v4370_v16 }
 0x2f6   :  { %4374 = vadd.xlane.f32.xlu1 %v4373_v24  ;;  %v4383_v61 = vadd.f32 %v4382_v22, %v4380_v54 }
 0x2f8   :  { %4384 = vadd.xlane.f32.xlu0 %v4383_v61 }
 0x31b   :  { %v3279_v5 = vpop.xlane.xlu1 %3278 }
 0x31c   :  { %v3280_v30 = vadd.f32 %v3279_v5, %v2196_v19 }
 0x31d   :  { %v3289_v14 = vpop.xlane.xlu0 %3288 }
 0x31e   :  { %v3290_v31 = vadd.f32 %v3289_v14, %v2206_v29 }
 0x383   :  { %v4375_v10 = vpop.xlane.xlu1 %4374 }
 0x384   :  { %v4376_v32 = vadd.f32 %v4375_v10, %v3280_v30 }
 0x385   :  { %v4385_v49 = vpop.xlane.xlu0 %4384 }
 0x386   :  { %v4387_v33 = vmul.f32 0.00055555557, %v4376_v32  ;;  %v4386_v34 = vadd.f32 %v4385_v49, %v3290_v31 }
 0x388   :  { %v4389_v12 = vmul.f32 %v4387_v33, %v4387_v33  ;;  %v4388_v36 = vmul.f32 0.00055555557, %v4386_v34 }
 0x38a   :  { %v4390_v13 = vsub.f32 %v4388_v36, %v4389_v12 }
 0x38c   :  { %v4391_v37 = vmax.f32 %v4390_v13, 0.0 }
 0x38e   :  { %v4393_v38 = vadd.f32 1e-05, %v4391_v37 }
 0x390   :  { %5052 = vrsqrt.f32 %v4393_v38 }
 0x39a   :  { %v5053_v40 = vpop.eup %5052 }
 0x39b   :  { %v4395_v42 = vmul.f32 %v5053_v40, %v4392_v39 }
 0x39d   :  { %4405 = vperm.xlu1 %5030, %v4395_v42   ;;  %v4397_v45 = vmul.f32 %v4395_v42, %v4387_v33 }
 0x39f   :  { %v4398_v46 = vsub.f32 %v4396_v43, %v4397_v45 }
 0x3a1   :  { %4414 = vperm.xlu0 %5031, %v4398_v46  }
 0x41c   :  { %v4406_v48 = vpop.permute.xlu1 %4405 }
 0x41d   :  { %v4408_v23 = vmul.f32 %v4406_v48, %v6051_v63  ;;  %v4409_v53 = vmul.f32 %v4406_v48, %v6054_v1  ;;  %v4410_v2 = vmul.f32 %v4406_v48, %v6070_v21  ;;  %v4411_v59 = vmul.f32 %v4406_v48, %v6076_v8 }
 0x41e   :  { %v4447_v60 = vmul.f32 %v4406_v48, %v6208_v55  ;;  %v4448_v62 = vmul.f32 %v4406_v48, %v6211_v57  ;;  %v4449_v0 = vmul.f32 %v4406_v48, %v6219_v7  ;;  %v4450_v3 = vmul.f32 %v4406_v48, %v6222_v11 }
 0x41f   :  { %v4481_v4 = vmul.f32 %v4406_v48, %v6232_v27  ;;  %v4482_v47 = vmul.f32 %v4406_v48, %v6235_v28  ;;  %v4483_v63 = vmul.f32 %v4406_v48, %v6242_v9  ;;  %v4484_v1 = vmul.f32 %v4406_v48, %v6245_v35 }
 0x420   :  { %v4515_v21 = vmul.f32 %v4406_v48, %v6255_v51  ;;  %v4516_v8 = vmul.f32 %v4406_v48, %v6258_v56  ;;  %v4517_v6 = vmul.f32 %v4406_v48, %v4330_v52  ;;  %v4518_v55 = vmul.f32 %v4406_v48, %v4332_v44  ;;  %v4415_v15 = vpop.permute.xlu0 %4414 }
 0x421   :  { %v4417_v57 = vadd.f32 %v4415_v15, %v4408_v23  ;;  %v4418_v16 = vadd.f32 %v4415_v15, %v4409_v53  ;;  %v4419_v7 = vadd.f32 %v4415_v15, %v4410_v2  ;;  %v4420_v17 = vadd.f32 %v4415_v15, %v4411_v59 }
 0x422   :  { %v4451_v11 = vadd.f32 %v4447_v60, %v4415_v15  ;;  %v4452_v18 = vadd.f32 %v4448_v62, %v4415_v15  ;;  %v4453_v27 = vadd.f32 %v4449_v0, %v4415_v15  ;;  %v4454_v20 = vadd.f32 %v4450_v3, %v4415_v15 }
 0x423   :  { %v4421_v28 = vmax.f32 %v4417_v57, 0.0  ;;  %v4422_v58 = vmax.f32 %v4418_v16, 0.0  ;;  %v4423_v9 = vmax.f32 %v4419_v7, 0.0  ;;  %v4424_v54 = vmax.f32 %v4420_v17, 0.0 }
 0x424   :  { %v4455_v35 = vmax.f32 %v4451_v11, 0.0  ;;  %v4456_v22 = vmax.f32 %v4452_v18, 0.0  ;;  %v4457_v51 = vmax.f32 %v4453_v27, 0.0  ;;  %v4458_v24 = vmax.f32 %v4454_v20, 0.0 }
 0x425   :  { %v4757_v56 = vpack.c.bf16 %v4422_v58, %v4421_v28  ;;  %v4758_v52 = vpack.c.bf16 %v4424_v54, %v4423_v9  ;;  %v4485_v44 = vadd.f32 %v4481_v4, %v4415_v15  ;;  %v4486_v61 = vadd.f32 %v4482_v47, %v4415_v15 }
 0x426   :  { %v4759_v41 = vpack.c.bf16 %v4456_v22, %v4455_v35  ;;  %v4760_v25 = vpack.c.bf16 %v4458_v24, %v4457_v51  ;;  %v4487_v50 = vadd.f32 %v4483_v63, %v4415_v15  ;;  %v4488_v26 = vadd.f32 %v4484_v1, %v4415_v15 }
 0x427   :  { %4441 = vst [vmem:[%s6314_s5] sm:$0xff] %v4757_v56  ;;  %4442 = vst [vmem:[%s6314_s5 + $0x8] sm:$0xff] %v4758_v52  ;;  %v4489_v5 = vmax.f32 %v4485_v44, 0.0  ;;  %v4490_v19 = vmax.f32 %v4486_v61, 0.0  ;;  %v4519_v14 = vadd.f32 %v4515_v21, %v4415_v15  ;;  %v4520_v29 = vadd.f32 %v4516_v8, %v4415_v15 }
 0x428   :  { %4475 = vst [vmem:[%s6314_s5 + $0x10] sm:$0xff] %v4759_v41  ;;  %4476 = vst [vmem:[%s6314_s5 + $0x18] sm:$0xff] %v4760_v25  ;;  %v4491_v30 = vmax.f32 %v4487_v50, 0.0  ;;  %v4492_v10 = vmax.f32 %v4488_v26, 0.0  ;;  %v4521_v31 = vadd.f32 %v4517_v6, %v4415_v15  ;;  %v4522_v32 = vadd.f32 %v4518_v55, %v4415_v15 }
 0x429   :  { %v4761_v49 = vpack.c.bf16 %v4490_v19, %v4489_v5  ;;  %v4523_v33 = vmax.f32 %v4519_v14, 0.0  ;;  %v4524_v34 = vmax.f32 %v4520_v29, 0.0 }
 0x42a   :  { %v4762_v12 = vpack.c.bf16 %v4492_v10, %v4491_v30  ;;  %v4525_v36 = vmax.f32 %v4521_v31, 0.0  ;;  %v4526_v13 = vmax.f32 %v4522_v32, 0.0 }
 0x42b   :  { %4509 = vst [vmem:[%s6314_s5 + $0x20] sm:$0xff] %v4761_v49  ;;  %v4763_v37 = vpack.c.bf16 %v4524_v34, %v4523_v33 }
 0x42c   :  { %4510 = vst [vmem:[%s6314_s5 + $0x28] sm:$0xff] %v4762_v12  ;;  %v4764_v38 = vpack.c.bf16 %v4526_v13, %v4525_v36 }
 0x42d   :  { %4543 = vst [vmem:[%s6314_s5 + $0x30] sm:$0xff] %v4763_v37 }
 0x42e   :  { %4544 = vst [vmem:[%s6314_s5 + $0x38] sm:$0xff] %v4764_v38 }

// kernel: network_forward.6
= control target key start
LH: loop header
LB: loop body
LE: loop exit
PB: predicated region body
PF: predicated region fallthrough
CT: control target
= control target key end

     0   :  { %v5817_v2 = vmov 0   ;;  %s5818_s22 = smov 127   ;;  %s5819_s25 = smov 126   ;;  %vm57_vm0 = vcmask 1039360   ;;  %vm66_vm1 = vcmask 1043456   ;;  %vm62_vm2 = vcmask 64512   ;;  %s7118_s0 = inlined_call_operand.vmem [shape: bf16[8,2048], index: 0, kind: input, shape index: {}]   ;;  %s7119_s1 = inlined_call_operand.vmem [shape: bf16[9,16,8], index: 1, kind: input, shape index: {}]   ;;  %s7120_s4 = inlined_call_operand.vmem [shape: f32[1,1920], index: 4, kind: input, shape index: {}]   ;;  %s7121_s2 = inlined_call_operand.vmem [shape: f32[16,1], index: 2, kind: input, shape index: {}]   ;;  %s7122_s3 = inlined_call_operand.vmem [shape: f32[16,1], index: 3, kind: input, shape index: {}]   ;;  %s7123_s5 = inlined_call_operand.vmem [shape: bf16[16,1920], index: 5, kind: output, shape index: {}]  }
   0x1   :  { %v22_v0 = vld [vmem:[%s7118_s0 + $0x8] sm:$0xff]  ;;  %v21_v1 = vld [vmem:[%s7118_s0] sm:$0xff]  ;;  %111 = vmatprep.mubr.bf16.mxu0 %v5817_v2  ;;  %154 = vmatprep.mubr.bf16.mxu1 %v5817_v2  ;;  %v5761_v7 = vld [vmem:[%s7118_s0 + $0x10] ss:$0 sps:$4 sm:$0xff]   ;;  %s5820_s26 = smov 98   ;;  %s5821_s27 = smov 97  }
   0x2   :  { %v5866_v3 = vcombine.low %v22_v0, %v22_v0  ;;  %v5868_v4 = vcombine.low %v21_v1, %v21_v1  ;;  %5755 = vset.pattern.permute.xlu1 %v5817_v2  ;;  %5756 = vset.pattern.permute.xlu0 %v5817_v2  ;;  %v5876_v5 = vcombine.high %v22_v0, %v22_v0  ;;  %s5822_s28 = smov 96   ;;  %s5823_s29 = smov 68   ;;  %v1265_v8 = vld [vmem:[%s7118_s0 + $0x10] sm:$0xff]  ;;  %v1266_v11 = vld [vmem:[%s7118_s0 + $0x18] sm:$0xff]  ;;  %v5976_v14 = vld [vmem:[%s7118_s0 + $0x20] ss:$0 sps:$4 sm:$0xff]  }
   0x3   :  { %v5878_v6 = vcombine.high %v21_v1, %v21_v1  ;;  %s5824_s30 = smov 67   ;;  %s5825_s6 = smov 66   ;;  %v5954_v9 = vcombine.low %v1265_v8, %v1265_v8  ;;  %v5956_v10 = vcombine.high %v1265_v8, %v1265_v8  ;;  %v5965_v12 = vcombine.low %v1266_v11, %v1266_v11  ;;  %v5767_v22 = vld [vmem:[%s7119_s1 + $0x8] sm:$0xff]   ;;  %v5768_v37 = vld [vmem:[%s7119_s1] sm:$0xff]   ;;  %v5769_v50 = vld [vmem:[%s7119_s1 + $0x10] sm:$0xff]  }
   0x4   :  { %51 = vrot.lane.b32.xlu1 %v5866_v3, %s5818_s22  ;;  %47 = vrot.lane.b32.xlu0 %v5868_v4, %s5818_s22  ;;  %v5967_v13 = vcombine.high %v1266_v11, %v1266_v11  ;;  %v174_v25 = vsel %vm66_vm1, %v5868_v4, 0  ;;  %vm289_vm3 = vcmask 1031168   ;;  %v180_v29 = vsel %vm66_vm1, %v5866_v3, 0  ;;  %v2491_v63 = vld [vmem:[%s7118_s0 + $0x20] sm:$0xff]  ;;  %v5770_v0 = vld [vmem:[%s7119_s1 + $0x18] sm:$0xff]  }
   0x5   :  { %vm421_vm4 = vcmask 801792   ;;  %vm553_vm5 = vcmask 793600   ;;  %vm685_vm6 = vcmask 785408   ;;  %v6119_v8 = vcombine.high %v2491_v63, %v2491_v63  ;;  %v2492_v11 = vld [vmem:[%s7118_s0 + $0x28] sm:$0xff] }
   0x6   :  { %vm817_vm7 = vcmask 556032   ;;  %vm949_vm8 = vcmask 547840   ;;  %vm1081_vm9 = vcmask 539648   ;;  %vm5827_vm10 = vmmov 0  }
   0x8   :  { %53 = vrot.lane.b32.xlu1 %v5876_v5, %s5818_s22  ;;  %49 = vrot.lane.b32.xlu0 %v5878_v6, %s5818_s22 }
   0xc   :  { %55 = vrot.lane.b32.xlu0 %v5761_v7, %s5818_s22  ;;  %279 = vrot.lane.b32.xlu1 %v5868_v4, %s5819_s25 }
  0x10   :  { %281 = vrot.lane.b32.xlu0 %v5878_v6, %s5819_s25  ;;  %283 = vrot.lane.b32.xlu1 %v5866_v3, %s5819_s25 }
  0x14   :  { %285 = vrot.lane.b32.xlu0 %v5876_v5, %s5819_s25  ;;  %287 = vrot.lane.b32.xlu1 %v5761_v7, %s5819_s25 }
  0x18   :  { %411 = vrot.lane.b32.xlu0 %v5868_v4, %s5820_s26  ;;  %413 = vrot.lane.b32.xlu1 %v5878_v6, %s5820_s26 }
  0x1c   :  { %415 = vrot.lane.b32.xlu0 %v5866_v3, %s5820_s26  ;;  %417 = vrot.lane.b32.xlu1 %v5876_v5, %s5820_s26 }
  0x20   :  { %419 = vrot.lane.b32.xlu0 %v5761_v7, %s5820_s26  ;;  %543 = vrot.lane.b32.xlu1 %v5868_v4, %s5821_s27 }
  0x24   :  { %545 = vrot.lane.b32.xlu0 %v5878_v6, %s5821_s27  ;;  %547 = vrot.lane.b32.xlu1 %v5866_v3, %s5821_s27 }
  0x28   :  { %549 = vrot.lane.b32.xlu0 %v5876_v5, %s5821_s27  ;;  %551 = vrot.lane.b32.xlu1 %v5761_v7, %s5821_s27 }
  0x2c   :  { %675 = vrot.lane.b32.xlu0 %v5868_v4, %s5822_s28  ;;  %677 = vrot.lane.b32.xlu1 %v5878_v6, %s5822_s28 }
  0x30   :  { %679 = vrot.lane.b32.xlu0 %v5866_v3, %s5822_s28  ;;  %681 = vrot.lane.b32.xlu1 %v5876_v5, %s5822_s28 }
  0x34   :  { %683 = vrot.lane.b32.xlu0 %v5761_v7, %s5822_s28  ;;  %807 = vrot.lane.b32.xlu1 %v5868_v4, %s5823_s29 }
  0x38   :  { %809 = vrot.lane.b32.xlu0 %v5878_v6, %s5823_s29  ;;  %811 = vrot.lane.b32.xlu1 %v5866_v3, %s5823_s29 }
  0x3c   :  { %813 = vrot.lane.b32.xlu0 %v5876_v5, %s5823_s29  ;;  %815 = vrot.lane.b32.xlu1 %v5761_v7, %s5823_s29 }
  0x40   :  { %939 = vrot.lane.b32.xlu0 %v5868_v4, %s5824_s30  ;;  %941 = vrot.lane.b32.xlu1 %v5878_v6, %s5824_s30 }
  0x44   :  { %943 = vrot.lane.b32.xlu0 %v5866_v3, %s5824_s30  ;;  %945 = vrot.lane.b32.xlu1 %v5876_v5, %s5824_s30 }
  0x48   :  { %947 = vrot.lane.b32.xlu0 %v5761_v7, %s5824_s30  ;;  %1071 = vrot.lane.b32.xlu1 %v5868_v4, %s5825_s6 }
  0x4c   :  { %1073 = vrot.lane.b32.xlu0 %v5878_v6, %s5825_s6  ;;  %1075 = vrot.lane.b32.xlu1 %v5866_v3, %s5825_s6 }
  0x50   :  { %1077 = vrot.lane.b32.xlu0 %v5876_v5, %s5825_s6  ;;  %1079 = vrot.lane.b32.xlu1 %v5761_v7, %s5825_s6 }
  0x54   :  { %1290 = vrot.lane.b32.xlu0 %v5954_v9, %s5818_s22  ;;  %1292 = vrot.lane.b32.xlu1 %v5956_v10, %s5818_s22 }
  0x58   :  { %1294 = vrot.lane.b32.xlu0 %v5965_v12, %s5818_s22  ;;  %1296 = vrot.lane.b32.xlu1 %v5967_v13, %s5818_s22 }
  0x5c   :  { %1298 = vrot.lane.b32.xlu0 %v5976_v14, %s5818_s22  ;;  %1518 = vrot.lane.b32.xlu1 %v5954_v9, %s5819_s25 }
  0x60   :  { %1520 = vrot.lane.b32.xlu0 %v5956_v10, %s5819_s25  ;;  %1522 = vrot.lane.b32.xlu1 %v5965_v12, %s5819_s25 }
  0x64   :  { %1524 = vrot.lane.b32.xlu0 %v5967_v13, %s5819_s25  ;;  %1526 = vrot.lane.b32.xlu1 %v5976_v14, %s5819_s25 }
  0x68   :  { %1648 = vrot.lane.b32.xlu0 %v5954_v9, %s5820_s26  ;;  %1650 = vrot.lane.b32.xlu1 %v5956_v10, %s5820_s26 }
  0x6c   :  { %1652 = vrot.lane.b32.xlu0 %v5965_v12, %s5820_s26  ;;  %1654 = vrot.lane.b32.xlu1 %v5967_v13, %s5820_s26 }
  0x70   :  { %1656 = vrot.lane.b32.xlu0 %v5976_v14, %s5820_s26  ;;  %1778 = vrot.lane.b32.xlu1 %v5954_v9, %s5821_s27 }
  0x74   :  { %1780 = vrot.lane.b32.xlu0 %v5956_v10, %s5821_s27  ;;  %1782 = vrot.lane.b32.xlu1 %v5965_v12, %s5821_s27 }
  0x76   :  { %v52_v15 = vpop.permute.xlu1 %51  ;;  %v48_v16 = vpop.permute.xlu0 %47 }
  0x78   :  { %1784 = vrot.lane.b32.xlu0 %v5967_v13, %s5821_s27  ;;  %1786 = vrot.lane.b32.xlu1 %v5976_v14, %s5821_s27 }
  0x7a   :  { %v54_v17 = vpop.permute.xlu1 %53  ;;  %v50_v18 = vpop.permute.xlu0 %49 }
  0x7b   :  { %v59_v19 = vsel %vm57_vm0, %v50_v18, %v52_v15  ;;  %v58_v20 = vsel %vm57_vm0, %v48_v16, %v50_v18  ;;  %v60_v23 = vsel %vm57_vm0, %v52_v15, %v54_v17 }
  0x7c   :  { %5135 = vmatprep.subr.msk.bf16.mxu0 %vm66_vm1, %v59_v19  ;;  %v68_v21 = vsel %vm66_vm1, %v58_v20, 0  ;;  %1908 = vrot.lane.b32.xlu0 %v5954_v9, %s5822_s28  ;;  %v74_v28 = vsel %vm66_vm1, %v60_v23, 0  ;;  %v6135_v19 = vcombine.high %v2492_v11, %v2492_v11  ;;  %v6148_v23 = vld [vmem:[%s7118_s0 + $0x30] ss:$0 sps:$4 sm:$0xff]  }
  0x7d   :  { %80 = vmatpush1.bf16.msra.mxu0 %v68_v21  ;;  %1910 = vrot.lane.b32.xlu1 %v5956_v10, %s5822_s28 }
  0x7e   :  { %v56_v24 = vpop.permute.xlu0 %55  ;;  %5140 = vmatprep.subr.msk.bf16.mxu0 %vm66_vm1, %v5878_v6  ;;  %v280_v26 = vpop.permute.xlu1 %279 }
  0x7f   :  { %v61_v27 = vsel %vm57_vm0, %v54_v17, %v56_v24  ;;  %v5771_v24 = vld [vmem:[%s7119_s1 + $0x20] sm:$0xff]  }
  0x80   :  { %5136 = vmatmul.mubr.msk.bf16.vlgmr.msra.gmra.mrb[0].mxu0 %vm62_vm2, %v5767_v22  ;;  %5137 = vmatprep.subr.msk.bf16.mxu1 %vm66_vm1, %v61_v27 }
  0x81   :  { %123 = vmatpush1.bf16.msra.mxu1 %v74_v28  ;;  %186 = vmatpush1.bf16.msra.mxu0 %v174_v25 }
  0x82   :  { %5142 = vmatprep.subr.msk.bf16.mxu1 %vm66_vm1, %v5876_v5  ;;  %v282_v30 = vpop.permute.xlu0 %281  ;;  %v284_v31 = vpop.permute.xlu1 %283  ;;  %217 = vmatprep.mubr.bf16.mxu0 %v5817_v2  ;;  %v6111_v5 = vcombine.low %v2491_v63, %v2491_v63  ;;  %v5778_v63 = vld [vmem:[%s7119_s1 + $0x38] sm:$0xff]  }
  0x83   :  { %v291_v32 = vsel %vm289_vm3, %v282_v30, %v284_v31  ;;  %1912 = vrot.lane.b32.xlu0 %v5965_v12, %s5822_s28  ;;  %1914 = vrot.lane.b32.xlu1 %v5967_v13, %s5822_s28  ;;  %v290_v35 = vsel %vm289_vm3, %v280_v26, %v282_v30 }
  0x84   :  { %5138 = vmatmul.mubr.msk.bf16.vlgmr.msra.gmra.mrb[0].mxu1 %vm62_vm2, %v5767_v22  ;;  %5147 = vmatprep.subr.msk.bf16.mxu0 %vm66_vm1, %v291_v32  ;;  %v298_v38 = vsel %vm66_vm1, %v290_v35, 0 }
  0x85   :  { %229 = vmatpush1.bf16.msra.mxu1 %v180_v29  ;;  %260 = vmatprep.mubr.bf16.mxu1 %v5817_v2 }
  0x86   :  { %v286_v33 = vpop.permute.xlu0 %285  ;;  %v288_v34 = vpop.permute.xlu1 %287 }
  0x87   :  { %v293_v36 = vsel %vm289_vm3, %v286_v33, %v288_v34  ;;  %1916 = vrot.lane.b32.xlu0 %v5976_v14, %s5822_s28  ;;  %2038 = vrot.lane.b32.xlu1 %v5954_v9, %s5823_s29  ;;  %v292_v41 = vsel %vm289_vm3, %v284_v31, %v286_v33 }
  0x88   :  { %5149 = vmatprep.subr.msk.bf16.mxu1 %vm66_vm1, %v293_v36  ;;  %v304_v42 = vsel %vm66_vm1, %v292_v41, 0 }
  0x8a   :  { %v412_v39 = vpop.permute.xlu0 %411  ;;  %v414_v40 = vpop.permute.xlu1 %413 }
  0x8b   :  { %2040 = vrot.lane.b32.xlu0 %v5956_v10, %s5823_s29  ;;  %2042 = vrot.lane.b32.xlu1 %v5965_v12, %s5823_s29  ;;  %v422_v48 = vsel %vm421_vm4, %v412_v39, %v414_v40 }
  0x8c   :  { %5141 = vmatmul.mubr.msk.bf16.vlgmr.msra.gmra.mrb[0].mxu0 %vm62_vm2, %v5768_v37  ;;  %v430_v51 = vsel %vm66_vm1, %v422_v48, 0 }
  0x8d   :  { %310 = vmatpush1.bf16.msra.mxu0 %v298_v38  ;;  %341 = vmatprep.mubr.bf16.mxu0 %v5817_v2 }
  0x8e   :  { %v416_v43 = vpop.permute.xlu0 %415  ;;  %v418_v44 = vpop.permute.xlu1 %417 }
  0x8f   :  { %v423_v45 = vsel %vm421_vm4, %v414_v40, %v416_v43  ;;  %2044 = vrot.lane.b32.xlu0 %v5967_v13, %s5823_s29  ;;  %2046 = vrot.lane.b32.xlu1 %v5976_v14, %s5823_s29  ;;  %v424_v54 = vsel %vm421_vm4, %v416_v43, %v418_v44 }
  0x90   :  { %5143 = vmatmul.mubr.msk.bf16.vlgmr.msra.gmra.mrb[0].mxu1 %vm62_vm2, %v5768_v37  ;;  %5154 = vmatprep.subr.msk.bf16.mxu0 %vm66_vm1, %v423_v45  ;;  %v436_v56 = vsel %vm66_vm1, %v424_v54, 0  ;;  %v5772_v37 = vld [vmem:[%s7119_s1 + $0x28] sm:$0xff]  }
  0x91   :  { %353 = vmatpush1.bf16.msra.mxu1 %v304_v42  ;;  %384 = vmatprep.mubr.bf16.mxu1 %v5817_v2 }
  0x92   :  { %v420_v46 = vpop.permute.xlu0 %419  ;;  %v544_v47 = vpop.permute.xlu1 %543 }
  0x93   :  { %v425_v49 = vsel %vm421_vm4, %v418_v44, %v420_v46  ;;  %2168 = vrot.lane.b32.xlu0 %v5954_v9, %s5824_s30  ;;  %2170 = vrot.lane.b32.xlu1 %v5956_v10, %s5824_s30 }
  0x94   :  { %5156 = vmatprep.subr.msk.bf16.mxu1 %vm66_vm1, %v425_v49 }
  0x96   :  { %v546_v52 = vpop.permute.xlu0 %545  ;;  %v548_v53 = vpop.permute.xlu1 %547 }
  0x97   :  { %v555_v55 = vsel %vm553_vm5, %v546_v52, %v548_v53  ;;  %2172 = vrot.lane.b32.xlu0 %v5965_v12, %s5824_s30  ;;  %2174 = vrot.lane.b32.xlu1 %v5967_v13, %s5824_s30  ;;  %v554_v62 = vsel %vm553_vm5, %v544_v47, %v546_v52 }
  0x98   :  { %5148 = vmatmul.mubr.msk.bf16.vlgmr.msra.gmra.mrb[0].mxu0 %vm62_vm2, %v5769_v50  ;;  %v562_v1 = vsel %vm66_vm1, %v554_v62, 0 }
  0x99   :  { %442 = vmatpush1.bf16.msra.mxu0 %v430_v51  ;;  %473 = vmatprep.mubr.bf16.mxu0 %v5817_v2 }
  0x9a   :  { %v550_v57 = vpop.permute.xlu0 %549  ;;  %5161 = vmatprep.subr.msk.bf16.mxu0 %vm66_vm1, %v555_v55  ;;  %v552_v58 = vpop.permute.xlu1 %551 }
  0x9b   :  { %v557_v59 = vsel %vm553_vm5, %v550_v57, %v552_v58  ;;  %2176 = vrot.lane.b32.xlu0 %v5976_v14, %s5824_s30  ;;  %2298 = vrot.lane.b32.xlu1 %v5954_v9, %s5825_s6  ;;  %v556_v6 = vsel %vm553_vm5, %v548_v53, %v550_v57 }
  0x9c   :  { %5150 = vmatmul.mubr.msk.bf16.vlgmr.msra.gmra.mrb[0].mxu1 %vm62_vm2, %v5769_v50  ;;  %v568_v15 = vsel %vm66_vm1, %v556_v6, 0  ;;  %v5773_v50 = vld [vmem:[%s7119_s1 + $0x30] sm:$0xff]  }
  0x9d   :  { %485 = vmatpush1.bf16.msra.mxu1 %v436_v56  ;;  %516 = vmatprep.mubr.bf16.mxu1 %v5817_v2 }
  0x9e   :  { %5163 = vmatprep.subr.msk.bf16.mxu1 %vm66_vm1, %v557_v59  ;;  %v676_v60 = vpop.permute.xlu0 %675  ;;  %v678_v61 = vpop.permute.xlu1 %677 }
  0x9f   :  { %2300 = vrot.lane.b32.xlu0 %v5956_v10, %s5825_s6  ;;  %2302 = vrot.lane.b32.xlu1 %v5965_v12, %s5825_s6  ;;  %v686_v22 = vsel %vm685_vm6, %v676_v60, %v678_v61 }
  0xa0   :  { %v694_v25 = vsel %vm66_vm1, %v686_v22, 0 }
  0xa2   :  { %v680_v3 = vpop.permute.xlu0 %679  ;;  %v682_v4 = vpop.permute.xlu1 %681 }
  0xa3   :  { %v687_v7 = vsel %vm685_vm6, %v678_v61, %v680_v3  ;;  %2304 = vrot.lane.b32.xlu0 %v5967_v13, %s5825_s6  ;;  %2306 = vrot.lane.b32.xlu1 %v5976_v14, %s5825_s6  ;;  %v6133_v14 = vcombine.low %v2492_v11, %v2492_v11  ;;  %v688_v28 = vsel %vm685_vm6, %v680_v3, %v682_v4 }
  0xa4   :  { %5155 = vmatmul.mubr.msk.bf16.vlgmr.msra.gmra.mrb[0].mxu0 %vm62_vm2, %v5770_v0  ;;  %v700_v30 = vsel %vm66_vm1, %v688_v28, 0 }
  0xa5   :  { %574 = vmatpush1.bf16.msra.mxu0 %v562_v1  ;;  %605 = vmatprep.mubr.bf16.mxu0 %v5817_v2 }
  0xa6   :  { %5168 = vmatprep.subr.msk.bf16.mxu0 %vm66_vm1, %v687_v7  ;;  %v684_v16 = vpop.permute.xlu0 %683  ;;  %v808_v17 = vpop.permute.xlu1 %807 }
  0xa7   :  { %v689_v18 = vsel %vm685_vm6, %v682_v4, %v684_v16  ;;  %2516 = vrot.lane.b32.xlu0 %v6111_v5, %s5818_s22  ;;  %2518 = vrot.lane.b32.xlu1 %v6119_v8, %s5818_s22 }
  0xa8   :  { %5157 = vmatmul.mubr.msk.bf16.vlgmr.msra.gmra.mrb[0].mxu1 %vm62_vm2, %v5770_v0 }
  0xa9   :  { %617 = vmatpush1.bf16.msra.mxu1 %v568_v15  ;;  %648 = vmatprep.mubr.bf16.mxu1 %v5817_v2 }
  0xaa   :  { %5170 = vmatprep.subr.msk.bf16.mxu1 %vm66_vm1, %v689_v18  ;;  %v810_v20 = vpop.permute.xlu0 %809  ;;  %v812_v21 = vpop.permute.xlu1 %811 }
  0xab   :  { %2520 = vrot.lane.b32.xlu0 %v6133_v14, %s5818_s22  ;;  %2522 = vrot.lane.b32.xlu1 %v6135_v19, %s5818_s22  ;;  %v819_v29 = vsel %vm817_vm7, %v810_v20, %v812_v21  ;;  %v818_v36 = vsel %vm817_vm7, %v808_v17, %v810_v20 }
  0xac   :  { %v826_v38 = vsel %vm66_vm1, %v818_v36, 0  ;;  %v3721_v36 = vld [vmem:[%s7118_s0 + $0x30] sm:$0xff] }
  0xae   :  { %v814_v26 = vpop.permute.xlu0 %813  ;;  %v816_v27 = vpop.permute.xlu1 %815 }
  0xaf   :  { %2524 = vrot.lane.b32.xlu0 %v6148_v23, %s5818_s22  ;;  %2744 = vrot.lane.b32.xlu1 %v6111_v5, %s5819_s25  ;;  %v821_v33 = vsel %vm817_vm7, %v814_v26, %v816_v27  ;;  %v820_v41 = vsel %vm817_vm7, %v812_v21, %v814_v26  ;;  %v5780_v21 = vld [vmem:[%s7119_s1 + $0x40] sm:$0xff]  }
  0xb0   :  { %5162 = vmatmul.mubr.msk.bf16.vlgmr.msra.gmra.mrb[0].mxu0 %vm62_vm2, %v5771_v24  ;;  %v832_v43 = vsel %vm66_vm1, %v820_v41, 0 }
  0xb1   :  { %706 = vmatpush1.bf16.msra.mxu0 %v694_v25  ;;  %737 = vmatprep.mubr.bf16.mxu0 %v5817_v2 }
  0xb2   :  { %5175 = vmatprep.subr.msk.bf16.mxu0 %vm66_vm1, %v819_v29  ;;  %v940_v31 = vpop.permute.xlu0 %939  ;;  %v942_v32 = vpop.permute.xlu1 %941  ;;  %v5781_v29 = vld [vmem:[%s7119_s1 + $0x8] sm:$0xff]  }
  0xb3   :  { %2746 = vrot.lane.b32.xlu0 %v6119_v8, %s5819_s25  ;;  %2748 = vrot.lane.b32.xlu1 %v6133_v14, %s5819_s25  ;;  %v950_v49 = vsel %vm949_vm8, %v940_v31, %v942_v32 }
  0xb4   :  { %5164 = vmatmul.mubr.msk.bf16.vlgmr.msra.gmra.mrb[0].mxu1 %vm62_vm2, %v5771_v24  ;;  %v958_v51 = vsel %vm66_vm1, %v950_v49, 0 }
  0xb5   :  { %749 = vmatpush1.bf16.msra.mxu1 %v700_v30  ;;  %780 = vmatprep.mubr.bf16.mxu1 %v5817_v2 }
  0xb6   :  { %5177 = vmatprep.subr.msk.bf16.mxu1 %vm66_vm1, %v821_v33  ;;  %v944_v34 = vpop.permute.xlu0 %943  ;;  %v946_v35 = vpop.permute.xlu1 %945 }
  0xb7   :  { %2750 = vrot.lane.b32.xlu0 %v6135_v19, %s5819_s25  ;;  %2752 = vrot.lane.b32.xlu1 %v6148_v23, %s5819_s25  ;;  %v951_v42 = vsel %vm949_vm8, %v942_v32, %v944_v34  ;;  %v952_v54 = vsel %vm949_vm8, %v944_v34, %v946_v35 }
  0xb8   :  { %v964_v56 = vsel %vm66_vm1, %v952_v54, 0 }
  0xba   :  { %v948_v39 = vpop.permute.xlu0 %947  ;;  %v1072_v40 = vpop.permute.xlu1 %1071 }
  0xbb   :  { %2874 = vrot.lane.b32.xlu0 %v6111_v5, %s5820_s26  ;;  %2876 = vrot.lane.b32.xlu1 %v6119_v8, %s5820_s26  ;;  %v953_v46 = vsel %vm949_vm8, %v946_v35, %v948_v39 }
  0xbc   :  { %5169 = vmatmul.mubr.msk.bf16.vlgmr.msra.gmra.mrb[0].mxu0 %vm62_vm2, %v5772_v37 }
  0xbd   :  { %838 = vmatpush1.bf16.msra.mxu0 %v826_v38  ;;  %869 = vmatprep.mubr.bf16.mxu0 %v5817_v2 }
  0xbe   :  { %5182 = vmatprep.subr.msk.bf16.mxu0 %vm66_vm1, %v951_v42  ;;  %v1074_v44 = vpop.permute.xlu0 %1073  ;;  %v1076_v45 = vpop.permute.xlu1 %1075 }
  0xbf   :  { %2878 = vrot.lane.b32.xlu0 %v6133_v14, %s5820_s26  ;;  %2880 = vrot.lane.b32.xlu1 %v6135_v19, %s5820_s26  ;;  %v1083_v55 = vsel %vm1081_vm9, %v1074_v44, %v1076_v45  ;;  %v1082_v62 = vsel %vm1081_vm9, %v1072_v40, %v1074_v44  ;;  %v6346_v40 = vcombine.low %v3721_v36, %v3721_v36 }
  0xc0   :  { %5171 = vmatmul.mubr.msk.bf16.vlgmr.msra.gmra.mrb[0].mxu1 %vm62_vm2, %v5772_v37  ;;  %v1090_v0 = vsel %vm66_vm1, %v1082_v62, 0  ;;  %v5782_v37 = vld [vmem:[%s7119_s1] sm:$0xff]  }
  0xc1   :  { %881 = vmatpush1.bf16.msra.mxu1 %v832_v43  ;;  %912 = vmatprep.mubr.bf16.mxu1 %v5817_v2  ;;  %v6358_v43 = vcombine.high %v3721_v36, %v3721_v36 }
  0xc2   :  { %5184 = vmatprep.subr.msk.bf16.mxu1 %vm66_vm1, %v953_v46  ;;  %v1078_v47 = vpop.permute.xlu0 %1077  ;;  %v1080_v48 = vpop.permute.xlu1 %1079 }
  0xc3   :  { %2882 = vrot.lane.b32.xlu0 %v6148_v23, %s5820_s26  ;;  %3004 = vrot.lane.b32.xlu1 %v6111_v5, %s5821_s27  ;;  %v1085_v59 = vsel %vm1081_vm9, %v1078_v47, %v1080_v48  ;;  %v1084_v4 = vsel %vm1081_vm9, %v1076_v45, %v1078_v47  ;;  %v3722_v45 = vld [vmem:[%s7118_s0 + $0x38] sm:$0xff] }
  0xc4   :  { %v1096_v7 = vsel %vm66_vm1, %v1084_v4, 0  ;;  %v6377_v48 = vcombine.low %v3722_v45, %v3722_v45  ;;  %v6379_v49 = vcombine.high %v3722_v45, %v3722_v45 }
  0xc6   :  { %v1291_v52 = vpop.permute.xlu0 %1290  ;;  %v1293_v53 = vpop.permute.xlu1 %1292 }
  0xc7   :  { %3006 = vrot.lane.b32.xlu0 %v6119_v8, %s5821_s27  ;;  %3008 = vrot.lane.b32.xlu1 %v6133_v14, %s5821_s27  ;;  %v1300_v20 = vsel %vm57_vm0, %v1291_v52, %v1293_v53 }
  0xc8   :  { %5176 = vmatmul.mubr.msk.bf16.vlgmr.msra.gmra.mrb[0].mxu0 %vm62_vm2, %v5773_v50  ;;  %v1308_v22 = vsel %vm66_vm1, %v1300_v20, 0  ;;  %v5785_v20 = vld [vmem:[%s7119_s1 + $0x20] sm:$0xff]  }
  0xc9   :  { %970 = vmatpush1.bf16.msra.mxu0 %v958_v51  ;;  %1001 = vmatprep.mubr.bf16.mxu0 %v5817_v2 }
  0xca   :  { %5189 = vmatprep.subr.msk.bf16.mxu0 %vm66_vm1, %v1083_v55  ;;  %v1295_v57 = vpop.permute.xlu0 %1294  ;;  %v1297_v58 = vpop.permute.xlu1 %1296 }
  0xcb   :  { %3010 = vrot.lane.b32.xlu0 %v6135_v19, %s5821_s27  ;;  %3012 = vrot.lane.b32.xlu1 %v6148_v23, %s5821_s27  ;;  %v1301_v6 = vsel %vm57_vm0, %v1293_v53, %v1295_v57  ;;  %v1302_v26 = vsel %vm57_vm0, %v1295_v57, %v1297_v58  ;;  %v5783_v53 = vld [vmem:[%s7119_s1 + $0x10] sm:$0xff]  }
  0xcc   :  { %5178 = vmatmul.mubr.msk.bf16.vlgmr.msra.gmra.mrb[0].mxu1 %vm62_vm2, %v5773_v50  ;;  %v1314_v27 = vsel %vm66_vm1, %v1302_v26, 0 }
  0xcd   :  { %1013 = vmatpush1.bf16.msra.mxu1 %v964_v56  ;;  %1044 = vmatprep.mubr.bf16.mxu1 %v5817_v2 }
  0xce   :  { %5191 = vmatprep.subr.msk.bf16.mxu1 %vm66_vm1, %v1085_v59  ;;  %v1299_v60 = vpop.permute.xlu0 %1298  ;;  %v6226_v61 = vpop.permute.xlu1 %1518 }
  0xcf   :  { %3134 = vrot.lane.b32.xlu0 %v6111_v5, %s5822_s28  ;;  %3136 = vrot.lane.b32.xlu1 %v6119_v8, %s5822_s28  ;;  %v1303_v16 = vsel %vm57_vm0, %v1297_v58, %v1299_v60 }
  0xd2   :  { %v6237_v1 = vpop.permute.xlu0 %1520  ;;  %v6239_v3 = vpop.permute.xlu1 %1522 }
  0xd3   :  { %3138 = vrot.lane.b32.xlu0 %v6133_v14, %s5822_s28  ;;  %3140 = vrot.lane.b32.xlu1 %v6135_v19, %s5822_s28  ;;  %v1529_v32 = vsel %vm289_vm3, %v6237_v1, %v6239_v3 }
  0xd4   :  { %5183 = vmatmul.mubr.msk.bf16.vlgmr.msra.gmra.mrb[0].mxu0 %vm62_vm2, %v5778_v63 }
  0xd5   :  { %1102 = vmatpush1.bf16.msra.mxu0 %v1090_v0  ;;  %1133 = vmatprep.mubr.bf16.mxu0 %v5817_v2  ;;  %v5784_v0 = vld [vmem:[%s7119_s1 + $0x18] sm:$0xff]  }
  0xd6   :  { %5201 = vmatprep.subr.msk.bf16.mxu0 %vm66_vm1, %v1301_v6  ;;  %v6251_v11 = vpop.permute.xlu0 %1524  ;;  %v1527_v15 = vpop.permute.xlu1 %1526 }
  0xd7   :  { %3142 = vrot.lane.b32.xlu0 %v6148_v23, %s5822_s28  ;;  %3264 = vrot.lane.b32.xlu1 %v6111_v5, %s5823_s29  ;;  %v1531_v34 = vsel %vm289_vm3, %v6251_v11, %v1527_v15  ;;  %v1530_v41 = vsel %vm289_vm3, %v6239_v3, %v6251_v11 }
  0xd8   :  { %5185 = vmatmul.mubr.msk.bf16.vlgmr.msra.gmra.mrb[0].mxu1 %vm62_vm2, %v5778_v63  ;;  %v1542_v47 = vsel %vm66_vm1, %v1530_v41, 0 }
  0xd9   :  { %1145 = vmatpush1.bf16.msra.mxu1 %v1096_v7  ;;  %1176 = vmatprep.mubr.bf16.mxu1 %v5817_v2 }
  0xda   :  { %5203 = vmatprep.subr.msk.bf16.mxu1 %vm66_vm1, %v1303_v16  ;;  %v6261_v17 = vpop.permute.xlu0 %1648  ;;  %v6263_v18 = vpop.permute.xlu1 %1650 }
  0xdb   :  { %3266 = vrot.lane.b32.xlu0 %v6119_v8, %s5823_s29  ;;  %3268 = vrot.lane.b32.xlu1 %v6133_v14, %s5823_s29  ;;  %v1658_v52 = vsel %vm421_vm4, %v6261_v17, %v6263_v18 }
  0xdc   :  { %v1666_v54 = vsel %vm66_vm1, %v1658_v52, 0 }
  0xde   :  { %v6274_v24 = vpop.permute.xlu0 %1652  ;;  %v6276_v25 = vpop.permute.xlu1 %1654 }
  0xdf   :  { %3270 = vrot.lane.b32.xlu0 %v6135_v19, %s5823_s29  ;;  %3272 = vrot.lane.b32.xlu1 %v6148_v23, %s5823_s29  ;;  %v1659_v42 = vsel %vm421_vm4, %v6263_v18, %v6274_v24  ;;  %v1660_v56 = vsel %vm421_vm4, %v6274_v24, %v6276_v25 }
  0xe0   :  { %5190 = vmatmul.mubr.msk.bf16.vlgmr.msra.gmra.mrb[0].mxu0 %vm62_vm2, %v5780_v21  ;;  %v1672_v59 = vsel %vm66_vm1, %v1660_v56, 0 }
  0xe1   :  { %1320 = vmatpush1.bf16.msra.mxu0 %v1308_v22  ;;  %1351 = vmatprep.mubr.bf16.mxu0 %v5817_v2 }
  0xe2   :  { %5206 = vmatprep.subr.msk.bf16.mxu0 %vm66_vm1, %v5956_v10  ;;  %v1657_v28 = vpop.permute.xlu0 %1656  ;;  %v6296_v30 = vpop.permute.xlu1 %1778  ;;  %v1414_v10 = vsel %vm66_vm1, %v5954_v9, 0  ;;  %v1420_v9 = vsel %vm66_vm1, %v5965_v12, 0  ;;  %v1528_v12 = vsel %vm289_vm3, %v6226_v61, %v6237_v1 }
  0xe3   :  { %3394 = vrot.lane.b32.xlu0 %v6111_v5, %s5824_s30  ;;  %3396 = vrot.lane.b32.xlu1 %v6119_v8, %s5824_s30  ;;  %v1536_v39 = vsel %vm66_vm1, %v1528_v12, 0 }
  0xe4   :  { %5192 = vmatmul.mubr.msk.bf16.vlgmr.msra.gmra.mrb[0].mxu1 %vm62_vm2, %v5780_v21 }
  0xe5   :  { %1363 = vmatpush1.bf16.msra.mxu1 %v1314_v27  ;;  %1394 = vmatprep.mubr.bf16.mxu1 %v5817_v2 }
  0xe6   :  { %5208 = vmatprep.subr.msk.bf16.mxu1 %vm66_vm1, %v5967_v13  ;;  %v6303_v31 = vpop.permute.xlu0 %1780  ;;  %v6317_v13 = vpop.permute.xlu1 %1782 }
  0xe7   :  { %3398 = vrot.lane.b32.xlu0 %v6133_v14, %s5824_s30  ;;  %3400 = vrot.lane.b32.xlu1 %v6135_v19, %s5824_s30  ;;  %v1789_v57 = vsel %vm553_vm5, %v6303_v31, %v6317_v13  ;;  %v1788_v63 = vsel %vm553_vm5, %v6296_v30, %v6303_v31  ;;  %v5786_v31 = vld [vmem:[%s7119_s1 + $0x28] sm:$0xff]  }
  0xe8   :  { %5202 = vmatmul.mubr.msk.bf16.vlgmr.msra.gmra.mrb[4].mxu0 %vm62_vm2, %v5781_v29  ;;  %v1796_v1 = vsel %vm66_vm1, %v1788_v63, 0 }
  0xe9   :  { %1426 = vmatpush1.bf16.msra.mxu0 %v1414_v10  ;;  %1457 = vmatprep.mubr.bf16.mxu0 %v5817_v2 }
  0xea   :  { %5213 = vmatprep.subr.msk.bf16.mxu0 %vm66_vm1, %v1529_v32  ;;  %v6319_v33 = vpop.permute.xlu0 %1784  ;;  %v1787_v38 = vpop.permute.xlu1 %1786 }
  0xeb   :  { %3402 = vrot.lane.b32.xlu0 %v6148_v23, %s5824_s30  ;;  %3524 = vrot.lane.b32.xlu1 %v6111_v5, %s5825_s6  ;;  %v1791_v60 = vsel %vm553_vm5, %v6319_v33, %v1787_v38  ;;  %v1790_v4 = vsel %vm553_vm5, %v6317_v13, %v6319_v33 }
  0xec   :  { %5204 = vmatmul.mubr.msk.bf16.vlgmr.msra.gmra.mrb[4].mxu1 %vm62_vm2, %v5781_v29  ;;  %v1802_v11 = vsel %vm66_vm1, %v1790_v4, 0 }
  0xed   :  { %1469 = vmatpush1.bf16.msra.mxu1 %v1420_v9  ;;  %1500 = vmatprep.mubr.bf16.mxu1 %v5817_v2 }
  0xee   :  { %5215 = vmatprep.subr.msk.bf16.mxu1 %vm66_vm1, %v1531_v34  ;;  %v6333_v35 = vpop.permute.xlu0 %1908 }
  0xef   :  { %3526 = vrot.lane.b32.xlu0 %v6119_v8, %s5825_s6  ;;  %3528 = vrot.lane.b32.xlu1 %v6133_v14, %s5825_s6  ;;  %v6361_v44 = vpop.permute.xlu1 %1910 }
  0xf0   :  { %v1918_v18 = vsel %vm685_vm6, %v6333_v35, %v6361_v44 }
  0xf1   :  { %v1926_v21 = vsel %vm66_vm1, %v1918_v18, 0  ;;  %v2646_v18 = vsel %vm66_vm1, %v6133_v14, 0 }
  0xf3   :  { %3530 = vrot.lane.b32.xlu0 %v6135_v19, %s5825_s6  ;;  %3532 = vrot.lane.b32.xlu1 %v6148_v23, %s5825_s6  ;;  %v1661_v23 = vsel %vm421_vm4, %v6276_v25, %v1657_v28 }
  0xf4   :  { %5207 = vmatmul.mubr.msk.bf16.vlgmr.msra.gmra.mrb[4].mxu0 %vm62_vm2, %v5782_v37 }
  0xf5   :  { %1548 = vmatpush1.bf16.msra.mxu0 %v1536_v39  ;;  %1579 = vmatprep.mubr.bf16.mxu0 %v5817_v2  ;;  %v6367_v46 = vpop.permute.xlu0 %1912  ;;  %v1915_v50 = vpop.permute.xlu1 %1914  ;;  %v5787_v39 = vld [vmem:[%s7119_s1 + $0x30] sm:$0xff]  }
  0xf6   :  { %5220 = vmatprep.subr.msk.bf16.mxu0 %vm66_vm1, %v1659_v42  ;;  %v1919_v6 = vsel %vm685_vm6, %v6361_v44, %v6367_v46  ;;  %v1920_v25 = vsel %vm685_vm6, %v6367_v46, %v1915_v50 }
  0xf7   :  { %3740 = vrot.lane.b32.xlu0 %v6346_v40, %s5818_s22  ;;  %3742 = vrot.lane.b32.xlu1 %v6358_v43, %s5818_s22  ;;  %v1932_v27 = vsel %vm66_vm1, %v1920_v25, 0 }
  0xf8   :  { %5209 = vmatmul.mubr.msk.bf16.vlgmr.msra.gmra.mrb[4].mxu1 %vm62_vm2, %v5782_v37 }
  0xf9   :  { %1591 = vmatpush1.bf16.msra.mxu1 %v1542_v47  ;;  %1622 = vmatprep.mubr.bf16.mxu1 %v5817_v2  ;;  %v1917_v51 = vpop.permute.xlu0 %1916  ;;  %v6408_v58 = vpop.permute.xlu1 %2038 }
  0xfa   :  { %5222 = vmatprep.subr.msk.bf16.mxu1 %vm66_vm1, %v1661_v23  ;;  %v1921_v15 = vsel %vm685_vm6, %v1915_v50, %v1917_v51 }
  0xfb   :  { %3744 = vrot.lane.b32.xlu0 %v6377_v48, %s5818_s22  ;;  %3746 = vrot.lane.b32.xlu1 %v6379_v49, %s5818_s22 }
  0xfd   :  { %v6395_v55 = vpop.permute.xlu0 %2040  ;;  %v2043_v62 = vpop.permute.xlu1 %2042 }
  0xfe   :  { %v2049_v26 = vsel %vm817_vm7, %v6395_v55, %v2043_v62  ;;  %v2048_v10 = vsel %vm817_vm7, %v6408_v58, %v6395_v55 }
  0xff   :  { %3963 = vrot.lane.b32.xlu0 %v6346_v40, %s5819_s25  ;;  %3965 = vrot.lane.b32.xlu1 %v6358_v43, %s5819_s25  ;;  %v2056_v32 = vsel %vm66_vm1, %v2048_v10, 0 }
 0x100   :  { %5214 = vmatmul.mubr.msk.bf16.vlgmr.msra.gmra.mrb[4].mxu0 %vm62_vm2, %v5783_v53 }
 0x101   :  { %1678 = vmatpush1.bf16.msra.mxu0 %v1666_v54  ;;  %1709 = vmatprep.mubr.bf16.mxu0 %v5817_v2  ;;  %v6420_v61 = vpop.permute.xlu0 %2044  ;;  %v2047_v7 = vpop.permute.xlu1 %2046 }
 0x102   :  { %5227 = vmatprep.subr.msk.bf16.mxu0 %vm66_vm1, %v1789_v57  ;;  %v2051_v28 = vsel %vm817_vm7, %v6420_v61, %v2047_v7  ;;  %v2050_v33 = vsel %vm817_vm7, %v2043_v62, %v6420_v61  ;;  %v5793_v62 = vld [vmem:[%s7119_s1 + $0x40] sm:$0xff]  }
 0x103   :  { %3967 = vrot.lane.b32.xlu0 %v6377_v48, %s5819_s25  ;;  %3969 = vrot.lane.b32.xlu1 %v6379_v49, %s5819_s25  ;;  %v2062_v12 = vsel %vm66_vm1, %v2050_v33, 0 }
 0x104   :  { %5216 = vmatmul.mubr.msk.bf16.vlgmr.msra.gmra.mrb[4].mxu1 %vm62_vm2, %v5783_v53  ;;  %v5791_v53 = vld [vmem:[%s7119_s1 + $0x38] sm:$0xff]  }
 0x105   :  { %1721 = vmatpush1.bf16.msra.mxu1 %v1672_v59  ;;  %1752 = vmatprep.mubr.bf16.mxu1 %v5817_v2  ;;  %v6435_v3 = vpop.permute.xlu0 %2168  ;;  %v2171_v16 = vpop.permute.xlu1 %2170 }
 0x106   :  { %5229 = vmatprep.subr.msk.bf16.mxu1 %vm66_vm1, %v1791_v60  ;;  %v2178_v38 = vsel %vm949_vm8, %v6435_v3, %v2171_v16 }
 0x107   :  { %4083 = vrot.lane.b32.xlu0 %v6346_v40, %s5820_s26  ;;  %4085 = vrot.lane.b32.xlu1 %v6358_v43, %s5820_s26  ;;  %v2186_v41 = vsel %vm66_vm1, %v2178_v38, 0 }
 0x109   :  { %v2173_v17 = vpop.permute.xlu0 %2172  ;;  %v2175_v22 = vpop.permute.xlu1 %2174 }
 0x10a   :  { %v2179_v34 = vsel %vm949_vm8, %v2171_v16, %v2173_v17  ;;  %v2180_v45 = vsel %vm949_vm8, %v2173_v17, %v2175_v22 }
 0x10b   :  { %4087 = vrot.lane.b32.xlu0 %v6377_v48, %s5820_s26  ;;  %4089 = vrot.lane.b32.xlu1 %v6379_v49, %s5820_s26  ;;  %v2192_v47 = vsel %vm66_vm1, %v2180_v45, 0 }
 0x10c   :  { %5221 = vmatmul.mubr.msk.bf16.vlgmr.msra.gmra.mrb[4].mxu0 %vm62_vm2, %v5784_v0 }
 0x10d   :  { %1808 = vmatpush1.bf16.msra.mxu0 %v1796_v1  ;;  %1839 = vmatprep.mubr.bf16.mxu0 %v5817_v2  ;;  %v2177_v24 = vpop.permute.xlu0 %2176  ;;  %v2299_v29 = vpop.permute.xlu1 %2298 }
 0x10e   :  { %5234 = vmatprep.subr.msk.bf16.mxu0 %vm66_vm1, %v1919_v6  ;;  %v2181_v35 = vsel %vm949_vm8, %v2175_v22, %v2177_v24  ;;  %v5795_v22 = vld [vmem:[%s7119_s1] sm:$0xff]  }
 0x10f   :  { %4203 = vrot.lane.b32.xlu0 %v6346_v40, %s5821_s27  ;;  %4205 = vrot.lane.b32.xlu1 %v6358_v43, %s5821_s27 }
 0x110   :  { %5223 = vmatmul.mubr.msk.bf16.vlgmr.msra.gmra.mrb[4].mxu1 %vm62_vm2, %v5784_v0 }
 0x111   :  { %1851 = vmatpush1.bf16.msra.mxu1 %v1802_v11  ;;  %1882 = vmatprep.mubr.bf16.mxu1 %v5817_v2  ;;  %v2301_v30 = vpop.permute.xlu0 %2300  ;;  %v2303_v9 = vpop.permute.xlu1 %2302  ;;  %v5794_v11 = vld [vmem:[%s7119_s1 + $0x8] sm:$0xff]  }
 0x112   :  { %5236 = vmatprep.subr.msk.bf16.mxu1 %vm66_vm1, %v1921_v15  ;;  %v2309_v46 = vsel %vm1081_vm9, %v2301_v30, %v2303_v9  ;;  %v2308_v52 = vsel %vm1081_vm9, %v2299_v29, %v2301_v30  ;;  %v2640_v15 = vsel %vm66_vm1, %v6111_v5, 0 }
 0x113   :  { %4207 = vrot.lane.b32.xlu0 %v6377_v48, %s5821_s27  ;;  %4209 = vrot.lane.b32.xlu1 %v6379_v49, %s5821_s27  ;;  %v2316_v55 = vsel %vm66_vm1, %v2308_v52, 0 }
 0x115   :  { %v2305_v13 = vpop.permute.xlu0 %2304  ;;  %v2307_v36 = vpop.permute.xlu1 %2306 }
 0x116   :  { %v2311_v23 = vsel %vm1081_vm9, %v2305_v13, %v2307_v36 }
 0x117   :  { %4323 = vrot.lane.b32.xlu0 %v6346_v40, %s5822_s28  ;;  %4325 = vrot.lane.b32.xlu1 %v6358_v43, %s5822_s28 }
 0x118   :  { %5228 = vmatmul.mubr.msk.bf16.vlgmr.msra.gmra.mrb[4].mxu0 %vm62_vm2, %v5785_v20 }
 0x119   :  { %1938 = vmatpush1.bf16.msra.mxu0 %v1926_v21  ;;  %1969 = vmatprep.mubr.bf16.mxu0 %v5817_v2  ;;  %v2517_v37 = vpop.permute.xlu0 %2516  ;;  %v2519_v42 = vpop.permute.xlu1 %2518 }
 0x11a   :  { %5241 = vmatprep.subr.msk.bf16.mxu0 %vm66_vm1, %v2049_v26  ;;  %v2526_v61 = vsel %vm57_vm0, %v2517_v37, %v2519_v42 }
 0x11b   :  { %4327 = vrot.lane.b32.xlu0 %v6377_v48, %s5822_s28  ;;  %4329 = vrot.lane.b32.xlu1 %v6379_v49, %s5822_s28  ;;  %v2534_v1 = vsel %vm66_vm1, %v2526_v61, 0 }
 0x11c   :  { %5230 = vmatmul.mubr.msk.bf16.vlgmr.msra.gmra.mrb[4].mxu1 %vm62_vm2, %v5785_v20 }
 0x11d   :  { %1981 = vmatpush1.bf16.msra.mxu1 %v1932_v27  ;;  %2012 = vmatprep.mubr.bf16.mxu1 %v5817_v2  ;;  %v2521_v44 = vpop.permute.xlu0 %2520  ;;  %v2523_v50 = vpop.permute.xlu1 %2522 }
 0x11e   :  { %5243 = vmatprep.subr.msk.bf16.mxu1 %vm66_vm1, %v2051_v28  ;;  %v2527_v56 = vsel %vm57_vm0, %v2519_v42, %v2521_v44  ;;  %v2528_v3 = vsel %vm57_vm0, %v2521_v44, %v2523_v50 }
 0x11f   :  { %4443 = vrot.lane.b32.xlu0 %v6346_v40, %s5823_s29  ;;  %4445 = vrot.lane.b32.xlu1 %v6358_v43, %s5823_s29  ;;  %v2540_v6 = vsel %vm66_vm1, %v2528_v3, 0 }
 0x121   :  { %v2525_v51 = vpop.permute.xlu0 %2524  ;;  %v2745_v54 = vpop.permute.xlu1 %2744 }
 0x122   :  { %v2529_v60 = vsel %vm57_vm0, %v2523_v50, %v2525_v51 }
 0x123   :  { %4447 = vrot.lane.b32.xlu0 %v6377_v48, %s5823_s29  ;;  %4449 = vrot.lane.b32.xlu1 %v6379_v49, %s5823_s29 }
 0x124   :  { %5235 = vmatmul.mubr.msk.bf16.vlgmr.msra.gmra.mrb[4].mxu0 %vm62_vm2, %v5786_v31 }
 0x125   :  { %2068 = vmatpush1.bf16.msra.mxu0 %v2056_v32  ;;  %2099 = vmatprep.mubr.bf16.mxu0 %v5817_v2  ;;  %v2749_v58 = vpop.permute.xlu1 %2748  ;;  %v5796_v32 = vld [vmem:[%s7119_s1 + $0x10] sm:$0xff]  }
 0x126   :  { %5248 = vmatprep.subr.msk.bf16.mxu0 %vm66_vm1, %v2179_v34 }
 0x127   :  { %4563 = vrot.lane.b32.xlu0 %v6346_v40, %s5824_s30  ;;  %4565 = vrot.lane.b32.xlu1 %v6358_v43, %s5824_s30 }
 0x128   :  { %5237 = vmatmul.mubr.msk.bf16.vlgmr.msra.gmra.mrb[4].mxu1 %vm62_vm2, %v5786_v31 }
 0x129   :  { %2111 = vmatpush1.bf16.msra.mxu1 %v2062_v12  ;;  %2142 = vmatprep.mubr.bf16.mxu1 %v5817_v2  ;;  %v2753_v63 = vpop.permute.xlu1 %2752 }
 0x12a   :  { %5250 = vmatprep.subr.msk.bf16.mxu1 %vm66_vm1, %v2181_v35 }
 0x12b   :  { %4567 = vrot.lane.b32.xlu0 %v6377_v48, %s5824_s30  ;;  %4569 = vrot.lane.b32.xlu1 %v6379_v49, %s5824_s30 }
 0x12d   :  { %v2877_v4 = vpop.permute.xlu1 %2876 }
 0x12f   :  { %4683 = vrot.lane.b32.xlu0 %v6346_v40, %s5825_s6  ;;  %4685 = vrot.lane.b32.xlu1 %v6358_v43, %s5825_s6 }
 0x130   :  { %5242 = vmatmul.mubr.msk.bf16.vlgmr.msra.gmra.mrb[4].mxu0 %vm62_vm2, %v5787_v39 }
 0x131   :  { %2198 = vmatpush1.bf16.msra.mxu0 %v2186_v41  ;;  %2229 = vmatprep.mubr.bf16.mxu0 %v5817_v2  ;;  %v2881_v16 = vpop.permute.xlu1 %2880  ;;  %v5797_v41 = vld [vmem:[%s7119_s1 + $0x18] sm:$0xff]  }
 0x132   :  { %5255 = vmatprep.subr.msk.bf16.mxu0 %vm66_vm1, %v2309_v46 }
 0x133   :  { %4687 = vrot.lane.b32.xlu0 %v6377_v48, %s5825_s6  ;;  %4689 = vrot.lane.b32.xlu1 %v6379_v49, %s5825_s6  ;;  %v2747_v48 = vpop.permute.xlu0 %2746  ;;  %v2310_v49 = vsel %vm1081_vm9, %v2303_v9, %v2305_v13 }
 0x134   :  { %5244 = vmatmul.mubr.msk.bf16.vlgmr.msra.gmra.mrb[4].mxu1 %vm62_vm2, %v5787_v39  ;;  %v2322_v57 = vsel %vm66_vm1, %v2310_v49, 0  ;;  %v2755_v17 = vsel %vm289_vm3, %v2747_v48, %v2749_v58  ;;  %v2754_v21 = vsel %vm289_vm3, %v2745_v54, %v2747_v48  ;;  %v5798_v54 = vld [vmem:[%s7119_s1 + $0x20] sm:$0xff]  }
 0x135   :  { %2241 = vmatpush1.bf16.msra.mxu1 %v2192_v47  ;;  %2272 = vmatprep.mubr.bf16.mxu1 %v5817_v2  ;;  %v3005_v5 = vpop.permute.xlu1 %3004  ;;  %v2762_v14 = vsel %vm66_vm1, %v2754_v21, 0 }
 0x136   :  { %5257 = vmatprep.subr.msk.bf16.mxu1 %vm66_vm1, %v2311_v23 }
 0x137   :  { %v2751_v59 = vpop.permute.xlu0 %2750 }
 0x138   :  { %v2757_v20 = vsel %vm289_vm3, %v2751_v59, %v2753_v63  ;;  %v2756_v26 = vsel %vm289_vm3, %v2749_v58, %v2751_v59 }
 0x139   :  { %v3009_v24 = vpop.permute.xlu1 %3008  ;;  %v2768_v28 = vsel %vm66_vm1, %v2756_v26, 0 }
 0x13b   :  { %v2875_v0 = vpop.permute.xlu0 %2874 }
 0x13c   :  { %5249 = vmatmul.mubr.msk.bf16.vlgmr.msra.gmra.mrb[4].mxu0 %vm62_vm2, %v5791_v53  ;;  %v2884_v31 = vsel %vm421_vm4, %v2875_v0, %v2877_v4  ;;  %v5799_v0 = vld [vmem:[%s7119_s1 + $0x28] sm:$0xff]  }
 0x13d   :  { %2328 = vmatpush1.bf16.msra.mxu0 %v2316_v55  ;;  %2359 = vmatprep.mubr.bf16.mxu0 %v5817_v2  ;;  %v3013_v30 = vpop.permute.xlu1 %3012  ;;  %v2892_v13 = vsel %vm66_vm1, %v2884_v31, 0 }
 0x13e   :  { %5267 = vmatprep.subr.msk.bf16.mxu0 %vm66_vm1, %v2527_v56 }
 0x13f   :  { %v2879_v7 = vpop.permute.xlu0 %2878 }
 0x140   :  { %5251 = vmatmul.mubr.msk.bf16.vlgmr.msra.gmra.mrb[4].mxu1 %vm62_vm2, %v5791_v53  ;;  %v2885_v27 = vsel %vm421_vm4, %v2877_v4, %v2879_v7  ;;  %v2886_v34 = vsel %vm421_vm4, %v2879_v7, %v2881_v16 }
 0x141   :  { %2371 = vmatpush1.bf16.msra.mxu1 %v2322_v57  ;;  %2402 = vmatprep.mubr.bf16.mxu1 %v5817_v2  ;;  %v3137_v9 = vpop.permute.xlu1 %3136  ;;  %v2898_v35 = vsel %vm66_vm1, %v2886_v34, 0 }
 0x142   :  { %5269 = vmatprep.subr.msk.bf16.mxu1 %vm66_vm1, %v2529_v60 }
 0x145   :  { %v3141_v36 = vpop.permute.xlu1 %3140 }
 0x148   :  { %5256 = vmatmul.mubr.msk.bf16.vlgmr.msra.gmra.mrb[4].mxu0 %vm62_vm2, %v5793_v62 }
 0x149   :  { %2546 = vmatpush1.bf16.msra.mxu0 %v2534_v1  ;;  %2577 = vmatprep.mubr.bf16.mxu0 %v5817_v2  ;;  %v3265_v42 = vpop.permute.xlu1 %3264 }
 0x14a   :  { %5272 = vmatprep.subr.msk.bf16.mxu0 %vm66_vm1, %v6119_v8  ;;  %v2883_v8 = vpop.permute.xlu0 %2882 }
 0x14b   :  { %v2887_v29 = vsel %vm421_vm4, %v2881_v16, %v2883_v8 }
 0x14c   :  { %5258 = vmatmul.mubr.msk.bf16.vlgmr.msra.gmra.mrb[4].mxu1 %vm62_vm2, %v5793_v62 }
 0x14d   :  { %2589 = vmatpush1.bf16.msra.mxu1 %v2540_v6  ;;  %2620 = vmatprep.mubr.bf16.mxu1 %v5817_v2  ;;  %v3269_v50 = vpop.permute.xlu1 %3268 }
 0x14e   :  { %5274 = vmatprep.subr.msk.bf16.mxu1 %vm66_vm1, %v6135_v19  ;;  %v3007_v19 = vpop.permute.xlu0 %3006 }
 0x14f   :  { %v3015_v12 = vsel %vm553_vm5, %v3007_v19, %v3009_v24  ;;  %v3014_v39 = vsel %vm553_vm5, %v3005_v5, %v3007_v19 }
 0x150   :  { %5268 = vmatmul.mubr.msk.bf16.vlgmr.msra.gmra.mrb[8].mxu0 %vm62_vm2, %v5794_v11  ;;  %v3022_v45 = vsel %vm66_vm1, %v3014_v39, 0 }
 0x151   :  { %2652 = vmatpush1.bf16.msra.mxu0 %v2640_v15  ;;  %2683 = vmatprep.mubr.bf16.mxu0 %v5817_v2  ;;  %v3273_v48 = vpop.permute.xlu1 %3272 }
 0x152   :  { %5279 = vmatprep.subr.msk.bf16.mxu0 %vm66_vm1, %v2755_v17  ;;  %v3011_v25 = vpop.permute.xlu0 %3010 }
 0x153   :  { %v3017_v37 = vsel %vm553_vm5, %v3011_v25, %v3013_v30  ;;  %v3016_v46 = vsel %vm553_vm5, %v3009_v24, %v3011_v25 }
 0x154   :  { %5270 = vmatmul.mubr.msk.bf16.vlgmr.msra.gmra.mrb[8].mxu1 %vm62_vm2, %v5794_v11  ;;  %v3028_v23 = vsel %vm66_vm1, %v3016_v46, 0 }
 0x155   :  { %2695 = vmatpush1.bf16.msra.mxu1 %v2646_v18  ;;  %2726 = vmatprep.mubr.bf16.mxu1 %v5817_v2  ;;  %v3397_v58 = vpop.permute.xlu1 %3396  ;;  %v5800_v18 = vld [vmem:[%s7119_s1 + $0x30] sm:$0xff]  }
 0x156   :  { %5281 = vmatprep.subr.msk.bf16.mxu1 %vm66_vm1, %v2757_v20  ;;  %v3135_v10 = vpop.permute.xlu0 %3134 }
 0x157   :  { %v3144_v53 = vsel %vm685_vm6, %v3135_v10, %v3137_v9 }
 0x158   :  { %v3152_v49 = vsel %vm66_vm1, %v3144_v53, 0 }
 0x159   :  { %v3401_v62 = vpop.permute.xlu1 %3400 }
 0x15a   :  { %v3139_v33 = vpop.permute.xlu0 %3138 }
 0x15b   :  { %v3145_v47 = vsel %vm685_vm6, %v3137_v9, %v3139_v33  ;;  %v3146_v56 = vsel %vm685_vm6, %v3139_v33, %v3141_v36  ;;  %v5826_v33 = vmov 0.0  }
 0x15c   :  { %5273 = vmatmul.mubr.msk.bf16.vlgmr.msra.gmra.mrb[8].mxu0 %vm62_vm2, %v5795_v22  ;;  %v3158_v59 = vsel %vm66_vm1, %v3146_v56, 0 }
 0x15d   :  { %2774 = vmatpush1.bf16.msra.mxu0 %v2762_v14  ;;  %2805 = vmatprep.mubr.bf16.mxu0 %v5817_v2  ;;  %v3525_v7 = vpop.permute.xlu1 %3524 }
 0x15e   :  { %5286 = vmatprep.subr.msk.bf16.mxu0 %vm66_vm1, %v2885_v27  ;;  %v3143_v38 = vpop.permute.xlu0 %3142  ;;  %v5801_v27 = vld [vmem:[%s7119_s1 + $0x38] sm:$0xff]  }
 0x15f   :  { %v3147_v52 = vsel %vm685_vm6, %v3141_v36, %v3143_v38 }
 0x160   :  { %5275 = vmatmul.mubr.msk.bf16.vlgmr.msra.gmra.mrb[8].mxu1 %vm62_vm2, %v5795_v22 }
 0x161   :  { %2817 = vmatpush1.bf16.msra.mxu1 %v2768_v28  ;;  %2848 = vmatprep.mubr.bf16.mxu1 %v5817_v2  ;;  %v3529_v17 = vpop.permute.xlu1 %3528 }
 0x162   :  { %5288 = vmatprep.subr.msk.bf16.mxu1 %vm66_vm1, %v2887_v29  ;;  %v3267_v44 = vpop.permute.xlu0 %3266 }
 0x163   :  { %v3275_v57 = vsel %vm817_vm7, %v3267_v44, %v3269_v50  ;;  %v3274_v63 = vsel %vm817_vm7, %v3265_v42, %v3267_v44 }
 0x164   :  { %v3282_v3 = vsel %vm66_vm1, %v3274_v63, 0 }
 0x165   :  { %v3533_v22 = vpop.permute.xlu1 %3532 }
 0x166   :  { %v3271_v51 = vpop.permute.xlu0 %3270 }
 0x167   :  { %v3277_v61 = vsel %vm817_vm7, %v3271_v51, %v3273_v48  ;;  %v3276_v4 = vsel %vm817_vm7, %v3269_v50, %v3271_v51  ;;  %v5803_v48 = vld [vmem:[%s7119_s1 + $0x8] sm:$0xff]  }
 0x168   :  { %5280 = vmatmul.mubr.msk.bf16.vlgmr.msra.gmra.mrb[8].mxu0 %vm62_vm2, %v5796_v32  ;;  %v3288_v11 = vsel %vm66_vm1, %v3276_v4, 0 }
 0x169   :  { %2904 = vmatpush1.bf16.msra.mxu0 %v2892_v13  ;;  %2935 = vmatprep.mubr.bf16.mxu0 %v5817_v2  ;;  %v3743_v28 = vpop.permute.xlu1 %3742 }
 0x16a   :  { %5293 = vmatprep.subr.msk.bf16.mxu0 %vm66_vm1, %v3015_v12  ;;  %v3395_v55 = vpop.permute.xlu0 %3394 }
 0x16b   :  { %v3404_v8 = vsel %vm949_vm8, %v3395_v55, %v3397_v58 }
 0x16c   :  { %5282 = vmatmul.mubr.msk.bf16.vlgmr.msra.gmra.mrb[8].mxu1 %vm62_vm2, %v5796_v32  ;;  %v3412_v5 = vsel %vm66_vm1, %v3404_v8, 0  ;;  %v1205_v32 = vlaneseq }
 0x16d   :  { %2947 = vmatpush1.bf16.msra.mxu1 %v2898_v35  ;;  %2978 = vmatprep.mubr.bf16.mxu1 %v5817_v2  ;;  %v3747_v12 = vpop.permute.xlu1 %3746  ;;  %v5802_v35 = vld [vmem:[%s7119_s1 + $0x40] sm:$0xff]  }
 0x16e   :  { %5295 = vmatprep.subr.msk.bf16.mxu1 %vm66_vm1, %v3017_v37  ;;  %v3399_v60 = vpop.permute.xlu0 %3398  ;;  %v1206_v13 = vshrl.u32 %v1205_v32, 7  ;;  %v1203_v37 = vld [vmem:[%s7120_s4] sm:$0xf] }
 0x16f   :  { %v3405_v6 = vsel %vm949_vm8, %v3397_v58, %v3399_v60  ;;  %v3406_v19 = vsel %vm949_vm8, %v3399_v60, %v3401_v62  ;;  %v3864_v60 = vsel %vm66_vm1, %v6346_v40, 0 }
 0x170   :  { %v3418_v14 = vsel %vm66_vm1, %v3406_v19, 0  ;;  %v6702_v36 = vsub.s32 0, %v1206_v13  ;;  %v6707_v38 = vsub.s32 1, %v1206_v13 }
 0x171   :  { %v3966_v51 = vpop.permute.xlu1 %3965 }
 0x172   :  { %v3403_v1 = vpop.permute.xlu0 %3402  ;;  %v1208_v44 = vrot.slane %v1203_v37, %v6702_v36  ;;  %v1212_v46 = vrot.slane %v1203_v37, %v6707_v38 }
 0x173   :  { %v3407_v16 = vsel %vm949_vm8, %v3401_v62, %v3403_v1 }
 0x174   :  { %5287 = vmatmul.mubr.msk.bf16.vlgmr.msra.gmra.mrb[8].mxu0 %vm62_vm2, %v5797_v41 }
 0x175   :  { %3034 = vmatpush1.bf16.msra.mxu0 %v3022_v45  ;;  %3065 = vmatprep.mubr.bf16.mxu0 %v5817_v2  ;;  %v6715_v45 = vsub.s32 2, %v1206_v13 }
 0x176   :  { %5300 = vmatprep.subr.msk.bf16.mxu0 %vm66_vm1, %v3145_v47  ;;  %v3527_v15 = vpop.permute.xlu0 %3526  ;;  %v6719_v47 = vsub.s32 3, %v1206_v13 }
 0x177   :  { %v3535_v21 = vsel %vm1081_vm9, %v3527_v15, %v3529_v17  ;;  %v3534_v26 = vsel %vm1081_vm9, %v3525_v7, %v3527_v15 }
 0x178   :  { %5289 = vmatmul.mubr.msk.bf16.vlgmr.msra.gmra.mrb[8].mxu1 %vm62_vm2, %v5797_v41  ;;  %v3542_v30 = vsel %vm66_vm1, %v3534_v26, 0  ;;  %v1220_v56 = vrot.slane %v1203_v37, %v6719_v47 }
 0x179   :  { %3077 = vmatpush1.bf16.msra.mxu1 %v3028_v23  ;;  %3108 = vmatprep.mubr.bf16.mxu1 %v5817_v2 }
 0x17a   :  { %5302 = vmatprep.subr.msk.bf16.mxu1 %vm66_vm1, %v3147_v52  ;;  %v3531_v20 = vpop.permute.xlu0 %3530 }
 0x17b   :  { %v3537_v25 = vsel %vm1081_vm9, %v3531_v20, %v3533_v22  ;;  %v3536_v10 = vsel %vm1081_vm9, %v3529_v17, %v3531_v20 }
 0x17c   :  { %v3548_v9 = vsel %vm66_vm1, %v3536_v10, 0 }
 0x17e   :  { %v3741_v24 = vpop.permute.xlu0 %3740 }
 0x17f   :  { %v3748_v34 = vsel %vm57_vm0, %v3741_v24, %v3743_v28 }
 0x180   :  { %5294 = vmatmul.mubr.msk.bf16.vlgmr.msra.gmra.mrb[8].mxu0 %vm62_vm2, %v5798_v54  ;;  %v3755_v39 = vsel %vm66_vm1, %v3748_v34, 0  ;;  %v5805_v34 = vld [vmem:[%s7119_s1] sm:$0xff]  }
 0x181   :  { %3164 = vmatpush1.bf16.msra.mxu0 %v3152_v49  ;;  %3195 = vmatprep.mubr.bf16.mxu0 %v5817_v2 }
 0x182   :  { %5307 = vmatprep.subr.msk.bf16.mxu0 %vm66_vm1, %v3275_v57  ;;  %v3745_v29 = vpop.permute.xlu0 %3744 }
 0x183   :  { %v3749_v31 = vsel %vm57_vm0, %v3743_v28, %v3745_v29  ;;  %v3750_v42 = vsel %vm57_vm0, %v3745_v29, %v3747_v12  ;;  %v3970_v29 = vpop.permute.xlu1 %3969 }
 0x184   :  { %5296 = vmatmul.mubr.msk.bf16.vlgmr.msra.gmra.mrb[8].mxu1 %vm62_vm2, %v5798_v54  ;;  %v3761_v23 = vsel %vm66_vm1, %v3750_v42, 0  ;;  %v1216_v54 = vrot.slane %v1203_v37, %v6715_v45 }
 0x185   :  { %3207 = vmatpush1.bf16.msra.mxu1 %v3158_v59  ;;  %3238 = vmatprep.mubr.bf16.mxu1 %v5817_v2 }
 0x186   :  { %5309 = vmatprep.subr.msk.bf16.mxu1 %vm66_vm1, %v3277_v61  ;;  %v6710_v41 = vpop.permute.xlu0 %3963  ;;  %v5804_v61 = vld [vmem:[%s7118_s0 + $0x38] ss:$0 sps:$4 sm:$0xff]  }
 0x187   :  { %v3870_v19 = vsel %vm66_vm1, %v5804_v61, 0  ;;  %v4086_v12 = vpop.permute.xlu1 %4085  ;;  %v5807_v61 = vld [vmem:[%s7119_s1 + $0x18] sm:$0xff]  }
 0x18a   :  { %v3968_v55 = vpop.permute.xlu0 %3967 }
 0x18c   :  { %5301 = vmatmul.mubr.msk.bf16.vlgmr.msra.gmra.mrb[8].mxu0 %vm62_vm2, %v5799_v0 }
 0x18d   :  { %3294 = vmatpush1.bf16.msra.mxu0 %v3282_v3  ;;  %3325 = vmatprep.mubr.bf16.mxu0 %v5817_v2  ;;  %v3972_v3 = vsel %vm289_vm3, %v3966_v51, %v3968_v55 }
 0x18e   :  { %5314 = vmatprep.subr.msk.bf16.mxu0 %vm66_vm1, %v3405_v6 }
 0x190   :  { %5303 = vmatmul.mubr.msk.bf16.vlgmr.msra.gmra.mrb[8].mxu1 %vm62_vm2, %v5799_v0 }
 0x191   :  { %3337 = vmatpush1.bf16.msra.mxu1 %v3288_v11  ;;  %3368 = vmatprep.mubr.bf16.mxu1 %v5817_v2 }
 0x192   :  { %5316 = vmatprep.subr.msk.bf16.mxu1 %vm66_vm1, %v3407_v16 }
 0x198   :  { %5308 = vmatmul.mubr.msk.bf16.vlgmr.msra.gmra.mrb[8].mxu0 %vm62_vm2, %v5800_v18 }
 0x199   :  { %3424 = vmatpush1.bf16.msra.mxu0 %v3412_v5  ;;  %3455 = vmatprep.mubr.bf16.mxu0 %v5817_v2 }
 0x19a   :  { %5321 = vmatprep.subr.msk.bf16.mxu0 %vm66_vm1, %v3535_v21  ;;  %v4084_v21 = vpop.permute.xlu0 %4083 }
 0x19c   :  { %5310 = vmatmul.mubr.msk.bf16.vlgmr.msra.gmra.mrb[8].mxu1 %vm62_vm2, %v5800_v18 }
 0x19d   :  { %3467 = vmatpush1.bf16.msra.mxu1 %v3418_v14  ;;  %3498 = vmatprep.mubr.bf16.mxu1 %v5817_v2 }
 0x19e   :  { %5323 = vmatprep.subr.msk.bf16.mxu1 %vm66_vm1, %v3537_v25 }
 0x1a4   :  { %5315 = vmatmul.mubr.msk.bf16.vlgmr.msra.gmra.mrb[8].mxu0 %vm62_vm2, %v5801_v27 }
 0x1a5   :  { %3554 = vmatpush1.bf16.msra.mxu0 %v3542_v30  ;;  %3585 = vmatprep.mubr.bf16.mxu0 %v5817_v2 }
 0x1a6   :  { %5332 = vmatprep.subr.msk.bf16.mxu0 %vm66_vm1, %v3749_v31 }
 0x1a8   :  { %5317 = vmatmul.mubr.msk.bf16.vlgmr.msra.gmra.mrb[8].mxu1 %vm62_vm2, %v5801_v27 }
 0x1a9   :  { %3597 = vmatpush1.bf16.msra.mxu1 %v3548_v9  ;;  %3628 = vmatprep.mubr.bf16.mxu1 %v5817_v2  ;;  %v3971_v9 = vsel %vm289_vm3, %v6710_v41, %v3966_v51  ;;  %v5806_v51 = vld [vmem:[%s7119_s1 + $0x10] sm:$0xff]  }
 0x1aa   :  { %5434 = vmatprep.subr.bf16.mxu1 %v5826_v33  ;;  %v3978_v37 = vsel %vm66_vm1, %v3971_v9, 0 }
 0x1b0   :  { %5322 = vmatmul.mubr.msk.bf16.vlgmr.msra.gmra.mrb[8].mxu0 %vm62_vm2, %v5802_v35 }
 0x1b1   :  { %3764 = vmatpush1.bf16.msra.mxu0 %v3755_v39  ;;  %3795 = vmatprep.mubr.bf16.mxu0 %v5817_v2  ;;  %v3973_v39 = vsel %vm289_vm3, %v3968_v55, %v3970_v29 }
 0x1b2   :  { %5339 = vmatprep.subr.msk.bf16.mxu0 %vm66_vm1, %v6358_v43  ;;  %v3984_v41 = vsel %vm66_vm1, %v3973_v39, 0 }
 0x1b3   :  { %v6724_v50 = vpop.f32.mrb[0].mxu0 }
 0x1b4   :  { %v1225_v52 = vmul.f32 %v1208_v44, %v6724_v50  ;;  %v6727_v53 = vpop.f32.mrb[1].mxu0  ;;  %5324 = vmatmul.mubr.msk.bf16.vlgmr.msra.gmra.mrb[8].mxu1 %vm62_vm2, %v5802_v35  ;;  %v4088_v35 = vpop.permute.xlu0 %4087 }
 0x1b5   :  { %v1226_v49 = vmul.f32 %v1212_v46, %v6727_v53  ;;  %5435 = vmatpush3.bf16.msra.mxu1 %v3761_v23  ;;  %v6735_v43 = vpop.f32.mrb[2].mxu0  ;;  %5436 = vmatprep.mubr.msk.bf16.mxu1 %vm5827_vm10, %v5826_v33  ;;  %v4092_v42 = vsel %vm421_vm4, %v4086_v12, %v4088_v35  ;;  %v4091_v23 = vsel %vm421_vm4, %v4084_v21, %v4086_v12 }
 0x1b6   :  { %v1245_v57 = vmul.f32 %v1225_v52, %v6724_v50  ;;  %v1229_v58 = vmul.f32 %v1208_v44, %v6735_v43  ;;  %v6742_v59 = vpop.f32.mrb[3].mxu0  ;;  %5440 = vmatprep.subr.bf16.mxu1 %v5826_v33 }
 0x1b7   :  { %v1233_v62 = vadd.f32 %v1226_v49, %v1225_v52  ;;  %v1246_v63 = vmul.f32 %v1226_v49, %v6727_v53  ;;  %v1230_v0 = vmul.f32 %v1212_v46, %v6742_v59  ;;  %v6752_v1 = vpop.f32.mrb[0].mxu1  ;;  %v4090_v46 = vpop.permute.xlu1 %4089 }
 0x1b8   :  { %v1249_v4 = vmul.f32 %v1229_v58, %v6735_v43  ;;  %v1227_v6 = vmul.f32 %v1216_v54, %v6752_v1  ;;  %v6757_v40 = vpop.f32.mrb[1].mxu1  ;;  %5333 = vmatmul.mubr.msk.bf16.vlgmr.msra.gmra.mrb[12].mxu0 %vm62_vm2, %v5803_v48  ;;  %v4204_v44 = vpop.permute.xlu0 %4203  ;;  %v4093_v55 = vsel %vm421_vm4, %v4088_v35, %v4090_v46 }
 0x1b9   :  { %v1253_v7 = vadd.f32 %v1246_v63, %v1245_v57  ;;  %v1238_v11 = vadd.f32 %v1230_v0, %v1229_v58  ;;  %v1250_v15 = vmul.f32 %v1230_v0, %v6742_v59  ;;  %v1228_v16 = vmul.f32 %v1220_v56, %v6757_v40  ;;  %v6762_v17 = vpop.f32.mrb[2].mxu1  ;;  %3873 = vmatpush1.bf16.msra.mxu0 %v3864_v60 }
 0x1ba   :  { %v1234_v8 = vadd.f32 %v1233_v62, %v1227_v6  ;;  %v1247_v18 = vmul.f32 %v1227_v6, %v6752_v1  ;;  %v1231_v20 = vmul.f32 %v1216_v54, %v6762_v17  ;;  %v6766_v5 = vpop.f32.mrb[3].mxu1  ;;  %3904 = vmatprep.mubr.bf16.mxu0 %v5817_v2  ;;  %5345 = vmatprep.subr.msk.bf16.mxu0 %vm66_vm1, %v3972_v3 }
 0x1bb   :  { %v1258_v22 = vadd.f32 %v1250_v15, %v1249_v4  ;;  %v1248_v14 = vmul.f32 %v1228_v16, %v6757_v40  ;;  %v1232_v24 = vmul.f32 %v1220_v56, %v6766_v5  ;;  %v4206_v52 = vpop.permute.xlu1 %4205  ;;  %v4104_v56 = vsel %vm66_vm1, %v4093_v55, 0  ;;  %v2429_v55 = vld [vmem:[%s7120_s4 + $0x4] sm:$0xf] }
 0x1bc   :  { %v1254_v25 = vadd.f32 %v1253_v7, %v1247_v18  ;;  %v1239_v26 = vadd.f32 %v1238_v11, %v1231_v20  ;;  %v1251_v27 = vmul.f32 %v1231_v20, %v6762_v17  ;;  %5437 = vmatmul.mubr.msk.bf16.vlgmr.msra.gmra.mrb[12].mxu1 %vm62_vm2, %v5803_v48  ;;  %v1235_v28 = vadd.f32 %v1234_v8, %v1228_v16  ;;  %v4208_v54 = vpop.permute.xlu0 %4207  ;;  %v5808_v16 = vld [vmem:[%s7119_s1 + $0x20] sm:$0xff]  }
 0x1bd   :  { %v1252_v30 = vmul.f32 %v1232_v24, %v6766_v5  ;;  %5441 = vmatpush3.bf16.msra.mxu1 %v3870_v19  ;;  %5442 = vmatprep.mubr.msk.bf16.mxu1 %vm5827_vm10, %v5826_v33  ;;  %v4098_v48 = vsel %vm66_vm1, %v4091_v23, 0  ;;  %v4212_v49 = vsel %vm553_vm5, %v4206_v52, %v4208_v54  ;;  %v4211_v60 = vsel %vm553_vm5, %v4204_v44, %v4206_v52  ;;  %v5811_v23 = vld [vmem:[%s7119_s1 + $0x38] sm:$0xff]  }
 0x1be   :  { %v1259_v10 = vadd.f32 %v1258_v22, %v1251_v27  ;;  %1236 = vadd.xlane.f32.xlu0 %v1235_v28  ;;  %v1240_v31 = vadd.f32 %v1239_v26, %v1232_v24  ;;  %v1255_v32 = vadd.f32 %v1254_v25, %v1248_v14  ;;  %5446 = vmatprep.subr.bf16.mxu1 %v5826_v33  ;;  %v4218_v0 = vsel %vm66_vm1, %v4211_v60, 0  ;;  %v5809_v26 = vld [vmem:[%s7119_s1 + $0x28] sm:$0xff]  }
 0x1bf   :  { %v4210_v58 = vpop.permute.xlu1 %4209 }
 0x1c0   :  { %1241 = vadd.xlane.f32.xlu1 %v1240_v31  ;;  %v1260_v13 = vadd.f32 %v1259_v10, %v1252_v30  ;;  %v4324_v57 = vpop.permute.xlu0 %4323  ;;  %v4213_v3 = vsel %vm553_vm5, %v4208_v54, %v4210_v58 }
 0x1c1   :  { %v4224_v6 = vsel %vm66_vm1, %v4213_v3, 0 }
 0x1c2   :  { %1261 = vadd.xlane.f32.xlu0 %v1260_v13 }
 0x1c3   :  { %v4326_v62 = vpop.permute.xlu1 %4325 }
 0x1c4   :  { %5340 = vmatmul.mubr.msk.bf16.vlgmr.msra.gmra.mrb[12].mxu0 %vm62_vm2, %v5805_v34  ;;  %1256 = vadd.xlane.f32.xlu1 %v1255_v32  ;;  %v4328_v63 = vpop.permute.xlu0 %4327  ;;  %v4331_v15 = vsel %vm685_vm6, %v4324_v57, %v4326_v62 }
 0x1c5   :  { %3987 = vmatpush1.bf16.msra.mxu0 %v3978_v37  ;;  %4018 = vmatprep.mubr.bf16.mxu0 %v5817_v2  ;;  %v4332_v4 = vsel %vm685_vm6, %v4326_v62, %v4328_v63  ;;  %v4338_v20 = vsel %vm66_vm1, %v4331_v15, 0  ;;  %v2446_v62 = vrot.slane %v2429_v55, %v6719_v47 }
 0x1c6   :  { %5351 = vmatprep.subr.msk.bf16.mxu0 %vm66_vm1, %v4092_v42 }
 0x1c7   :  { %v4330_v11 = vpop.permute.xlu1 %4329 }
 0x1c8   :  { %5443 = vmatmul.mubr.msk.bf16.vlgmr.msra.gmra.mrb[12].mxu1 %vm62_vm2, %v5805_v34  ;;  %v4444_v7 = vpop.permute.xlu0 %4443  ;;  %v4333_v19 = vsel %vm685_vm6, %v4328_v63, %v4330_v11  ;;  %v5810_v34 = vld [vmem:[%s7119_s1 + $0x30] sm:$0xff]  }
 0x1c9   :  { %5447 = vmatpush3.bf16.msra.mxu1 %v3984_v41  ;;  %5448 = vmatprep.mubr.msk.bf16.mxu1 %vm5827_vm10, %v5826_v33  ;;  %v4344_v22 = vsel %vm66_vm1, %v4333_v19, 0 }
 0x1ca   :  { %5452 = vmatprep.subr.bf16.mxu1 %v5826_v33 }
 0x1cb   :  { %v4446_v8 = vpop.permute.xlu1 %4445 }
 0x1cc   :  { %v4448_v18 = vpop.permute.xlu0 %4447  ;;  %v4451_v25 = vsel %vm817_vm7, %v4444_v7, %v4446_v8 }
 0x1cd   :  { %v4452_v21 = vsel %vm817_vm7, %v4446_v8, %v4448_v18  ;;  %v4458_v29 = vsel %vm66_vm1, %v4451_v25, 0 }
 0x1cf   :  { %v4450_v24 = vpop.permute.xlu1 %4449 }
 0x1d0   :  { %5346 = vmatmul.mubr.msk.bf16.vlgmr.msra.gmra.mrb[12].mxu0 %vm62_vm2, %v5806_v51  ;;  %v4564_v14 = vpop.permute.xlu0 %4563  ;;  %v4453_v30 = vsel %vm817_vm7, %v4448_v18, %v4450_v24 }
 0x1d1   :  { %4107 = vmatpush1.bf16.msra.mxu0 %v4098_v48  ;;  %4138 = vmatprep.mubr.bf16.mxu0 %v5817_v2  ;;  %v4464_v31 = vsel %vm66_vm1, %v4453_v30, 0  ;;  %v5812_v48 = vld [vmem:[%s7119_s1 + $0x40] sm:$0xff]  }
 0x1d2   :  { %5357 = vmatprep.subr.msk.bf16.mxu0 %vm66_vm1, %v4212_v49  ;;  %v2438_v49 = vrot.slane %v2429_v55, %v6707_v38 }
 0x1d3   :  { %v4566_v27 = vpop.permute.xlu1 %4565 }
 0x1d4   :  { %5449 = vmatmul.mubr.msk.bf16.vlgmr.msra.gmra.mrb[12].mxu1 %vm62_vm2, %v5806_v51  ;;  %v4568_v28 = vpop.permute.xlu0 %4567  ;;  %v4571_v13 = vsel %vm949_vm8, %v4564_v14, %v4566_v27 }
 0x1d5   :  { %5453 = vmatpush3.bf16.msra.mxu1 %v4104_v56  ;;  %5454 = vmatprep.mubr.msk.bf16.mxu1 %vm5827_vm10, %v5826_v33  ;;  %v4572_v10 = vsel %vm949_vm8, %v4566_v27, %v4568_v28  ;;  %v4578_v37 = vsel %vm66_vm1, %v4571_v13, 0 }
 0x1d6   :  { %5458 = vmatprep.subr.bf16.mxu1 %v5826_v33 }
 0x1d7   :  { %v4570_v9 = vpop.permute.xlu1 %4569 }
 0x1d8   :  { %v4684_v32 = vpop.permute.xlu0 %4683  ;;  %v4573_v39 = vsel %vm949_vm8, %v4568_v28, %v4570_v9 }
 0x1d9   :  { %v4584_v41 = vsel %vm66_vm1, %v4573_v39, 0 }
 0x1db   :  { %v4686_v12 = vpop.permute.xlu1 %4685 }
 0x1dc   :  { %5352 = vmatmul.mubr.msk.bf16.vlgmr.msra.gmra.mrb[12].mxu0 %vm62_vm2, %v5807_v61  ;;  %v4688_v35 = vpop.permute.xlu0 %4687  ;;  %v4691_v44 = vsel %vm1081_vm9, %v4684_v32, %v4686_v12 }
 0x1dd   :  { %4227 = vmatpush1.bf16.msra.mxu0 %v4218_v0  ;;  %4258 = vmatprep.mubr.bf16.mxu0 %v5817_v2  ;;  %v4692_v42 = vsel %vm1081_vm9, %v4686_v12, %v4688_v35  ;;  %v4698_v51 = vsel %vm66_vm1, %v4691_v44, 0 }
 0x1de   :  { %5363 = vmatprep.subr.msk.bf16.mxu0 %vm66_vm1, %v4332_v4 }
 0x1df   :  { %v4690_v46 = vpop.permute.xlu1 %4689 }
 0x1e0   :  { %5455 = vmatmul.mubr.msk.bf16.vlgmr.msra.gmra.mrb[12].mxu1 %vm62_vm2, %v5807_v61  ;;  %v4693_v52 = vsel %vm1081_vm9, %v4688_v35, %v4690_v46 }
 0x1e1   :  { %5459 = vmatpush3.bf16.msra.mxu1 %v4224_v6  ;;  %5460 = vmatprep.mubr.msk.bf16.mxu1 %vm5827_vm10, %v5826_v33  ;;  %v4704_v54 = vsel %vm66_vm1, %v4693_v52, 0 }
 0x1e2   :  { %5464 = vmatprep.subr.bf16.mxu1 %v5826_v33 }
 0x1e8   :  { %5358 = vmatmul.mubr.msk.bf16.vlgmr.msra.gmra.mrb[12].mxu0 %vm62_vm2, %v5808_v16 }
 0x1e9   :  { %4347 = vmatpush1.bf16.msra.mxu0 %v4338_v20  ;;  %4378 = vmatprep.mubr.bf16.mxu0 %v5817_v2 }
 0x1ea   :  { %5369 = vmatprep.subr.msk.bf16.mxu0 %vm66_vm1, %v4452_v21 }
 0x1ec   :  { %5461 = vmatmul.mubr.msk.bf16.vlgmr.msra.gmra.mrb[12].mxu1 %vm62_vm2, %v5808_v16 }
 0x1ed   :  { %5465 = vmatpush3.bf16.msra.mxu1 %v4344_v22  ;;  %5466 = vmatprep.mubr.msk.bf16.mxu1 %vm5827_vm10, %v5826_v33 }
 0x1ee   :  { %5470 = vmatprep.subr.bf16.mxu1 %v5826_v33 }
 0x1f4   :  { %5364 = vmatmul.mubr.msk.bf16.vlgmr.msra.gmra.mrb[12].mxu0 %vm62_vm2, %v5809_v26 }
 0x1f5   :  { %4467 = vmatpush1.bf16.msra.mxu0 %v4458_v29  ;;  %4498 = vmatprep.mubr.bf16.mxu0 %v5817_v2 }
 0x1f6   :  { %5375 = vmatprep.subr.msk.bf16.mxu0 %vm66_vm1, %v4572_v10 }
 0x1f8   :  { %5467 = vmatmul.mubr.msk.bf16.vlgmr.msra.gmra.mrb[12].mxu1 %vm62_vm2, %v5809_v26 }
 0x1f9   :  { %5471 = vmatpush3.bf16.msra.mxu1 %v4464_v31  ;;  %5472 = vmatprep.mubr.msk.bf16.mxu1 %vm5827_vm10, %v5826_v33 }
 0x1fa   :  { %5476 = vmatprep.subr.bf16.mxu1 %v5826_v33 }
 0x200   :  { %5370 = vmatmul.mubr.msk.bf16.vlgmr.msra.gmra.mrb[12].mxu0 %vm62_vm2, %v5810_v34 }
 0x201   :  { %4587 = vmatpush1.bf16.msra.mxu0 %v4578_v37  ;;  %4618 = vmatprep.mubr.bf16.mxu0 %v5817_v2  ;;  %v3655_v37 = vld [vmem:[%s7120_s4 + $0x8] sm:$0xf] }
 0x202   :  { %5381 = vmatprep.subr.msk.bf16.mxu0 %vm66_vm1, %v4692_v42  ;;  %v3660_v39 = vrot.slane %v3655_v37, %v6702_v36  ;;  %v3664_v42 = vrot.slane %v3655_v37, %v6707_v38 }
 0x204   :  { %5473 = vmatmul.mubr.msk.bf16.vlgmr.msra.gmra.mrb[12].mxu1 %vm62_vm2, %v5810_v34 }
 0x205   :  { %5477 = vmatpush3.bf16.msra.mxu1 %v4584_v41  ;;  %5478 = vmatprep.mubr.msk.bf16.mxu1 %vm5827_vm10, %v5826_v33 }
 0x206   :  { %5482 = vmatprep.subr.bf16.mxu1 %v5826_v33 }
 0x20c   :  { %5376 = vmatmul.mubr.msk.bf16.vlgmr.msra.gmra.mrb[12].mxu0 %vm62_vm2, %v5811_v23 }
 0x20d   :  { %4707 = vmatpush1.bf16.msra.mxu0 %v4698_v51  ;;  %4738 = vmatprep.mubr.bf16.mxu0 %v5817_v2  ;;  %v2434_v2 = vrot.slane %v2429_v55, %v6702_v36 }
 0x210   :  { %5479 = vmatmul.mubr.msk.bf16.vlgmr.msra.gmra.mrb[12].mxu1 %vm62_vm2, %v5811_v23  ;;  %v3668_v23 = vrot.slane %v3655_v37, %v6715_v45 }
 0x211   :  { %5483 = vmatpush3.bf16.msra.mxu1 %v4704_v54  ;;  %5484 = vmatprep.mubr.msk.bf16.mxu1 %vm5827_vm10, %v5826_v33  ;;  %v2442_v33 = vrot.slane %v2429_v55, %v6715_v45  ;;  %v3672_v54 = vrot.slane %v3655_v37, %v6719_v47 }
 0x218   :  { %5382 = vmatmul.mubr.msk.bf16.vlgmr.msra.gmra.mrb[12].mxu0 %vm62_vm2, %v5812_v48 }
 0x21b   :  { %v6891_v56 = vpop.f32.mrb[4].mxu0 }
 0x21c   :  { %v2451_v57 = vmul.f32 %v2434_v2, %v6891_v56  ;;  %v6894_v58 = vpop.f32.mrb[5].mxu0  ;;  %5485 = vmatmul.mubr.msk.bf16.vlgmr.msra.gmra.mrb[12].mxu1 %vm62_vm2, %v5812_v48 }
 0x21d   :  { %v2452_v60 = vmul.f32 %v2438_v49, %v6894_v58  ;;  %v6899_v61 = vpop.f32.mrb[6].mxu0 }
 0x21e   :  { %v2471_v63 = vmul.f32 %v2451_v57, %v6891_v56  ;;  %v2455_v0 = vmul.f32 %v2434_v2, %v6899_v61  ;;  %v6904_v3 = vpop.f32.mrb[7].mxu0 }
 0x21f   :  { %v2459_v4 = vadd.f32 %v2452_v60, %v2451_v57  ;;  %v2472_v6 = vmul.f32 %v2452_v60, %v6894_v58  ;;  %v2456_v7 = vmul.f32 %v2438_v49, %v6904_v3  ;;  %v6908_v11 = vpop.f32.mrb[4].mxu1 }
 0x220   :  { %v2475_v15 = vmul.f32 %v2455_v0, %v6899_v61  ;;  %v2453_v16 = vmul.f32 %v2442_v33, %v6908_v11  ;;  %v6912_v8 = vpop.f32.mrb[5].mxu1 }
 0x221   :  { %v2479_v18 = vadd.f32 %v2472_v6, %v2471_v63  ;;  %v2464_v20 = vadd.f32 %v2456_v7, %v2455_v0  ;;  %v2476_v19 = vmul.f32 %v2456_v7, %v6904_v3  ;;  %v2454_v21 = vmul.f32 %v2446_v62, %v6912_v8  ;;  %v6916_v22 = vpop.f32.mrb[6].mxu1 }
 0x222   :  { %v2460_v14 = vadd.f32 %v2459_v4, %v2453_v16  ;;  %v2473_v24 = vmul.f32 %v2453_v16, %v6908_v11  ;;  %v2457_v25 = vmul.f32 %v2442_v33, %v6916_v22  ;;  %v6920_v26 = vpop.f32.mrb[7].mxu1 }
 0x223   :  { %v2484_v27 = vadd.f32 %v2476_v19, %v2475_v15  ;;  %v2474_v28 = vmul.f32 %v2454_v21, %v6912_v8  ;;  %v2458_v29 = vmul.f32 %v2446_v62, %v6920_v26 }
 0x224   :  { %v2480_v30 = vadd.f32 %v2479_v18, %v2473_v24  ;;  %v2465_v10 = vadd.f32 %v2464_v20, %v2457_v25  ;;  %v2477_v31 = vmul.f32 %v2457_v25, %v6916_v22  ;;  %v2461_v32 = vadd.f32 %v2460_v14, %v2454_v21 }
 0x225   :  { %v2478_v9 = vmul.f32 %v2458_v29, %v6920_v26 }
 0x226   :  { %v2485_v13 = vadd.f32 %v2484_v27, %v2477_v31  ;;  %2462 = vadd.xlane.f32.xlu0 %v2461_v32  ;;  %v2481_v34 = vadd.f32 %v2480_v30, %v2474_v28  ;;  %v2466_v12 = vadd.f32 %v2465_v10, %v2458_v29 }
 0x228   :  { %2482 = vadd.xlane.f32.xlu1 %v2481_v34  ;;  %v2486_v35 = vadd.f32 %v2485_v13, %v2478_v9  ;;  %v4802_v13 = vld [vmem:[%s7120_s4 + $0xc] sm:$0x7] }
 0x229   :  { %v4807_v34 = vrot.slane %v4802_v13, %v6702_v36 }
 0x22a   :  { %2467 = vadd.xlane.f32.xlu0 %v2466_v12  ;;  %v4811_v12 = vrot.slane %v4802_v13, %v6707_v38 }
 0x22e   :  { %2487 = vadd.xlane.f32.xlu0 %v2486_v35 }
 0x283   :  { %v6931_v41 = vpop.f32.mrb[8].mxu0 }
 0x284   :  { %v3677_v44 = vmul.f32 %v3660_v39, %v6931_v41  ;;  %v6934_v46 = vpop.f32.mrb[9].mxu0 }
 0x285   :  { %v3678_v51 = vmul.f32 %v3664_v42, %v6934_v46  ;;  %v6938_v52 = vpop.f32.mrb[10].mxu0 }
 0x286   :  { %v3697_v48 = vmul.f32 %v3677_v44, %v6931_v41  ;;  %v3681_v55 = vmul.f32 %v3660_v39, %v6938_v52  ;;  %v6943_v2 = vpop.f32.mrb[11].mxu0 }
 0x287   :  { %v3685_v49 = vadd.f32 %v3678_v51, %v3677_v44  ;;  %v3698_v57 = vmul.f32 %v3678_v51, %v6934_v46  ;;  %v3682_v33 = vmul.f32 %v3664_v42, %v6943_v2  ;;  %v6947_v60 = vpop.f32.mrb[8].mxu1  ;;  %v4815_v42 = vrot.slane %v4802_v13, %v6715_v45 }
 0x288   :  { %v3701_v62 = vmul.f32 %v3681_v55, %v6938_v52  ;;  %v3679_v63 = vmul.f32 %v3668_v23, %v6947_v60  ;;  %v6951_v0 = vpop.f32.mrb[9].mxu1 }
 0x289   :  { %v3705_v47 = vadd.f32 %v3698_v57, %v3697_v48  ;;  %v3690_v4 = vadd.f32 %v3682_v33, %v3681_v55  ;;  %v3702_v6 = vmul.f32 %v3682_v33, %v6943_v2  ;;  %v3680_v7 = vmul.f32 %v3672_v54, %v6951_v0  ;;  %v6955_v15 = vpop.f32.mrb[10].mxu1 }
 0x28a   :  { %v3686_v16 = vadd.f32 %v3685_v49, %v3679_v63  ;;  %v3699_v18 = vmul.f32 %v3679_v63, %v6947_v60  ;;  %v3683_v20 = vmul.f32 %v3668_v23, %v6955_v15  ;;  %v6959_v19 = vpop.f32.mrb[11].mxu1 }
 0x28b   :  { %v3710_v21 = vadd.f32 %v3702_v6, %v3701_v62  ;;  %v3700_v14 = vmul.f32 %v3680_v7, %v6951_v0  ;;  %v3684_v24 = vmul.f32 %v3672_v54, %v6959_v19 }
 0x28c   :  { %v3706_v25 = vadd.f32 %v3705_v47, %v3699_v18  ;;  %v3691_v27 = vadd.f32 %v3690_v4, %v3683_v20  ;;  %v3703_v28 = vmul.f32 %v3683_v20, %v6955_v15  ;;  %v3687_v29 = vadd.f32 %v3686_v16, %v3680_v7 }
 0x28d   :  { %v3704_v30 = vmul.f32 %v3684_v24, %v6959_v19 }
 0x28e   :  { %v3711_v10 = vadd.f32 %v3710_v21, %v3703_v28  ;;  %3688 = vadd.xlane.f32.xlu1 %v3687_v29  ;;  %v3692_v31 = vadd.f32 %v3691_v27, %v3684_v24  ;;  %v3707_v32 = vadd.f32 %v3706_v25, %v3700_v14  ;;  %v1237_v27 = vpop.xlane.xlu0 %1236  ;;  %v1242_v29 = vpop.xlane.xlu1 %1241 }
 0x290   :  { %3693 = vadd.xlane.f32.xlu0 %v3692_v31  ;;  %v3712_v9 = vadd.f32 %v3711_v10, %v3704_v30 }
 0x292   :  { %3708 = vadd.xlane.f32.xlu1 %v3707_v32  ;;  %v1262_v28 = vpop.xlane.xlu0 %1261  ;;  %v1257_v10 = vpop.xlane.xlu1 %1256 }
 0x294   :  { %3713 = vadd.xlane.f32.xlu0 %v3712_v9 }
 0x2b3   :  { %v2463_v30 = vpop.xlane.xlu0 %2462 }
 0x2b5   :  { %v2483_v32 = vpop.xlane.xlu1 %2482 }
 0x2b7   :  { %v2468_v31 = vpop.xlane.xlu0 %2467 }
 0x2bb   :  { %v2488_v9 = vpop.xlane.xlu0 %2487 }
 0x2eb   :  { %v6970_v35 = vpop.f32.mrb[12].mxu0 }
 0x2ec   :  { %v4819_v37 = vmul.f32 %v4807_v34, %v6970_v35  ;;  %v6973_v39 = vpop.f32.mrb[13].mxu0 }
 0x2ed   :  { %v4820_v44 = vmul.f32 %v4811_v12, %v6973_v39  ;;  %v6977_v23 = vpop.f32.mrb[14].mxu0 }
 0x2ee   :  { %v4835_v51 = vmul.f32 %v4819_v37, %v6970_v35  ;;  %v4822_v54 = vmul.f32 %v4807_v34, %v6977_v23  ;;  %v6981_v48 = vpop.f32.mrb[15].mxu0 }
 0x2ef   :  { %v4825_v36 = vadd.f32 %v4820_v44, %v4819_v37  ;;  %v4836_v38 = vmul.f32 %v4820_v44, %v6973_v39  ;;  %v4823_v55 = vmul.f32 %v4811_v12, %v6981_v48  ;;  %v6985_v49 = vpop.f32.mrb[12].mxu1  ;;  %v2469_v37 = vadd.f32 %v2463_v30, %v1237_v27 }
 0x2f0   :  { %v4838_v57 = vmul.f32 %v4822_v54, %v6977_v23  ;;  %v4821_v45 = vmul.f32 %v4815_v42, %v6985_v49  ;;  %v5486_v33 = vpop.f32.mrb[13].mxu1  ;;  %v2470_v44 = vadd.f32 %v2468_v31, %v1242_v29 }
 0x2f1   :  { %v4841_v62 = vadd.f32 %v4836_v38, %v4835_v51  ;;  %v4829_v63 = vadd.f32 %v4823_v55, %v4822_v54  ;;  %v4839_v47 = vmul.f32 %v4823_v55, %v6981_v48  ;;  %v6990_v4 = vpop.f32.mrb[14].mxu1 }
 0x2f2   :  { %v4837_v6 = vmul.f32 %v4821_v45, %v6985_v49  ;;  %v4824_v7 = vmul.f32 %v4815_v42, %v6990_v4  ;;  %v5487_v16 = vpop.f32.mrb[15].mxu1  ;;  %v4826_v18 = vadd.f32 %v4825_v36, %v4821_v45  ;;  %v2489_v36 = vadd.f32 %v2483_v32, %v1257_v10  ;;  %v4861_v32 = vld [vmem:[%s7121_s2] sm:$0xff] }
 0x2f3   :  { %v4845_v20 = vadd.f32 %v4839_v47, %v4838_v57  ;;  %v2490_v45 = vadd.f32 %v2488_v9, %v1262_v28 }
 0x2f4   :  { %v4840_v21 = vmul.f32 %v4824_v7, %v6990_v4  ;;  %4827 = vadd.xlane.f32.xlu1 %v4826_v18  ;;  %v4830_v14 = vadd.f32 %v4829_v63, %v4824_v7  ;;  %v4842_v24 = vadd.f32 %v4841_v62, %v4837_v6 }
 0x2f6   :  { %4831 = vadd.xlane.f32.xlu0 %v4830_v14  ;;  %v4846_v25 = vadd.f32 %v4845_v20, %v4840_v21 }
 0x2f8   :  { %4843 = vadd.xlane.f32.xlu1 %v4842_v24 }
 0x2fa   :  { %4847 = vadd.xlane.f32.xlu0 %v4846_v25 }
 0x31b   :  { %v3689_v13 = vpop.xlane.xlu1 %3688 }
 0x31c   :  { %v3695_v51 = vadd.f32 %v3689_v13, %v2469_v37  ;;  %v4862_v13 = vld [vmem:[%s7121_s2 + $0x8] sm:$0xff]  ;;  %v4869_v37 = vld [vmem:[%s7122_s3] sm:$0xff] }
 0x31d   :  { %v3694_v34 = vpop.xlane.xlu0 %3693 }
 0x31e   :  { %v3696_v38 = vadd.f32 %v3694_v34, %v2470_v44 }
 0x31f   :  { %v3709_v12 = vpop.xlane.xlu1 %3708 }
 0x320   :  { %v3715_v33 = vadd.f32 %v3709_v12, %v2489_v36  ;;  %v4870_v36 = vld [vmem:[%s7122_s3 + $0x8] sm:$0xff] }
 0x321   :  { %v3714_v42 = vpop.xlane.xlu0 %3713 }
 0x322   :  { %v3716_v6 = vadd.f32 %v3714_v42, %v2490_v45 }
 0x381   :  { %v4828_v54 = vpop.xlane.xlu1 %4827 }
 0x382   :  { %v4833_v55 = vadd.f32 %v4828_v54, %v3695_v51 }
 0x383   :  { %v4832_v57 = vpop.xlane.xlu0 %4831 }
 0x384   :  { %v4851_v62 = vmul.f32 0.0006377551, %v4833_v55  ;;  %v4834_v63 = vadd.f32 %v4832_v57, %v3696_v38 }
 0x385   :  { %v4844_v47 = vpop.xlane.xlu1 %4843 }
 0x386   :  { %v4852_v7 = vmul.f32 0.0006377551, %v4834_v63  ;;  %v4849_v16 = vadd.f32 %v4844_v47, %v3715_v33  ;;  %v4855_v20 = vmul.f32 %v4851_v62, %v4851_v62 }
 0x387   :  { %v4848_v18 = vpop.xlane.xlu0 %4847 }
 0x388   :  { %v4853_v21 = vmul.f32 0.0006377551, %v4849_v16  ;;  %v4850_v14 = vadd.f32 %v4848_v18, %v3716_v6  ;;  %v4856_v24 = vmul.f32 %v4852_v7, %v4852_v7 }
 0x38a   :  { %v4857_v25 = vsub.f32 %v4853_v21, %v4855_v20  ;;  %v4854_v27 = vmul.f32 0.0006377551, %v4850_v14 }
 0x38c   :  { %v4859_v29 = vmax.f32 %v4857_v25, 0.0  ;;  %v4858_v30 = vsub.f32 %v4854_v27, %v4856_v24 }
 0x38e   :  { %v4863_v10 = vadd.f32 1e-05, %v4859_v29  ;;  %v4860_v31 = vmax.f32 %v4858_v30, 0.0 }
 0x390   :  { %5813 = vrsqrt.f32 %v4863_v10  ;;  %v4864_v28 = vadd.f32 1e-05, %v4860_v31 }
 0x392   :  { %5815 = vrsqrt.f32 %v4864_v28 }
 0x39a   :  { %v5814_v9 = vpop.eup %5813 }
 0x39b   :  { %v4867_v34 = vmul.f32 %v5814_v9, %v4861_v32 }
 0x39c   :  { %v5816_v12 = vpop.eup %5815 }
 0x39d   :  { %4885 = vperm.xlu1 %5755, %v4867_v34   ;;  %v4868_v42 = vmul.f32 %v5816_v12, %v4862_v13  ;;  %v4871_v44 = vmul.f32 %v4867_v34, %v4851_v62 }
 0x39f   :  { %4890 = vperm.xlu0 %5756, %v4868_v42   ;;  %v4873_v51 = vsub.f32 %v4869_v37, %v4871_v44  ;;  %v4872_v54 = vmul.f32 %v4868_v42, %v4852_v7 }
 0x3a1   :  { %4903 = vperm.xlu1 %5755, %v4873_v51   ;;  %v4874_v38 = vsub.f32 %v4870_v36, %v4872_v54 }
 0x3a5   :  { %4908 = vperm.xlu1 %5755, %v4874_v38  }
 0x41c   :  { %v4886_v55 = vpop.permute.xlu1 %4885 }
 0x41d   :  { %v4893_v57 = vmul.f32 %v4886_v55, %v6724_v50  ;;  %v4894_v45 = vmul.f32 %v4886_v55, %v6727_v53  ;;  %v4895_v33 = vmul.f32 %v4886_v55, %v6752_v1  ;;  %v4896_v63 = vmul.f32 %v4886_v55, %v6757_v40 }
 0x41e   :  { %v4963_v62 = vmul.f32 %v4886_v55, %v6891_v56  ;;  %v4964_v47 = vmul.f32 %v4886_v55, %v6894_v58  ;;  %v4965_v6 = vmul.f32 %v4886_v55, %v6908_v11  ;;  %v4966_v7 = vmul.f32 %v4886_v55, %v6912_v8  ;;  %v4891_v16 = vpop.permute.xlu0 %4890 }
 0x41f   :  { %v5023_v18 = vmul.f32 %v4886_v55, %v6931_v41  ;;  %v5024_v20 = vmul.f32 %v4886_v55, %v6934_v46  ;;  %v5025_v50 = vmul.f32 %v4886_v55, %v6947_v60  ;;  %v5026_v53 = vmul.f32 %v4886_v55, %v6951_v0 }
 0x420   :  { %v5081_v1 = vmul.f32 %v4886_v55, %v6970_v35  ;;  %v5082_v40 = vmul.f32 %v4886_v55, %v6973_v39  ;;  %v5083_v56 = vmul.f32 %v4886_v55, %v6985_v49  ;;  %v4897_v58 = vmul.f32 %v4891_v16, %v6735_v43  ;;  %v4904_v60 = vpop.permute.xlu1 %4903 }
 0x421   :  { %v4898_v11 = vmul.f32 %v4891_v16, %v6742_v59  ;;  %v4899_v8 = vmul.f32 %v4891_v16, %v6762_v17  ;;  %v4900_v41 = vmul.f32 %v4891_v16, %v6766_v5  ;;  %v7027_v46 = vmul.f32 %v4891_v16, %v6899_v61 }
 0x422   :  { %v7030_v0 = vmul.f32 %v4891_v16, %v6904_v3  ;;  %v7033_v35 = vmul.f32 %v4891_v16, %v6916_v22  ;;  %v7036_v39 = vmul.f32 %v4891_v16, %v6920_v26  ;;  %v7039_v43 = vmul.f32 %v4891_v16, %v6938_v52 }
 0x423   :  { %v7042_v59 = vmul.f32 %v4891_v16, %v6943_v2  ;;  %v7045_v17 = vmul.f32 %v4891_v16, %v6955_v15  ;;  %v7048_v5 = vmul.f32 %v4891_v16, %v6959_v19  ;;  %v7051_v61 = vmul.f32 %v4891_v16, %v6977_v23 }
 0x424   :  { %v7054_v3 = vmul.f32 %v4891_v16, %v6981_v48  ;;  %v7057_v22 = vmul.f32 %v4891_v16, %v6990_v4  ;;  %v4911_v26 = vadd.f32 %v4904_v60, %v4893_v57  ;;  %v4912_v52 = vadd.f32 %v4904_v60, %v4894_v45  ;;  %v4909_v34 = vpop.permute.xlu1 %4908 }
 0x425   :  { %v4913_v49 = vadd.f32 %v4904_v60, %v4895_v33  ;;  %v4914_v2 = vadd.f32 %v4904_v60, %v4896_v63  ;;  %v4971_v21 = vadd.f32 %v4963_v62, %v4904_v60  ;;  %v4972_v14 = vadd.f32 %v4964_v47, %v4904_v60 }
 0x426   :  { %v4919_v15 = vmax.f32 %v4911_v26, 0.0  ;;  %v4920_v24 = vmax.f32 %v4912_v52, 0.0  ;;  %v4973_v25 = vadd.f32 %v4965_v6, %v4904_v60  ;;  %v4974_v19 = vadd.f32 %v4966_v7, %v4904_v60 }
 0x427   :  { %v4921_v27 = vmax.f32 %v4913_v49, 0.0  ;;  %v4922_v29 = vmax.f32 %v4914_v2, 0.0  ;;  %v4979_v23 = vmax.f32 %v4971_v21, 0.0  ;;  %v4980_v30 = vmax.f32 %v4972_v14, 0.0 }
 0x428   :  { %v5400_v10 = vpack.c.bf16 %v4920_v24, %v4919_v15  ;;  %v4981_v48 = vmax.f32 %v4973_v25, 0.0  ;;  %v4982_v31 = vmax.f32 %v4974_v19, 0.0  ;;  %v5031_v28 = vadd.f32 %v5023_v18, %v4904_v60 }
 0x429   :  { %v5401_v4 = vpack.c.bf16 %v4922_v29, %v4921_v27  ;;  %v5404_v32 = vpack.c.bf16 %v4980_v30, %v4979_v23  ;;  %v5032_v9 = vadd.f32 %v5024_v20, %v4904_v60  ;;  %v5033_v13 = vadd.f32 %v5025_v50, %v4904_v60 }
 0x42a   :  { %4951 = vst [vmem:[%s7123_s5] sm:$0xff] %v5400_v10  ;;  %v5405_v12 = vpack.c.bf16 %v4982_v31, %v4981_v48  ;;  %v5034_v37 = vadd.f32 %v5026_v53, %v4904_v60  ;;  %v5039_v42 = vmax.f32 %v5031_v28, 0.0  ;;  %v5087_v44 = vadd.f32 %v5081_v1, %v4904_v60 }
 0x42b   :  { %4952 = vst [vmem:[%s7123_s5 + $0x8] sm:$0xff] %v5401_v4  ;;  %5011 = vst [vmem:[%s7123_s5 + $0x10] sm:$0xff] %v5404_v32  ;;  %v5040_v51 = vmax.f32 %v5032_v9, 0.0  ;;  %v5041_v54 = vmax.f32 %v5033_v13, 0.0  ;;  %v5088_v36 = vadd.f32 %v5082_v40, %v4904_v60  ;;  %v5089_v38 = vadd.f32 %v5083_v56, %v4904_v60 }
 0x42c   :  { %5012 = vst [vmem:[%s7123_s5 + $0x18] sm:$0xff] %v5405_v12  ;;  %v5042_v55 = vmax.f32 %v5034_v37, 0.0  ;;  %v5093_v57 = vmax.f32 %v5087_v44, 0.0  ;;  %v4915_v45 = vadd.f32 %v4909_v34, %v4897_v58  ;;  %v4916_v33 = vadd.f32 %v4909_v34, %v4898_v11 }
 0x42d   :  { %v5408_v63 = vpack.c.bf16 %v5040_v51, %v5039_v42  ;;  %v5094_v62 = vmax.f32 %v5088_v36, 0.0  ;;  %v5095_v47 = vmax.f32 %v5089_v38, 0.0  ;;  %v4917_v6 = vadd.f32 %v4909_v34, %v4899_v8 }
 0x42e   :  { %v5409_v7 = vpack.c.bf16 %v5042_v55, %v5041_v54  ;;  %v4918_v16 = vadd.f32 %v4909_v34, %v4900_v41  ;;  %v4923_v18 = vmax.f32 %v4915_v45, 0.0  ;;  %v4924_v20 = vmax.f32 %v4916_v33, 0.0 }
 0x42f   :  { %5071 = vst [vmem:[%s7123_s5 + $0x20] sm:$0xff] %v5408_v63  ;;  %v5412_v50 = vpack.c.bf16 %v5094_v62, %v5093_v57  ;;  %v5413_v53 = vpack.c.bf16 %v5095_v47, %v5095_v47  ;;  %v4925_v1 = vmax.f32 %v4917_v6, 0.0  ;;  %v4975_v40 = vadd.f32 %v7027_v46, %v4909_v34 }
 0x430   :  { %5072 = vst [vmem:[%s7123_s5 + $0x28] sm:$0xff] %v5409_v7  ;;  %v4926_v56 = vmax.f32 %v4918_v16, 0.0  ;;  %v5402_v58 = vpack.c.bf16 %v4924_v20, %v4923_v18  ;;  %v4976_v11 = vadd.f32 %v7030_v0, %v4909_v34  ;;  %v4977_v8 = vadd.f32 %v7033_v35, %v4909_v34 }
 0x431   :  { %5119 = vst [vmem:[%s7123_s5 + $0x30] sm:$0xff] %v5412_v50  ;;  %5120 = vst [vmem:[%s7123_s5 + $0x38] sm:$0xf] %v5413_v53  ;;  %v4978_v41 = vadd.f32 %v7036_v39, %v4909_v34  ;;  %v4983_v46 = vmax.f32 %v4975_v40, 0.0  ;;  %v5035_v60 = vadd.f32 %v7039_v43, %v4909_v34  ;;  %v5036_v26 = vadd.f32 %v7042_v59, %v4909_v34 }
 0x432   :  { %v5403_v52 = vpack.c.bf16 %v4926_v56, %v4925_v1  ;;  %4953 = vst [vmem:[%s7123_s5 + $0x3c] sm:$0xff] %v5402_v58  ;;  %v4984_v0 = vmax.f32 %v4976_v11, 0.0  ;;  %v4985_v35 = vmax.f32 %v4977_v8, 0.0  ;;  %v5037_v49 = vadd.f32 %v7045_v17, %v4909_v34 }
 0x433   :  { %v4986_v2 = vmax.f32 %v4978_v41, 0.0  ;;  %v5038_v21 = vadd.f32 %v7048_v5, %v4909_v34  ;;  %v5043_v14 = vmax.f32 %v5035_v60, 0.0  ;;  %v5044_v15 = vmax.f32 %v5036_v26, 0.0 }
 0x434   :  { %4954 = vst [vmem:[%s7123_s5 + $0x44] sm:$0xff] %v5403_v52  ;;  %v5406_v39 = vpack.c.bf16 %v4984_v0, %v4983_v46  ;;  %v5045_v43 = vmax.f32 %v5037_v49, 0.0  ;;  %v5090_v59 = vadd.f32 %v7051_v61, %v4909_v34  ;;  %v5091_v24 = vadd.f32 %v7054_v3, %v4909_v34 }
 0x435   :  { %v5407_v25 = vpack.c.bf16 %v4986_v2, %v4985_v35  ;;  %v5046_v19 = vmax.f32 %v5038_v21, 0.0  ;;  %v5410_v27 = vpack.c.bf16 %v5044_v15, %v5043_v14  ;;  %v5092_v17 = vadd.f32 %v7057_v22, %v4909_v34 }
 0x436   :  { %5013 = vst [vmem:[%s7123_s5 + $0x4c] sm:$0xff] %v5406_v39  ;;  %v5096_v5 = vmax.f32 %v5090_v59, 0.0  ;;  %v5097_v29 = vmax.f32 %v5091_v24, 0.0 }
 0x437   :  { %5014 = vst [vmem:[%s7123_s5 + $0x54] sm:$0xff] %v5407_v25  ;;  %v5411_v23 = vpack.c.bf16 %v5046_v19, %v5045_v43  ;;  %5073 = vst [vmem:[%s7123_s5 + $0x5c] sm:$0xff] %v5410_v27  ;;  %v5098_v61 = vmax.f32 %v5092_v17, 0.0 }
 0x438   :  { %v5414_v3 = vpack.c.bf16 %v5097_v29, %v5096_v5 }
 0x439   :  { %5074 = vst [vmem:[%s7123_s5 + $0x64] sm:$0xff] %v5411_v23  ;;  %v5415_v22 = vpack.c.bf16 %v5098_v61, %v5098_v61 }
 0x43a   :  { %5121 = vst [vmem:[%s7123_s5 + $0x6c] sm:$0xff] %v5414_v3 }
 0x43b   :  { %5122 = vst [vmem:[%s7123_s5 + $0x74] sm:$0xf] %v5415_v22 }

// kernel: network_forward.7
= control target key start
LH: loop header
LB: loop body
LE: loop exit
PB: predicated region body
PF: predicated region fallthrough
CT: control target
= control target key end

     0   :  { %v4779_v1 = vmov 0   ;;  %s4780_s22 = smov 127   ;;  %s4781_s29 = smov 126   ;;  %vm77_vm0 = vcmask 1039360   ;;  %vm86_vm1 = vcmask 130048   ;;  %vm353_vm2 = vcmask 1031168   ;;  %s5530_s0 = inlined_call_operand.vmem [shape: bf16[16,640], index: 0, kind: input, shape index: {}]   ;;  %s5531_s1 = inlined_call_operand.vmem [shape: bf16[25,24,16], index: 1, kind: input, shape index: {}]   ;;  %s5532_s4 = inlined_call_operand.vmem [shape: f32[1,512], index: 4, kind: input, shape index: {}]   ;;  %s5533_s2 = inlined_call_operand.vmem [shape: f32[24,1], index: 2, kind: input, shape index: {}]   ;;  %s5534_s3 = inlined_call_operand.vmem [shape: f32[24,1], index: 3, kind: input, shape index: {}]   ;;  %s5535_s5 = inlined_call_operand.vmem [shape: bf16[24,512], index: 5, kind: output, shape index: {}]  }
   0x1   :  { %v4837_v0 = vld [vmem:[%s5530_s0 + $0x4] ss:$20 sps:$4 sm:$0xff]   ;;  %125 = vmatprep.mubr.bf16.mxu0 %v4779_v1  ;;  %176 = vmatprep.mubr.bf16.mxu1 %v4779_v1  ;;  %v4844_v2 = vld [vmem:[%s5530_s0] ss:$20 sps:$4 sm:$0xff]   ;;  %v4852_v3 = vld [vmem:[%s5530_s0 + $0x8] ss:$20 sps:$4 sm:$0xff]  }
   0x2   :  { %4714 = vset.pattern.permute.xlu1 %v4779_v1  ;;  %4715 = vset.pattern.permute.xlu0 %v4779_v1  ;;  %v4858_v4 = vld [vmem:[%s5530_s0 + $0xc] ss:$20 sps:$4 sm:$0xff]   ;;  %v4864_v5 = vld [vmem:[%s5530_s0 + $0x10] ss:$20 sps:$4 sm:$0xff]   ;;  %s4782_s30 = smov 125   ;;  %s4783_s0 = smov 124  }
   0x3   :  { %69 = vrot.lane.b32.xlu0 %v4837_v0, %s4780_s22  ;;  %67 = vrot.lane.b32.xlu1 %v4844_v2, %s4780_s22  ;;  %s4784_s6 = smov 112   ;;  %s4785_s7 = smov 111   ;;  %v4723_v12 = vld [vmem:[%s5531_s1 + $0xc] sm:$0xff]   ;;  %v4724_v20 = vld [vmem:[%s5531_s1 + $0x14] ss:$0 sps:$4 sm:$0xff]   ;;  %vm504_vm3 = vcmask 1022976  }
   0x4   :  { %s4786_s8 = smov 110   ;;  %s4787_s9 = smov 109   ;;  %v4725_v26 = vld [vmem:[%s5531_s1] sm:$0xff]   ;;  %v4726_v34 = vld [vmem:[%s5531_s1 + $0x8] ss:$0 sps:$4 sm:$0xff]   ;;  %v4727_v38 = vld [vmem:[%s5531_s1 + $0x18] sm:$0xff]  }
   0x5   :  { %s4788_s10 = smov 108   ;;  %s4789_s11 = smov 96   ;;  %vm655_vm4 = vcmask 1014784   ;;  %v4728_v45 = vld [vmem:[%s5531_s1 + $0x20] ss:$0 sps:$4 sm:$0xff]   ;;  %v4729_v49 = vld [vmem:[%s5531_s1 + $0x24] sm:$0xff]  }
   0x6   :  { %s4790_s12 = smov 95   ;;  %s4791_s13 = smov 94   ;;  %vm806_vm5 = vcmask 916480   ;;  %v4730_v56 = vld [vmem:[%s5531_s1 + $0x2c] ss:$0 sps:$4 sm:$0xff]   ;;  %v4731_v60 = vld [vmem:[%s5531_s1 + $0x30] sm:$0xff]  }
   0x7   :  { %71 = vrot.lane.b32.xlu0 %v4852_v3, %s4780_s22  ;;  %73 = vrot.lane.b32.xlu1 %v4858_v4, %s4780_s22  ;;  %s4792_s16 = smov 93   ;;  %s4793_s19 = smov 92   ;;  %vm957_vm6 = vcmask 908288   ;;  %vm1108_vm7 = vcmask 900096   ;;  %vm1259_vm8 = vcmask 891904   ;;  %vm1410_vm9 = vcmask 883712  }
   0x8   :  { %s4795_s25 = smov 79   ;;  %s4800_s18 = smov 63   ;;  %vm1561_vm10 = vcmask 785408   ;;  %vm1712_vm11 = vcmask 777216   ;;  %vm1863_vm12 = vcmask 769024   ;;  %vm2014_vm13 = vcmask 760832  }
   0x9   :  { %s4801_s21 = smov 62   ;;  %s4802_s24 = smov 61   ;;  %vm2165_vm14 = vcmask 752640   ;;  %vm2316_vm15 = vcmask 654336  }
   0xb   :  { %75 = vrot.lane.b32.xlu0 %v4864_v5, %s4780_s22  ;;  %345 = vrot.lane.b32.xlu1 %v4837_v0, %s4781_s29  ;;  %s4794_s22 = smov 80  }
   0xf   :  { %347 = vrot.lane.b32.xlu0 %v4852_v3, %s4781_s29  ;;  %343 = vrot.lane.b32.xlu1 %v4844_v2, %s4781_s29 }
  0x13   :  { %349 = vrot.lane.b32.xlu0 %v4858_v4, %s4781_s29  ;;  %351 = vrot.lane.b32.xlu1 %v4864_v5, %s4781_s29  ;;  %s4803_s29 = smov 60  }
  0x17   :  { %496 = vrot.lane.b32.xlu0 %v4837_v0, %s4782_s30  ;;  %498 = vrot.lane.b32.xlu1 %v4852_v3, %s4782_s30 }
  0x1b   :  { %494 = vrot.lane.b32.xlu0 %v4844_v2, %s4782_s30  ;;  %500 = vrot.lane.b32.xlu1 %v4858_v4, %s4782_s30 }
  0x1f   :  { %502 = vrot.lane.b32.xlu0 %v4864_v5, %s4782_s30  ;;  %647 = vrot.lane.b32.xlu1 %v4837_v0, %s4783_s0  ;;  %s4796_s30 = smov 78  }
  0x23   :  { %649 = vrot.lane.b32.xlu0 %v4852_v3, %s4783_s0  ;;  %645 = vrot.lane.b32.xlu1 %v4844_v2, %s4783_s0 }
  0x27   :  { %651 = vrot.lane.b32.xlu0 %v4858_v4, %s4783_s0  ;;  %653 = vrot.lane.b32.xlu1 %v4864_v5, %s4783_s0 }
  0x2b   :  { %798 = vrot.lane.b32.xlu0 %v4837_v0, %s4784_s6  ;;  %800 = vrot.lane.b32.xlu1 %v4852_v3, %s4784_s6 }
  0x2f   :  { %796 = vrot.lane.b32.xlu0 %v4844_v2, %s4784_s6  ;;  %802 = vrot.lane.b32.xlu1 %v4858_v4, %s4784_s6 }
  0x33   :  { %804 = vrot.lane.b32.xlu0 %v4864_v5, %s4784_s6  ;;  %949 = vrot.lane.b32.xlu1 %v4837_v0, %s4785_s7 }
  0x37   :  { %951 = vrot.lane.b32.xlu0 %v4852_v3, %s4785_s7  ;;  %947 = vrot.lane.b32.xlu1 %v4844_v2, %s4785_s7 }
  0x3b   :  { %953 = vrot.lane.b32.xlu0 %v4858_v4, %s4785_s7  ;;  %955 = vrot.lane.b32.xlu1 %v4864_v5, %s4785_s7  ;;  %s4797_s7 = smov 77  }
  0x3f   :  { %1100 = vrot.lane.b32.xlu0 %v4837_v0, %s4786_s8  ;;  %1102 = vrot.lane.b32.xlu1 %v4852_v3, %s4786_s8 }
  0x43   :  { %1098 = vrot.lane.b32.xlu0 %v4844_v2, %s4786_s8  ;;  %1104 = vrot.lane.b32.xlu1 %v4858_v4, %s4786_s8 }
  0x47   :  { %1106 = vrot.lane.b32.xlu0 %v4864_v5, %s4786_s8  ;;  %1251 = vrot.lane.b32.xlu1 %v4837_v0, %s4787_s9 }
  0x4b   :  { %1253 = vrot.lane.b32.xlu0 %v4852_v3, %s4787_s9  ;;  %1249 = vrot.lane.b32.xlu1 %v4844_v2, %s4787_s9 }
  0x4f   :  { %1255 = vrot.lane.b32.xlu0 %v4858_v4, %s4787_s9  ;;  %1257 = vrot.lane.b32.xlu1 %v4864_v5, %s4787_s9 }
  0x53   :  { %1402 = vrot.lane.b32.xlu0 %v4837_v0, %s4788_s10  ;;  %1404 = vrot.lane.b32.xlu1 %v4852_v3, %s4788_s10 }
  0x57   :  { %1400 = vrot.lane.b32.xlu0 %v4844_v2, %s4788_s10  ;;  %1406 = vrot.lane.b32.xlu1 %v4858_v4, %s4788_s10 }
  0x5b   :  { %1408 = vrot.lane.b32.xlu0 %v4864_v5, %s4788_s10  ;;  %1553 = vrot.lane.b32.xlu1 %v4837_v0, %s4789_s11  ;;  %s4798_s10 = smov 76  }
  0x5f   :  { %1555 = vrot.lane.b32.xlu0 %v4852_v3, %s4789_s11  ;;  %1551 = vrot.lane.b32.xlu1 %v4844_v2, %s4789_s11 }
  0x63   :  { %1557 = vrot.lane.b32.xlu0 %v4858_v4, %s4789_s11  ;;  %1559 = vrot.lane.b32.xlu1 %v4864_v5, %s4789_s11 }
  0x67   :  { %1704 = vrot.lane.b32.xlu0 %v4837_v0, %s4790_s12  ;;  %1706 = vrot.lane.b32.xlu1 %v4852_v3, %s4790_s12 }
  0x6b   :  { %1702 = vrot.lane.b32.xlu0 %v4844_v2, %s4790_s12  ;;  %1708 = vrot.lane.b32.xlu1 %v4858_v4, %s4790_s12 }
  0x6f   :  { %1710 = vrot.lane.b32.xlu0 %v4864_v5, %s4790_s12  ;;  %1855 = vrot.lane.b32.xlu1 %v4837_v0, %s4791_s13 }
  0x73   :  { %1857 = vrot.lane.b32.xlu0 %v4852_v3, %s4791_s13  ;;  %1853 = vrot.lane.b32.xlu1 %v4844_v2, %s4791_s13 }
  0x75   :  { %v70_v6 = vpop.permute.xlu0 %69  ;;  %v68_v7 = vpop.permute.xlu1 %67 }
  0x76   :  { %v78_v11 = vsel %vm77_vm0, %v68_v7, %v70_v6 }
  0x77   :  { %1859 = vrot.lane.b32.xlu0 %v4858_v4, %s4791_s13  ;;  %1861 = vrot.lane.b32.xlu1 %v4864_v5, %s4791_s13  ;;  %s4799_s13 = smov 64  }
  0x79   :  { %v72_v8 = vpop.permute.xlu0 %71  ;;  %v74_v9 = vpop.permute.xlu1 %73 }
  0x7a   :  { %v79_v10 = vsel %vm77_vm0, %v70_v6, %v72_v8  ;;  %v80_v16 = vsel %vm77_vm0, %v72_v8, %v74_v9 }
  0x7b   :  { %93 = vmatprep.subr.bf16.mxu0 %v79_v10  ;;  %2006 = vrot.lane.b32.xlu0 %v4837_v0, %s4792_s16 }
  0x7c   :  { %94 = vmatpush1.bf16.msra.mxu0 %v78_v11  ;;  %2008 = vrot.lane.b32.xlu1 %v4852_v3, %s4792_s16 }
  0x7d   :  { %v76_v13 = vpop.permute.xlu0 %75  ;;  %229 = vmatprep.subr.bf16.mxu0 %v4837_v0  ;;  %v346_v15 = vpop.permute.xlu1 %345 }
  0x7e   :  { %v81_v14 = vsel %vm77_vm0, %v74_v9, %v76_v13  ;;  %v4732_v9 = vld [vmem:[%s5531_s1 + $0x38] ss:$0 sps:$4 sm:$0xff]   ;;  %v4733_v13 = vld [vmem:[%s5531_s1 + $0x3c] sm:$0xff]   ;;  %vm2467_vm0 = vcmask 646144  }
  0x7f   :  { %4072 = vmatmul.mubr.msk.bf16.vlgmr.msra.gmra.mrb[0].mxu0 %vm86_vm1, %v4723_v12  ;;  %144 = vmatprep.subr.bf16.mxu1 %v81_v14 }
  0x80   :  { %145 = vmatpush1.bf16.msra.mxu1 %v80_v16  ;;  %230 = vmatpush1.bf16.msra.mxu0 %v4844_v2 }
  0x81   :  { %280 = vmatprep.subr.bf16.mxu1 %v4858_v4  ;;  %135 = vmatprep.mubr.bf16.mxu0 %v4779_v1  ;;  %v348_v17 = vpop.permute.xlu0 %347  ;;  %v344_v18 = vpop.permute.xlu1 %343 }
  0x82   :  { %v355_v19 = vsel %vm353_vm2, %v346_v15, %v348_v17  ;;  %2004 = vrot.lane.b32.xlu0 %v4844_v2, %s4792_s16  ;;  %2010 = vrot.lane.b32.xlu1 %v4858_v4, %s4792_s16  ;;  %v354_v27 = vsel %vm353_vm2, %v344_v18, %v346_v15 }
  0x83   :  { %4074 = vmatmul.mubr.msk.bf16.vlgmr.msra.gmra.mrb[0].mxu1 %vm86_vm1, %v4723_v12  ;;  %368 = vmatprep.subr.bf16.mxu0 %v355_v19 }
  0x84   :  { %281 = vmatpush1.bf16.msra.mxu1 %v4852_v3  ;;  %186 = vmatprep.mubr.bf16.mxu1 %v4779_v1 }
  0x85   :  { %v350_v21 = vpop.permute.xlu0 %349  ;;  %v352_v22 = vpop.permute.xlu1 %351 }
  0x86   :  { %2012 = vrot.lane.b32.xlu0 %v4864_v5, %s4792_s16  ;;  %2157 = vrot.lane.b32.xlu1 %v4837_v0, %s4793_s19  ;;  %v357_v23 = vsel %vm353_vm2, %v350_v21, %v352_v22  ;;  %v356_v31 = vsel %vm353_vm2, %v348_v17, %v350_v21  ;;  %vm2618_vm2 = vcmask 637952  }
  0x87   :  { %4073 = vmatmul.mubr.msk.bf16.gmra.mrb[4].mxu0 %vm86_vm1, %v4724_v20  ;;  %419 = vmatprep.subr.bf16.mxu1 %v357_v23 }
  0x88   :  { %261 = vmatprep.mubr.bf16.mxu0 %v4779_v1 }
  0x89   :  { %v497_v24 = vpop.permute.xlu0 %496  ;;  %v499_v25 = vpop.permute.xlu1 %498 }
  0x8a   :  { %2159 = vrot.lane.b32.xlu0 %v4852_v3, %s4793_s19  ;;  %2155 = vrot.lane.b32.xlu1 %v4844_v2, %s4793_s19  ;;  %v506_v29 = vsel %vm504_vm3, %v497_v24, %v499_v25 }
  0x8b   :  { %4075 = vmatmul.mubr.msk.bf16.gmra.mrb[4].mxu1 %vm86_vm1, %v4724_v20  ;;  %v4734_v20 = vld [vmem:[%s5531_s1 + $0x44] ss:$0 sps:$4 sm:$0xff]  }
  0x8c   :  { %312 = vmatprep.mubr.bf16.mxu1 %v4779_v1 }
  0x8d   :  { %v495_v28 = vpop.permute.xlu0 %494  ;;  %v501_v30 = vpop.permute.xlu1 %500 }
  0x8e   :  { %2161 = vrot.lane.b32.xlu0 %v4858_v4, %s4793_s19  ;;  %2163 = vrot.lane.b32.xlu1 %v4864_v5, %s4793_s19  ;;  %v505_v39 = vsel %vm504_vm3, %v495_v28, %v497_v24  ;;  %v507_v43 = vsel %vm504_vm3, %v499_v25, %v501_v30  ;;  %v4735_v24 = vld [vmem:[%s5531_s1 + $0x48] sm:$0xff]  }
  0x8f   :  { %4082 = vmatmul.mubr.msk.bf16.vlgmr.msra.gmra.mrb[0].mxu0 %vm86_vm1, %v4725_v26 }
  0x90   :  { %369 = vmatpush1.bf16.msra.mxu0 %v354_v27  ;;  %271 = vmatprep.mubr.bf16.mxu0 %v4779_v1 }
  0x91   :  { %519 = vmatprep.subr.bf16.mxu0 %v506_v29  ;;  %v503_v32 = vpop.permute.xlu0 %502  ;;  %v648_v35 = vpop.permute.xlu1 %647 }
  0x92   :  { %v508_v33 = vsel %vm504_vm3, %v501_v30, %v503_v32  ;;  %2308 = vrot.lane.b32.xlu0 %v4837_v0, %s4794_s22  ;;  %2310 = vrot.lane.b32.xlu1 %v4852_v3, %s4794_s22  ;;  %vm2769_vm3 = vcmask 629760  }
  0x93   :  { %4084 = vmatmul.mubr.msk.bf16.vlgmr.msra.gmra.mrb[0].mxu1 %vm86_vm1, %v4725_v26 }
  0x94   :  { %420 = vmatpush1.bf16.msra.mxu1 %v356_v31  ;;  %322 = vmatprep.mubr.bf16.mxu1 %v4779_v1  ;;  %v4736_v31 = vld [vmem:[%s5531_s1 + $0x50] ss:$0 sps:$4 sm:$0xff]  }
  0x95   :  { %570 = vmatprep.subr.bf16.mxu1 %v508_v33  ;;  %v650_v36 = vpop.permute.xlu0 %649  ;;  %v646_v37 = vpop.permute.xlu1 %645 }
  0x96   :  { %2306 = vrot.lane.b32.xlu0 %v4844_v2, %s4794_s22  ;;  %2312 = vrot.lane.b32.xlu1 %v4858_v4, %s4794_s22  ;;  %v657_v40 = vsel %vm655_vm4, %v648_v35, %v650_v36  ;;  %v656_v50 = vsel %vm655_vm4, %v646_v37, %v648_v35  ;;  %v4737_v35 = vld [vmem:[%s5531_s1 + $0x54] sm:$0xff]  }
  0x97   :  { %4083 = vmatmul.mubr.msk.bf16.gmra.mrb[4].mxu0 %vm86_vm1, %v4726_v34 }
  0x98   :  { %400 = vmatprep.mubr.bf16.mxu0 %v4779_v1 }
  0x99   :  { %v652_v41 = vpop.permute.xlu0 %651  ;;  %v654_v42 = vpop.permute.xlu1 %653 }
  0x9a   :  { %2314 = vrot.lane.b32.xlu0 %v4864_v5, %s4794_s22  ;;  %2459 = vrot.lane.b32.xlu1 %v4837_v0, %s4795_s25  ;;  %v659_v44 = vsel %vm655_vm4, %v652_v41, %v654_v42  ;;  %v658_v54 = vsel %vm655_vm4, %v650_v36, %v652_v41  ;;  %v4738_v42 = vld [vmem:[%s5531_s1 + $0x5c] ss:$0 sps:$4 sm:$0xff]   ;;  %vm2920_vm4 = vcmask 621568  }
  0x9b   :  { %4085 = vmatmul.mubr.msk.bf16.gmra.mrb[4].mxu1 %vm86_vm1, %v4726_v34 }
  0x9c   :  { %451 = vmatprep.mubr.bf16.mxu1 %v4779_v1 }
  0x9d   :  { %v799_v46 = vpop.permute.xlu0 %798  ;;  %v801_v48 = vpop.permute.xlu1 %800 }
  0x9e   :  { %2461 = vrot.lane.b32.xlu0 %v4852_v3, %s4795_s25  ;;  %2457 = vrot.lane.b32.xlu1 %v4844_v2, %s4795_s25  ;;  %v808_v51 = vsel %vm806_vm5, %v799_v46, %v801_v48 }
  0x9f   :  { %4091 = vmatmul.mubr.msk.bf16.vlgmr.msra.gmra.mrb[0].mxu0 %vm86_vm1, %v4727_v38 }
  0xa0   :  { %520 = vmatpush1.bf16.msra.mxu0 %v505_v39  ;;  %410 = vmatprep.mubr.bf16.mxu0 %v4779_v1 }
  0xa1   :  { %670 = vmatprep.subr.bf16.mxu0 %v657_v40  ;;  %v797_v47 = vpop.permute.xlu0 %796  ;;  %v803_v52 = vpop.permute.xlu1 %802 }
  0xa2   :  { %2463 = vrot.lane.b32.xlu0 %v4858_v4, %s4795_s25  ;;  %2465 = vrot.lane.b32.xlu1 %v4864_v5, %s4795_s25  ;;  %v807_v61 = vsel %vm806_vm5, %v797_v47, %v799_v46  ;;  %v809_v7 = vsel %vm806_vm5, %v801_v48, %v803_v52  ;;  %v4740_v48 = vld [vmem:[%s5531_s1 + $0x68] ss:$0 sps:$4 sm:$0xff]  }
  0xa3   :  { %4093 = vmatmul.mubr.msk.bf16.vlgmr.msra.gmra.mrb[0].mxu1 %vm86_vm1, %v4727_v38 }
  0xa4   :  { %571 = vmatpush1.bf16.msra.mxu1 %v507_v43  ;;  %461 = vmatprep.mubr.bf16.mxu1 %v4779_v1 }
  0xa5   :  { %721 = vmatprep.subr.bf16.mxu1 %v659_v44  ;;  %v805_v53 = vpop.permute.xlu0 %804  ;;  %v950_v57 = vpop.permute.xlu1 %949  ;;  %v4739_v44 = vld [vmem:[%s5531_s1 + $0x60] sm:$0xff]  }
  0xa6   :  { %2610 = vrot.lane.b32.xlu0 %v4837_v0, %s4796_s30  ;;  %2612 = vrot.lane.b32.xlu1 %v4852_v3, %s4796_s30  ;;  %v810_v55 = vsel %vm806_vm5, %v803_v52, %v805_v53  ;;  %v4741_v52 = vld [vmem:[%s5531_s1 + $0x6c] sm:$0xff]   ;;  %vm3071_vm5 = vcmask 523264  }
  0xa7   :  { %4092 = vmatmul.mubr.msk.bf16.gmra.mrb[4].mxu0 %vm86_vm1, %v4728_v45 }
  0xa8   :  { %551 = vmatprep.mubr.bf16.mxu0 %v4779_v1 }
  0xa9   :  { %v952_v58 = vpop.permute.xlu0 %951  ;;  %v948_v59 = vpop.permute.xlu1 %947 }
  0xaa   :  { %2608 = vrot.lane.b32.xlu0 %v4844_v2, %s4796_s30  ;;  %2614 = vrot.lane.b32.xlu1 %v4858_v4, %s4796_s30  ;;  %v959_v62 = vsel %vm957_vm6, %v950_v57, %v952_v58  ;;  %v958_v14 = vsel %vm957_vm6, %v948_v59, %v950_v57  ;;  %v4742_v59 = vld [vmem:[%s5531_s1 + $0x74] ss:$0 sps:$4 sm:$0xff]  }
  0xab   :  { %4094 = vmatmul.mubr.msk.bf16.gmra.mrb[4].mxu1 %vm86_vm1, %v4728_v45 }
  0xac   :  { %602 = vmatprep.mubr.bf16.mxu1 %v4779_v1 }
  0xad   :  { %v954_v63 = vpop.permute.xlu0 %953  ;;  %v956_v6 = vpop.permute.xlu1 %955 }
  0xae   :  { %2616 = vrot.lane.b32.xlu0 %v4864_v5, %s4796_s30  ;;  %2761 = vrot.lane.b32.xlu1 %v4837_v0, %s4797_s7  ;;  %v961_v8 = vsel %vm957_vm6, %v954_v63, %v956_v6  ;;  %v960_v18 = vsel %vm957_vm6, %v952_v58, %v954_v63  ;;  %v4743_v63 = vld [vmem:[%s5531_s1 + $0x78] sm:$0xff]   ;;  %vm3222_vm6 = vcmask 515072  }
  0xaf   :  { %4100 = vmatmul.mubr.msk.bf16.vlgmr.msra.gmra.mrb[0].mxu0 %vm86_vm1, %v4729_v49 }
  0xb0   :  { %671 = vmatpush1.bf16.msra.mxu0 %v656_v50  ;;  %561 = vmatprep.mubr.bf16.mxu0 %v4779_v1 }
  0xb1   :  { %821 = vmatprep.subr.bf16.mxu0 %v808_v51  ;;  %v1101_v10 = vpop.permute.xlu0 %1100  ;;  %v1103_v12 = vpop.permute.xlu1 %1102 }
  0xb2   :  { %2763 = vrot.lane.b32.xlu0 %v4852_v3, %s4797_s7  ;;  %2759 = vrot.lane.b32.xlu1 %v4844_v2, %s4797_s7  ;;  %v1110_v15 = vsel %vm1108_vm7, %v1101_v10, %v1103_v12 }
  0xb3   :  { %4102 = vmatmul.mubr.msk.bf16.vlgmr.msra.gmra.mrb[0].mxu1 %vm86_vm1, %v4729_v49 }
  0xb4   :  { %722 = vmatpush1.bf16.msra.mxu1 %v658_v54  ;;  %612 = vmatprep.mubr.bf16.mxu1 %v4779_v1 }
  0xb5   :  { %872 = vmatprep.subr.bf16.mxu1 %v810_v55  ;;  %v1099_v11 = vpop.permute.xlu0 %1098  ;;  %v1105_v16 = vpop.permute.xlu1 %1104 }
  0xb6   :  { %2765 = vrot.lane.b32.xlu0 %v4858_v4, %s4797_s7  ;;  %2767 = vrot.lane.b32.xlu1 %v4864_v5, %s4797_s7  ;;  %v1109_v25 = vsel %vm1108_vm7, %v1099_v11, %v1101_v10  ;;  %v1111_v29 = vsel %vm1108_vm7, %v1103_v12, %v1105_v16  ;;  %v4744_v12 = vld [vmem:[%s5531_s1 + $0x80] ss:$0 sps:$4 sm:$0xff]  }
  0xb7   :  { %4101 = vmatmul.mubr.msk.bf16.gmra.mrb[4].mxu0 %vm86_vm1, %v4730_v56 }
  0xb8   :  { %702 = vmatprep.mubr.bf16.mxu0 %v4779_v1 }
  0xb9   :  { %v1107_v17 = vpop.permute.xlu0 %1106  ;;  %v1252_v21 = vpop.permute.xlu1 %1251 }
  0xba   :  { %2912 = vrot.lane.b32.xlu0 %v4837_v0, %s4798_s10  ;;  %2914 = vrot.lane.b32.xlu1 %v4852_v3, %s4798_s10  ;;  %v1112_v19 = vsel %vm1108_vm7, %v1105_v16, %v1107_v17  ;;  %v4745_v16 = vld [vmem:[%s5531_s1 + $0x84] sm:$0xff]   ;;  %vm3373_vm7 = vcmask 506880  }
  0xbb   :  { %4103 = vmatmul.mubr.msk.bf16.gmra.mrb[4].mxu1 %vm86_vm1, %v4730_v56 }
  0xbc   :  { %753 = vmatprep.mubr.bf16.mxu1 %v4779_v1 }
  0xbd   :  { %v1254_v22 = vpop.permute.xlu0 %1253  ;;  %v1250_v23 = vpop.permute.xlu1 %1249 }
  0xbe   :  { %2910 = vrot.lane.b32.xlu0 %v4844_v2, %s4798_s10  ;;  %2916 = vrot.lane.b32.xlu1 %v4858_v4, %s4798_s10  ;;  %v1261_v26 = vsel %vm1259_vm8, %v1252_v21, %v1254_v22  ;;  %v1260_v36 = vsel %vm1259_vm8, %v1250_v23, %v1252_v21  ;;  %v4746_v23 = vld [vmem:[%s5531_s1 + $0x8c] ss:$0 sps:$4 sm:$0xff]  }
  0xbf   :  { %4109 = vmatmul.mubr.msk.bf16.vlgmr.msra.gmra.mrb[0].mxu0 %vm86_vm1, %v4731_v60 }
  0xc0   :  { %822 = vmatpush1.bf16.msra.mxu0 %v807_v61  ;;  %712 = vmatprep.mubr.bf16.mxu0 %v4779_v1 }
  0xc1   :  { %972 = vmatprep.subr.bf16.mxu0 %v959_v62  ;;  %v1256_v27 = vpop.permute.xlu0 %1255  ;;  %v1258_v28 = vpop.permute.xlu1 %1257 }
  0xc2   :  { %2918 = vrot.lane.b32.xlu0 %v4864_v5, %s4798_s10  ;;  %3063 = vrot.lane.b32.xlu1 %v4837_v0, %s4799_s13  ;;  %v1263_v30 = vsel %vm1259_vm8, %v1256_v27, %v1258_v28  ;;  %v1262_v40 = vsel %vm1259_vm8, %v1254_v22, %v1256_v27  ;;  %v4747_v27 = vld [vmem:[%s5531_s1 + $0x90] sm:$0xff]   ;;  %vm3524_vm8 = vcmask 498688  }
  0xc3   :  { %4111 = vmatmul.mubr.msk.bf16.vlgmr.msra.gmra.mrb[0].mxu1 %vm86_vm1, %v4731_v60 }
  0xc4   :  { %873 = vmatpush1.bf16.msra.mxu1 %v809_v7  ;;  %763 = vmatprep.mubr.bf16.mxu1 %v4779_v1 }
  0xc5   :  { %1023 = vmatprep.subr.bf16.mxu1 %v961_v8  ;;  %v1403_v32 = vpop.permute.xlu0 %1402  ;;  %v1405_v34 = vpop.permute.xlu1 %1404 }
  0xc6   :  { %3065 = vrot.lane.b32.xlu0 %v4852_v3, %s4799_s13  ;;  %3061 = vrot.lane.b32.xlu1 %v4844_v2, %s4799_s13  ;;  %v1412_v37 = vsel %vm1410_vm9, %v1403_v32, %v1405_v34 }
  0xc7   :  { %4110 = vmatmul.mubr.msk.bf16.gmra.mrb[4].mxu0 %vm86_vm1, %v4732_v9 }
  0xc8   :  { %853 = vmatprep.mubr.bf16.mxu0 %v4779_v1 }
  0xc9   :  { %v1401_v33 = vpop.permute.xlu0 %1400  ;;  %v1407_v38 = vpop.permute.xlu1 %1406 }
  0xca   :  { %3067 = vrot.lane.b32.xlu0 %v4858_v4, %s4799_s13  ;;  %3069 = vrot.lane.b32.xlu1 %v4864_v5, %s4799_s13 }
  0xcb   :  { %4112 = vmatmul.mubr.msk.bf16.gmra.mrb[4].mxu1 %vm86_vm1, %v4732_v9 }
  0xcc   :  { %904 = vmatprep.mubr.bf16.mxu1 %v4779_v1 }
  0xcd   :  { %v1409_v39 = vpop.permute.xlu0 %1408  ;;  %v1554_v43 = vpop.permute.xlu1 %1553 }
  0xce   :  { %3214 = vrot.lane.b32.xlu0 %v4837_v0, %s4800_s18  ;;  %3216 = vrot.lane.b32.xlu1 %v4852_v3, %s4800_s18  ;;  %v1414_v41 = vsel %vm1410_vm9, %v1407_v38, %v1409_v39 }
  0xcf   :  { %4118 = vmatmul.mubr.msk.bf16.vlgmr.msra.gmra.mrb[0].mxu0 %vm86_vm1, %v4733_v13 }
  0xd0   :  { %973 = vmatpush1.bf16.msra.mxu0 %v958_v14  ;;  %863 = vmatprep.mubr.bf16.mxu0 %v4779_v1 }
  0xd1   :  { %1123 = vmatprep.subr.bf16.mxu0 %v1110_v15 }
  0xd2   :  { %3212 = vrot.lane.b32.xlu0 %v4844_v2, %s4800_s18  ;;  %3218 = vrot.lane.b32.xlu1 %v4858_v4, %s4800_s18 }
  0xd3   :  { %4120 = vmatmul.mubr.msk.bf16.vlgmr.msra.gmra.mrb[0].mxu1 %vm86_vm1, %v4733_v13 }
  0xd4   :  { %1024 = vmatpush1.bf16.msra.mxu1 %v960_v18  ;;  %914 = vmatprep.mubr.bf16.mxu1 %v4779_v1 }
  0xd5   :  { %1174 = vmatprep.subr.bf16.mxu1 %v1112_v19 }
  0xd6   :  { %3220 = vrot.lane.b32.xlu0 %v4864_v5, %s4800_s18  ;;  %3365 = vrot.lane.b32.xlu1 %v4837_v0, %s4801_s21 }
  0xd7   :  { %4119 = vmatmul.mubr.msk.bf16.gmra.mrb[4].mxu0 %vm86_vm1, %v4734_v20 }
  0xd8   :  { %1004 = vmatprep.mubr.bf16.mxu0 %v4779_v1 }
  0xda   :  { %3367 = vrot.lane.b32.xlu0 %v4852_v3, %s4801_s21  ;;  %3363 = vrot.lane.b32.xlu1 %v4844_v2, %s4801_s21 }
  0xdb   :  { %4121 = vmatmul.mubr.msk.bf16.gmra.mrb[4].mxu1 %vm86_vm1, %v4734_v20 }
  0xdc   :  { %1055 = vmatprep.mubr.bf16.mxu1 %v4779_v1 }
  0xde   :  { %3369 = vrot.lane.b32.xlu0 %v4858_v4, %s4801_s21  ;;  %3371 = vrot.lane.b32.xlu1 %v4864_v5, %s4801_s21 }
  0xdf   :  { %4127 = vmatmul.mubr.msk.bf16.vlgmr.msra.gmra.mrb[0].mxu0 %vm86_vm1, %v4735_v24 }
  0xe0   :  { %1124 = vmatpush1.bf16.msra.mxu0 %v1109_v25  ;;  %1014 = vmatprep.mubr.bf16.mxu0 %v4779_v1 }
  0xe1   :  { %1274 = vmatprep.subr.bf16.mxu0 %v1261_v26 }
  0xe2   :  { %3516 = vrot.lane.b32.xlu0 %v4837_v0, %s4802_s24  ;;  %3518 = vrot.lane.b32.xlu1 %v4852_v3, %s4802_s24 }
  0xe3   :  { %4129 = vmatmul.mubr.msk.bf16.vlgmr.msra.gmra.mrb[0].mxu1 %vm86_vm1, %v4735_v24 }
  0xe4   :  { %1175 = vmatpush1.bf16.msra.mxu1 %v1111_v29  ;;  %1065 = vmatprep.mubr.bf16.mxu1 %v4779_v1 }
  0xe5   :  { %1325 = vmatprep.subr.bf16.mxu1 %v1263_v30 }
  0xe6   :  { %3514 = vrot.lane.b32.xlu0 %v4844_v2, %s4802_s24  ;;  %3520 = vrot.lane.b32.xlu1 %v4858_v4, %s4802_s24 }
  0xe7   :  { %4128 = vmatmul.mubr.msk.bf16.gmra.mrb[4].mxu0 %vm86_vm1, %v4736_v31 }
  0xe8   :  { %1155 = vmatprep.mubr.bf16.mxu0 %v4779_v1 }
  0xea   :  { %3522 = vrot.lane.b32.xlu0 %v4864_v5, %s4802_s24  ;;  %3667 = vrot.lane.b32.xlu1 %v4837_v0, %s4803_s29  ;;  %v1556_v0 = vpop.permute.xlu0 %1555 }
  0xeb   :  { %4130 = vmatmul.mubr.msk.bf16.gmra.mrb[4].mxu1 %vm86_vm1, %v4736_v31 }
  0xec   :  { %1206 = vmatprep.mubr.bf16.mxu1 %v4779_v1 }
  0xee   :  { %3669 = vrot.lane.b32.xlu0 %v4852_v3, %s4803_s29  ;;  %3665 = vrot.lane.b32.xlu1 %v4844_v2, %s4803_s29  ;;  %v1552_v3 = vpop.permute.xlu1 %1551  ;;  %v1411_v2 = vsel %vm1410_vm9, %v1401_v33, %v1403_v32  ;;  %v1558_v45 = vpop.permute.xlu0 %1557 }
  0xef   :  { %4136 = vmatmul.mubr.msk.bf16.vlgmr.msra.gmra.mrb[0].mxu0 %vm86_vm1, %v4737_v35  ;;  %v1562_v53 = vsel %vm1561_vm10, %v1552_v3, %v1554_v43  ;;  %v1564_v57 = vsel %vm1561_vm10, %v1556_v0, %v1558_v45  ;;  %v4750_v3 = vld [vmem:[%s5531_s1 + $0xa4] ss:$0 sps:$4 sm:$0xff]  }
  0xf0   :  { %1275 = vmatpush1.bf16.msra.mxu0 %v1260_v36  ;;  %1165 = vmatprep.mubr.bf16.mxu0 %v4779_v1 }
  0xf1   :  { %1425 = vmatprep.subr.bf16.mxu0 %v1412_v37 }
  0xf2   :  { %3671 = vrot.lane.b32.xlu0 %v4858_v4, %s4803_s29  ;;  %3673 = vrot.lane.b32.xlu1 %v4864_v5, %s4803_s29  ;;  %v1563_v4 = vsel %vm1561_vm10, %v1554_v43, %v1556_v0  ;;  %v1560_v46 = vpop.permute.xlu1 %1559  ;;  %v1413_v5 = vsel %vm1410_vm9, %v1405_v34, %v1407_v38  ;;  %v1705_v49 = vpop.permute.xlu0 %1704  ;;  %v4748_v34 = vld [vmem:[%s5531_s1 + $0x98] ss:$0 sps:$4 sm:$0xff]   ;;  %v4749_v38 = vld [vmem:[%s5531_s1 + $0x9c] sm:$0xff]   ;;  %vm3675_vm9 = vcmask 490496  }
  0xf3   :  { %4138 = vmatmul.mubr.msk.bf16.vlgmr.msra.gmra.mrb[0].mxu1 %vm86_vm1, %v4737_v35  ;;  %v1565_v47 = vsel %vm1561_vm10, %v1558_v45, %v1560_v46  ;;  %v4751_v45 = vld [vmem:[%s5531_s1 + $0xa8] sm:$0xff]  }
  0xf4   :  { %1326 = vmatpush1.bf16.msra.mxu1 %v1262_v40  ;;  %1216 = vmatprep.mubr.bf16.mxu1 %v4779_v1 }
  0xf5   :  { %1476 = vmatprep.subr.bf16.mxu1 %v1414_v41 }
  0xf6   :  { %v1703_v50 = vpop.permute.xlu0 %1702  ;;  %v1707_v51 = vpop.permute.xlu1 %1706 }
  0xf7   :  { %4137 = vmatmul.mubr.msk.bf16.gmra.mrb[4].mxu0 %vm86_vm1, %v4738_v42  ;;  %v1714_v54 = vsel %vm1712_vm11, %v1705_v49, %v1707_v51  ;;  %v1713_v6 = vsel %vm1712_vm11, %v1703_v50, %v1705_v49 }
  0xf8   :  { %1306 = vmatprep.mubr.bf16.mxu0 %v4779_v1 }
  0xfa   :  { %v1709_v55 = vpop.permute.xlu1 %1708  ;;  %v1711_v56 = vpop.permute.xlu0 %1710 }
  0xfb   :  { %4139 = vmatmul.mubr.msk.bf16.gmra.mrb[4].mxu1 %vm86_vm1, %v4738_v42  ;;  %v1716_v58 = vsel %vm1712_vm11, %v1709_v55, %v1711_v56  ;;  %v1715_v10 = vsel %vm1712_vm11, %v1707_v51, %v1709_v55  ;;  %v4752_v51 = vld [vmem:[%s5531_s1 + $0xb0] ss:$0 sps:$4 sm:$0xff]   ;;  %v4753_v55 = vld [vmem:[%s5531_s1 + $0xb4] sm:$0xff]  }
  0xfc   :  { %1357 = vmatprep.mubr.bf16.mxu1 %v4779_v1 }
  0xfe   :  { %v1856_v60 = vpop.permute.xlu1 %1855  ;;  %v1858_v61 = vpop.permute.xlu0 %1857 }
  0xff   :  { %4145 = vmatmul.mubr.msk.bf16.vlgmr.msra.gmra.mrb[0].mxu0 %vm86_vm1, %v4739_v44  ;;  %v1865_v7 = vsel %vm1863_vm12, %v1856_v60, %v1858_v61 }
 0x100   :  { %1426 = vmatpush1.bf16.msra.mxu0 %v1411_v2  ;;  %1316 = vmatprep.mubr.bf16.mxu0 %v4779_v1 }
 0x101   :  { %1576 = vmatprep.subr.bf16.mxu0 %v1563_v4 }
 0x102   :  { %v1854_v62 = vpop.permute.xlu1 %1853  ;;  %v1860_v8 = vpop.permute.xlu0 %1859 }
 0x103   :  { %4147 = vmatmul.mubr.msk.bf16.vlgmr.msra.gmra.mrb[0].mxu1 %vm86_vm1, %v4739_v44  ;;  %v1864_v17 = vsel %vm1863_vm12, %v1854_v62, %v1856_v60  ;;  %v1866_v21 = vsel %vm1863_vm12, %v1858_v61, %v1860_v8  ;;  %v4754_v62 = vld [vmem:[%s5531_s1 + $0xbc] ss:$0 sps:$4 sm:$0xff]  }
 0x104   :  { %1477 = vmatpush1.bf16.msra.mxu1 %v1413_v5  ;;  %1367 = vmatprep.mubr.bf16.mxu1 %v4779_v1 }
 0x105   :  { %1627 = vmatprep.subr.bf16.mxu1 %v1565_v47 }
 0x106   :  { %v1862_v9 = vpop.permute.xlu1 %1861  ;;  %v2007_v13 = vpop.permute.xlu0 %2006 }
 0x107   :  { %4146 = vmatmul.mubr.msk.bf16.gmra.mrb[4].mxu0 %vm86_vm1, %v4740_v48  ;;  %v1867_v11 = vsel %vm1863_vm12, %v1860_v8, %v1862_v9  ;;  %v4755_v8 = vld [vmem:[%s5531_s1 + $0xc0] sm:$0xff]  }
 0x108   :  { %1457 = vmatprep.mubr.bf16.mxu0 %v4779_v1 }
 0x10a   :  { %v2005_v14 = vpop.permute.xlu0 %2004  ;;  %v2009_v15 = vpop.permute.xlu1 %2008 }
 0x10b   :  { %4148 = vmatmul.mubr.msk.bf16.gmra.mrb[4].mxu1 %vm86_vm1, %v4740_v48  ;;  %v2016_v18 = vsel %vm2014_vm13, %v2007_v13, %v2009_v15  ;;  %v2015_v28 = vsel %vm2014_vm13, %v2005_v14, %v2007_v13 }
 0x10c   :  { %1508 = vmatprep.mubr.bf16.mxu1 %v4779_v1 }
 0x10e   :  { %v2011_v19 = vpop.permute.xlu1 %2010  ;;  %v2013_v20 = vpop.permute.xlu0 %2012 }
 0x10f   :  { %4154 = vmatmul.mubr.msk.bf16.vlgmr.msra.gmra.mrb[0].mxu0 %vm86_vm1, %v4741_v52  ;;  %v2018_v22 = vsel %vm2014_vm13, %v2011_v19, %v2013_v20  ;;  %v2017_v32 = vsel %vm2014_vm13, %v2009_v15, %v2011_v19  ;;  %v4756_v15 = vld [vmem:[%s5531_s1 + $0xc8] ss:$0 sps:$4 sm:$0xff]   ;;  %v4757_v19 = vld [vmem:[%s5531_s1 + $0xcc] sm:$0xff]  }
 0x110   :  { %1577 = vmatpush1.bf16.msra.mxu0 %v1562_v53  ;;  %1467 = vmatprep.mubr.bf16.mxu0 %v4779_v1 }
 0x111   :  { %1727 = vmatprep.subr.bf16.mxu0 %v1714_v54 }
 0x112   :  { %v2158_v24 = vpop.permute.xlu1 %2157  ;;  %v2160_v25 = vpop.permute.xlu0 %2159 }
 0x113   :  { %4156 = vmatmul.mubr.msk.bf16.vlgmr.msra.gmra.mrb[0].mxu1 %vm86_vm1, %v4741_v52  ;;  %v2167_v29 = vsel %vm2165_vm14, %v2158_v24, %v2160_v25 }
 0x114   :  { %1628 = vmatpush1.bf16.msra.mxu1 %v1564_v57  ;;  %1518 = vmatprep.mubr.bf16.mxu1 %v4779_v1 }
 0x115   :  { %1778 = vmatprep.subr.bf16.mxu1 %v1716_v58 }
 0x116   :  { %v2156_v26 = vpop.permute.xlu1 %2155  ;;  %v2162_v30 = vpop.permute.xlu0 %2161 }
 0x117   :  { %4155 = vmatmul.mubr.msk.bf16.gmra.mrb[4].mxu0 %vm86_vm1, %v4742_v59  ;;  %v2166_v39 = vsel %vm2165_vm14, %v2156_v26, %v2158_v24  ;;  %v2168_v43 = vsel %vm2165_vm14, %v2160_v25, %v2162_v30  ;;  %v4758_v26 = vld [vmem:[%s5531_s1 + $0xd4] ss:$0 sps:$4 sm:$0xff]  }
 0x118   :  { %1608 = vmatprep.mubr.bf16.mxu0 %v4779_v1 }
 0x11a   :  { %v2164_v31 = vpop.permute.xlu1 %2163  ;;  %v2309_v35 = vpop.permute.xlu0 %2308 }
 0x11b   :  { %4157 = vmatmul.mubr.msk.bf16.gmra.mrb[4].mxu1 %vm86_vm1, %v4742_v59  ;;  %v2169_v33 = vsel %vm2165_vm14, %v2162_v30, %v2164_v31  ;;  %v4759_v30 = vld [vmem:[%s5531_s1 + $0xd8] sm:$0xff]  }
 0x11c   :  { %1659 = vmatprep.mubr.bf16.mxu1 %v4779_v1 }
 0x11e   :  { %v2307_v36 = vpop.permute.xlu0 %2306  ;;  %v2311_v37 = vpop.permute.xlu1 %2310 }
 0x11f   :  { %4163 = vmatmul.mubr.msk.bf16.vlgmr.msra.gmra.mrb[0].mxu0 %vm86_vm1, %v4743_v63  ;;  %v2318_v40 = vsel %vm2316_vm15, %v2309_v35, %v2311_v37  ;;  %v2317_v46 = vsel %vm2316_vm15, %v2307_v36, %v2309_v35 }
 0x120   :  { %1728 = vmatpush1.bf16.msra.mxu0 %v1713_v6  ;;  %1618 = vmatprep.mubr.bf16.mxu0 %v4779_v1 }
 0x121   :  { %1878 = vmatprep.subr.bf16.mxu0 %v1865_v7 }
 0x122   :  { %v2313_v41 = vpop.permute.xlu1 %2312  ;;  %v2315_v42 = vpop.permute.xlu0 %2314 }
 0x123   :  { %4165 = vmatmul.mubr.msk.bf16.vlgmr.msra.gmra.mrb[0].mxu1 %vm86_vm1, %v4743_v63  ;;  %v2320_v0 = vsel %vm2316_vm15, %v2313_v41, %v2315_v42  ;;  %v2319_v49 = vsel %vm2316_vm15, %v2311_v37, %v2313_v41  ;;  %v4760_v37 = vld [vmem:[%s5531_s1 + $0xe0] ss:$0 sps:$4 sm:$0xff]   ;;  %v4761_v41 = vld [vmem:[%s5531_s1 + $0xe4] sm:$0xff]  }
 0x124   :  { %1779 = vmatpush1.bf16.msra.mxu1 %v1715_v10  ;;  %1669 = vmatprep.mubr.bf16.mxu1 %v4779_v1 }
 0x125   :  { %1929 = vmatprep.subr.bf16.mxu1 %v1867_v11 }
 0x126   :  { %v2460_v44 = vpop.permute.xlu1 %2459  ;;  %v2462_v2 = vpop.permute.xlu0 %2461 }
 0x127   :  { %4164 = vmatmul.mubr.msk.bf16.gmra.mrb[4].mxu0 %vm86_vm1, %v4744_v12  ;;  %v2469_v5 = vsel %vm2467_vm0, %v2460_v44, %v2462_v2 }
 0x128   :  { %1759 = vmatprep.mubr.bf16.mxu0 %v4779_v1 }
 0x12a   :  { %v2458_v4 = vpop.permute.xlu1 %2457  ;;  %v2464_v47 = vpop.permute.xlu0 %2463 }
 0x12b   :  { %4166 = vmatmul.mubr.msk.bf16.gmra.mrb[4].mxu1 %vm86_vm1, %v4744_v12  ;;  %v2468_v56 = vsel %vm2467_vm0, %v2458_v4, %v2460_v44  ;;  %v2470_v60 = vsel %vm2467_vm0, %v2462_v2, %v2464_v47  ;;  %v4762_v4 = vld [vmem:[%s5531_s1 + $0xec] ss:$0 sps:$4 sm:$0xff]  }
 0x12c   :  { %1810 = vmatprep.mubr.bf16.mxu1 %v4779_v1 }
 0x12e   :  { %v2466_v48 = vpop.permute.xlu1 %2465  ;;  %v2611_v52 = vpop.permute.xlu0 %2610 }
 0x12f   :  { %4172 = vmatmul.mubr.msk.bf16.vlgmr.msra.gmra.mrb[0].mxu0 %vm86_vm1, %v4745_v16  ;;  %v2471_v50 = vsel %vm2467_vm0, %v2464_v47, %v2466_v48  ;;  %v4763_v47 = vld [vmem:[%s5531_s1 + $0xf0] sm:$0xff]  }
 0x130   :  { %1879 = vmatpush1.bf16.msra.mxu0 %v1864_v17  ;;  %1769 = vmatprep.mubr.bf16.mxu0 %v4779_v1 }
 0x131   :  { %2029 = vmatprep.subr.bf16.mxu0 %v2016_v18 }
 0x132   :  { %v2609_v53 = vpop.permute.xlu0 %2608  ;;  %v2613_v54 = vpop.permute.xlu1 %2612 }
 0x133   :  { %4174 = vmatmul.mubr.msk.bf16.vlgmr.msra.gmra.mrb[0].mxu1 %vm86_vm1, %v4745_v16  ;;  %v2620_v57 = vsel %vm2618_vm2, %v2611_v52, %v2613_v54  ;;  %v2619_v9 = vsel %vm2618_vm2, %v2609_v53, %v2611_v52 }
 0x134   :  { %1930 = vmatpush1.bf16.msra.mxu1 %v1866_v21  ;;  %1820 = vmatprep.mubr.bf16.mxu1 %v4779_v1 }
 0x135   :  { %2080 = vmatprep.subr.bf16.mxu1 %v2018_v22 }
 0x136   :  { %v2615_v58 = vpop.permute.xlu1 %2614  ;;  %v2617_v59 = vpop.permute.xlu0 %2616 }
 0x137   :  { %4173 = vmatmul.mubr.msk.bf16.gmra.mrb[4].mxu0 %vm86_vm1, %v4746_v23  ;;  %v2622_v61 = vsel %vm2618_vm2, %v2615_v58, %v2617_v59  ;;  %v2621_v13 = vsel %vm2618_vm2, %v2613_v54, %v2615_v58  ;;  %v4764_v54 = vld [vmem:[%s5531_s1 + $0xf8] ss:$0 sps:$4 sm:$0xff]   ;;  %v4765_v58 = vld [vmem:[%s5531_s1 + $0xfc] sm:$0xff]  }
 0x138   :  { %1910 = vmatprep.mubr.bf16.mxu0 %v4779_v1 }
 0x13a   :  { %v2762_v63 = vpop.permute.xlu1 %2761  ;;  %v2764_v6 = vpop.permute.xlu0 %2763 }
 0x13b   :  { %4175 = vmatmul.mubr.msk.bf16.gmra.mrb[4].mxu1 %vm86_vm1, %v4746_v23  ;;  %v2771_v10 = vsel %vm2769_vm3, %v2762_v63, %v2764_v6 }
 0x13c   :  { %1961 = vmatprep.mubr.bf16.mxu1 %v4779_v1 }
 0x13e   :  { %v2760_v7 = vpop.permute.xlu1 %2759  ;;  %v2766_v11 = vpop.permute.xlu0 %2765 }
 0x13f   :  { %4181 = vmatmul.mubr.msk.bf16.vlgmr.msra.gmra.mrb[0].mxu0 %vm86_vm1, %v4747_v27  ;;  %v2770_v20 = vsel %vm2769_vm3, %v2760_v7, %v2762_v63  ;;  %v2772_v24 = vsel %vm2769_vm3, %v2764_v6, %v2766_v11  ;;  %v4766_v7 = vld [vmem:[%s5531_s1 + $0x104] ss:$0 sps:$4 sm:$0xff]  }
 0x140   :  { %2030 = vmatpush1.bf16.msra.mxu0 %v2015_v28  ;;  %1920 = vmatprep.mubr.bf16.mxu0 %v4779_v1 }
 0x141   :  { %2180 = vmatprep.subr.bf16.mxu0 %v2167_v29 }
 0x142   :  { %v2768_v12 = vpop.permute.xlu1 %2767  ;;  %v2913_v16 = vpop.permute.xlu0 %2912 }
 0x143   :  { %4183 = vmatmul.mubr.msk.bf16.vlgmr.msra.gmra.mrb[0].mxu1 %vm86_vm1, %v4747_v27  ;;  %v2773_v14 = vsel %vm2769_vm3, %v2766_v11, %v2768_v12  ;;  %v4767_v11 = vld [vmem:[%s5531_s1 + $0x108] sm:$0xff]  }
 0x144   :  { %2081 = vmatpush1.bf16.msra.mxu1 %v2017_v32  ;;  %1971 = vmatprep.mubr.bf16.mxu1 %v4779_v1 }
 0x145   :  { %2231 = vmatprep.subr.bf16.mxu1 %v2169_v33 }
 0x146   :  { %v2911_v17 = vpop.permute.xlu0 %2910  ;;  %v2915_v18 = vpop.permute.xlu1 %2914 }
 0x147   :  { %4182 = vmatmul.mubr.msk.bf16.gmra.mrb[4].mxu0 %vm86_vm1, %v4748_v34  ;;  %v2922_v21 = vsel %vm2920_vm4, %v2913_v16, %v2915_v18  ;;  %v2921_v31 = vsel %vm2920_vm4, %v2911_v17, %v2913_v16 }
 0x148   :  { %2061 = vmatprep.mubr.bf16.mxu0 %v4779_v1 }
 0x14a   :  { %v2917_v22 = vpop.permute.xlu1 %2916  ;;  %v2919_v23 = vpop.permute.xlu0 %2918 }
 0x14b   :  { %4184 = vmatmul.mubr.msk.bf16.gmra.mrb[4].mxu1 %vm86_vm1, %v4748_v34  ;;  %v2924_v25 = vsel %vm2920_vm4, %v2917_v22, %v2919_v23  ;;  %v2923_v35 = vsel %vm2920_vm4, %v2915_v18, %v2917_v22  ;;  %v4768_v18 = vld [vmem:[%s5531_s1 + $0x110] ss:$0 sps:$4 sm:$0xff]   ;;  %v4770_v22 = vld [vmem:[%s5531_s1 + $0x11c] ss:$0 sps:$4 sm:$0xff]   ;;  %v4771_v23 = vld [vmem:[%s5531_s1 + $0x120] sm:$0xff]  }
 0x14c   :  { %2112 = vmatprep.mubr.bf16.mxu1 %v4779_v1 }
 0x14e   :  { %v3064_v27 = vpop.permute.xlu1 %3063  ;;  %v3066_v28 = vpop.permute.xlu0 %3065 }
 0x14f   :  { %4190 = vmatmul.mubr.msk.bf16.vlgmr.msra.gmra.mrb[0].mxu0 %vm86_vm1, %v4749_v38  ;;  %v3073_v32 = vsel %vm3071_vm5, %v3064_v27, %v3066_v28 }
 0x150   :  { %2181 = vmatpush1.bf16.msra.mxu0 %v2166_v39  ;;  %2071 = vmatprep.mubr.bf16.mxu0 %v4779_v1 }
 0x151   :  { %2331 = vmatprep.subr.bf16.mxu0 %v2318_v40 }
 0x152   :  { %v3062_v29 = vpop.permute.xlu1 %3061  ;;  %v3068_v33 = vpop.permute.xlu0 %3067 }
 0x153   :  { %4192 = vmatmul.mubr.msk.bf16.vlgmr.msra.gmra.mrb[0].mxu1 %vm86_vm1, %v4749_v38  ;;  %v3072_v42 = vsel %vm3071_vm5, %v3062_v29, %v3064_v27  ;;  %v3074_v44 = vsel %vm3071_vm5, %v3066_v28, %v3068_v33  ;;  %v3816_v28 = vld [vmem:[%s5532_s4] sm:$0xf] }
 0x154   :  { %2232 = vmatpush1.bf16.msra.mxu1 %v2168_v43  ;;  %2122 = vmatprep.mubr.bf16.mxu1 %v4779_v1 }
 0x155   :  { %2382 = vmatprep.subr.bf16.mxu1 %v2320_v0 }
 0x156   :  { %v3070_v34 = vpop.permute.xlu1 %3069  ;;  %v3215_v38 = vpop.permute.xlu0 %3214 }
 0x157   :  { %4191 = vmatmul.mubr.msk.bf16.gmra.mrb[4].mxu0 %vm86_vm1, %v4750_v3  ;;  %v3075_v36 = vsel %vm3071_vm5, %v3068_v33, %v3070_v34 }
 0x158   :  { %2212 = vmatprep.mubr.bf16.mxu0 %v4779_v1 }
 0x15a   :  { %v3213_v39 = vpop.permute.xlu0 %3212  ;;  %v3217_v40 = vpop.permute.xlu1 %3216 }
 0x15b   :  { %4193 = vmatmul.mubr.msk.bf16.gmra.mrb[4].mxu1 %vm86_vm1, %v4750_v3  ;;  %v3224_v43 = vsel %vm3222_vm6, %v3215_v38, %v3217_v40  ;;  %v3223_v48 = vsel %vm3222_vm6, %v3213_v39, %v3215_v38 }
 0x15c   :  { %2263 = vmatprep.mubr.bf16.mxu1 %v4779_v1 }
 0x15e   :  { %v3219_v0 = vpop.permute.xlu1 %3218  ;;  %v3221_v3 = vpop.permute.xlu0 %3220 }
 0x15f   :  { %4199 = vmatmul.mubr.msk.bf16.vlgmr.msra.gmra.mrb[0].mxu0 %vm86_vm1, %v4751_v45  ;;  %v3226_v2 = vsel %vm3222_vm6, %v3219_v0, %v3221_v3  ;;  %v3225_v52 = vsel %vm3222_vm6, %v3217_v40, %v3219_v0 }
 0x160   :  { %2332 = vmatpush1.bf16.msra.mxu0 %v2317_v46  ;;  %2222 = vmatprep.mubr.bf16.mxu0 %v4779_v1 }
 0x161   :  { %2482 = vmatprep.subr.bf16.mxu0 %v2469_v5 }
 0x162   :  { %v3368_v46 = vpop.permute.xlu0 %3367 }
 0x163   :  { %4201 = vmatmul.mubr.msk.bf16.vlgmr.msra.gmra.mrb[0].mxu1 %vm86_vm1, %v4751_v45  ;;  %v3366_v45 = vpop.permute.xlu1 %3365 }
 0x164   :  { %2383 = vmatpush1.bf16.msra.mxu1 %v2319_v49  ;;  %2273 = vmatprep.mubr.bf16.mxu1 %v4779_v1  ;;  %v3375_v49 = vsel %vm3373_vm7, %v3366_v45, %v3368_v46 }
 0x165   :  { %2533 = vmatprep.subr.bf16.mxu1 %v2471_v50 }
 0x166   :  { %v3370_v50 = vpop.permute.xlu0 %3369 }
 0x167   :  { %4200 = vmatmul.mubr.msk.bf16.gmra.mrb[4].mxu0 %vm86_vm1, %v4752_v51  ;;  %v3364_v5 = vpop.permute.xlu1 %3363  ;;  %v3376_v63 = vsel %vm3373_vm7, %v3368_v46, %v3370_v50 }
 0x168   :  { %2363 = vmatprep.mubr.bf16.mxu0 %v4779_v1  ;;  %v3374_v59 = vsel %vm3373_vm7, %v3364_v5, %v3366_v45 }
 0x16b   :  { %4202 = vmatmul.mubr.msk.bf16.gmra.mrb[4].mxu1 %vm86_vm1, %v4752_v51  ;;  %v3372_v51 = vpop.permute.xlu1 %3371 }
 0x16c   :  { %2414 = vmatprep.mubr.bf16.mxu1 %v4779_v1  ;;  %v3377_v53 = vsel %vm3373_vm7, %v3370_v50, %v3372_v51 }
 0x16f   :  { %4208 = vmatmul.mubr.msk.bf16.vlgmr.msra.gmra.mrb[0].mxu0 %vm86_vm1, %v4753_v55 }
 0x170   :  { %2483 = vmatpush1.bf16.msra.mxu0 %v2468_v56  ;;  %2373 = vmatprep.mubr.bf16.mxu0 %v4779_v1 }
 0x171   :  { %2633 = vmatprep.subr.bf16.mxu0 %v2620_v57  ;;  %v3519_v57 = vpop.permute.xlu1 %3518 }
 0x173   :  { %4210 = vmatmul.mubr.msk.bf16.vlgmr.msra.gmra.mrb[0].mxu1 %vm86_vm1, %v4753_v55  ;;  %v3517_v55 = vpop.permute.xlu0 %3516 }
 0x174   :  { %2534 = vmatpush1.bf16.msra.mxu1 %v2470_v60  ;;  %2424 = vmatprep.mubr.bf16.mxu1 %v4779_v1  ;;  %v3526_v60 = vsel %vm3524_vm8, %v3517_v55, %v3519_v57 }
 0x175   :  { %2684 = vmatprep.subr.bf16.mxu1 %v2622_v61  ;;  %v3521_v61 = vpop.permute.xlu1 %3520 }
 0x176   :  { %v3527_v16 = vsel %vm3524_vm8, %v3519_v57, %v3521_v61 }
 0x177   :  { %4209 = vmatmul.mubr.msk.bf16.gmra.mrb[4].mxu0 %vm86_vm1, %v4754_v62  ;;  %v3515_v56 = vpop.permute.xlu0 %3514 }
 0x178   :  { %2514 = vmatprep.mubr.bf16.mxu0 %v4779_v1  ;;  %v3525_v12 = vsel %vm3524_vm8, %v3515_v56, %v3517_v55 }
 0x17b   :  { %4211 = vmatmul.mubr.msk.bf16.gmra.mrb[4].mxu1 %vm86_vm1, %v4754_v62  ;;  %v3523_v62 = vpop.permute.xlu0 %3522 }
 0x17c   :  { %2565 = vmatprep.mubr.bf16.mxu1 %v4779_v1  ;;  %v3528_v6 = vsel %vm3524_vm8, %v3521_v61, %v3523_v62 }
 0x17f   :  { %4217 = vmatmul.mubr.msk.bf16.vlgmr.msra.gmra.mrb[0].mxu0 %vm86_vm1, %v4755_v8 }
 0x180   :  { %2634 = vmatpush1.bf16.msra.mxu0 %v2619_v9  ;;  %2524 = vmatprep.mubr.bf16.mxu0 %v4779_v1  ;;  %v3670_v9 = vpop.permute.xlu0 %3669 }
 0x181   :  { %2784 = vmatprep.subr.bf16.mxu0 %v2771_v10 }
 0x183   :  { %4219 = vmatmul.mubr.msk.bf16.vlgmr.msra.gmra.mrb[0].mxu1 %vm86_vm1, %v4755_v8  ;;  %v3668_v8 = vpop.permute.xlu1 %3667 }
 0x184   :  { %2685 = vmatpush1.bf16.msra.mxu1 %v2621_v13  ;;  %2575 = vmatprep.mubr.bf16.mxu1 %v4779_v1  ;;  %v3677_v13 = vsel %vm3675_vm9, %v3668_v8, %v3670_v9 }
 0x185   :  { %2835 = vmatprep.subr.bf16.mxu1 %v2773_v14  ;;  %v3672_v14 = vpop.permute.xlu0 %3671 }
 0x187   :  { %4218 = vmatmul.mubr.msk.bf16.gmra.mrb[4].mxu0 %vm86_vm1, %v4756_v15  ;;  %v3666_v10 = vpop.permute.xlu1 %3665 }
 0x188   :  { %2665 = vmatprep.mubr.bf16.mxu0 %v4779_v1 }
 0x18b   :  { %4220 = vmatmul.mubr.msk.bf16.gmra.mrb[4].mxu1 %vm86_vm1, %v4756_v15  ;;  %v3674_v15 = vpop.permute.xlu1 %3673 }
 0x18c   :  { %2716 = vmatprep.mubr.bf16.mxu1 %v4779_v1  ;;  %v3679_v17 = vsel %vm3675_vm9, %v3672_v14, %v3674_v15 }
 0x18f   :  { %4226 = vmatmul.mubr.msk.bf16.vlgmr.msra.gmra.mrb[0].mxu0 %vm86_vm1, %v4757_v19 }
 0x190   :  { %2785 = vmatpush1.bf16.msra.mxu0 %v2770_v20  ;;  %2675 = vmatprep.mubr.bf16.mxu0 %v4779_v1  ;;  %v3676_v20 = vsel %vm3675_vm9, %v3666_v10, %v3668_v8 }
 0x191   :  { %2935 = vmatprep.subr.bf16.mxu0 %v2922_v21  ;;  %v3678_v21 = vsel %vm3675_vm9, %v3670_v9, %v3672_v14 }
 0x193   :  { %4228 = vmatmul.mubr.msk.bf16.vlgmr.msra.gmra.mrb[0].mxu1 %vm86_vm1, %v4757_v19  ;;  %v4769_v19 = vld [vmem:[%s5531_s1 + $0x114] sm:$0xff]  }
 0x194   :  { %2836 = vmatpush1.bf16.msra.mxu1 %v2772_v24  ;;  %2726 = vmatprep.mubr.bf16.mxu1 %v4779_v1  ;;  %v4772_v24 = vld [vmem:[%s5531_s1 + $0x128] ss:$0 sps:$4 sm:$0xff]  }
 0x195   :  { %2986 = vmatprep.subr.bf16.mxu1 %v2924_v25  ;;  %v3818_v25 = vlaneseq }
 0x197   :  { %4227 = vmatmul.mubr.msk.bf16.gmra.mrb[4].mxu0 %vm86_vm1, %v4758_v26 }
 0x198   :  { %2816 = vmatprep.mubr.bf16.mxu0 %v4779_v1 }
 0x19b   :  { %4229 = vmatmul.mubr.msk.bf16.gmra.mrb[4].mxu1 %vm86_vm1, %v4758_v26  ;;  %v3819_v26 = vshrl.u32 %v3818_v25, 7 }
 0x19c   :  { %2867 = vmatprep.mubr.bf16.mxu1 %v4779_v1 }
 0x19d   :  { %v3820_v27 = vsub.s32 0, %v3819_v26  ;;  %v3824_v29 = vsub.s32 1, %v3819_v26  ;;  %v3832_v33 = vsub.s32 3, %v3819_v26 }
 0x19f   :  { %4235 = vmatmul.mubr.msk.bf16.vlgmr.msra.gmra.mrb[0].mxu0 %vm86_vm1, %v4759_v30  ;;  %v3833_v39 = vrot.slane %v3816_v28, %v3832_v33 }
 0x1a0   :  { %2936 = vmatpush1.bf16.msra.mxu0 %v2921_v31  ;;  %2826 = vmatprep.mubr.bf16.mxu0 %v4779_v1  ;;  %v3828_v31 = vsub.s32 2, %v3819_v26 }
 0x1a1   :  { %3086 = vmatprep.subr.bf16.mxu0 %v3073_v32  ;;  %v3825_v32 = vrot.slane %v3816_v28, %v3824_v29 }
 0x1a3   :  { %4237 = vmatmul.mubr.msk.bf16.vlgmr.msra.gmra.mrb[0].mxu1 %vm86_vm1, %v4759_v30  ;;  %v3821_v30 = vrot.slane %v3816_v28, %v3820_v27 }
 0x1a4   :  { %2987 = vmatpush1.bf16.msra.mxu1 %v2923_v35  ;;  %2877 = vmatprep.mubr.bf16.mxu1 %v4779_v1 }
 0x1a5   :  { %3137 = vmatprep.subr.bf16.mxu1 %v3075_v36  ;;  %v3829_v36 = vrot.slane %v3816_v28, %v3828_v31 }
 0x1a7   :  { %4236 = vmatmul.mubr.msk.bf16.gmra.mrb[4].mxu0 %vm86_vm1, %v4760_v37 }
 0x1a8   :  { %2967 = vmatprep.mubr.bf16.mxu0 %v4779_v1 }
 0x1ab   :  { %4238 = vmatmul.mubr.msk.bf16.gmra.mrb[4].mxu1 %vm86_vm1, %v4760_v37 }
 0x1ac   :  { %3018 = vmatprep.mubr.bf16.mxu1 %v4779_v1 }
 0x1af   :  { %4244 = vmatmul.mubr.msk.bf16.vlgmr.msra.gmra.mrb[0].mxu0 %vm86_vm1, %v4761_v41 }
 0x1b0   :  { %3087 = vmatpush1.bf16.msra.mxu0 %v3072_v42  ;;  %2977 = vmatprep.mubr.bf16.mxu0 %v4779_v1 }
 0x1b1   :  { %3237 = vmatprep.subr.bf16.mxu0 %v3224_v43 }
 0x1b3   :  { %4246 = vmatmul.mubr.msk.bf16.vlgmr.msra.gmra.mrb[0].mxu1 %vm86_vm1, %v4761_v41 }
 0x1b4   :  { %3138 = vmatpush1.bf16.msra.mxu1 %v3074_v44  ;;  %3028 = vmatprep.mubr.bf16.mxu1 %v4779_v1 }
 0x1b5   :  { %3288 = vmatprep.subr.bf16.mxu1 %v3226_v2 }
 0x1b7   :  { %4245 = vmatmul.mubr.msk.bf16.gmra.mrb[4].mxu0 %vm86_vm1, %v4762_v4 }
 0x1b8   :  { %3118 = vmatprep.mubr.bf16.mxu0 %v4779_v1 }
 0x1bb   :  { %4247 = vmatmul.mubr.msk.bf16.gmra.mrb[4].mxu1 %vm86_vm1, %v4762_v4 }
 0x1bc   :  { %3169 = vmatprep.mubr.bf16.mxu1 %v4779_v1 }
 0x1bf   :  { %4253 = vmatmul.mubr.msk.bf16.vlgmr.msra.gmra.mrb[0].mxu0 %vm86_vm1, %v4763_v47 }
 0x1c0   :  { %3238 = vmatpush1.bf16.msra.mxu0 %v3223_v48  ;;  %3128 = vmatprep.mubr.bf16.mxu0 %v4779_v1 }
 0x1c1   :  { %3388 = vmatprep.subr.bf16.mxu0 %v3375_v49 }
 0x1c3   :  { %4255 = vmatmul.mubr.msk.bf16.vlgmr.msra.gmra.mrb[0].mxu1 %vm86_vm1, %v4763_v47 }
 0x1c4   :  { %3289 = vmatpush1.bf16.msra.mxu1 %v3225_v52  ;;  %3179 = vmatprep.mubr.bf16.mxu1 %v4779_v1 }
 0x1c5   :  { %3439 = vmatprep.subr.bf16.mxu1 %v3377_v53 }
 0x1c7   :  { %4254 = vmatmul.mubr.msk.bf16.gmra.mrb[4].mxu0 %vm86_vm1, %v4764_v54 }
 0x1c8   :  { %3269 = vmatprep.mubr.bf16.mxu0 %v4779_v1 }
 0x1cb   :  { %4256 = vmatmul.mubr.msk.bf16.gmra.mrb[4].mxu1 %vm86_vm1, %v4764_v54 }
 0x1cc   :  { %3320 = vmatprep.mubr.bf16.mxu1 %v4779_v1 }
 0x1cf   :  { %4262 = vmatmul.mubr.msk.bf16.vlgmr.msra.gmra.mrb[0].mxu0 %vm86_vm1, %v4765_v58 }
 0x1d0   :  { %3389 = vmatpush1.bf16.msra.mxu0 %v3374_v59  ;;  %3279 = vmatprep.mubr.bf16.mxu0 %v4779_v1 }
 0x1d1   :  { %3539 = vmatprep.subr.bf16.mxu0 %v3526_v60 }
 0x1d3   :  { %4264 = vmatmul.mubr.msk.bf16.vlgmr.msra.gmra.mrb[0].mxu1 %vm86_vm1, %v4765_v58 }
 0x1d4   :  { %3440 = vmatpush1.bf16.msra.mxu1 %v3376_v63  ;;  %3330 = vmatprep.mubr.bf16.mxu1 %v4779_v1 }
 0x1d5   :  { %3590 = vmatprep.subr.bf16.mxu1 %v3528_v6 }
 0x1d7   :  { %4263 = vmatmul.mubr.msk.bf16.gmra.mrb[4].mxu0 %vm86_vm1, %v4766_v7 }
 0x1d8   :  { %3420 = vmatprep.mubr.bf16.mxu0 %v4779_v1 }
 0x1db   :  { %4265 = vmatmul.mubr.msk.bf16.gmra.mrb[4].mxu1 %vm86_vm1, %v4766_v7 }
 0x1dc   :  { %3471 = vmatprep.mubr.bf16.mxu1 %v4779_v1 }
 0x1df   :  { %4271 = vmatmul.mubr.msk.bf16.vlgmr.msra.gmra.mrb[0].mxu0 %vm86_vm1, %v4767_v11 }
 0x1e0   :  { %3540 = vmatpush1.bf16.msra.mxu0 %v3525_v12  ;;  %3430 = vmatprep.mubr.bf16.mxu0 %v4779_v1 }
 0x1e1   :  { %3690 = vmatprep.subr.bf16.mxu0 %v3677_v13 }
 0x1e3   :  { %4273 = vmatmul.mubr.msk.bf16.vlgmr.msra.gmra.mrb[0].mxu1 %vm86_vm1, %v4767_v11 }
 0x1e4   :  { %3591 = vmatpush1.bf16.msra.mxu1 %v3527_v16  ;;  %3481 = vmatprep.mubr.bf16.mxu1 %v4779_v1 }
 0x1e5   :  { %3741 = vmatprep.subr.bf16.mxu1 %v3679_v17 }
 0x1e7   :  { %4272 = vmatmul.mubr.msk.bf16.gmra.mrb[4].mxu0 %vm86_vm1, %v4768_v18 }
 0x1e8   :  { %3571 = vmatprep.mubr.bf16.mxu0 %v4779_v1 }
 0x1eb   :  { %4274 = vmatmul.mubr.msk.bf16.gmra.mrb[4].mxu1 %vm86_vm1, %v4768_v18 }
 0x1ec   :  { %3622 = vmatprep.mubr.bf16.mxu1 %v4779_v1 }
 0x1ef   :  { %4280 = vmatmul.mubr.msk.bf16.vlgmr.msra.gmra.mrb[0].mxu0 %vm86_vm1, %v4769_v19 }
 0x1f0   :  { %3691 = vmatpush1.bf16.msra.mxu0 %v3676_v20  ;;  %3581 = vmatprep.mubr.bf16.mxu0 %v4779_v1 }
 0x1f3   :  { %4282 = vmatmul.mubr.msk.bf16.vlgmr.msra.gmra.mrb[0].mxu1 %vm86_vm1, %v4769_v19 }
 0x1f4   :  { %3742 = vmatpush1.bf16.msra.mxu1 %v3678_v21  ;;  %3632 = vmatprep.mubr.bf16.mxu1 %v4779_v1 }
 0x1f7   :  { %4281 = vmatmul.mubr.msk.bf16.gmra.mrb[4].mxu0 %vm86_vm1, %v4770_v22 }
 0x1f8   :  { %3722 = vmatprep.mubr.bf16.mxu0 %v4779_v1 }
 0x1fb   :  { %4283 = vmatmul.mubr.msk.bf16.gmra.mrb[4].mxu1 %vm86_vm1, %v4770_v22 }
 0x1fc   :  { %3773 = vmatprep.mubr.bf16.mxu1 %v4779_v1 }
 0x1ff   :  { %4289 = vmatmul.mubr.msk.bf16.vlgmr.msra.gmra.mrb[0].mxu0 %vm86_vm1, %v4771_v23 }
 0x200   :  { %3732 = vmatprep.mubr.bf16.mxu0 %v4779_v1 }
 0x203   :  { %4291 = vmatmul.mubr.msk.bf16.vlgmr.msra.gmra.mrb[0].mxu1 %vm86_vm1, %v4771_v23 }
 0x204   :  { %3783 = vmatprep.mubr.bf16.mxu1 %v4779_v1 }
 0x207   :  { %4290 = vmatmul.mubr.msk.bf16.gmra.mrb[4].mxu0 %vm86_vm1, %v4772_v24 }
 0x20b   :  { %4292 = vmatmul.mubr.msk.bf16.gmra.mrb[4].mxu1 %vm86_vm1, %v4772_v24 }
 0x2d2   :  { %v5434_v34 = vpop.f32.mrb[0].mxu0 }
 0x2d3   :  { %v3838_v1 = vmul.f32 %v3821_v30, %v5434_v34  ;;  %v5437_v35 = vpop.f32.mrb[1].mxu0 }
 0x2d4   :  { %v3839_v37 = vmul.f32 %v3825_v32, %v5437_v35  ;;  %v5440_v38 = vpop.f32.mrb[2].mxu0 }
 0x2d5   :  { %v3868_v40 = vmul.f32 %v3838_v1, %v5434_v34  ;;  %v3842_v41 = vmul.f32 %v3821_v30, %v5440_v38  ;;  %v5444_v42 = vpop.f32.mrb[3].mxu0 }
 0x2d6   :  { %v3850_v43 = vadd.f32 %v3839_v37, %v3838_v1  ;;  %v3869_v0 = vmul.f32 %v3839_v37, %v5437_v35  ;;  %v3843_v3 = vmul.f32 %v3825_v32, %v5444_v42  ;;  %v5448_v44 = vpop.f32.mrb[0].mxu1 }
 0x2d7   :  { %v3872_v2 = vmul.f32 %v3842_v41, %v5440_v38  ;;  %v3840_v4 = vmul.f32 %v3829_v36, %v5448_v44  ;;  %v5452_v45 = vpop.f32.mrb[1].mxu1 }
 0x2d8   :  { %v3880_v46 = vadd.f32 %v3869_v0, %v3868_v40  ;;  %v3855_v5 = vadd.f32 %v3843_v3, %v3842_v41  ;;  %v3873_v47 = vmul.f32 %v3843_v3, %v5444_v42  ;;  %v3841_v48 = vmul.f32 %v3833_v39, %v5452_v45  ;;  %v5456_v49 = vpop.f32.mrb[2].mxu1 }
 0x2d9   :  { %v3851_v50 = vadd.f32 %v3850_v43, %v3840_v4  ;;  %v3870_v51 = vmul.f32 %v3840_v4, %v5448_v44  ;;  %v3844_v52 = vmul.f32 %v3829_v36, %v5456_v49  ;;  %v5460_v53 = vpop.f32.mrb[3].mxu1 }
 0x2da   :  { %v3885_v54 = vadd.f32 %v3873_v47, %v3872_v2  ;;  %v3871_v55 = vmul.f32 %v3841_v48, %v5452_v45  ;;  %v3845_v56 = vmul.f32 %v3833_v39, %v5460_v53  ;;  %v5464_v57 = vpop.f32.mrb[4].mxu0 }
 0x2db   :  { %v3881_v58 = vadd.f32 %v3880_v46, %v3870_v51  ;;  %v3856_v59 = vadd.f32 %v3855_v5, %v3844_v52  ;;  %v3874_v60 = vmul.f32 %v3844_v52, %v5456_v49  ;;  %v3846_v61 = vmul.f32 %v3821_v30, %v5464_v57  ;;  %v5468_v62 = vpop.f32.mrb[5].mxu0 }
 0x2dc   :  { %v3875_v63 = vmul.f32 %v3845_v56, %v5460_v53  ;;  %v3847_v6 = vmul.f32 %v3825_v32, %v5468_v62  ;;  %v3738_v7 = vpop.f32.mrb[6].mxu0  ;;  %v3852_v8 = vadd.f32 %v3851_v50, %v3841_v48 }
 0x2dd   :  { %v3886_v9 = vadd.f32 %v3885_v54, %v3874_v60  ;;  %v3876_v10 = vmul.f32 %v3846_v61, %v5464_v57  ;;  %v3739_v11 = vpop.f32.mrb[7].mxu0  ;;  %v3857_v12 = vadd.f32 %v3856_v59, %v3845_v56  ;;  %v3882_v13 = vadd.f32 %v3881_v58, %v3871_v55  ;;  %v3913_v56 = vld [vmem:[%s5533_s2] sm:$0xff]  ;;  %v3914_v58 = vld [vmem:[%s5533_s2 + $0x8] sm:$0xff] }
 0x2de   :  { %v3860_v14 = vadd.f32 %v3847_v6, %v3846_v61  ;;  %v3877_v15 = vmul.f32 %v3847_v6, %v5468_v62  ;;  %3853 = vadd.xlane.f32.xlu0 %v3852_v8  ;;  %v5474_v16 = vpop.f32.mrb[4].mxu1  ;;  %v3925_v6 = vld [vmem:[%s5534_s3] sm:$0xff]  ;;  %v3915_v11 = vld [vmem:[%s5533_s2 + $0x10] sm:$0xff] }
 0x2df   :  { %v3848_v17 = vmul.f32 %v3829_v36, %v5474_v16  ;;  %v5477_v18 = vpop.f32.mrb[5].mxu1  ;;  %3858 = vadd.xlane.f32.xlu1 %v3857_v12  ;;  %v3887_v19 = vadd.f32 %v3886_v9, %v3875_v63 }
 0x2e0   :  { %v3890_v20 = vadd.f32 %v3877_v15, %v3876_v10  ;;  %v3849_v21 = vmul.f32 %v3833_v39, %v5477_v18  ;;  %v3789_v22 = vpop.f32.mrb[6].mxu1  ;;  %v3926_v10 = vld [vmem:[%s5534_s3 + $0x8] sm:$0xff] }
 0x2e1   :  { %v3861_v23 = vadd.f32 %v3860_v14, %v3848_v17  ;;  %v3878_v24 = vmul.f32 %v3848_v17, %v5474_v16  ;;  %v3790_v25 = vpop.f32.mrb[7].mxu1  ;;  %v3927_v17 = vld [vmem:[%s5534_s3 + $0x10] sm:$0xff] }
 0x2e2   :  { %v3879_v26 = vmul.f32 %v3849_v21, %v5477_v18  ;;  %3883 = vadd.xlane.f32.xlu0 %v3882_v13 }
 0x2e3   :  { %v3891_v27 = vadd.f32 %v3890_v20, %v3878_v24  ;;  %3888 = vadd.xlane.f32.xlu1 %v3887_v19  ;;  %v3862_v28 = vadd.f32 %v3861_v23, %v3849_v21 }
 0x2e5   :  { %v3892_v29 = vadd.f32 %v3891_v27, %v3879_v26 }
 0x2e6   :  { %3863 = vadd.xlane.f32.xlu0 %v3862_v28 }
 0x2ea   :  { %3893 = vadd.xlane.f32.xlu0 %v3892_v29 }
 0x36b   :  { %v3854_v30 = vpop.xlane.xlu0 %3853 }
 0x36c   :  { %v3898_v31 = vmul.f32 0.0034722222, %v3854_v30  ;;  %v3859_v32 = vpop.xlane.xlu1 %3858 }
 0x36d   :  { %v3899_v33 = vmul.f32 0.0034722222, %v3859_v32 }
 0x36e   :  { %v3904_v36 = vmul.f32 %v3898_v31, %v3898_v31 }
 0x36f   :  { %v3884_v1 = vpop.xlane.xlu0 %3883  ;;  %v3905_v40 = vmul.f32 %v3899_v33, %v3899_v33 }
 0x370   :  { %v3901_v37 = vmul.f32 0.0034722222, %v3884_v1  ;;  %v3889_v39 = vpop.xlane.xlu1 %3888 }
 0x371   :  { %v3902_v41 = vmul.f32 0.0034722222, %v3889_v39 }
 0x372   :  { %v3907_v43 = vsub.f32 %v3901_v37, %v3904_v36 }
 0x373   :  { %v3908_v0 = vsub.f32 %v3902_v41, %v3905_v40  ;;  %v3864_v3 = vpop.xlane.xlu0 %3863 }
 0x374   :  { %v3910_v2 = vmax.f32 %v3907_v43, 0.0  ;;  %v3900_v4 = vmul.f32 0.0034722222, %v3864_v3 }
 0x375   :  { %v3911_v46 = vmax.f32 %v3908_v0, 0.0 }
 0x376   :  { %v3916_v5 = vadd.f32 1e-05, %v3910_v2  ;;  %v3906_v50 = vmul.f32 %v3900_v4, %v3900_v4 }
 0x377   :  { %v3917_v47 = vadd.f32 1e-05, %v3911_v46  ;;  %v3894_v48 = vpop.xlane.xlu0 %3893 }
 0x378   :  { %4773 = vrsqrt.f32 %v3916_v5  ;;  %v3903_v51 = vmul.f32 0.0034722222, %v3894_v48 }
 0x379   :  { %4775 = vrsqrt.f32 %v3917_v47 }
 0x37a   :  { %v3909_v52 = vsub.f32 %v3903_v51, %v3906_v50 }
 0x37c   :  { %v3912_v54 = vmax.f32 %v3909_v52, 0.0 }
 0x37e   :  { %v3918_v55 = vadd.f32 1e-05, %v3912_v54 }
 0x380   :  { %4777 = vrsqrt.f32 %v3918_v55 }
 0x382   :  { %v4774_v59 = vpop.eup %4773 }
 0x383   :  { %v4776_v60 = vpop.eup %4775  ;;  %v3922_v61 = vmul.f32 %v4774_v59, %v3913_v56 }
 0x384   :  { %v3923_v63 = vmul.f32 %v4776_v60, %v3914_v58 }
 0x385   :  { %3948 = vperm.xlu1 %4714, %v3922_v61   ;;  %v3928_v7 = vmul.f32 %v3922_v61, %v3898_v31 }
 0x386   :  { %3953 = vperm.xlu0 %4715, %v3923_v63   ;;  %v3929_v9 = vmul.f32 %v3923_v63, %v3899_v33 }
 0x387   :  { %v3931_v8 = vsub.f32 %v3925_v6, %v3928_v7 }
 0x388   :  { %v3932_v13 = vsub.f32 %v3926_v10, %v3929_v9 }
 0x389   :  { %3975 = vperm.xlu1 %4714, %v3931_v8  }
 0x38a   :  { %v4778_v12 = vpop.eup %4777 }
 0x38b   :  { %v3924_v14 = vmul.f32 %v4778_v12, %v3915_v11 }
 0x38d   :  { %3980 = vperm.xlu1 %4714, %v3932_v13   ;;  %v3930_v15 = vmul.f32 %v3924_v14, %v3900_v4 }
 0x38f   :  { %v3933_v19 = vsub.f32 %v3927_v17, %v3930_v15 }
 0x391   :  { %3958 = vperm.xlu1 %4714, %v3924_v14  }
 0x395   :  { %3985 = vperm.xlu1 %4714, %v3933_v19  }
 0x404   :  { %v3949_v20 = vpop.permute.xlu1 %3948 }
 0x405   :  { %v3961_v21 = vmul.f32 %v3949_v20, %v5434_v34  ;;  %v3962_v22 = vmul.f32 %v3949_v20, %v5437_v35  ;;  %v3963_v23 = vmul.f32 %v3949_v20, %v5448_v44  ;;  %v3964_v24 = vmul.f32 %v3949_v20, %v5452_v45  ;;  %v3954_v25 = vpop.permute.xlu0 %3953 }
 0x406   :  { %v3965_v31 = vmul.f32 %v3954_v25, %v5440_v38  ;;  %v3966_v32 = vmul.f32 %v3954_v25, %v5444_v42  ;;  %v3967_v35 = vmul.f32 %v3954_v25, %v5456_v49  ;;  %v3968_v44 = vmul.f32 %v3954_v25, %v5460_v53 }
 0x408   :  { %v3976_v26 = vpop.permute.xlu1 %3975 }
 0x409   :  { %v3988_v27 = vadd.f32 %v3976_v26, %v3961_v21  ;;  %v3989_v28 = vadd.f32 %v3976_v26, %v3962_v22  ;;  %v3990_v29 = vadd.f32 %v3976_v26, %v3963_v23  ;;  %v3991_v30 = vadd.f32 %v3976_v26, %v3964_v24 }
 0x40b   :  { %v4000_v33 = vmax.f32 %v3988_v27, 0.0  ;;  %v4001_v1 = vmax.f32 %v3989_v28, 0.0  ;;  %v4002_v36 = vmax.f32 %v3990_v29, 0.0  ;;  %v4003_v34 = vmax.f32 %v3991_v30, 0.0 }
 0x40c   :  { %v3981_v37 = vpop.permute.xlu1 %3980 }
 0x40d   :  { %v4299_v45 = vpack.c.bf16 %v4001_v1, %v4000_v33  ;;  %v4300_v39 = vpack.c.bf16 %v4003_v34, %v4002_v36  ;;  %v3992_v40 = vadd.f32 %v3981_v37, %v3965_v31  ;;  %v3993_v41 = vadd.f32 %v3981_v37, %v3966_v32 }
 0x40e   :  { %v3994_v43 = vadd.f32 %v3981_v37, %v3967_v35  ;;  %v3995_v0 = vadd.f32 %v3981_v37, %v3968_v44 }
 0x40f   :  { %4052 = vst [vmem:[%s5535_s5] sm:$0xff] %v4299_v45  ;;  %4053 = vst [vmem:[%s5535_s5 + $0x8] sm:$0xff] %v4300_v39  ;;  %v4004_v38 = vmax.f32 %v3992_v40, 0.0  ;;  %v4005_v42 = vmax.f32 %v3993_v41, 0.0 }
 0x410   :  { %v4006_v49 = vmax.f32 %v3994_v43, 0.0  ;;  %v4007_v3 = vmax.f32 %v3995_v0, 0.0  ;;  %v3959_v53 = vpop.permute.xlu1 %3958 }
 0x411   :  { %v4301_v2 = vpack.c.bf16 %v4005_v42, %v4004_v38  ;;  %v3969_v46 = vmul.f32 %v3959_v53, %v5464_v57  ;;  %v3970_v5 = vmul.f32 %v3959_v53, %v5468_v62  ;;  %v3971_v47 = vmul.f32 %v3959_v53, %v5474_v16 }
 0x412   :  { %v4302_v4 = vpack.c.bf16 %v4007_v3, %v4006_v49  ;;  %v3972_v48 = vmul.f32 %v3959_v53, %v5477_v18 }
 0x413   :  { %4054 = vst [vmem:[%s5535_s5 + $0x10] sm:$0xff] %v4301_v2 }
 0x414   :  { %4055 = vst [vmem:[%s5535_s5 + $0x18] sm:$0xff] %v4302_v4  ;;  %v3986_v50 = vpop.permute.xlu1 %3985 }
 0x415   :  { %v3996_v51 = vadd.f32 %v3986_v50, %v3969_v46  ;;  %v3997_v52 = vadd.f32 %v3986_v50, %v3970_v5  ;;  %v3998_v54 = vadd.f32 %v3986_v50, %v3971_v47  ;;  %v3999_v55 = vadd.f32 %v3986_v50, %v3972_v48 }
 0x417   :  { %v4008_v56 = vmax.f32 %v3996_v51, 0.0  ;;  %v4009_v58 = vmax.f32 %v3997_v52, 0.0  ;;  %v4010_v59 = vmax.f32 %v3998_v54, 0.0  ;;  %v4011_v60 = vmax.f32 %v3999_v55, 0.0 }
 0x419   :  { %v4303_v57 = vpack.c.bf16 %v4009_v58, %v4008_v56  ;;  %v4304_v61 = vpack.c.bf16 %v4011_v60, %v4010_v59 }
 0x41b   :  { %4056 = vst [vmem:[%s5535_s5 + $0x20] sm:$0xff] %v4303_v57  ;;  %4057 = vst [vmem:[%s5535_s5 + $0x28] sm:$0xff] %v4304_v61 }

// kernel: network_forward.8
= control target key start
LH: loop header
LB: loop body
LE: loop exit
PB: predicated region body
PF: predicated region fallthrough
CT: control target
= control target key end

     0   :  { %s5514_s22 = smov 127   ;;  %v5515_v7 = vmov 0   ;;  %s5516_s10 = smov 126   ;;  %vm105_vm0 = vcmask 1039360   ;;  %vm125_vm1 = vcmask 1043456   ;;  %vm118_vm2 = vcmask 195584   ;;  %s6814_s0 = inlined_call_operand.vmem [shape: bf16[24,640], index: 0, kind: input, shape index: {}]   ;;  %s6815_s1 = inlined_call_operand.vmem [shape: bf16[25,24,24], index: 1, kind: input, shape index: {}]   ;;  %s6816_s4 = inlined_call_operand.vmem [shape: f32[1,512], index: 4, kind: input, shape index: {}]   ;;  %s6817_s2 = inlined_call_operand.vmem [shape: f32[24,1], index: 2, kind: input, shape index: {}]   ;;  %s6818_s3 = inlined_call_operand.vmem [shape: f32[24,1], index: 3, kind: input, shape index: {}]   ;;  %s6819_s5 = inlined_call_operand.vmem [shape: bf16[24,512], index: 5, kind: output, shape index: {}]  }
   0x1   :  { %v5572_v0 = vld [vmem:[%s6814_s0 + $0x4] ss:$20 sps:$4 sm:$0xff]   ;;  %v5577_v1 = vld [vmem:[%s6814_s0] ss:$20 sps:$4 sm:$0xff]   ;;  %v5583_v2 = vld [vmem:[%s6814_s0 + $0x8] ss:$20 sps:$4 sm:$0xff]   ;;  %170 = vmatprep.mubr.bf16.mxu0 %v5515_v7  ;;  %221 = vmatprep.mubr.bf16.mxu1 %v5515_v7 }
   0x2   :  { %87 = vrot.lane.b32.xlu0 %v5572_v0, %s5514_s22  ;;  %85 = vrot.lane.b32.xlu1 %v5577_v1, %s5514_s22  ;;  %v5589_v3 = vld [vmem:[%s6814_s0 + $0xc] ss:$20 sps:$4 sm:$0xff]   ;;  %v5594_v4 = vld [vmem:[%s6814_s0 + $0x10] ss:$20 sps:$4 sm:$0xff]   ;;  %s5517_s11 = smov 125   ;;  %s5518_s12 = smov 124  }
   0x3   :  { %v36_v5 = vld [vmem:[%s6814_s0 + $0x28] sm:$0xff]  ;;  %v37_v6 = vld [vmem:[%s6814_s0 + $0x30] sm:$0xff]  ;;  %5438 = vset.pattern.permute.xlu1 %v5515_v7  ;;  %5439 = vset.pattern.permute.xlu0 %v5515_v7  ;;  %v5622_v12 = vld [vmem:[%s6814_s0 + $0x38] ss:$0 sps:$4 sm:$0xff]   ;;  %s5519_s13 = smov 114   ;;  %s5520_s14 = smov 113  }
   0x4   :  { %v5605_v8 = vcombine.low %v36_v5, %v36_v5  ;;  %v5611_v9 = vcombine.high %v36_v5, %v36_v5  ;;  %v5614_v10 = vcombine.low %v37_v6, %v37_v6  ;;  %v5617_v11 = vcombine.high %v37_v6, %v37_v6  ;;  %s5521_s15 = smov 112   ;;  %v5452_v28 = vld [vmem:[%s6815_s1 + $0xc] sm:$0xff]   ;;  %v5453_v37 = vld [vmem:[%s6815_s1 + $0x14] ss:$0 sps:$4 sm:$0xff]   ;;  %s5522_s20 = smov 111   ;;  %v5454_v45 = vld [vmem:[%s6815_s1] sm:$0xff]  }
   0x5   :  { %vm430_vm3 = vcmask 1031168   ;;  %v5455_v55 = vld [vmem:[%s6815_s1 + $0x8] ss:$0 sps:$4 sm:$0xff]   ;;  %vm607_vm4 = vcmask 1022976   ;;  %s5523_s25 = smov 110   ;;  %v5456_v5 = vld [vmem:[%s6815_s1 + $0x18] sm:$0xff]  }
   0x6   :  { %89 = vrot.lane.b32.xlu0 %v5583_v2, %s5514_s22  ;;  %91 = vrot.lane.b32.xlu1 %v5589_v3, %s5514_s22  ;;  %v285_v36 = vsel %vm125_vm1, %v5605_v8, 0  ;;  %v291_v41 = vsel %vm125_vm1, %v5614_v10, 0  ;;  %vm784_vm5 = vcmask 1014784   ;;  %s5524_s7 = smov 100   ;;  %vm961_vm6 = vcmask 932864   ;;  %s5526_s19 = smov 98  }
   0x7   :  { %vm1138_vm7 = vcmask 924672   ;;  %vm1315_vm8 = vcmask 916480   ;;  %s5527_s24 = smov 97   ;;  %vm1492_vm9 = vcmask 908288   ;;  %s5528_s6 = smov 96   ;;  %vm1669_vm10 = vcmask 900096  }
   0x8   :  { %s5529_s21 = smov 86   ;;  %vm1846_vm11 = vcmask 818176   ;;  %vm2023_vm12 = vcmask 809984   ;;  %s5531_s30 = smov 84   ;;  %vm2200_vm13 = vcmask 801792   ;;  %vm2377_vm14 = vcmask 793600  }
   0x9   :  { %vm2554_vm15 = vcmask 785408   ;;  %s5536_s29 = smov 70   ;;  %s5537_s9 = smov 69  }
   0xa   :  { %93 = vrot.lane.b32.xlu0 %v5594_v4, %s5514_s22  ;;  %95 = vrot.lane.b32.xlu1 %v5605_v8, %s5514_s22 }
   0xe   :  { %97 = vrot.lane.b32.xlu0 %v5611_v9, %s5514_s22  ;;  %99 = vrot.lane.b32.xlu1 %v5614_v10, %s5514_s22 }
  0x12   :  { %101 = vrot.lane.b32.xlu0 %v5617_v11, %s5514_s22  ;;  %103 = vrot.lane.b32.xlu1 %v5622_v12, %s5514_s22 }
  0x16   :  { %412 = vrot.lane.b32.xlu0 %v5572_v0, %s5516_s10  ;;  %414 = vrot.lane.b32.xlu1 %v5583_v2, %s5516_s10 }
  0x1a   :  { %410 = vrot.lane.b32.xlu0 %v5577_v1, %s5516_s10  ;;  %416 = vrot.lane.b32.xlu1 %v5589_v3, %s5516_s10 }
  0x1e   :  { %418 = vrot.lane.b32.xlu0 %v5594_v4, %s5516_s10  ;;  %420 = vrot.lane.b32.xlu1 %v5605_v8, %s5516_s10 }
  0x22   :  { %422 = vrot.lane.b32.xlu0 %v5611_v9, %s5516_s10  ;;  %424 = vrot.lane.b32.xlu1 %v5614_v10, %s5516_s10 }
  0x26   :  { %426 = vrot.lane.b32.xlu0 %v5617_v11, %s5516_s10  ;;  %428 = vrot.lane.b32.xlu1 %v5622_v12, %s5516_s10  ;;  %s5532_s10 = smov 83  }
  0x2a   :  { %589 = vrot.lane.b32.xlu0 %v5572_v0, %s5517_s11  ;;  %591 = vrot.lane.b32.xlu1 %v5583_v2, %s5517_s11 }
  0x2e   :  { %587 = vrot.lane.b32.xlu0 %v5577_v1, %s5517_s11  ;;  %593 = vrot.lane.b32.xlu1 %v5589_v3, %s5517_s11 }
  0x32   :  { %595 = vrot.lane.b32.xlu0 %v5594_v4, %s5517_s11  ;;  %597 = vrot.lane.b32.xlu1 %v5605_v8, %s5517_s11 }
  0x36   :  { %599 = vrot.lane.b32.xlu0 %v5611_v9, %s5517_s11  ;;  %601 = vrot.lane.b32.xlu1 %v5614_v10, %s5517_s11 }
  0x3a   :  { %603 = vrot.lane.b32.xlu0 %v5617_v11, %s5517_s11  ;;  %605 = vrot.lane.b32.xlu1 %v5622_v12, %s5517_s11 }
  0x3e   :  { %766 = vrot.lane.b32.xlu0 %v5572_v0, %s5518_s12  ;;  %768 = vrot.lane.b32.xlu1 %v5583_v2, %s5518_s12 }
  0x42   :  { %764 = vrot.lane.b32.xlu0 %v5577_v1, %s5518_s12  ;;  %770 = vrot.lane.b32.xlu1 %v5589_v3, %s5518_s12 }
  0x46   :  { %772 = vrot.lane.b32.xlu0 %v5594_v4, %s5518_s12  ;;  %774 = vrot.lane.b32.xlu1 %v5605_v8, %s5518_s12 }
  0x4a   :  { %776 = vrot.lane.b32.xlu0 %v5611_v9, %s5518_s12  ;;  %778 = vrot.lane.b32.xlu1 %v5614_v10, %s5518_s12 }
  0x4e   :  { %780 = vrot.lane.b32.xlu0 %v5617_v11, %s5518_s12  ;;  %782 = vrot.lane.b32.xlu1 %v5622_v12, %s5518_s12  ;;  %s5525_s12 = smov 99  }
  0x52   :  { %943 = vrot.lane.b32.xlu0 %v5572_v0, %s5519_s13  ;;  %945 = vrot.lane.b32.xlu1 %v5583_v2, %s5519_s13 }
  0x56   :  { %941 = vrot.lane.b32.xlu0 %v5577_v1, %s5519_s13  ;;  %947 = vrot.lane.b32.xlu1 %v5589_v3, %s5519_s13 }
  0x5a   :  { %949 = vrot.lane.b32.xlu0 %v5594_v4, %s5519_s13  ;;  %951 = vrot.lane.b32.xlu1 %v5605_v8, %s5519_s13 }
  0x5e   :  { %953 = vrot.lane.b32.xlu0 %v5611_v9, %s5519_s13  ;;  %955 = vrot.lane.b32.xlu1 %v5614_v10, %s5519_s13 }
  0x62   :  { %957 = vrot.lane.b32.xlu0 %v5617_v11, %s5519_s13  ;;  %959 = vrot.lane.b32.xlu1 %v5622_v12, %s5519_s13 }
  0x66   :  { %1120 = vrot.lane.b32.xlu0 %v5572_v0, %s5520_s14  ;;  %1122 = vrot.lane.b32.xlu1 %v5583_v2, %s5520_s14 }
  0x6a   :  { %1118 = vrot.lane.b32.xlu0 %v5577_v1, %s5520_s14  ;;  %1124 = vrot.lane.b32.xlu1 %v5589_v3, %s5520_s14 }
  0x6e   :  { %1126 = vrot.lane.b32.xlu0 %v5594_v4, %s5520_s14  ;;  %1128 = vrot.lane.b32.xlu1 %v5605_v8, %s5520_s14 }
  0x72   :  { %1130 = vrot.lane.b32.xlu0 %v5611_v9, %s5520_s14  ;;  %1132 = vrot.lane.b32.xlu1 %v5614_v10, %s5520_s14 }
  0x74   :  { %v88_v13 = vpop.permute.xlu0 %87  ;;  %v86_v14 = vpop.permute.xlu1 %85 }
  0x75   :  { %v106_v18 = vsel %vm105_vm0, %v86_v14, %v88_v13 }
  0x76   :  { %1134 = vrot.lane.b32.xlu0 %v5617_v11, %s5520_s14  ;;  %1136 = vrot.lane.b32.xlu1 %v5622_v12, %s5520_s14  ;;  %s5538_s14 = smov 68  }
  0x78   :  { %v90_v15 = vpop.permute.xlu0 %89  ;;  %v92_v16 = vpop.permute.xlu1 %91 }
  0x79   :  { %v107_v17 = vsel %vm105_vm0, %v88_v13, %v90_v15  ;;  %v108_v22 = vsel %vm105_vm0, %v90_v15, %v92_v16 }
  0x7a   :  { %138 = vmatprep.subr.bf16.mxu0 %v107_v17  ;;  %1297 = vrot.lane.b32.xlu0 %v5572_v0, %s5521_s15 }
  0x7b   :  { %1299 = vrot.lane.b32.xlu1 %v5583_v2, %s5521_s15  ;;  %139 = vmatpush1.bf16.msra.mxu0 %v106_v18 }
  0x7c   :  { %v94_v19 = vpop.permute.xlu0 %93  ;;  %v96_v20 = vpop.permute.xlu1 %95 }
  0x7d   :  { %v109_v21 = vsel %vm105_vm0, %v92_v16, %v94_v19 }
  0x7e   :  { %1295 = vrot.lane.b32.xlu0 %v5577_v1, %s5521_s15  ;;  %189 = vmatprep.subr.bf16.mxu1 %v109_v21  ;;  %v5457_v21 = vld [vmem:[%s6815_s1 + $0x20] ss:$0 sps:$4 sm:$0xff]  }
  0x7f   :  { %1301 = vrot.lane.b32.xlu1 %v5589_v3, %s5521_s15  ;;  %190 = vmatpush1.bf16.msra.mxu1 %v108_v22 }
  0x80   :  { %v98_v23 = vpop.permute.xlu0 %97  ;;  %v100_v24 = vpop.permute.xlu1 %99 }
  0x81   :  { %v110_v25 = vsel %vm105_vm0, %v96_v20, %v98_v23  ;;  %v111_v26 = vsel %vm105_vm0, %v98_v23, %v100_v24 }
  0x82   :  { %1303 = vrot.lane.b32.xlu0 %v5594_v4, %s5521_s15  ;;  %v127_v27 = vsel %vm125_vm1, %v110_v25, 0  ;;  %4742 = vmatprep.subr.msk.bf16.mxu0 %vm125_vm1, %v111_v26 }
  0x83   :  { %1305 = vrot.lane.b32.xlu1 %v5605_v8, %s5521_s15  ;;  %141 = vmatpush1.bf16.msra.mxu0 %v127_v27 }
  0x84   :  { %v102_v29 = vpop.permute.xlu0 %101  ;;  %v104_v30 = vpop.permute.xlu1 %103  ;;  %296 = vmatprep.subr.bf16.mxu0 %v5572_v0 }
  0x85   :  { %v112_v31 = vsel %vm105_vm0, %v100_v24, %v102_v29  ;;  %v113_v32 = vsel %vm105_vm0, %v102_v29, %v104_v30  ;;  %vm2731_vm0 = vcmask 703488  }
  0x86   :  { %1307 = vrot.lane.b32.xlu0 %v5611_v9, %s5521_s15  ;;  %v133_v33 = vsel %vm125_vm1, %v112_v31, 0  ;;  %4743 = vmatmul.mubr.msk.bf16.vlgmr.msra.gmra.mrb[0].mxu0 %vm118_vm2, %v5452_v28  ;;  %v5458_v31 = vld [vmem:[%s6815_s1 + $0x24] sm:$0xff]  }
  0x87   :  { %1309 = vrot.lane.b32.xlu1 %v5614_v10, %s5521_s15  ;;  %4745 = vmatprep.subr.msk.bf16.mxu1 %vm125_vm1, %v113_v32 }
  0x88   :  { %297 = vmatpush1.bf16.msra.mxu0 %v5577_v1  ;;  %v413_v34 = vpop.permute.xlu0 %412  ;;  %192 = vmatpush1.bf16.msra.mxu1 %v133_v33  ;;  %v415_v35 = vpop.permute.xlu1 %414 }
  0x89   :  { %4758 = vmatprep.subr.msk.bf16.mxu0 %vm125_vm1, %v5611_v9  ;;  %347 = vmatprep.subr.bf16.mxu1 %v5589_v3  ;;  %v432_v39 = vsel %vm430_vm3, %v413_v34, %v415_v35 }
  0x8a   :  { %1311 = vrot.lane.b32.xlu0 %v5617_v11, %s5521_s15  ;;  %180 = vmatprep.mubr.bf16.mxu0 %v5515_v7 }
  0x8b   :  { %1313 = vrot.lane.b32.xlu1 %v5622_v12, %s5521_s15  ;;  %4746 = vmatmul.mubr.msk.bf16.vlgmr.msra.gmra.mrb[0].mxu1 %vm118_vm2, %v5452_v28  ;;  %s5533_s15 = smov 82  }
  0x8c   :  { %299 = vmatpush1.bf16.msra.mxu0 %v285_v36  ;;  %v411_v38 = vpop.permute.xlu0 %410  ;;  %v417_v40 = vpop.permute.xlu1 %416  ;;  %348 = vmatpush1.bf16.msra.mxu1 %v5583_v2 }
  0x8d   :  { %461 = vmatprep.subr.bf16.mxu0 %v432_v39  ;;  %4761 = vmatprep.subr.msk.bf16.mxu1 %vm125_vm1, %v5617_v11  ;;  %v431_v49 = vsel %vm430_vm3, %v411_v38, %v413_v34  ;;  %v433_v56 = vsel %vm430_vm3, %v415_v35, %v417_v40 }
  0x8e   :  { %1474 = vrot.lane.b32.xlu0 %v5572_v0, %s5522_s20  ;;  %4744 = vmatmul.mubr.msk.bf16.gmra.mrb[4].mxu0 %vm118_vm2, %v5453_v37 }
  0x8f   :  { %1476 = vrot.lane.b32.xlu1 %v5583_v2, %s5522_s20  ;;  %231 = vmatprep.mubr.bf16.mxu1 %v5515_v7 }
  0x90   :  { %v419_v42 = vpop.permute.xlu0 %418  ;;  %328 = vmatprep.mubr.bf16.mxu0 %v5515_v7  ;;  %v421_v43 = vpop.permute.xlu1 %420  ;;  %350 = vmatpush1.bf16.msra.mxu1 %v291_v41 }
  0x91   :  { %v434_v44 = vsel %vm430_vm3, %v417_v40, %v419_v42  ;;  %v5459_v42 = vld [vmem:[%s6815_s1 + $0x2c] ss:$0 sps:$4 sm:$0xff]  }
  0x92   :  { %1472 = vrot.lane.b32.xlu0 %v5577_v1, %s5522_s20  ;;  %512 = vmatprep.subr.bf16.mxu1 %v434_v44 }
  0x93   :  { %1478 = vrot.lane.b32.xlu1 %v5589_v3, %s5522_s20  ;;  %4747 = vmatmul.mubr.msk.bf16.gmra.mrb[4].mxu1 %vm118_vm2, %v5453_v37 }
  0x94   :  { %v423_v46 = vpop.permute.xlu0 %422  ;;  %v425_v47 = vpop.permute.xlu1 %424  ;;  %379 = vmatprep.mubr.bf16.mxu1 %v5515_v7 }
  0x95   :  { %v436_v48 = vsel %vm430_vm3, %v423_v46, %v425_v47  ;;  %v435_v50 = vsel %vm430_vm3, %v421_v43, %v423_v46 }
  0x96   :  { %1480 = vrot.lane.b32.xlu0 %v5594_v4, %s5522_s20  ;;  %4759 = vmatmul.mubr.msk.bf16.vlgmr.msra.gmra.mrb[0].mxu0 %vm118_vm2, %v5454_v45  ;;  %v450_v54 = vsel %vm125_vm1, %v435_v50, 0 }
  0x97   :  { %1482 = vrot.lane.b32.xlu1 %v5605_v8, %s5522_s20  ;;  %462 = vmatpush1.bf16.msra.mxu0 %v431_v49 }
  0x98   :  { %v427_v51 = vpop.permute.xlu0 %426  ;;  %338 = vmatprep.mubr.bf16.mxu0 %v5515_v7  ;;  %4769 = vmatprep.subr.msk.bf16.mxu0 %vm125_vm1, %v436_v48  ;;  %v429_v52 = vpop.permute.xlu1 %428 }
  0x99   :  { %v438_v53 = vsel %vm430_vm3, %v427_v51, %v429_v52  ;;  %v437_v58 = vsel %vm430_vm3, %v425_v47, %v427_v51  ;;  %v5460_v52 = vld [vmem:[%s6815_s1 + $0x30] sm:$0xff]   ;;  %vm2908_vm3 = vcmask 695296  }
  0x9a   :  { %1484 = vrot.lane.b32.xlu0 %v5611_v9, %s5522_s20  ;;  %v456_v61 = vsel %vm125_vm1, %v437_v58, 0 }
  0x9b   :  { %1486 = vrot.lane.b32.xlu1 %v5614_v10, %s5522_s20  ;;  %4762 = vmatmul.mubr.msk.bf16.vlgmr.msra.gmra.mrb[0].mxu1 %vm118_vm2, %v5454_v45 }
  0x9c   :  { %464 = vmatpush1.bf16.msra.mxu0 %v450_v54  ;;  %v590_v57 = vpop.permute.xlu0 %589  ;;  %513 = vmatpush1.bf16.msra.mxu1 %v433_v56  ;;  %v592_v59 = vpop.permute.xlu1 %591 }
  0x9d   :  { %389 = vmatprep.mubr.bf16.mxu1 %v5515_v7  ;;  %4772 = vmatprep.subr.msk.bf16.mxu1 %vm125_vm1, %v438_v53  ;;  %v609_v60 = vsel %vm607_vm4, %v590_v57, %v592_v59 }
  0x9e   :  { %1488 = vrot.lane.b32.xlu0 %v5617_v11, %s5522_s20  ;;  %4760 = vmatmul.mubr.msk.bf16.gmra.mrb[4].mxu0 %vm118_vm2, %v5455_v55 }
  0x9f   :  { %1490 = vrot.lane.b32.xlu1 %v5622_v12, %s5522_s20  ;;  %638 = vmatprep.subr.bf16.mxu0 %v609_v60  ;;  %v5461_v60 = vld [vmem:[%s6815_s1 + $0x38] ss:$0 sps:$4 sm:$0xff]   ;;  %s5534_s20 = smov 72  }
  0xa0   :  { %v588_v62 = vpop.permute.xlu0 %587  ;;  %493 = vmatprep.mubr.bf16.mxu0 %v5515_v7  ;;  %515 = vmatpush1.bf16.msra.mxu1 %v456_v61  ;;  %v594_v63 = vpop.permute.xlu1 %593 }
  0xa1   :  { %v608_v15 = vsel %vm607_vm4, %v588_v62, %v590_v57  ;;  %v610_v22 = vsel %vm607_vm4, %v592_v59, %v594_v63 }
  0xa2   :  { %1651 = vrot.lane.b32.xlu0 %v5572_v0, %s5523_s25 }
  0xa3   :  { %1653 = vrot.lane.b32.xlu1 %v5583_v2, %s5523_s25  ;;  %4763 = vmatmul.mubr.msk.bf16.gmra.mrb[4].mxu1 %vm118_vm2, %v5455_v55 }
  0xa4   :  { %v596_v6 = vpop.permute.xlu0 %595  ;;  %v598_v13 = vpop.permute.xlu1 %597  ;;  %544 = vmatprep.mubr.bf16.mxu1 %v5515_v7 }
  0xa5   :  { %v611_v14 = vsel %vm607_vm4, %v594_v63, %v596_v6 }
  0xa6   :  { %1649 = vrot.lane.b32.xlu0 %v5577_v1, %s5523_s25  ;;  %689 = vmatprep.subr.bf16.mxu1 %v611_v14 }
  0xa7   :  { %1655 = vrot.lane.b32.xlu1 %v5589_v3, %s5523_s25  ;;  %4770 = vmatmul.mubr.msk.bf16.vlgmr.msra.gmra.mrb[0].mxu0 %vm118_vm2, %v5456_v5 }
  0xa8   :  { %639 = vmatpush1.bf16.msra.mxu0 %v608_v15  ;;  %v600_v16 = vpop.permute.xlu0 %599  ;;  %503 = vmatprep.mubr.bf16.mxu0 %v5515_v7  ;;  %v602_v18 = vpop.permute.xlu1 %601 }
  0xa9   :  { %v612_v17 = vsel %vm607_vm4, %v598_v13, %v600_v16  ;;  %v613_v19 = vsel %vm607_vm4, %v600_v16, %v602_v18 }
  0xaa   :  { %1657 = vrot.lane.b32.xlu0 %v5594_v4, %s5523_s25  ;;  %v627_v20 = vsel %vm125_vm1, %v612_v17, 0  ;;  %4780 = vmatprep.subr.msk.bf16.mxu0 %vm125_vm1, %v613_v19  ;;  %v5462_v17 = vld [vmem:[%s6815_s1 + $0x3c] sm:$0xff]  }
  0xab   :  { %1659 = vrot.lane.b32.xlu1 %v5605_v8, %s5523_s25  ;;  %4773 = vmatmul.mubr.msk.bf16.vlgmr.msra.gmra.mrb[0].mxu1 %vm118_vm2, %v5456_v5 }
  0xac   :  { %641 = vmatpush1.bf16.msra.mxu0 %v627_v20  ;;  %v604_v23 = vpop.permute.xlu0 %603  ;;  %690 = vmatpush1.bf16.msra.mxu1 %v610_v22  ;;  %v606_v25 = vpop.permute.xlu1 %605 }
  0xad   :  { %v614_v24 = vsel %vm607_vm4, %v602_v18, %v604_v23  ;;  %554 = vmatprep.mubr.bf16.mxu1 %v5515_v7  ;;  %v615_v26 = vsel %vm607_vm4, %v604_v23, %v606_v25  ;;  %vm3085_vm4 = vcmask 687104  }
  0xae   :  { %1661 = vrot.lane.b32.xlu0 %v5611_v9, %s5523_s25  ;;  %v633_v27 = vsel %vm125_vm1, %v614_v24, 0  ;;  %4783 = vmatprep.subr.msk.bf16.mxu1 %vm125_vm1, %v615_v26  ;;  %v5463_v26 = vld [vmem:[%s6815_s1 + $0x44] ss:$0 sps:$4 sm:$0xff]  }
  0xaf   :  { %1663 = vrot.lane.b32.xlu1 %v5614_v10, %s5523_s25  ;;  %4771 = vmatmul.mubr.msk.bf16.gmra.mrb[4].mxu0 %vm118_vm2, %v5457_v21 }
  0xb0   :  { %v767_v28 = vpop.permute.xlu0 %766  ;;  %670 = vmatprep.mubr.bf16.mxu0 %v5515_v7  ;;  %692 = vmatpush1.bf16.msra.mxu1 %v633_v27  ;;  %v769_v29 = vpop.permute.xlu1 %768 }
  0xb1   :  { %v786_v30 = vsel %vm784_vm5, %v767_v28, %v769_v29 }
  0xb2   :  { %1665 = vrot.lane.b32.xlu0 %v5617_v11, %s5523_s25  ;;  %815 = vmatprep.subr.bf16.mxu0 %v786_v30 }
  0xb3   :  { %1667 = vrot.lane.b32.xlu1 %v5622_v12, %s5523_s25  ;;  %4774 = vmatmul.mubr.msk.bf16.gmra.mrb[4].mxu1 %vm118_vm2, %v5457_v21  ;;  %s5530_s25 = smov 85  }
  0xb4   :  { %v765_v32 = vpop.permute.xlu0 %764  ;;  %v771_v34 = vpop.permute.xlu1 %770  ;;  %721 = vmatprep.mubr.bf16.mxu1 %v5515_v7 }
  0xb5   :  { %v785_v33 = vsel %vm784_vm5, %v765_v32, %v767_v28  ;;  %v787_v38 = vsel %vm784_vm5, %v769_v29, %v771_v34 }
  0xb6   :  { %1828 = vrot.lane.b32.xlu0 %v5572_v0, %s5524_s7 }
  0xb7   :  { %1830 = vrot.lane.b32.xlu1 %v5583_v2, %s5524_s7  ;;  %4781 = vmatmul.mubr.msk.bf16.vlgmr.msra.gmra.mrb[0].mxu0 %vm118_vm2, %v5458_v31 }
  0xb8   :  { %816 = vmatpush1.bf16.msra.mxu0 %v785_v33  ;;  %v773_v35 = vpop.permute.xlu0 %772  ;;  %680 = vmatprep.mubr.bf16.mxu0 %v5515_v7  ;;  %v775_v36 = vpop.permute.xlu1 %774 }
  0xb9   :  { %v788_v37 = vsel %vm784_vm5, %v771_v34, %v773_v35 }
  0xba   :  { %1826 = vrot.lane.b32.xlu0 %v5577_v1, %s5524_s7  ;;  %866 = vmatprep.subr.bf16.mxu1 %v788_v37  ;;  %v5464_v37 = vld [vmem:[%s6815_s1 + $0x48] sm:$0xff]  }
  0xbb   :  { %1832 = vrot.lane.b32.xlu1 %v5589_v3, %s5524_s7  ;;  %4784 = vmatmul.mubr.msk.bf16.vlgmr.msra.gmra.mrb[0].mxu1 %vm118_vm2, %v5458_v31 }
  0xbc   :  { %v777_v39 = vpop.permute.xlu0 %776  ;;  %867 = vmatpush1.bf16.msra.mxu1 %v787_v38  ;;  %v779_v41 = vpop.permute.xlu1 %778  ;;  %731 = vmatprep.mubr.bf16.mxu1 %v5515_v7 }
  0xbd   :  { %v789_v40 = vsel %vm784_vm5, %v775_v36, %v777_v39  ;;  %v790_v43 = vsel %vm784_vm5, %v777_v39, %v779_v41 }
  0xbe   :  { %1834 = vrot.lane.b32.xlu0 %v5594_v4, %s5524_s7  ;;  %v804_v44 = vsel %vm125_vm1, %v789_v40, 0  ;;  %4791 = vmatprep.subr.msk.bf16.mxu0 %vm125_vm1, %v790_v43 }
  0xbf   :  { %1836 = vrot.lane.b32.xlu1 %v5605_v8, %s5524_s7  ;;  %818 = vmatpush1.bf16.msra.mxu0 %v804_v44 }
  0xc0   :  { %v781_v45 = vpop.permute.xlu0 %780  ;;  %v783_v47 = vpop.permute.xlu1 %782  ;;  %4782 = vmatmul.mubr.msk.bf16.gmra.mrb[4].mxu0 %vm118_vm2, %v5459_v42 }
  0xc1   :  { %v791_v46 = vsel %vm784_vm5, %v779_v41, %v781_v45  ;;  %v792_v48 = vsel %vm784_vm5, %v781_v45, %v783_v47  ;;  %847 = vmatprep.mubr.bf16.mxu0 %v5515_v7  ;;  %vm3262_vm5 = vcmask 678912  }
  0xc2   :  { %1838 = vrot.lane.b32.xlu0 %v5611_v9, %s5524_s7  ;;  %v810_v49 = vsel %vm125_vm1, %v791_v46, 0  ;;  %4794 = vmatprep.subr.msk.bf16.mxu1 %vm125_vm1, %v792_v48  ;;  %v5465_v46 = vld [vmem:[%s6815_s1 + $0x50] ss:$0 sps:$4 sm:$0xff]  }
  0xc3   :  { %1840 = vrot.lane.b32.xlu1 %v5614_v10, %s5524_s7  ;;  %869 = vmatpush1.bf16.msra.mxu1 %v810_v49 }
  0xc4   :  { %v944_v50 = vpop.permute.xlu0 %943  ;;  %v946_v51 = vpop.permute.xlu1 %945  ;;  %4785 = vmatmul.mubr.msk.bf16.gmra.mrb[4].mxu1 %vm118_vm2, %v5459_v42 }
  0xc5   :  { %v963_v53 = vsel %vm961_vm6, %v944_v50, %v946_v51  ;;  %898 = vmatprep.mubr.bf16.mxu1 %v5515_v7 }
  0xc6   :  { %1842 = vrot.lane.b32.xlu0 %v5617_v11, %s5524_s7  ;;  %992 = vmatprep.subr.bf16.mxu0 %v963_v53 }
  0xc7   :  { %1844 = vrot.lane.b32.xlu1 %v5622_v12, %s5524_s7 }
  0xc8   :  { %v942_v54 = vpop.permute.xlu0 %941  ;;  %v948_v56 = vpop.permute.xlu1 %947  ;;  %4792 = vmatmul.mubr.msk.bf16.vlgmr.msra.gmra.mrb[0].mxu0 %vm118_vm2, %v5460_v52 }
  0xc9   :  { %v962_v55 = vsel %vm961_vm6, %v942_v54, %v944_v50  ;;  %857 = vmatprep.mubr.bf16.mxu0 %v5515_v7  ;;  %v964_v61 = vsel %vm961_vm6, %v946_v51, %v948_v56 }
  0xca   :  { %2005 = vrot.lane.b32.xlu0 %v5572_v0, %s5525_s12  ;;  %993 = vmatpush1.bf16.msra.mxu0 %v962_v55  ;;  %v5466_v55 = vld [vmem:[%s6815_s1 + $0x54] sm:$0xff]  }
  0xcb   :  { %2007 = vrot.lane.b32.xlu1 %v5583_v2, %s5525_s12 }
  0xcc   :  { %v950_v57 = vpop.permute.xlu0 %949  ;;  %v952_v58 = vpop.permute.xlu1 %951  ;;  %4795 = vmatmul.mubr.msk.bf16.vlgmr.msra.gmra.mrb[0].mxu1 %vm118_vm2, %v5460_v52 }
  0xcd   :  { %v965_v59 = vsel %vm961_vm6, %v948_v56, %v950_v57  ;;  %908 = vmatprep.mubr.bf16.mxu1 %v5515_v7 }
  0xce   :  { %2003 = vrot.lane.b32.xlu0 %v5577_v1, %s5525_s12  ;;  %1043 = vmatprep.subr.bf16.mxu1 %v965_v59 }
  0xcf   :  { %2009 = vrot.lane.b32.xlu1 %v5589_v3, %s5525_s12  ;;  %1044 = vmatpush1.bf16.msra.mxu1 %v964_v61 }
  0xd0   :  { %v954_v62 = vpop.permute.xlu0 %953  ;;  %v956_v5 = vpop.permute.xlu1 %955  ;;  %4793 = vmatmul.mubr.msk.bf16.gmra.mrb[4].mxu0 %vm118_vm2, %v5461_v60 }
  0xd1   :  { %v966_v63 = vsel %vm961_vm6, %v952_v58, %v954_v62  ;;  %v967_v6 = vsel %vm961_vm6, %v954_v62, %v956_v5  ;;  %1024 = vmatprep.mubr.bf16.mxu0 %v5515_v7 }
  0xd2   :  { %2011 = vrot.lane.b32.xlu0 %v5594_v4, %s5525_s12  ;;  %v981_v13 = vsel %vm125_vm1, %v966_v63, 0  ;;  %4802 = vmatprep.subr.msk.bf16.mxu0 %vm125_vm1, %v967_v6  ;;  %v5467_v63 = vld [vmem:[%s6815_s1 + $0x5c] ss:$0 sps:$4 sm:$0xff]  }
  0xd3   :  { %2013 = vrot.lane.b32.xlu1 %v5605_v8, %s5525_s12  ;;  %995 = vmatpush1.bf16.msra.mxu0 %v981_v13  ;;  %v6026_v13 = vld [vmem:[%s6814_s0 + $0x4] ss:$20 sps:$4 sm:$0xff]  }
  0xd4   :  { %v958_v14 = vpop.permute.xlu0 %957  ;;  %v960_v16 = vpop.permute.xlu1 %959  ;;  %4796 = vmatmul.mubr.msk.bf16.gmra.mrb[4].mxu1 %vm118_vm2, %v5461_v60 }
  0xd5   :  { %v968_v15 = vsel %vm961_vm6, %v956_v5, %v958_v14  ;;  %v969_v18 = vsel %vm961_vm6, %v958_v14, %v960_v16  ;;  %1075 = vmatprep.mubr.bf16.mxu1 %v5515_v7  ;;  %vm3439_vm6 = vcmask 670720  }
  0xd6   :  { %2015 = vrot.lane.b32.xlu0 %v5611_v9, %s5525_s12  ;;  %v987_v19 = vsel %vm125_vm1, %v968_v15, 0  ;;  %4805 = vmatprep.subr.msk.bf16.mxu1 %vm125_vm1, %v969_v18 }
  0xd7   :  { %2017 = vrot.lane.b32.xlu1 %v5614_v10, %s5525_s12  ;;  %1046 = vmatpush1.bf16.msra.mxu1 %v987_v19  ;;  %v6051_v19 = vld [vmem:[%s6814_s0 + $0xc] ss:$20 sps:$4 sm:$0xff]  }
  0xd8   :  { %v1121_v20 = vpop.permute.xlu0 %1120  ;;  %v1123_v21 = vpop.permute.xlu1 %1122  ;;  %4803 = vmatmul.mubr.msk.bf16.vlgmr.msra.gmra.mrb[0].mxu0 %vm118_vm2, %v5462_v17 }
  0xd9   :  { %v1140_v22 = vsel %vm1138_vm7, %v1121_v20, %v1123_v21  ;;  %1034 = vmatprep.mubr.bf16.mxu0 %v5515_v7 }
  0xda   :  { %2019 = vrot.lane.b32.xlu0 %v5617_v11, %s5525_s12  ;;  %1169 = vmatprep.subr.bf16.mxu0 %v1140_v22 }
  0xdb   :  { %2021 = vrot.lane.b32.xlu1 %v5622_v12, %s5525_s12 }
  0xdc   :  { %v1119_v23 = vpop.permute.xlu0 %1118  ;;  %v1125_v25 = vpop.permute.xlu1 %1124  ;;  %4806 = vmatmul.mubr.msk.bf16.vlgmr.msra.gmra.mrb[0].mxu1 %vm118_vm2, %v5462_v17  ;;  %v6043_v17 = vld [vmem:[%s6814_s0] ss:$20 sps:$4 sm:$0xff]  }
  0xdd   :  { %v1139_v24 = vsel %vm1138_vm7, %v1119_v23, %v1121_v20  ;;  %1085 = vmatprep.mubr.bf16.mxu1 %v5515_v7  ;;  %v1141_v30 = vsel %vm1138_vm7, %v1123_v21, %v1125_v25  ;;  %v6061_v23 = vld [vmem:[%s6814_s0 + $0x10] ss:$20 sps:$4 sm:$0xff]  }
  0xde   :  { %2182 = vrot.lane.b32.xlu0 %v5572_v0, %s5526_s19  ;;  %1170 = vmatpush1.bf16.msra.mxu0 %v1139_v24 }
  0xdf   :  { %2184 = vrot.lane.b32.xlu1 %v5583_v2, %s5526_s19 }
  0xe0   :  { %v1127_v27 = vpop.permute.xlu0 %1126  ;;  %v1129_v28 = vpop.permute.xlu1 %1128  ;;  %4804 = vmatmul.mubr.msk.bf16.gmra.mrb[4].mxu0 %vm118_vm2, %v5463_v26 }
  0xe1   :  { %v1142_v29 = vsel %vm1138_vm7, %v1125_v25, %v1127_v27  ;;  %1201 = vmatprep.mubr.bf16.mxu0 %v5515_v7  ;;  %v5468_v27 = vld [vmem:[%s6815_s1 + $0x60] sm:$0xff]  }
  0xe2   :  { %2180 = vrot.lane.b32.xlu0 %v5577_v1, %s5526_s19  ;;  %1220 = vmatprep.subr.bf16.mxu1 %v1142_v29 }
  0xe3   :  { %2186 = vrot.lane.b32.xlu1 %v5589_v3, %s5526_s19  ;;  %1221 = vmatpush1.bf16.msra.mxu1 %v1141_v30 }
  0xe4   :  { %v1131_v31 = vpop.permute.xlu0 %1130  ;;  %v1133_v33 = vpop.permute.xlu1 %1132  ;;  %4807 = vmatmul.mubr.msk.bf16.gmra.mrb[4].mxu1 %vm118_vm2, %v5463_v26 }
  0xe5   :  { %v1143_v32 = vsel %vm1138_vm7, %v1129_v28, %v1131_v31  ;;  %v1144_v34 = vsel %vm1138_vm7, %v1131_v31, %v1133_v33  ;;  %1252 = vmatprep.mubr.bf16.mxu1 %v5515_v7 }
  0xe6   :  { %2188 = vrot.lane.b32.xlu0 %v5594_v4, %s5526_s19  ;;  %v1158_v35 = vsel %vm125_vm1, %v1143_v32, 0  ;;  %4813 = vmatprep.subr.msk.bf16.mxu0 %vm125_vm1, %v1144_v34 }
  0xe7   :  { %2190 = vrot.lane.b32.xlu1 %v5605_v8, %s5526_s19  ;;  %1172 = vmatpush1.bf16.msra.mxu0 %v1158_v35  ;;  %v6089_v35 = vld [vmem:[%s6814_s0 + $0x38] ss:$0 sps:$4 sm:$0xff]  }
  0xe8   :  { %v1135_v36 = vpop.permute.xlu0 %1134  ;;  %v1137_v39 = vpop.permute.xlu1 %1136 }
  0xe9   :  { %v1145_v38 = vsel %vm1138_vm7, %v1133_v33, %v1135_v36  ;;  %v1146_v40 = vsel %vm1138_vm7, %v1135_v36, %v1137_v39  ;;  %vm3616_vm7 = vcmask 588800  }
  0xea   :  { %2192 = vrot.lane.b32.xlu0 %v5611_v9, %s5526_s19  ;;  %v1164_v41 = vsel %vm125_vm1, %v1145_v38, 0  ;;  %4816 = vmatprep.subr.msk.bf16.mxu1 %vm125_vm1, %v1146_v40 }
  0xeb   :  { %2194 = vrot.lane.b32.xlu1 %v5614_v10, %s5526_s19  ;;  %1223 = vmatpush1.bf16.msra.mxu1 %v1164_v41 }
  0xec   :  { %v1298_v42 = vpop.permute.xlu0 %1297  ;;  %4814 = vmatmul.mubr.msk.bf16.vlgmr.msra.gmra.mrb[0].mxu0 %vm118_vm2, %v5464_v37 }
  0xed   :  { %v1300_v43 = vpop.permute.xlu1 %1299  ;;  %1211 = vmatprep.mubr.bf16.mxu0 %v5515_v7 }
  0xee   :  { %2196 = vrot.lane.b32.xlu0 %v5617_v11, %s5526_s19  ;;  %v1317_v44 = vsel %vm1315_vm8, %v1298_v42, %v1300_v43  ;;  %4817 = vmatmul.mubr.msk.bf16.vlgmr.msra.gmra.mrb[0].mxu1 %vm118_vm2, %v5464_v37  ;;  %v5469_v37 = vld [vmem:[%s6815_s1 + $0x68] ss:$0 sps:$4 sm:$0xff]  }
  0xef   :  { %2198 = vrot.lane.b32.xlu1 %v5622_v12, %s5526_s19  ;;  %1346 = vmatprep.subr.bf16.mxu0 %v1317_v44 }
  0xf0   :  { %v1296_v45 = vpop.permute.xlu0 %1295  ;;  %1262 = vmatprep.mubr.bf16.mxu1 %v5515_v7 }
  0xf1   :  { %v1316_v47 = vsel %vm1315_vm8, %v1296_v45, %v1298_v42  ;;  %v1302_v48 = vpop.permute.xlu1 %1301 }
  0xf2   :  { %2359 = vrot.lane.b32.xlu0 %v5572_v0, %s5527_s24  ;;  %1347 = vmatpush1.bf16.msra.mxu0 %v1316_v47  ;;  %v1318_v52 = vsel %vm1315_vm8, %v1300_v43, %v1302_v48 }
  0xf3   :  { %2361 = vrot.lane.b32.xlu1 %v5583_v2, %s5527_s24 }
  0xf4   :  { %v1304_v49 = vpop.permute.xlu0 %1303  ;;  %4815 = vmatmul.mubr.msk.bf16.gmra.mrb[4].mxu0 %vm118_vm2, %v5465_v46 }
  0xf5   :  { %v1306_v50 = vpop.permute.xlu1 %1305  ;;  %v1319_v51 = vsel %vm1315_vm8, %v1302_v48, %v1304_v49  ;;  %1378 = vmatprep.mubr.bf16.mxu0 %v5515_v7 }
  0xf6   :  { %2357 = vrot.lane.b32.xlu0 %v5577_v1, %s5527_s24  ;;  %1397 = vmatprep.subr.bf16.mxu1 %v1319_v51 }
  0xf7   :  { %2363 = vrot.lane.b32.xlu1 %v5589_v3, %s5527_s24  ;;  %1398 = vmatpush1.bf16.msra.mxu1 %v1318_v52 }
  0xf8   :  { %v1308_v0 = vpop.permute.xlu0 %1307  ;;  %4818 = vmatmul.mubr.msk.bf16.gmra.mrb[4].mxu1 %vm118_vm2, %v5465_v46 }
  0xf9   :  { %v1320_v2 = vsel %vm1315_vm8, %v1306_v50, %v1308_v0  ;;  %v1310_v53 = vpop.permute.xlu1 %1309  ;;  %1429 = vmatprep.mubr.bf16.mxu1 %v5515_v7  ;;  %v5470_v50 = vld [vmem:[%s6815_s1 + $0x6c] sm:$0xff]  }
  0xfa   :  { %2365 = vrot.lane.b32.xlu0 %v5594_v4, %s5527_s24  ;;  %v1321_v1 = vsel %vm1315_vm8, %v1308_v0, %v1310_v53  ;;  %v1335_v54 = vsel %vm125_vm1, %v1320_v2, 0 }
  0xfb   :  { %2367 = vrot.lane.b32.xlu1 %v5605_v8, %s5527_s24  ;;  %4824 = vmatprep.subr.msk.bf16.mxu0 %vm125_vm1, %v1321_v1 }
  0xfc   :  { %1349 = vmatpush1.bf16.msra.mxu0 %v1335_v54  ;;  %v1312_v3 = vpop.permute.xlu0 %1311 }
  0xfd   :  { %v1322_v56 = vsel %vm1315_vm8, %v1310_v53, %v1312_v3  ;;  %v1314_v57 = vpop.permute.xlu1 %1313 }
  0xfe   :  { %v1323_v4 = vsel %vm1315_vm8, %v1312_v3, %v1314_v57  ;;  %2369 = vrot.lane.b32.xlu0 %v5611_v9, %s5527_s24  ;;  %v1341_v58 = vsel %vm125_vm1, %v1322_v56, 0  ;;  %vm3793_vm8 = vcmask 580608  }
  0xff   :  { %2371 = vrot.lane.b32.xlu1 %v5614_v10, %s5527_s24  ;;  %4827 = vmatprep.subr.msk.bf16.mxu1 %vm125_vm1, %v1323_v4 }
 0x100   :  { %1400 = vmatpush1.bf16.msra.mxu1 %v1341_v58  ;;  %v1475_v59 = vpop.permute.xlu0 %1474  ;;  %4825 = vmatmul.mubr.msk.bf16.vlgmr.msra.gmra.mrb[0].mxu0 %vm118_vm2, %v5466_v55 }
 0x101   :  { %v1477_v60 = vpop.permute.xlu1 %1476  ;;  %1388 = vmatprep.mubr.bf16.mxu0 %v5515_v7 }
 0x102   :  { %2373 = vrot.lane.b32.xlu0 %v5617_v11, %s5527_s24  ;;  %v1494_v61 = vsel %vm1492_vm9, %v1475_v59, %v1477_v60 }
 0x103   :  { %2375 = vrot.lane.b32.xlu1 %v5622_v12, %s5527_s24  ;;  %1523 = vmatprep.subr.bf16.mxu0 %v1494_v61  ;;  %v6033_v12 = vld [vmem:[%s6814_s0 + $0x8] ss:$20 sps:$4 sm:$0xff]   ;;  %s5535_s24 = smov 71  }
 0x104   :  { %v1473_v62 = vpop.permute.xlu0 %1472  ;;  %4828 = vmatmul.mubr.msk.bf16.vlgmr.msra.gmra.mrb[0].mxu1 %vm118_vm2, %v5466_v55  ;;  %v5471_v55 = vld [vmem:[%s6815_s1 + $0x74] ss:$0 sps:$4 sm:$0xff]  }
 0x105   :  { %v1493_v5 = vsel %vm1492_vm9, %v1473_v62, %v1475_v59  ;;  %v1479_v6 = vpop.permute.xlu1 %1478  ;;  %1439 = vmatprep.mubr.bf16.mxu1 %v5515_v7 }
 0x106   :  { %2536 = vrot.lane.b32.xlu0 %v6026_v13, %s5528_s6  ;;  %1524 = vmatpush1.bf16.msra.mxu0 %v1493_v5  ;;  %v1495_v18 = vsel %vm1492_vm9, %v1477_v60, %v1479_v6 }
 0x107   :  { %2538 = vrot.lane.b32.xlu1 %v6033_v12, %s5528_s6 }
 0x108   :  { %v1481_v14 = vpop.permute.xlu0 %1480  ;;  %4826 = vmatmul.mubr.msk.bf16.gmra.mrb[4].mxu0 %vm118_vm2, %v5467_v63 }
 0x109   :  { %v1483_v15 = vpop.permute.xlu1 %1482  ;;  %v1496_v16 = vsel %vm1492_vm9, %v1479_v6, %v1481_v14  ;;  %1555 = vmatprep.mubr.bf16.mxu0 %v5515_v7 }
 0x10a   :  { %2534 = vrot.lane.b32.xlu0 %v6043_v17, %s5528_s6  ;;  %1574 = vmatprep.subr.bf16.mxu1 %v1496_v16 }
 0x10b   :  { %2540 = vrot.lane.b32.xlu1 %v6051_v19, %s5528_s6  ;;  %1575 = vmatpush1.bf16.msra.mxu1 %v1495_v18 }
 0x10c   :  { %v1485_v20 = vpop.permute.xlu0 %1484  ;;  %4829 = vmatmul.mubr.msk.bf16.gmra.mrb[4].mxu1 %vm118_vm2, %v5467_v63 }
 0x10d   :  { %v1497_v21 = vsel %vm1492_vm9, %v1483_v15, %v1485_v20  ;;  %v1487_v22 = vpop.permute.xlu1 %1486  ;;  %1606 = vmatprep.mubr.bf16.mxu1 %v5515_v7  ;;  %v5472_v15 = vld [vmem:[%s6815_s1 + $0x78] sm:$0xff]  }
 0x10e   :  { %2542 = vrot.lane.b32.xlu0 %v6061_v23, %s5528_s6  ;;  %v1498_v24 = vsel %vm1492_vm9, %v1485_v20, %v1487_v22  ;;  %v1512_v25 = vsel %vm125_vm1, %v1497_v21, 0 }
 0x10f   :  { %2544 = vrot.lane.b32.xlu1 %v5605_v8, %s5528_s6  ;;  %4835 = vmatprep.subr.msk.bf16.mxu0 %vm125_vm1, %v1498_v24 }
 0x110   :  { %1526 = vmatpush1.bf16.msra.mxu0 %v1512_v25  ;;  %v1489_v26 = vpop.permute.xlu0 %1488 }
 0x111   :  { %v1499_v28 = vsel %vm1492_vm9, %v1487_v22, %v1489_v26  ;;  %v1491_v29 = vpop.permute.xlu1 %1490 }
 0x112   :  { %v1500_v30 = vsel %vm1492_vm9, %v1489_v26, %v1491_v29  ;;  %2546 = vrot.lane.b32.xlu0 %v5611_v9, %s5528_s6  ;;  %v1518_v31 = vsel %vm125_vm1, %v1499_v28, 0  ;;  %vm3970_vm9 = vcmask 572416  }
 0x113   :  { %2548 = vrot.lane.b32.xlu1 %v5614_v10, %s5528_s6  ;;  %4838 = vmatprep.subr.msk.bf16.mxu1 %vm125_vm1, %v1500_v30 }
 0x114   :  { %1577 = vmatpush1.bf16.msra.mxu1 %v1518_v31  ;;  %v1652_v32 = vpop.permute.xlu0 %1651  ;;  %4836 = vmatmul.mubr.msk.bf16.vlgmr.msra.gmra.mrb[0].mxu0 %vm118_vm2, %v5468_v27 }
 0x115   :  { %v1654_v33 = vpop.permute.xlu1 %1653  ;;  %1565 = vmatprep.mubr.bf16.mxu0 %v5515_v7 }
 0x116   :  { %2550 = vrot.lane.b32.xlu0 %v5617_v11, %s5528_s6  ;;  %v1671_v34 = vsel %vm1669_vm10, %v1652_v32, %v1654_v33 }
 0x117   :  { %2552 = vrot.lane.b32.xlu1 %v6089_v35, %s5528_s6  ;;  %1700 = vmatprep.subr.bf16.mxu0 %v1671_v34 }
 0x118   :  { %v1650_v36 = vpop.permute.xlu0 %1649  ;;  %4839 = vmatmul.mubr.msk.bf16.vlgmr.msra.gmra.mrb[0].mxu1 %vm118_vm2, %v5468_v27  ;;  %v5473_v27 = vld [vmem:[%s6815_s1 + $0x80] ss:$0 sps:$4 sm:$0xff]  }
 0x119   :  { %v1670_v38 = vsel %vm1669_vm10, %v1650_v36, %v1652_v32  ;;  %v1656_v39 = vpop.permute.xlu1 %1655  ;;  %1616 = vmatprep.mubr.bf16.mxu1 %v5515_v7 }
 0x11a   :  { %2713 = vrot.lane.b32.xlu0 %v6026_v13, %s5529_s21  ;;  %1701 = vmatpush1.bf16.msra.mxu0 %v1670_v38  ;;  %v1672_v43 = vsel %vm1669_vm10, %v1654_v33, %v1656_v39 }
 0x11b   :  { %2715 = vrot.lane.b32.xlu1 %v6033_v12, %s5529_s21 }
 0x11c   :  { %v1658_v40 = vpop.permute.xlu0 %1657  ;;  %4837 = vmatmul.mubr.msk.bf16.gmra.mrb[4].mxu0 %vm118_vm2, %v5469_v37 }
 0x11d   :  { %v1660_v41 = vpop.permute.xlu1 %1659  ;;  %v1673_v42 = vsel %vm1669_vm10, %v1656_v39, %v1658_v40  ;;  %1732 = vmatprep.mubr.bf16.mxu0 %v5515_v7 }
 0x11e   :  { %2711 = vrot.lane.b32.xlu0 %v6043_v17, %s5529_s21  ;;  %1751 = vmatprep.subr.bf16.mxu1 %v1673_v42 }
 0x11f   :  { %2717 = vrot.lane.b32.xlu1 %v6051_v19, %s5529_s21  ;;  %1752 = vmatpush1.bf16.msra.mxu1 %v1672_v43 }
 0x120   :  { %v1662_v44 = vpop.permute.xlu0 %1661  ;;  %4840 = vmatmul.mubr.msk.bf16.gmra.mrb[4].mxu1 %vm118_vm2, %v5469_v37 }
 0x121   :  { %v1674_v45 = vsel %vm1669_vm10, %v1660_v41, %v1662_v44  ;;  %v1664_v46 = vpop.permute.xlu1 %1663  ;;  %1783 = vmatprep.mubr.bf16.mxu1 %v5515_v7  ;;  %v5474_v41 = vld [vmem:[%s6815_s1 + $0x84] sm:$0xff]  }
 0x122   :  { %2719 = vrot.lane.b32.xlu0 %v6061_v23, %s5529_s21  ;;  %v1675_v47 = vsel %vm1669_vm10, %v1662_v44, %v1664_v46  ;;  %v1689_v48 = vsel %vm125_vm1, %v1674_v45, 0 }
 0x123   :  { %2721 = vrot.lane.b32.xlu1 %v5605_v8, %s5529_s21  ;;  %4846 = vmatprep.subr.msk.bf16.mxu0 %vm125_vm1, %v1675_v47 }
 0x124   :  { %1703 = vmatpush1.bf16.msra.mxu0 %v1689_v48  ;;  %v1666_v49 = vpop.permute.xlu0 %1665 }
 0x125   :  { %v1676_v51 = vsel %vm1669_vm10, %v1664_v46, %v1666_v49  ;;  %v1668_v52 = vpop.permute.xlu1 %1667 }
 0x126   :  { %v1677_v0 = vsel %vm1669_vm10, %v1666_v49, %v1668_v52  ;;  %2723 = vrot.lane.b32.xlu0 %v5611_v9, %s5529_s21  ;;  %v1695_v2 = vsel %vm125_vm1, %v1676_v51, 0  ;;  %vm4147_vm10 = vcmask 564224  }
 0x127   :  { %2725 = vrot.lane.b32.xlu1 %v5614_v10, %s5529_s21  ;;  %4849 = vmatprep.subr.msk.bf16.mxu1 %vm125_vm1, %v1677_v0 }
 0x128   :  { %1754 = vmatpush1.bf16.msra.mxu1 %v1695_v2  ;;  %v1829_v53 = vpop.permute.xlu0 %1828  ;;  %4847 = vmatmul.mubr.msk.bf16.vlgmr.msra.gmra.mrb[0].mxu0 %vm118_vm2, %v5470_v50 }
 0x129   :  { %v1831_v1 = vpop.permute.xlu1 %1830  ;;  %1742 = vmatprep.mubr.bf16.mxu0 %v5515_v7 }
 0x12a   :  { %2727 = vrot.lane.b32.xlu0 %v5617_v11, %s5529_s21  ;;  %v1848_v54 = vsel %vm1846_vm11, %v1829_v53, %v1831_v1 }
 0x12b   :  { %2729 = vrot.lane.b32.xlu1 %v6089_v35, %s5529_s21  ;;  %1877 = vmatprep.subr.bf16.mxu0 %v1848_v54 }
 0x12c   :  { %v1827_v3 = vpop.permute.xlu0 %1826  ;;  %4850 = vmatmul.mubr.msk.bf16.vlgmr.msra.gmra.mrb[0].mxu1 %vm118_vm2, %v5470_v50  ;;  %v5475_v50 = vld [vmem:[%s6815_s1 + $0x8c] ss:$0 sps:$4 sm:$0xff]  }
 0x12d   :  { %v1847_v56 = vsel %vm1846_vm11, %v1827_v3, %v1829_v53  ;;  %v1833_v57 = vpop.permute.xlu1 %1832  ;;  %1793 = vmatprep.mubr.bf16.mxu1 %v5515_v7 }
 0x12e   :  { %2890 = vrot.lane.b32.xlu0 %v6026_v13, %s5530_s25  ;;  %1878 = vmatpush1.bf16.msra.mxu0 %v1847_v56  ;;  %v1849_v60 = vsel %vm1846_vm11, %v1831_v1, %v1833_v57 }
 0x12f   :  { %2892 = vrot.lane.b32.xlu1 %v6033_v12, %s5530_s25 }
 0x130   :  { %v1835_v4 = vpop.permute.xlu0 %1834  ;;  %4848 = vmatmul.mubr.msk.bf16.gmra.mrb[4].mxu0 %vm118_vm2, %v5471_v55 }
 0x131   :  { %v1837_v58 = vpop.permute.xlu1 %1836  ;;  %v1850_v59 = vsel %vm1846_vm11, %v1833_v57, %v1835_v4  ;;  %1909 = vmatprep.mubr.bf16.mxu0 %v5515_v7 }
 0x132   :  { %2888 = vrot.lane.b32.xlu0 %v6043_v17, %s5530_s25  ;;  %1928 = vmatprep.subr.bf16.mxu1 %v1850_v59 }
 0x133   :  { %2894 = vrot.lane.b32.xlu1 %v6051_v19, %s5530_s25  ;;  %1929 = vmatpush1.bf16.msra.mxu1 %v1849_v60 }
 0x134   :  { %v1839_v61 = vpop.permute.xlu0 %1838  ;;  %4851 = vmatmul.mubr.msk.bf16.gmra.mrb[4].mxu1 %vm118_vm2, %v5471_v55 }
 0x135   :  { %v1851_v62 = vsel %vm1846_vm11, %v1837_v58, %v1839_v61  ;;  %v1841_v63 = vpop.permute.xlu1 %1840  ;;  %1960 = vmatprep.mubr.bf16.mxu1 %v5515_v7  ;;  %v5476_v58 = vld [vmem:[%s6815_s1 + $0x90] sm:$0xff]  }
 0x136   :  { %2896 = vrot.lane.b32.xlu0 %v6061_v23, %s5530_s25  ;;  %v1852_v5 = vsel %vm1846_vm11, %v1839_v61, %v1841_v63  ;;  %v1866_v6 = vsel %vm125_vm1, %v1851_v62, 0 }
 0x137   :  { %2898 = vrot.lane.b32.xlu1 %v5605_v8, %s5530_s25  ;;  %4857 = vmatprep.subr.msk.bf16.mxu0 %vm125_vm1, %v1852_v5 }
 0x138   :  { %1880 = vmatpush1.bf16.msra.mxu0 %v1866_v6  ;;  %v1843_v14 = vpop.permute.xlu0 %1842 }
 0x139   :  { %v1853_v16 = vsel %vm1846_vm11, %v1841_v63, %v1843_v14  ;;  %v1845_v18 = vpop.permute.xlu1 %1844 }
 0x13a   :  { %v1854_v20 = vsel %vm1846_vm11, %v1843_v14, %v1845_v18  ;;  %2900 = vrot.lane.b32.xlu0 %v5611_v9, %s5530_s25  ;;  %v1872_v21 = vsel %vm125_vm1, %v1853_v16, 0  ;;  %vm4324_vm11 = vcmask 556032  }
 0x13b   :  { %2902 = vrot.lane.b32.xlu1 %v5614_v10, %s5530_s25  ;;  %4860 = vmatprep.subr.msk.bf16.mxu1 %vm125_vm1, %v1854_v20 }
 0x13c   :  { %1931 = vmatpush1.bf16.msra.mxu1 %v1872_v21  ;;  %v2006_v22 = vpop.permute.xlu0 %2005  ;;  %4858 = vmatmul.mubr.msk.bf16.vlgmr.msra.gmra.mrb[0].mxu0 %vm118_vm2, %v5472_v15 }
 0x13d   :  { %v2008_v24 = vpop.permute.xlu1 %2007  ;;  %1919 = vmatprep.mubr.bf16.mxu0 %v5515_v7 }
 0x13e   :  { %2904 = vrot.lane.b32.xlu0 %v5617_v11, %s5530_s25  ;;  %v2025_v25 = vsel %vm2023_vm12, %v2006_v22, %v2008_v24 }
 0x13f   :  { %2906 = vrot.lane.b32.xlu1 %v6089_v35, %s5530_s25  ;;  %2054 = vmatprep.subr.bf16.mxu0 %v2025_v25 }
 0x140   :  { %v2004_v26 = vpop.permute.xlu0 %2003  ;;  %4861 = vmatmul.mubr.msk.bf16.vlgmr.msra.gmra.mrb[0].mxu1 %vm118_vm2, %v5472_v15  ;;  %v5477_v15 = vld [vmem:[%s6815_s1 + $0x98] ss:$0 sps:$4 sm:$0xff]  }
 0x141   :  { %v2024_v28 = vsel %vm2023_vm12, %v2004_v26, %v2006_v22  ;;  %v2010_v29 = vpop.permute.xlu1 %2009  ;;  %1970 = vmatprep.mubr.bf16.mxu1 %v5515_v7 }
 0x142   :  { %3067 = vrot.lane.b32.xlu0 %v6026_v13, %s5531_s30  ;;  %2055 = vmatpush1.bf16.msra.mxu0 %v2024_v28  ;;  %v2026_v33 = vsel %vm2023_vm12, %v2008_v24, %v2010_v29 }
 0x143   :  { %3069 = vrot.lane.b32.xlu1 %v6033_v12, %s5531_s30 }
 0x144   :  { %v2012_v30 = vpop.permute.xlu0 %2011  ;;  %4859 = vmatmul.mubr.msk.bf16.gmra.mrb[4].mxu0 %vm118_vm2, %v5473_v27 }
 0x145   :  { %v2014_v31 = vpop.permute.xlu1 %2013  ;;  %v2027_v32 = vsel %vm2023_vm12, %v2010_v29, %v2012_v30  ;;  %2086 = vmatprep.mubr.bf16.mxu0 %v5515_v7 }
 0x146   :  { %3065 = vrot.lane.b32.xlu0 %v6043_v17, %s5531_s30  ;;  %2105 = vmatprep.subr.bf16.mxu1 %v2027_v32 }
 0x147   :  { %3071 = vrot.lane.b32.xlu1 %v6051_v19, %s5531_s30  ;;  %2106 = vmatpush1.bf16.msra.mxu1 %v2026_v33 }
 0x148   :  { %v2016_v34 = vpop.permute.xlu0 %2015  ;;  %4862 = vmatmul.mubr.msk.bf16.gmra.mrb[4].mxu1 %vm118_vm2, %v5473_v27 }
 0x149   :  { %v2028_v36 = vsel %vm2023_vm12, %v2014_v31, %v2016_v34  ;;  %v2018_v37 = vpop.permute.xlu1 %2017  ;;  %2137 = vmatprep.mubr.bf16.mxu1 %v5515_v7  ;;  %v5478_v31 = vld [vmem:[%s6815_s1 + $0x9c] sm:$0xff]  }
 0x14a   :  { %3073 = vrot.lane.b32.xlu0 %v6061_v23, %s5531_s30  ;;  %v2029_v38 = vsel %vm2023_vm12, %v2016_v34, %v2018_v37  ;;  %v2043_v39 = vsel %vm125_vm1, %v2028_v36, 0 }
 0x14b   :  { %3075 = vrot.lane.b32.xlu1 %v5605_v8, %s5531_s30  ;;  %4868 = vmatprep.subr.msk.bf16.mxu0 %vm125_vm1, %v2029_v38 }
 0x14c   :  { %2057 = vmatpush1.bf16.msra.mxu0 %v2043_v39  ;;  %v2020_v40 = vpop.permute.xlu0 %2019 }
 0x14d   :  { %v2030_v42 = vsel %vm2023_vm12, %v2018_v37, %v2020_v40  ;;  %v2022_v43 = vpop.permute.xlu1 %2021 }
 0x14e   :  { %v2031_v44 = vsel %vm2023_vm12, %v2020_v40, %v2022_v43  ;;  %3077 = vrot.lane.b32.xlu0 %v5611_v9, %s5531_s30  ;;  %v2049_v45 = vsel %vm125_vm1, %v2030_v42, 0 }
 0x14f   :  { %3079 = vrot.lane.b32.xlu1 %v5614_v10, %s5531_s30  ;;  %4871 = vmatprep.subr.msk.bf16.mxu1 %vm125_vm1, %v2031_v44 }
 0x150   :  { %2108 = vmatpush1.bf16.msra.mxu1 %v2049_v45  ;;  %v2183_v46 = vpop.permute.xlu0 %2182  ;;  %4869 = vmatmul.mubr.msk.bf16.vlgmr.msra.gmra.mrb[0].mxu0 %vm118_vm2, %v5474_v41 }
 0x151   :  { %v2185_v47 = vpop.permute.xlu1 %2184  ;;  %2096 = vmatprep.mubr.bf16.mxu0 %v5515_v7 }
 0x152   :  { %3081 = vrot.lane.b32.xlu0 %v5617_v11, %s5531_s30  ;;  %v2202_v48 = vsel %vm2200_vm13, %v2183_v46, %v2185_v47 }
 0x153   :  { %3083 = vrot.lane.b32.xlu1 %v6089_v35, %s5531_s30  ;;  %2231 = vmatprep.subr.bf16.mxu0 %v2202_v48 }
 0x154   :  { %v2181_v49 = vpop.permute.xlu0 %2180  ;;  %4872 = vmatmul.mubr.msk.bf16.vlgmr.msra.gmra.mrb[0].mxu1 %vm118_vm2, %v5474_v41  ;;  %v5479_v41 = vld [vmem:[%s6815_s1 + $0xa4] ss:$0 sps:$4 sm:$0xff]  }
 0x155   :  { %v2201_v51 = vsel %vm2200_vm13, %v2181_v49, %v2183_v46  ;;  %v2187_v52 = vpop.permute.xlu1 %2186  ;;  %2147 = vmatprep.mubr.bf16.mxu1 %v5515_v7 }
 0x156   :  { %3244 = vrot.lane.b32.xlu0 %v6026_v13, %s5532_s10  ;;  %2232 = vmatpush1.bf16.msra.mxu0 %v2201_v51  ;;  %v2203_v1 = vsel %vm2200_vm13, %v2185_v47, %v2187_v52 }
 0x157   :  { %3246 = vrot.lane.b32.xlu1 %v6033_v12, %s5532_s10 }
 0x158   :  { %v2189_v0 = vpop.permute.xlu0 %2188  ;;  %4870 = vmatmul.mubr.msk.bf16.gmra.mrb[4].mxu0 %vm118_vm2, %v5475_v50 }
 0x159   :  { %v2191_v2 = vpop.permute.xlu1 %2190  ;;  %v2204_v53 = vsel %vm2200_vm13, %v2187_v52, %v2189_v0  ;;  %2263 = vmatprep.mubr.bf16.mxu0 %v5515_v7 }
 0x15a   :  { %3242 = vrot.lane.b32.xlu0 %v6043_v17, %s5532_s10  ;;  %2282 = vmatprep.subr.bf16.mxu1 %v2204_v53 }
 0x15b   :  { %3248 = vrot.lane.b32.xlu1 %v6051_v19, %s5532_s10  ;;  %2283 = vmatpush1.bf16.msra.mxu1 %v2203_v1 }
 0x15c   :  { %v2193_v54 = vpop.permute.xlu0 %2192  ;;  %4873 = vmatmul.mubr.msk.bf16.gmra.mrb[4].mxu1 %vm118_vm2, %v5475_v50 }
 0x15d   :  { %v2205_v3 = vsel %vm2200_vm13, %v2191_v2, %v2193_v54  ;;  %v2195_v55 = vpop.permute.xlu1 %2194  ;;  %2314 = vmatprep.mubr.bf16.mxu1 %v5515_v7  ;;  %v5480_v2 = vld [vmem:[%s6815_s1 + $0xa8] sm:$0xff]  }
 0x15e   :  { %3250 = vrot.lane.b32.xlu0 %v6061_v23, %s5532_s10  ;;  %v2206_v56 = vsel %vm2200_vm13, %v2193_v54, %v2195_v55  ;;  %v2220_v57 = vsel %vm125_vm1, %v2205_v3, 0 }
 0x15f   :  { %3252 = vrot.lane.b32.xlu1 %v5605_v8, %s5532_s10  ;;  %4879 = vmatprep.subr.msk.bf16.mxu0 %vm125_vm1, %v2206_v56 }
 0x160   :  { %2234 = vmatpush1.bf16.msra.mxu0 %v2220_v57  ;;  %v2197_v4 = vpop.permute.xlu0 %2196 }
 0x161   :  { %v2207_v59 = vsel %vm2200_vm13, %v2195_v55, %v2197_v4  ;;  %v2199_v60 = vpop.permute.xlu1 %2198 }
 0x162   :  { %v2208_v61 = vsel %vm2200_vm13, %v2197_v4, %v2199_v60  ;;  %3254 = vrot.lane.b32.xlu0 %v5611_v9, %s5532_s10  ;;  %v2226_v62 = vsel %vm125_vm1, %v2207_v59, 0 }
 0x163   :  { %3256 = vrot.lane.b32.xlu1 %v5614_v10, %s5532_s10  ;;  %4882 = vmatprep.subr.msk.bf16.mxu1 %vm125_vm1, %v2208_v61 }
 0x164   :  { %2285 = vmatpush1.bf16.msra.mxu1 %v2226_v62  ;;  %v2360_v63 = vpop.permute.xlu0 %2359  ;;  %4880 = vmatmul.mubr.msk.bf16.vlgmr.msra.gmra.mrb[0].mxu0 %vm118_vm2, %v5476_v58 }
 0x165   :  { %v2362_v5 = vpop.permute.xlu1 %2361  ;;  %2273 = vmatprep.mubr.bf16.mxu0 %v5515_v7 }
 0x166   :  { %3258 = vrot.lane.b32.xlu0 %v5617_v11, %s5532_s10  ;;  %v2379_v6 = vsel %vm2377_vm14, %v2360_v63, %v2362_v5 }
 0x167   :  { %3260 = vrot.lane.b32.xlu1 %v6089_v35, %s5532_s10  ;;  %2408 = vmatprep.subr.bf16.mxu0 %v2379_v6 }
 0x168   :  { %v2358_v14 = vpop.permute.xlu0 %2357  ;;  %4883 = vmatmul.mubr.msk.bf16.vlgmr.msra.gmra.mrb[0].mxu1 %vm118_vm2, %v5476_v58  ;;  %v5481_v58 = vld [vmem:[%s6815_s1 + $0xb0] ss:$0 sps:$4 sm:$0xff]  }
 0x169   :  { %v2378_v16 = vsel %vm2377_vm14, %v2358_v14, %v2360_v63  ;;  %v2364_v18 = vpop.permute.xlu1 %2363  ;;  %2324 = vmatprep.mubr.bf16.mxu1 %v5515_v7 }
 0x16a   :  { %3421 = vrot.lane.b32.xlu0 %v6026_v13, %s5533_s15  ;;  %2409 = vmatpush1.bf16.msra.mxu0 %v2378_v16  ;;  %v2380_v24 = vsel %vm2377_vm14, %v2362_v5, %v2364_v18 }
 0x16b   :  { %3423 = vrot.lane.b32.xlu1 %v6033_v12, %s5533_s15 }
 0x16c   :  { %v2366_v20 = vpop.permute.xlu0 %2365  ;;  %4881 = vmatmul.mubr.msk.bf16.gmra.mrb[4].mxu0 %vm118_vm2, %v5477_v15 }
 0x16d   :  { %v2368_v21 = vpop.permute.xlu1 %2367  ;;  %v2381_v22 = vsel %vm2377_vm14, %v2364_v18, %v2366_v20  ;;  %2440 = vmatprep.mubr.bf16.mxu0 %v5515_v7 }
 0x16e   :  { %3419 = vrot.lane.b32.xlu0 %v6043_v17, %s5533_s15  ;;  %2459 = vmatprep.subr.bf16.mxu1 %v2381_v22 }
 0x16f   :  { %3425 = vrot.lane.b32.xlu1 %v6051_v19, %s5533_s15  ;;  %2460 = vmatpush1.bf16.msra.mxu1 %v2380_v24 }
 0x170   :  { %v2370_v25 = vpop.permute.xlu0 %2369  ;;  %4884 = vmatmul.mubr.msk.bf16.gmra.mrb[4].mxu1 %vm118_vm2, %v5477_v15 }
 0x171   :  { %v2382_v26 = vsel %vm2377_vm14, %v2368_v21, %v2370_v25  ;;  %v2372_v27 = vpop.permute.xlu1 %2371  ;;  %2491 = vmatprep.mubr.bf16.mxu1 %v5515_v7  ;;  %v5482_v21 = vld [vmem:[%s6815_s1 + $0xb4] sm:$0xff]  }
 0x172   :  { %3427 = vrot.lane.b32.xlu0 %v6061_v23, %s5533_s15  ;;  %v2383_v28 = vsel %vm2377_vm14, %v2370_v25, %v2372_v27  ;;  %v2397_v29 = vsel %vm125_vm1, %v2382_v26, 0 }
 0x173   :  { %3429 = vrot.lane.b32.xlu1 %v5605_v8, %s5533_s15  ;;  %4890 = vmatprep.subr.msk.bf16.mxu0 %vm125_vm1, %v2383_v28 }
 0x174   :  { %2411 = vmatpush1.bf16.msra.mxu0 %v2397_v29  ;;  %v2374_v30 = vpop.permute.xlu0 %2373 }
 0x175   :  { %v2384_v32 = vsel %vm2377_vm14, %v2372_v27, %v2374_v30  ;;  %v2376_v33 = vpop.permute.xlu1 %2375 }
 0x176   :  { %v2385_v34 = vsel %vm2377_vm14, %v2374_v30, %v2376_v33  ;;  %3431 = vrot.lane.b32.xlu0 %v5611_v9, %s5533_s15  ;;  %v2403_v36 = vsel %vm125_vm1, %v2384_v32, 0 }
 0x177   :  { %3433 = vrot.lane.b32.xlu1 %v5614_v10, %s5533_s15  ;;  %4893 = vmatprep.subr.msk.bf16.mxu1 %vm125_vm1, %v2385_v34 }
 0x178   :  { %2462 = vmatpush1.bf16.msra.mxu1 %v2403_v36  ;;  %v2537_v37 = vpop.permute.xlu0 %2536  ;;  %4891 = vmatmul.mubr.msk.bf16.vlgmr.msra.gmra.mrb[0].mxu0 %vm118_vm2, %v5478_v31 }
 0x179   :  { %v2539_v38 = vpop.permute.xlu1 %2538  ;;  %2450 = vmatprep.mubr.bf16.mxu0 %v5515_v7 }
 0x17a   :  { %3435 = vrot.lane.b32.xlu0 %v5617_v11, %s5533_s15  ;;  %v2556_v39 = vsel %vm2554_vm15, %v2537_v37, %v2539_v38 }
 0x17b   :  { %3437 = vrot.lane.b32.xlu1 %v6089_v35, %s5533_s15  ;;  %2585 = vmatprep.subr.bf16.mxu0 %v2556_v39 }
 0x17c   :  { %v2535_v40 = vpop.permute.xlu0 %2534  ;;  %4894 = vmatmul.mubr.msk.bf16.vlgmr.msra.gmra.mrb[0].mxu1 %vm118_vm2, %v5478_v31  ;;  %v5483_v31 = vld [vmem:[%s6815_s1 + $0xbc] ss:$0 sps:$4 sm:$0xff]  }
 0x17d   :  { %v2555_v42 = vsel %vm2554_vm15, %v2535_v40, %v2537_v37  ;;  %v2541_v43 = vpop.permute.xlu1 %2540  ;;  %2501 = vmatprep.mubr.bf16.mxu1 %v5515_v7 }
 0x17e   :  { %3598 = vrot.lane.b32.xlu0 %v6026_v13, %s5534_s20  ;;  %2586 = vmatpush1.bf16.msra.mxu0 %v2555_v42  ;;  %v2557_v47 = vsel %vm2554_vm15, %v2539_v38, %v2541_v43 }
 0x17f   :  { %3600 = vrot.lane.b32.xlu1 %v6033_v12, %s5534_s20 }
 0x180   :  { %v2543_v44 = vpop.permute.xlu0 %2542  ;;  %4892 = vmatmul.mubr.msk.bf16.gmra.mrb[4].mxu0 %vm118_vm2, %v5479_v41 }
 0x181   :  { %v2545_v45 = vpop.permute.xlu1 %2544  ;;  %v2558_v46 = vsel %vm2554_vm15, %v2541_v43, %v2543_v44  ;;  %2617 = vmatprep.mubr.bf16.mxu0 %v5515_v7 }
 0x182   :  { %3596 = vrot.lane.b32.xlu0 %v6043_v17, %s5534_s20  ;;  %2636 = vmatprep.subr.bf16.mxu1 %v2558_v46 }
 0x183   :  { %3602 = vrot.lane.b32.xlu1 %v6051_v19, %s5534_s20  ;;  %2637 = vmatpush1.bf16.msra.mxu1 %v2557_v47 }
 0x184   :  { %v2547_v48 = vpop.permute.xlu0 %2546  ;;  %4895 = vmatmul.mubr.msk.bf16.gmra.mrb[4].mxu1 %vm118_vm2, %v5479_v41 }
 0x185   :  { %v2559_v49 = vsel %vm2554_vm15, %v2545_v45, %v2547_v48  ;;  %v2549_v50 = vpop.permute.xlu1 %2548  ;;  %2668 = vmatprep.mubr.bf16.mxu1 %v5515_v7  ;;  %v5484_v45 = vld [vmem:[%s6815_s1 + $0xc0] sm:$0xff]  }
 0x186   :  { %3604 = vrot.lane.b32.xlu0 %v6061_v23, %s5534_s20  ;;  %v2560_v51 = vsel %vm2554_vm15, %v2547_v48, %v2549_v50  ;;  %v2574_v52 = vsel %vm125_vm1, %v2559_v49, 0 }
 0x187   :  { %3606 = vrot.lane.b32.xlu1 %v5605_v8, %s5534_s20  ;;  %4901 = vmatprep.subr.msk.bf16.mxu0 %vm125_vm1, %v2560_v51 }
 0x188   :  { %2588 = vmatpush1.bf16.msra.mxu0 %v2574_v52  ;;  %v2551_v0 = vpop.permute.xlu0 %2550 }
 0x189   :  { %v2561_v53 = vsel %vm2554_vm15, %v2549_v50, %v2551_v0  ;;  %v2553_v1 = vpop.permute.xlu1 %2552 }
 0x18a   :  { %v2562_v54 = vsel %vm2554_vm15, %v2551_v0, %v2553_v1  ;;  %3608 = vrot.lane.b32.xlu0 %v5611_v9, %s5534_s20  ;;  %v2580_v3 = vsel %vm125_vm1, %v2561_v53, 0 }
 0x18b   :  { %3610 = vrot.lane.b32.xlu1 %v5614_v10, %s5534_s20  ;;  %4904 = vmatprep.subr.msk.bf16.mxu1 %vm125_vm1, %v2562_v54 }
 0x18c   :  { %2639 = vmatpush1.bf16.msra.mxu1 %v2580_v3  ;;  %v2714_v55 = vpop.permute.xlu0 %2713  ;;  %4902 = vmatmul.mubr.msk.bf16.vlgmr.msra.gmra.mrb[0].mxu0 %vm118_vm2, %v5480_v2 }
 0x18d   :  { %v2716_v56 = vpop.permute.xlu1 %2715  ;;  %2627 = vmatprep.mubr.bf16.mxu0 %v5515_v7 }
 0x18e   :  { %3612 = vrot.lane.b32.xlu0 %v5617_v11, %s5534_s20  ;;  %v2733_v57 = vsel %vm2731_vm0, %v2714_v55, %v2716_v56 }
 0x18f   :  { %3614 = vrot.lane.b32.xlu1 %v6089_v35, %s5534_s20  ;;  %2762 = vmatprep.subr.bf16.mxu0 %v2733_v57 }
 0x190   :  { %v2712_v4 = vpop.permute.xlu0 %2711  ;;  %4905 = vmatmul.mubr.msk.bf16.vlgmr.msra.gmra.mrb[0].mxu1 %vm118_vm2, %v5480_v2  ;;  %v5485_v2 = vld [vmem:[%s6815_s1 + $0xc8] ss:$0 sps:$4 sm:$0xff]  }
 0x191   :  { %v2732_v59 = vsel %vm2731_vm0, %v2712_v4, %v2714_v55  ;;  %v2718_v60 = vpop.permute.xlu1 %2717  ;;  %2678 = vmatprep.mubr.bf16.mxu1 %v5515_v7 }
 0x192   :  { %3775 = vrot.lane.b32.xlu0 %v6026_v13, %s5535_s24  ;;  %2763 = vmatpush1.bf16.msra.mxu0 %v2732_v59  ;;  %v2734_v5 = vsel %vm2731_vm0, %v2716_v56, %v2718_v60 }
 0x193   :  { %3777 = vrot.lane.b32.xlu1 %v6033_v12, %s5535_s24 }
 0x194   :  { %v2720_v61 = vpop.permute.xlu0 %2719  ;;  %4903 = vmatmul.mubr.msk.bf16.gmra.mrb[4].mxu0 %vm118_vm2, %v5481_v58 }
 0x195   :  { %v2722_v62 = vpop.permute.xlu1 %2721  ;;  %v2735_v63 = vsel %vm2731_vm0, %v2718_v60, %v2720_v61  ;;  %2794 = vmatprep.mubr.bf16.mxu0 %v5515_v7 }
 0x196   :  { %3773 = vrot.lane.b32.xlu0 %v6043_v17, %s5535_s24  ;;  %2813 = vmatprep.subr.bf16.mxu1 %v2735_v63 }
 0x197   :  { %3779 = vrot.lane.b32.xlu1 %v6051_v19, %s5535_s24  ;;  %2814 = vmatpush1.bf16.msra.mxu1 %v2734_v5 }
 0x198   :  { %v2724_v6 = vpop.permute.xlu0 %2723  ;;  %4906 = vmatmul.mubr.msk.bf16.gmra.mrb[4].mxu1 %vm118_vm2, %v5481_v58 }
 0x199   :  { %v2736_v14 = vsel %vm2731_vm0, %v2722_v62, %v2724_v6  ;;  %v2726_v15 = vpop.permute.xlu1 %2725  ;;  %2845 = vmatprep.mubr.bf16.mxu1 %v5515_v7  ;;  %v5486_v62 = vld [vmem:[%s6815_s1 + $0xcc] sm:$0xff]  }
 0x19a   :  { %3781 = vrot.lane.b32.xlu0 %v6061_v23, %s5535_s24  ;;  %v2737_v16 = vsel %vm2731_vm0, %v2724_v6, %v2726_v15  ;;  %v2751_v18 = vsel %vm125_vm1, %v2736_v14, 0 }
 0x19b   :  { %3783 = vrot.lane.b32.xlu1 %v5605_v8, %s5535_s24  ;;  %4912 = vmatprep.subr.msk.bf16.mxu0 %vm125_vm1, %v2737_v16 }
 0x19c   :  { %2765 = vmatpush1.bf16.msra.mxu0 %v2751_v18  ;;  %v2728_v20 = vpop.permute.xlu0 %2727 }
 0x19d   :  { %v2738_v22 = vsel %vm2731_vm0, %v2726_v15, %v2728_v20  ;;  %v2730_v24 = vpop.permute.xlu1 %2729 }
 0x19e   :  { %v2739_v25 = vsel %vm2731_vm0, %v2728_v20, %v2730_v24  ;;  %3785 = vrot.lane.b32.xlu0 %v5611_v9, %s5535_s24  ;;  %v2757_v26 = vsel %vm125_vm1, %v2738_v22, 0 }
 0x19f   :  { %3787 = vrot.lane.b32.xlu1 %v5614_v10, %s5535_s24  ;;  %4915 = vmatprep.subr.msk.bf16.mxu1 %vm125_vm1, %v2739_v25 }
 0x1a0   :  { %2816 = vmatpush1.bf16.msra.mxu1 %v2757_v26  ;;  %v2891_v27 = vpop.permute.xlu0 %2890  ;;  %4913 = vmatmul.mubr.msk.bf16.vlgmr.msra.gmra.mrb[0].mxu0 %vm118_vm2, %v5482_v21 }
 0x1a1   :  { %v2893_v28 = vpop.permute.xlu1 %2892  ;;  %2804 = vmatprep.mubr.bf16.mxu0 %v5515_v7 }
 0x1a2   :  { %3789 = vrot.lane.b32.xlu0 %v5617_v11, %s5535_s24  ;;  %v2910_v29 = vsel %vm2908_vm3, %v2891_v27, %v2893_v28 }
 0x1a3   :  { %3791 = vrot.lane.b32.xlu1 %v6089_v35, %s5535_s24  ;;  %2939 = vmatprep.subr.bf16.mxu0 %v2910_v29 }
 0x1a4   :  { %v2889_v30 = vpop.permute.xlu0 %2888  ;;  %4916 = vmatmul.mubr.msk.bf16.vlgmr.msra.gmra.mrb[0].mxu1 %vm118_vm2, %v5482_v21  ;;  %v5487_v21 = vld [vmem:[%s6815_s1 + $0xd4] ss:$0 sps:$4 sm:$0xff]  }
 0x1a5   :  { %v2909_v32 = vsel %vm2908_vm3, %v2889_v30, %v2891_v27  ;;  %v2895_v33 = vpop.permute.xlu1 %2894  ;;  %2855 = vmatprep.mubr.bf16.mxu1 %v5515_v7 }
 0x1a6   :  { %3952 = vrot.lane.b32.xlu0 %v6026_v13, %s5536_s29  ;;  %2940 = vmatpush1.bf16.msra.mxu0 %v2909_v32  ;;  %v2911_v38 = vsel %vm2908_vm3, %v2893_v28, %v2895_v33 }
 0x1a7   :  { %3954 = vrot.lane.b32.xlu1 %v6033_v12, %s5536_s29 }
 0x1a8   :  { %v2897_v34 = vpop.permute.xlu0 %2896  ;;  %4914 = vmatmul.mubr.msk.bf16.gmra.mrb[4].mxu0 %vm118_vm2, %v5483_v31 }
 0x1a9   :  { %v2899_v36 = vpop.permute.xlu1 %2898  ;;  %v2912_v37 = vsel %vm2908_vm3, %v2895_v33, %v2897_v34  ;;  %2971 = vmatprep.mubr.bf16.mxu0 %v5515_v7 }
 0x1aa   :  { %3950 = vrot.lane.b32.xlu0 %v6043_v17, %s5536_s29  ;;  %2990 = vmatprep.subr.bf16.mxu1 %v2912_v37 }
 0x1ab   :  { %3956 = vrot.lane.b32.xlu1 %v6051_v19, %s5536_s29  ;;  %2991 = vmatpush1.bf16.msra.mxu1 %v2911_v38 }
 0x1ac   :  { %v2901_v39 = vpop.permute.xlu0 %2900  ;;  %4917 = vmatmul.mubr.msk.bf16.gmra.mrb[4].mxu1 %vm118_vm2, %v5483_v31 }
 0x1ad   :  { %v2913_v40 = vsel %vm2908_vm3, %v2899_v36, %v2901_v39  ;;  %v2903_v41 = vpop.permute.xlu1 %2902  ;;  %3022 = vmatprep.mubr.bf16.mxu1 %v5515_v7 }
 0x1ae   :  { %v2928_v42 = vsel %vm125_vm1, %v2913_v40, 0  ;;  %v2914_v43 = vsel %vm2908_vm3, %v2901_v39, %v2903_v41  ;;  %3958 = vrot.lane.b32.xlu0 %v6061_v23, %s5536_s29 }
 0x1af   :  { %3960 = vrot.lane.b32.xlu1 %v5605_v8, %s5536_s29  ;;  %4923 = vmatprep.subr.msk.bf16.mxu0 %vm125_vm1, %v2914_v43 }
 0x1b0   :  { %2942 = vmatpush1.bf16.msra.mxu0 %v2928_v42  ;;  %v2905_v44 = vpop.permute.xlu0 %2904 }
 0x1b1   :  { %v2915_v46 = vsel %vm2908_vm3, %v2903_v41, %v2905_v44  ;;  %v2907_v47 = vpop.permute.xlu1 %2906 }
 0x1b2   :  { %v2934_v48 = vsel %vm125_vm1, %v2915_v46, 0  ;;  %v2916_v49 = vsel %vm2908_vm3, %v2905_v44, %v2907_v47  ;;  %3962 = vrot.lane.b32.xlu0 %v5611_v9, %s5536_s29  ;;  %v5490_v47 = vld [vmem:[%s6815_s1 + $0xe4] sm:$0xff]  }
 0x1b3   :  { %3964 = vrot.lane.b32.xlu1 %v5614_v10, %s5536_s29  ;;  %4926 = vmatprep.subr.msk.bf16.mxu1 %vm125_vm1, %v2916_v49 }
 0x1b4   :  { %2993 = vmatpush1.bf16.msra.mxu1 %v2934_v48  ;;  %v3068_v50 = vpop.permute.xlu0 %3067  ;;  %4924 = vmatmul.mubr.msk.bf16.vlgmr.msra.gmra.mrb[0].mxu0 %vm118_vm2, %v5484_v45 }
 0x1b5   :  { %v3070_v51 = vpop.permute.xlu1 %3069  ;;  %2981 = vmatprep.mubr.bf16.mxu0 %v5515_v7 }
 0x1b6   :  { %3966 = vrot.lane.b32.xlu0 %v5617_v11, %s5536_s29  ;;  %v3087_v52 = vsel %vm3085_vm4, %v3068_v50, %v3070_v51 }
 0x1b7   :  { %3968 = vrot.lane.b32.xlu1 %v6089_v35, %s5536_s29  ;;  %3116 = vmatprep.subr.bf16.mxu0 %v3087_v52 }
 0x1b8   :  { %v3066_v0 = vpop.permute.xlu0 %3065  ;;  %4927 = vmatmul.mubr.msk.bf16.vlgmr.msra.gmra.mrb[0].mxu1 %vm118_vm2, %v5484_v45 }
 0x1b9   :  { %v3086_v53 = vsel %vm3085_vm4, %v3066_v0, %v3068_v50  ;;  %v3072_v1 = vpop.permute.xlu1 %3071  ;;  %3032 = vmatprep.mubr.bf16.mxu1 %v5515_v7 }
 0x1ba   :  { %4129 = vrot.lane.b32.xlu0 %v6026_v13, %s5537_s9  ;;  %3117 = vmatpush1.bf16.msra.mxu0 %v3086_v53  ;;  %v3088_v56 = vsel %vm3085_vm4, %v3070_v51, %v3072_v1 }
 0x1bb   :  { %4131 = vrot.lane.b32.xlu1 %v6033_v12, %s5537_s9 }
 0x1bc   :  { %v3074_v54 = vpop.permute.xlu0 %3073  ;;  %4925 = vmatmul.mubr.msk.bf16.gmra.mrb[4].mxu0 %vm118_vm2, %v5485_v2 }
 0x1bd   :  { %v3076_v3 = vpop.permute.xlu1 %3075  ;;  %v3089_v55 = vsel %vm3085_vm4, %v3072_v1, %v3074_v54  ;;  %3148 = vmatprep.mubr.bf16.mxu0 %v5515_v7  ;;  %v5491_v1 = vld [vmem:[%s6815_s1 + $0xec] ss:$0 sps:$4 sm:$0xff]  }
 0x1be   :  { %4127 = vrot.lane.b32.xlu0 %v6043_v17, %s5537_s9  ;;  %3167 = vmatprep.subr.bf16.mxu1 %v3089_v55 }
 0x1bf   :  { %4133 = vrot.lane.b32.xlu1 %v6051_v19, %s5537_s9  ;;  %3168 = vmatpush1.bf16.msra.mxu1 %v3088_v56 }
 0x1c0   :  { %v3078_v57 = vpop.permute.xlu0 %3077  ;;  %4928 = vmatmul.mubr.msk.bf16.gmra.mrb[4].mxu1 %vm118_vm2, %v5485_v2 }
 0x1c1   :  { %v3090_v4 = vsel %vm3085_vm4, %v3076_v3, %v3078_v57  ;;  %v3080_v58 = vpop.permute.xlu1 %3079  ;;  %3199 = vmatprep.mubr.bf16.mxu1 %v5515_v7 }
 0x1c2   :  { %v3105_v59 = vsel %vm125_vm1, %v3090_v4, 0  ;;  %v3091_v60 = vsel %vm3085_vm4, %v3078_v57, %v3080_v58  ;;  %4135 = vrot.lane.b32.xlu0 %v6061_v23, %s5537_s9 }
 0x1c3   :  { %4137 = vrot.lane.b32.xlu1 %v5605_v8, %s5537_s9  ;;  %4934 = vmatprep.subr.msk.bf16.mxu0 %vm125_vm1, %v3091_v60 }
 0x1c4   :  { %3119 = vmatpush1.bf16.msra.mxu0 %v3105_v59  ;;  %v3082_v61 = vpop.permute.xlu0 %3081 }
 0x1c5   :  { %v3092_v63 = vsel %vm3085_vm4, %v3080_v58, %v3082_v61  ;;  %v3084_v5 = vpop.permute.xlu1 %3083 }
 0x1c6   :  { %v3111_v6 = vsel %vm125_vm1, %v3092_v63, 0  ;;  %v3093_v14 = vsel %vm3085_vm4, %v3082_v61, %v3084_v5  ;;  %4139 = vrot.lane.b32.xlu0 %v5611_v9, %s5537_s9  ;;  %v5492_v5 = vld [vmem:[%s6815_s1 + $0xf0] sm:$0xff]  }
 0x1c7   :  { %4141 = vrot.lane.b32.xlu1 %v5614_v10, %s5537_s9  ;;  %4937 = vmatprep.subr.msk.bf16.mxu1 %vm125_vm1, %v3093_v14 }
 0x1c8   :  { %3170 = vmatpush1.bf16.msra.mxu1 %v3111_v6  ;;  %v3245_v15 = vpop.permute.xlu0 %3244  ;;  %4935 = vmatmul.mubr.msk.bf16.vlgmr.msra.gmra.mrb[0].mxu0 %vm118_vm2, %v5486_v62 }
 0x1c9   :  { %v3247_v16 = vpop.permute.xlu1 %3246  ;;  %3158 = vmatprep.mubr.bf16.mxu0 %v5515_v7 }
 0x1ca   :  { %4143 = vrot.lane.b32.xlu0 %v5617_v11, %s5537_s9  ;;  %v3264_v18 = vsel %vm3262_vm5, %v3245_v15, %v3247_v16 }
 0x1cb   :  { %4145 = vrot.lane.b32.xlu1 %v6089_v35, %s5537_s9  ;;  %3293 = vmatprep.subr.bf16.mxu0 %v3264_v18 }
 0x1cc   :  { %v3243_v20 = vpop.permute.xlu0 %3242  ;;  %4938 = vmatmul.mubr.msk.bf16.vlgmr.msra.gmra.mrb[0].mxu1 %vm118_vm2, %v5486_v62 }
 0x1cd   :  { %v3263_v22 = vsel %vm3262_vm5, %v3243_v20, %v3245_v15  ;;  %v3249_v24 = vpop.permute.xlu1 %3248  ;;  %3209 = vmatprep.mubr.bf16.mxu1 %v5515_v7 }
 0x1ce   :  { %4306 = vrot.lane.b32.xlu0 %v6026_v13, %s5538_s14  ;;  %3294 = vmatpush1.bf16.msra.mxu0 %v3263_v22  ;;  %v3265_v28 = vsel %vm3262_vm5, %v3247_v16, %v3249_v24 }
 0x1cf   :  { %4308 = vrot.lane.b32.xlu1 %v6033_v12, %s5538_s14 }
 0x1d0   :  { %v3251_v25 = vpop.permute.xlu0 %3250  ;;  %4936 = vmatmul.mubr.msk.bf16.gmra.mrb[4].mxu0 %vm118_vm2, %v5487_v21 }
 0x1d1   :  { %v3253_v26 = vpop.permute.xlu1 %3252  ;;  %v3266_v27 = vsel %vm3262_vm5, %v3249_v24, %v3251_v25  ;;  %3325 = vmatprep.mubr.bf16.mxu0 %v5515_v7  ;;  %v5493_v24 = vld [vmem:[%s6815_s1 + $0xf8] ss:$0 sps:$4 sm:$0xff]  }
 0x1d2   :  { %4304 = vrot.lane.b32.xlu0 %v6043_v17, %s5538_s14  ;;  %3344 = vmatprep.subr.bf16.mxu1 %v3266_v27 }
 0x1d3   :  { %4310 = vrot.lane.b32.xlu1 %v6051_v19, %s5538_s14  ;;  %3345 = vmatpush1.bf16.msra.mxu1 %v3265_v28  ;;  %v5488_v19 = vld [vmem:[%s6815_s1 + $0xd8] sm:$0xff]  }
 0x1d4   :  { %v3255_v13 = vpop.permute.xlu0 %3254  ;;  %4939 = vmatmul.mubr.msk.bf16.gmra.mrb[4].mxu1 %vm118_vm2, %v5487_v21 }
 0x1d5   :  { %v3267_v12 = vsel %vm3262_vm5, %v3253_v26, %v3255_v13  ;;  %v3257_v29 = vpop.permute.xlu1 %3256  ;;  %3376 = vmatprep.mubr.bf16.mxu1 %v5515_v7 }
 0x1d6   :  { %v3282_v30 = vsel %vm125_vm1, %v3267_v12, 0  ;;  %v3268_v31 = vsel %vm3262_vm5, %v3255_v13, %v3257_v29  ;;  %4312 = vrot.lane.b32.xlu0 %v6061_v23, %s5538_s14 }
 0x1d7   :  { %4314 = vrot.lane.b32.xlu1 %v5605_v8, %s5538_s14  ;;  %4945 = vmatprep.subr.msk.bf16.mxu0 %vm125_vm1, %v3268_v31 }
 0x1d8   :  { %3296 = vmatpush1.bf16.msra.mxu0 %v3282_v30  ;;  %v3259_v17 = vpop.permute.xlu0 %3258 }
 0x1d9   :  { %v3269_v32 = vsel %vm3262_vm5, %v3257_v29, %v3259_v17  ;;  %v3261_v33 = vpop.permute.xlu1 %3260 }
 0x1da   :  { %v3288_v34 = vsel %vm125_vm1, %v3269_v32, 0  ;;  %v3270_v36 = vsel %vm3262_vm5, %v3259_v17, %v3261_v33  ;;  %4316 = vrot.lane.b32.xlu0 %v5611_v9, %s5538_s14  ;;  %v5494_v33 = vld [vmem:[%s6815_s1 + $0xfc] sm:$0xff]  }
 0x1db   :  { %4318 = vrot.lane.b32.xlu1 %v5614_v10, %s5538_s14  ;;  %4948 = vmatprep.subr.msk.bf16.mxu1 %vm125_vm1, %v3270_v36  ;;  %v5489_v10 = vld [vmem:[%s6815_s1 + $0xe0] ss:$0 sps:$4 sm:$0xff]  }
 0x1dc   :  { %3347 = vmatpush1.bf16.msra.mxu1 %v3288_v34  ;;  %v3422_v8 = vpop.permute.xlu0 %3421  ;;  %4946 = vmatmul.mubr.msk.bf16.vlgmr.msra.gmra.mrb[0].mxu0 %vm118_vm2, %v5488_v19 }
 0x1dd   :  { %v3424_v23 = vpop.permute.xlu1 %3423  ;;  %3335 = vmatprep.mubr.bf16.mxu0 %v5515_v7 }
 0x1de   :  { %4320 = vrot.lane.b32.xlu0 %v5617_v11, %s5538_s14  ;;  %v3441_v37 = vsel %vm3439_vm6, %v3422_v8, %v3424_v23 }
 0x1df   :  { %4322 = vrot.lane.b32.xlu1 %v6089_v35, %s5538_s14  ;;  %3470 = vmatprep.subr.bf16.mxu0 %v3441_v37 }
 0x1e0   :  { %v3420_v9 = vpop.permute.xlu0 %3419  ;;  %4949 = vmatmul.mubr.msk.bf16.vlgmr.msra.gmra.mrb[0].mxu1 %vm118_vm2, %v5488_v19 }
 0x1e1   :  { %v3440_v38 = vsel %vm3439_vm6, %v3420_v9, %v3422_v8  ;;  %v3426_v39 = vpop.permute.xlu1 %3425  ;;  %3386 = vmatprep.mubr.bf16.mxu1 %v5515_v7 }
 0x1e2   :  { %3471 = vmatpush1.bf16.msra.mxu0 %v3440_v38  ;;  %v3442_v41 = vsel %vm3439_vm6, %v3424_v23, %v3426_v39 }
 0x1e4   :  { %v3428_v11 = vpop.permute.xlu0 %3427  ;;  %4947 = vmatmul.mubr.msk.bf16.gmra.mrb[4].mxu0 %vm118_vm2, %v5489_v10 }
 0x1e5   :  { %v3430_v40 = vpop.permute.xlu1 %3429  ;;  %v3443_v35 = vsel %vm3439_vm6, %v3426_v39, %v3428_v11  ;;  %3502 = vmatprep.mubr.bf16.mxu0 %v5515_v7  ;;  %v5495_v39 = vld [vmem:[%s6815_s1 + $0x104] ss:$0 sps:$4 sm:$0xff]  }
 0x1e6   :  { %3521 = vmatprep.subr.bf16.mxu1 %v3443_v35 }
 0x1e7   :  { %3522 = vmatpush1.bf16.msra.mxu1 %v3442_v41 }
 0x1e8   :  { %v3432_v42 = vpop.permute.xlu0 %3431  ;;  %4950 = vmatmul.mubr.msk.bf16.gmra.mrb[4].mxu1 %vm118_vm2, %v5489_v10 }
 0x1e9   :  { %v3444_v43 = vsel %vm3439_vm6, %v3430_v40, %v3432_v42  ;;  %v3434_v44 = vpop.permute.xlu1 %3433  ;;  %3553 = vmatprep.mubr.bf16.mxu1 %v5515_v7 }
 0x1ea   :  { %v3459_v45 = vsel %vm125_vm1, %v3444_v43, 0  ;;  %v3445_v46 = vsel %vm3439_vm6, %v3432_v42, %v3434_v44 }
 0x1eb   :  { %4956 = vmatprep.subr.msk.bf16.mxu0 %vm125_vm1, %v3445_v46 }
 0x1ec   :  { %3473 = vmatpush1.bf16.msra.mxu0 %v3459_v45  ;;  %v3436_v48 = vpop.permute.xlu0 %3435 }
 0x1ed   :  { %v3446_v49 = vsel %vm3439_vm6, %v3434_v44, %v3436_v48  ;;  %v3438_v50 = vpop.permute.xlu1 %3437 }
 0x1ee   :  { %v3465_v51 = vsel %vm125_vm1, %v3446_v49, 0  ;;  %v3447_v52 = vsel %vm3439_vm6, %v3436_v48, %v3438_v50  ;;  %v5496_v50 = vld [vmem:[%s6815_s1 + $0x108] sm:$0xff]  }
 0x1ef   :  { %4959 = vmatprep.subr.msk.bf16.mxu1 %vm125_vm1, %v3447_v52  ;;  %4957 = vmatmul.mubr.msk.bf16.vlgmr.msra.gmra.mrb[0].mxu0 %vm118_vm2, %v5490_v47 }
 0x1f0   :  { %3524 = vmatpush1.bf16.msra.mxu1 %v3465_v51  ;;  %v3599_v0 = vpop.permute.xlu0 %3598  ;;  %3512 = vmatprep.mubr.bf16.mxu0 %v5515_v7 }
 0x1f1   :  { %v3601_v2 = vpop.permute.xlu1 %3600 }
 0x1f2   :  { %v3618_v53 = vsel %vm3616_vm7, %v3599_v0, %v3601_v2 }
 0x1f3   :  { %3647 = vmatprep.subr.bf16.mxu0 %v3618_v53  ;;  %4960 = vmatmul.mubr.msk.bf16.vlgmr.msra.gmra.mrb[0].mxu1 %vm118_vm2, %v5490_v47 }
 0x1f4   :  { %v3597_v54 = vpop.permute.xlu0 %3596  ;;  %3563 = vmatprep.mubr.bf16.mxu1 %v5515_v7 }
 0x1f5   :  { %v3617_v3 = vsel %vm3616_vm7, %v3597_v54, %v3599_v0  ;;  %v3603_v55 = vpop.permute.xlu1 %3602 }
 0x1f6   :  { %3648 = vmatpush1.bf16.msra.mxu0 %v3617_v3  ;;  %v3619_v58 = vsel %vm3616_vm7, %v3601_v2, %v3603_v55 }
 0x1f7   :  { %4958 = vmatmul.mubr.msk.bf16.gmra.mrb[4].mxu0 %vm118_vm2, %v5491_v1 }
 0x1f8   :  { %v3605_v56 = vpop.permute.xlu0 %3604  ;;  %3679 = vmatprep.mubr.bf16.mxu0 %v5515_v7 }
 0x1f9   :  { %v3607_v57 = vpop.permute.xlu1 %3606  ;;  %v3620_v4 = vsel %vm3616_vm7, %v3603_v55, %v3605_v56  ;;  %v5497_v55 = vld [vmem:[%s6815_s1 + $0x110] ss:$0 sps:$4 sm:$0xff]  }
 0x1fa   :  { %3698 = vmatprep.subr.bf16.mxu1 %v3620_v4 }
 0x1fb   :  { %3699 = vmatpush1.bf16.msra.mxu1 %v3619_v58 }
 0x1fc   :  { %v3609_v59 = vpop.permute.xlu0 %3608  ;;  %4961 = vmatmul.mubr.msk.bf16.gmra.mrb[4].mxu1 %vm118_vm2, %v5491_v1 }
 0x1fd   :  { %v3621_v60 = vsel %vm3616_vm7, %v3607_v57, %v3609_v59  ;;  %v3611_v61 = vpop.permute.xlu1 %3610  ;;  %3730 = vmatprep.mubr.bf16.mxu1 %v5515_v7 }
 0x1fe   :  { %v3636_v62 = vsel %vm125_vm1, %v3621_v60, 0  ;;  %v3622_v63 = vsel %vm3616_vm7, %v3609_v59, %v3611_v61 }
 0x1ff   :  { %4967 = vmatprep.subr.msk.bf16.mxu0 %vm125_vm1, %v3622_v63 }
 0x200   :  { %3650 = vmatpush1.bf16.msra.mxu0 %v3636_v62  ;;  %v3613_v6 = vpop.permute.xlu0 %3612 }
 0x201   :  { %v3623_v14 = vsel %vm3616_vm7, %v3611_v61, %v3613_v6  ;;  %v3615_v15 = vpop.permute.xlu1 %3614 }
 0x202   :  { %v3642_v16 = vsel %vm125_vm1, %v3623_v14, 0  ;;  %v3624_v18 = vsel %vm3616_vm7, %v3613_v6, %v3615_v15  ;;  %v5498_v15 = vld [vmem:[%s6815_s1 + $0x114] sm:$0xff]  }
 0x203   :  { %4970 = vmatprep.subr.msk.bf16.mxu1 %vm125_vm1, %v3624_v18  ;;  %4968 = vmatmul.mubr.msk.bf16.vlgmr.msra.gmra.mrb[0].mxu0 %vm118_vm2, %v5492_v5 }
 0x204   :  { %3701 = vmatpush1.bf16.msra.mxu1 %v3642_v16  ;;  %v3776_v20 = vpop.permute.xlu0 %3775  ;;  %3689 = vmatprep.mubr.bf16.mxu0 %v5515_v7 }
 0x205   :  { %v3778_v21 = vpop.permute.xlu1 %3777 }
 0x206   :  { %v3795_v22 = vsel %vm3793_vm8, %v3776_v20, %v3778_v21 }
 0x207   :  { %3824 = vmatprep.subr.bf16.mxu0 %v3795_v22  ;;  %4971 = vmatmul.mubr.msk.bf16.vlgmr.msra.gmra.mrb[0].mxu1 %vm118_vm2, %v5492_v5 }
 0x208   :  { %v3774_v25 = vpop.permute.xlu0 %3773  ;;  %3740 = vmatprep.mubr.bf16.mxu1 %v5515_v7 }
 0x209   :  { %v3794_v26 = vsel %vm3793_vm8, %v3774_v25, %v3776_v20  ;;  %v3780_v27 = vpop.permute.xlu1 %3779 }
 0x20a   :  { %3825 = vmatpush1.bf16.msra.mxu0 %v3794_v26  ;;  %v3796_v29 = vsel %vm3793_vm8, %v3778_v21, %v3780_v27 }
 0x20b   :  { %4969 = vmatmul.mubr.msk.bf16.gmra.mrb[4].mxu0 %vm118_vm2, %v5493_v24 }
 0x20c   :  { %v3782_v28 = vpop.permute.xlu0 %3781  ;;  %3856 = vmatprep.mubr.bf16.mxu0 %v5515_v7 }
 0x20d   :  { %v3784_v13 = vpop.permute.xlu1 %3783  ;;  %v3797_v12 = vsel %vm3793_vm8, %v3780_v27, %v3782_v28  ;;  %v5499_v27 = vld [vmem:[%s6815_s1 + $0x11c] ss:$0 sps:$4 sm:$0xff]  }
 0x20e   :  { %3875 = vmatprep.subr.bf16.mxu1 %v3797_v12 }
 0x20f   :  { %3876 = vmatpush1.bf16.msra.mxu1 %v3796_v29 }
 0x210   :  { %v3786_v30 = vpop.permute.xlu0 %3785  ;;  %4972 = vmatmul.mubr.msk.bf16.gmra.mrb[4].mxu1 %vm118_vm2, %v5493_v24 }
 0x211   :  { %v3798_v31 = vsel %vm3793_vm8, %v3784_v13, %v3786_v30  ;;  %v3788_v17 = vpop.permute.xlu1 %3787  ;;  %3907 = vmatprep.mubr.bf16.mxu1 %v5515_v7 }
 0x212   :  { %v3813_v19 = vsel %vm125_vm1, %v3798_v31, 0  ;;  %v3799_v32 = vsel %vm3793_vm8, %v3786_v30, %v3788_v17 }
 0x213   :  { %4978 = vmatprep.subr.msk.bf16.mxu0 %vm125_vm1, %v3799_v32 }
 0x214   :  { %3827 = vmatpush1.bf16.msra.mxu0 %v3813_v19  ;;  %v3790_v34 = vpop.permute.xlu0 %3789 }
 0x215   :  { %v3800_v36 = vsel %vm3793_vm8, %v3788_v17, %v3790_v34  ;;  %v3792_v8 = vpop.permute.xlu1 %3791 }
 0x216   :  { %v3819_v23 = vsel %vm125_vm1, %v3800_v36, 0  ;;  %v3801_v37 = vsel %vm3793_vm8, %v3790_v34, %v3792_v8  ;;  %v5500_v8 = vld [vmem:[%s6815_s1 + $0x120] sm:$0xff]  }
 0x217   :  { %4981 = vmatprep.subr.msk.bf16.mxu1 %vm125_vm1, %v3801_v37  ;;  %4979 = vmatmul.mubr.msk.bf16.vlgmr.msra.gmra.mrb[0].mxu0 %vm118_vm2, %v5494_v33 }
 0x218   :  { %3878 = vmatpush1.bf16.msra.mxu1 %v3819_v23  ;;  %v3953_v9 = vpop.permute.xlu0 %3952  ;;  %3866 = vmatprep.mubr.bf16.mxu0 %v5515_v7 }
 0x219   :  { %v3955_v10 = vpop.permute.xlu1 %3954 }
 0x21a   :  { %v3972_v38 = vsel %vm3970_vm9, %v3953_v9, %v3955_v10 }
 0x21b   :  { %4001 = vmatprep.subr.bf16.mxu0 %v3972_v38  ;;  %4982 = vmatmul.mubr.msk.bf16.vlgmr.msra.gmra.mrb[0].mxu1 %vm118_vm2, %v5494_v33 }
 0x21c   :  { %v3951_v11 = vpop.permute.xlu0 %3950  ;;  %3917 = vmatprep.mubr.bf16.mxu1 %v5515_v7 }
 0x21d   :  { %v3971_v40 = vsel %vm3970_vm9, %v3951_v11, %v3953_v9  ;;  %v3957_v35 = vpop.permute.xlu1 %3956  ;;  %v4483_v11 = vlaneseq }
 0x21e   :  { %4002 = vmatpush1.bf16.msra.mxu0 %v3971_v40  ;;  %v3973_v44 = vsel %vm3970_vm9, %v3955_v10, %v3957_v35 }
 0x21f   :  { %4980 = vmatmul.mubr.msk.bf16.gmra.mrb[4].mxu0 %vm118_vm2, %v5495_v39  ;;  %v4484_v40 = vshrl.u32 %v4483_v11, 7 }
 0x220   :  { %v3959_v41 = vpop.permute.xlu0 %3958  ;;  %4033 = vmatprep.mubr.bf16.mxu0 %v5515_v7 }
 0x221   :  { %v3961_v42 = vpop.permute.xlu1 %3960  ;;  %v3974_v43 = vsel %vm3970_vm9, %v3957_v35, %v3959_v41  ;;  %v4485_v35 = vsub.s32 0, %v4484_v40  ;;  %v4481_v41 = vld [vmem:[%s6816_s4] sm:$0xf] }
 0x222   :  { %4052 = vmatprep.subr.bf16.mxu1 %v3974_v43 }
 0x223   :  { %4053 = vmatpush1.bf16.msra.mxu1 %v3973_v44  ;;  %v4486_v43 = vrot.slane %v4481_v41, %v4485_v35  ;;  %v4493_v44 = vsub.s32 2, %v4484_v40 }
 0x224   :  { %v3963_v45 = vpop.permute.xlu0 %3962  ;;  %4983 = vmatmul.mubr.msk.bf16.gmra.mrb[4].mxu1 %vm118_vm2, %v5495_v39  ;;  %v5501_v39 = vld [vmem:[%s6815_s1 + $0x128] ss:$0 sps:$4 sm:$0xff]  }
 0x225   :  { %v3975_v46 = vsel %vm3970_vm9, %v3961_v42, %v3963_v45  ;;  %v3965_v47 = vpop.permute.xlu1 %3964  ;;  %4084 = vmatprep.mubr.bf16.mxu1 %v5515_v7  ;;  %v4489_v42 = vsub.s32 1, %v4484_v40 }
 0x226   :  { %v3990_v48 = vsel %vm125_vm1, %v3975_v46, 0  ;;  %v3976_v49 = vsel %vm3970_vm9, %v3963_v45, %v3965_v47  ;;  %v4497_v46 = vsub.s32 3, %v4484_v40 }
 0x227   :  { %4989 = vmatprep.subr.msk.bf16.mxu0 %vm125_vm1, %v3976_v49  ;;  %v4490_v45 = vrot.slane %v4481_v41, %v4489_v42  ;;  %v4494_v49 = vrot.slane %v4481_v41, %v4493_v44 }
 0x228   :  { %4004 = vmatpush1.bf16.msra.mxu0 %v3990_v48  ;;  %v3967_v51 = vpop.permute.xlu0 %3966 }
 0x229   :  { %v3977_v52 = vsel %vm3970_vm9, %v3965_v47, %v3967_v51  ;;  %v3969_v0 = vpop.permute.xlu1 %3968 }
 0x22a   :  { %v3996_v2 = vsel %vm125_vm1, %v3977_v52, 0  ;;  %v3978_v53 = vsel %vm3970_vm9, %v3967_v51, %v3969_v0  ;;  %v4498_v52 = vrot.slane %v4481_v41, %v4497_v46 }
 0x22b   :  { %4992 = vmatprep.subr.msk.bf16.mxu1 %vm125_vm1, %v3978_v53  ;;  %4990 = vmatmul.mubr.msk.bf16.vlgmr.msra.gmra.mrb[0].mxu0 %vm118_vm2, %v5496_v50 }
 0x22c   :  { %4055 = vmatpush1.bf16.msra.mxu1 %v3996_v2  ;;  %v4130_v1 = vpop.permute.xlu0 %4129  ;;  %4043 = vmatprep.mubr.bf16.mxu0 %v5515_v7 }
 0x22d   :  { %v4132_v54 = vpop.permute.xlu1 %4131 }
 0x22e   :  { %v4149_v3 = vsel %vm4147_vm10, %v4130_v1, %v4132_v54 }
 0x22f   :  { %4178 = vmatprep.subr.bf16.mxu0 %v4149_v3  ;;  %4993 = vmatmul.mubr.msk.bf16.vlgmr.msra.gmra.mrb[0].mxu1 %vm118_vm2, %v5496_v50 }
 0x230   :  { %v4128_v56 = vpop.permute.xlu0 %4127  ;;  %4094 = vmatprep.mubr.bf16.mxu1 %v5515_v7 }
 0x231   :  { %v4148_v57 = vsel %vm4147_vm10, %v4128_v56, %v4130_v1  ;;  %v4134_v4 = vpop.permute.xlu1 %4133 }
 0x232   :  { %4179 = vmatpush1.bf16.msra.mxu0 %v4148_v57  ;;  %v4150_v61 = vsel %vm4147_vm10, %v4132_v54, %v4134_v4 }
 0x233   :  { %4991 = vmatmul.mubr.msk.bf16.gmra.mrb[4].mxu0 %vm118_vm2, %v5497_v55 }
 0x234   :  { %v4136_v58 = vpop.permute.xlu0 %4135  ;;  %4210 = vmatprep.mubr.bf16.mxu0 %v5515_v7 }
 0x235   :  { %v4138_v59 = vpop.permute.xlu1 %4137  ;;  %v4151_v60 = vsel %vm4147_vm10, %v4134_v4, %v4136_v58 }
 0x236   :  { %4229 = vmatprep.subr.bf16.mxu1 %v4151_v60 }
 0x237   :  { %4230 = vmatpush1.bf16.msra.mxu1 %v4150_v61 }
 0x238   :  { %v4140_v62 = vpop.permute.xlu0 %4139  ;;  %4994 = vmatmul.mubr.msk.bf16.gmra.mrb[4].mxu1 %vm118_vm2, %v5497_v55 }
 0x239   :  { %v4152_v63 = vsel %vm4147_vm10, %v4138_v59, %v4140_v62  ;;  %v4142_v5 = vpop.permute.xlu1 %4141  ;;  %4261 = vmatprep.mubr.bf16.mxu1 %v5515_v7 }
 0x23a   :  { %v4167_v6 = vsel %vm125_vm1, %v4152_v63, 0  ;;  %v4153_v14 = vsel %vm4147_vm10, %v4140_v62, %v4142_v5 }
 0x23b   :  { %5000 = vmatprep.subr.msk.bf16.mxu0 %vm125_vm1, %v4153_v14 }
 0x23c   :  { %4181 = vmatpush1.bf16.msra.mxu0 %v4167_v6  ;;  %v4144_v16 = vpop.permute.xlu0 %4143 }
 0x23d   :  { %v4154_v18 = vsel %vm4147_vm10, %v4142_v5, %v4144_v16  ;;  %v4146_v20 = vpop.permute.xlu1 %4145 }
 0x23e   :  { %v4173_v21 = vsel %vm125_vm1, %v4154_v18, 0  ;;  %v4155_v22 = vsel %vm4147_vm10, %v4144_v16, %v4146_v20 }
 0x23f   :  { %5003 = vmatprep.subr.msk.bf16.mxu1 %vm125_vm1, %v4155_v22  ;;  %5001 = vmatmul.mubr.msk.bf16.vlgmr.msra.gmra.mrb[0].mxu0 %vm118_vm2, %v5498_v15 }
 0x240   :  { %4232 = vmatpush1.bf16.msra.mxu1 %v4173_v21  ;;  %v4307_v24 = vpop.permute.xlu0 %4306  ;;  %4220 = vmatprep.mubr.bf16.mxu0 %v5515_v7 }
 0x241   :  { %v4309_v25 = vpop.permute.xlu1 %4308 }
 0x242   :  { %v4326_v26 = vsel %vm4324_vm11, %v4307_v24, %v4309_v25 }
 0x243   :  { %4355 = vmatprep.subr.bf16.mxu0 %v4326_v26  ;;  %5004 = vmatmul.mubr.msk.bf16.vlgmr.msra.gmra.mrb[0].mxu1 %vm118_vm2, %v5498_v15 }
 0x244   :  { %v4305_v28 = vpop.permute.xlu0 %4304  ;;  %4271 = vmatprep.mubr.bf16.mxu1 %v5515_v7 }
 0x245   :  { %v4325_v13 = vsel %vm4324_vm11, %v4305_v28, %v4307_v24  ;;  %v4311_v12 = vpop.permute.xlu1 %4310 }
 0x246   :  { %4356 = vmatpush1.bf16.msra.mxu0 %v4325_v13  ;;  %v4327_v17 = vsel %vm4324_vm11, %v4309_v25, %v4311_v12 }
 0x247   :  { %5002 = vmatmul.mubr.msk.bf16.gmra.mrb[4].mxu0 %vm118_vm2, %v5499_v27 }
 0x248   :  { %v4313_v29 = vpop.permute.xlu0 %4312  ;;  %4387 = vmatprep.mubr.bf16.mxu0 %v5515_v7 }
 0x249   :  { %v4315_v30 = vpop.permute.xlu1 %4314  ;;  %v4328_v31 = vsel %vm4324_vm11, %v4311_v12, %v4313_v29 }
 0x24a   :  { %4406 = vmatprep.subr.bf16.mxu1 %v4328_v31 }
 0x24b   :  { %4407 = vmatpush1.bf16.msra.mxu1 %v4327_v17 }
 0x24c   :  { %v4317_v19 = vpop.permute.xlu0 %4316  ;;  %5005 = vmatmul.mubr.msk.bf16.gmra.mrb[4].mxu1 %vm118_vm2, %v5499_v27 }
 0x24d   :  { %v4329_v32 = vsel %vm4324_vm11, %v4315_v30, %v4317_v19  ;;  %v4319_v33 = vpop.permute.xlu1 %4318  ;;  %4438 = vmatprep.mubr.bf16.mxu1 %v5515_v7 }
 0x24e   :  { %v4344_v34 = vsel %vm125_vm1, %v4329_v32, 0  ;;  %v4330_v36 = vsel %vm4324_vm11, %v4317_v19, %v4319_v33 }
 0x24f   :  { %5011 = vmatprep.subr.msk.bf16.mxu0 %vm125_vm1, %v4330_v36 }
 0x250   :  { %4358 = vmatpush1.bf16.msra.mxu0 %v4344_v34  ;;  %v4321_v23 = vpop.permute.xlu0 %4320 }
 0x251   :  { %v4331_v37 = vsel %vm4324_vm11, %v4319_v33, %v4321_v23  ;;  %v4323_v9 = vpop.permute.xlu1 %4322 }
 0x252   :  { %v4350_v10 = vsel %vm125_vm1, %v4331_v37, 0  ;;  %v4332_v38 = vsel %vm4324_vm11, %v4321_v23, %v4323_v9 }
 0x253   :  { %5012 = vmatmul.mubr.msk.bf16.vlgmr.msra.gmra.mrb[0].mxu0 %vm118_vm2, %v5500_v8  ;;  %5014 = vmatprep.subr.msk.bf16.mxu1 %vm125_vm1, %v4332_v38 }
 0x254   :  { %4409 = vmatpush1.bf16.msra.mxu1 %v4350_v10  ;;  %4397 = vmatprep.mubr.bf16.mxu0 %v5515_v7 }
 0x257   :  { %5015 = vmatmul.mubr.msk.bf16.vlgmr.msra.gmra.mrb[0].mxu1 %vm118_vm2, %v5500_v8 }
 0x258   :  { %4448 = vmatprep.mubr.bf16.mxu1 %v5515_v7 }
 0x25b   :  { %5013 = vmatmul.mubr.msk.bf16.gmra.mrb[4].mxu0 %vm118_vm2, %v5501_v39 }
 0x25f   :  { %5016 = vmatmul.mubr.msk.bf16.gmra.mrb[4].mxu1 %vm118_vm2, %v5501_v39 }
 0x326   :  { %v6718_v47 = vpop.f32.mrb[0].mxu0 }
 0x327   :  { %v4503_v7 = vmul.f32 %v4486_v43, %v6718_v47  ;;  %v6721_v48 = vpop.f32.mrb[1].mxu0 }
 0x328   :  { %v4504_v50 = vmul.f32 %v4490_v45, %v6721_v48  ;;  %v6724_v51 = vpop.f32.mrb[2].mxu0 }
 0x329   :  { %v4533_v0 = vmul.f32 %v4503_v7, %v6718_v47  ;;  %v4507_v2 = vmul.f32 %v4486_v43, %v6724_v51  ;;  %v6728_v53 = vpop.f32.mrb[3].mxu0 }
 0x32a   :  { %v4515_v1 = vadd.f32 %v4504_v50, %v4503_v7  ;;  %v4534_v54 = vmul.f32 %v4504_v50, %v6721_v48  ;;  %v4508_v3 = vmul.f32 %v4490_v45, %v6728_v53  ;;  %v6732_v55 = vpop.f32.mrb[0].mxu1 }
 0x32b   :  { %v4537_v56 = vmul.f32 %v4507_v2, %v6724_v51  ;;  %v4505_v57 = vmul.f32 %v4494_v49, %v6732_v55  ;;  %v6736_v4 = vpop.f32.mrb[1].mxu1 }
 0x32c   :  { %v4545_v58 = vadd.f32 %v4534_v54, %v4533_v0  ;;  %v4520_v59 = vadd.f32 %v4508_v3, %v4507_v2  ;;  %v4538_v60 = vmul.f32 %v4508_v3, %v6728_v53  ;;  %v4506_v61 = vmul.f32 %v4498_v52, %v6736_v4  ;;  %v6740_v62 = vpop.f32.mrb[2].mxu1 }
 0x32d   :  { %v4516_v63 = vadd.f32 %v4515_v1, %v4505_v57  ;;  %v4535_v5 = vmul.f32 %v4505_v57, %v6732_v55  ;;  %v4509_v6 = vmul.f32 %v4494_v49, %v6740_v62  ;;  %v6744_v14 = vpop.f32.mrb[3].mxu1 }
 0x32e   :  { %v4550_v15 = vadd.f32 %v4538_v60, %v4537_v56  ;;  %v4536_v16 = vmul.f32 %v4506_v61, %v6736_v4  ;;  %v4510_v18 = vmul.f32 %v4498_v52, %v6744_v14  ;;  %v6748_v20 = vpop.f32.mrb[4].mxu0 }
 0x32f   :  { %v4546_v21 = vadd.f32 %v4545_v58, %v4535_v5  ;;  %v4521_v22 = vadd.f32 %v4520_v59, %v4509_v6  ;;  %v4539_v24 = vmul.f32 %v4509_v6, %v6740_v62  ;;  %v4511_v25 = vmul.f32 %v4486_v43, %v6748_v20  ;;  %v6752_v26 = vpop.f32.mrb[5].mxu0 }
 0x330   :  { %v4540_v27 = vmul.f32 %v4510_v18, %v6744_v14  ;;  %v4512_v28 = vmul.f32 %v4490_v45, %v6752_v26  ;;  %v4403_v13 = vpop.f32.mrb[6].mxu0  ;;  %v4517_v12 = vadd.f32 %v4516_v63, %v4506_v61 }
 0x331   :  { %v4551_v29 = vadd.f32 %v4550_v15, %v4539_v24  ;;  %v4541_v30 = vmul.f32 %v4511_v25, %v6748_v20  ;;  %v4404_v31 = vpop.f32.mrb[7].mxu0  ;;  %v4522_v17 = vadd.f32 %v4521_v22, %v4510_v18  ;;  %v4547_v19 = vadd.f32 %v4546_v21, %v4536_v16  ;;  %v4578_v18 = vld [vmem:[%s6817_s2] sm:$0xff]  ;;  %v4579_v21 = vld [vmem:[%s6817_s2 + $0x8] sm:$0xff] }
 0x332   :  { %v4525_v32 = vadd.f32 %v4512_v28, %v4511_v25  ;;  %v4542_v33 = vmul.f32 %v4512_v28, %v6752_v26  ;;  %4518 = vadd.xlane.f32.xlu0 %v4517_v12  ;;  %v6758_v34 = vpop.f32.mrb[4].mxu1  ;;  %v4590_v28 = vld [vmem:[%s6818_s3] sm:$0xff]  ;;  %v4580_v31 = vld [vmem:[%s6817_s2 + $0x10] sm:$0xff] }
 0x333   :  { %v4513_v36 = vmul.f32 %v4494_v49, %v6758_v34  ;;  %v6761_v8 = vpop.f32.mrb[5].mxu1  ;;  %4523 = vadd.xlane.f32.xlu1 %v4522_v17  ;;  %v4552_v23 = vadd.f32 %v4551_v29, %v4540_v27 }
 0x334   :  { %v4555_v37 = vadd.f32 %v4542_v33, %v4541_v30  ;;  %v4514_v9 = vmul.f32 %v4498_v52, %v6761_v8  ;;  %v4454_v10 = vpop.f32.mrb[6].mxu1  ;;  %v4591_v30 = vld [vmem:[%s6818_s3 + $0x8] sm:$0xff] }
 0x335   :  { %v4526_v38 = vadd.f32 %v4525_v32, %v4513_v36  ;;  %v4543_v39 = vmul.f32 %v4513_v36, %v6758_v34  ;;  %v4455_v11 = vpop.f32.mrb[7].mxu1  ;;  %v4592_v36 = vld [vmem:[%s6818_s3 + $0x10] sm:$0xff] }
 0x336   :  { %v4544_v40 = vmul.f32 %v4514_v9, %v6761_v8  ;;  %4548 = vadd.xlane.f32.xlu0 %v4547_v19 }
 0x337   :  { %v4556_v35 = vadd.f32 %v4555_v37, %v4543_v39  ;;  %4553 = vadd.xlane.f32.xlu1 %v4552_v23  ;;  %v4527_v41 = vadd.f32 %v4526_v38, %v4514_v9 }
 0x339   :  { %v4557_v42 = vadd.f32 %v4556_v35, %v4544_v40 }
 0x33a   :  { %4528 = vadd.xlane.f32.xlu0 %v4527_v41 }
 0x33e   :  { %4558 = vadd.xlane.f32.xlu0 %v4557_v42 }
 0x3bf   :  { %v4519_v43 = vpop.xlane.xlu0 %4518 }
 0x3c0   :  { %v4563_v44 = vmul.f32 0.005, %v4519_v43  ;;  %v4524_v45 = vpop.xlane.xlu1 %4523 }
 0x3c1   :  { %v4564_v46 = vmul.f32 0.005, %v4524_v45 }
 0x3c2   :  { %v4569_v49 = vmul.f32 %v4563_v44, %v4563_v44 }
 0x3c3   :  { %v4549_v7 = vpop.xlane.xlu0 %4548  ;;  %v4570_v0 = vmul.f32 %v4564_v46, %v4564_v46 }
 0x3c4   :  { %v4566_v50 = vmul.f32 0.005, %v4549_v7  ;;  %v4554_v52 = vpop.xlane.xlu1 %4553 }
 0x3c5   :  { %v4567_v2 = vmul.f32 0.005, %v4554_v52 }
 0x3c6   :  { %v4572_v1 = vsub.f32 %v4566_v50, %v4569_v49 }
 0x3c7   :  { %v4573_v54 = vsub.f32 %v4567_v2, %v4570_v0  ;;  %v4529_v3 = vpop.xlane.xlu0 %4528 }
 0x3c8   :  { %v4575_v56 = vmax.f32 %v4572_v1, 0.0  ;;  %v4565_v57 = vmul.f32 0.005, %v4529_v3 }
 0x3c9   :  { %v4576_v58 = vmax.f32 %v4573_v54, 0.0 }
 0x3ca   :  { %v4581_v59 = vadd.f32 1e-05, %v4575_v56  ;;  %v4571_v63 = vmul.f32 %v4565_v57, %v4565_v57 }
 0x3cb   :  { %v4582_v60 = vadd.f32 1e-05, %v4576_v58  ;;  %v4559_v61 = vpop.xlane.xlu0 %4558 }
 0x3cc   :  { %5502 = vrsqrt.f32 %v4581_v59  ;;  %v4568_v5 = vmul.f32 0.005, %v4559_v61 }
 0x3cd   :  { %5504 = vrsqrt.f32 %v4582_v60 }
 0x3ce   :  { %v4574_v6 = vsub.f32 %v4568_v5, %v4571_v63 }
 0x3d0   :  { %v4577_v15 = vmax.f32 %v4574_v6, 0.0 }
 0x3d2   :  { %v4583_v16 = vadd.f32 1e-05, %v4577_v15 }
 0x3d4   :  { %5506 = vrsqrt.f32 %v4583_v16 }
 0x3d6   :  { %v5503_v22 = vpop.eup %5502 }
 0x3d7   :  { %v5505_v24 = vpop.eup %5504  ;;  %v4587_v25 = vmul.f32 %v5503_v22, %v4578_v18 }
 0x3d8   :  { %v4588_v27 = vmul.f32 %v5505_v24, %v4579_v21 }
 0x3d9   :  { %4613 = vperm.xlu1 %5438, %v4587_v25   ;;  %v4593_v13 = vmul.f32 %v4587_v25, %v4563_v44 }
 0x3da   :  { %4618 = vperm.xlu0 %5439, %v4588_v27   ;;  %v4594_v29 = vmul.f32 %v4588_v27, %v4564_v46 }
 0x3db   :  { %v4596_v12 = vsub.f32 %v4590_v28, %v4593_v13 }
 0x3dc   :  { %v4597_v19 = vsub.f32 %v4591_v30, %v4594_v29 }
 0x3dd   :  { %4640 = vperm.xlu1 %5438, %v4596_v12  }
 0x3de   :  { %v5507_v17 = vpop.eup %5506 }
 0x3df   :  { %v4589_v32 = vmul.f32 %v5507_v17, %v4580_v31 }
 0x3e1   :  { %4645 = vperm.xlu1 %5438, %v4597_v19   ;;  %v4595_v33 = vmul.f32 %v4589_v32, %v4565_v57 }
 0x3e3   :  { %v4598_v23 = vsub.f32 %v4592_v36, %v4595_v33 }
 0x3e5   :  { %4623 = vperm.xlu1 %5438, %v4589_v32  }
 0x3e9   :  { %4650 = vperm.xlu1 %5438, %v4598_v23  }
 0x458   :  { %v4614_v37 = vpop.permute.xlu1 %4613 }
 0x459   :  { %v4626_v9 = vmul.f32 %v4614_v37, %v6718_v47  ;;  %v4627_v10 = vmul.f32 %v4614_v37, %v6721_v48  ;;  %v4628_v38 = vmul.f32 %v4614_v37, %v6732_v55  ;;  %v4629_v39 = vmul.f32 %v4614_v37, %v6736_v4  ;;  %v4619_v11 = vpop.permute.xlu0 %4618 }
 0x45a   :  { %v4630_v44 = vmul.f32 %v4619_v11, %v6724_v51  ;;  %v4631_v45 = vmul.f32 %v4619_v11, %v6728_v53  ;;  %v4632_v48 = vmul.f32 %v4619_v11, %v6740_v62  ;;  %v4633_v55 = vmul.f32 %v4619_v11, %v6744_v14 }
 0x45c   :  { %v4641_v40 = vpop.permute.xlu1 %4640 }
 0x45d   :  { %v4653_v35 = vadd.f32 %v4641_v40, %v4626_v9  ;;  %v4654_v41 = vadd.f32 %v4641_v40, %v4627_v10  ;;  %v4655_v42 = vadd.f32 %v4641_v40, %v4628_v38  ;;  %v4656_v43 = vadd.f32 %v4641_v40, %v4629_v39 }
 0x45f   :  { %v4665_v46 = vmax.f32 %v4653_v35, 0.0  ;;  %v4666_v7 = vmax.f32 %v4654_v41, 0.0  ;;  %v4667_v49 = vmax.f32 %v4655_v42, 0.0  ;;  %v4668_v47 = vmax.f32 %v4656_v43, 0.0 }
 0x460   :  { %v4646_v50 = vpop.permute.xlu1 %4645 }
 0x461   :  { %v5023_v4 = vpack.c.bf16 %v4666_v7, %v4665_v46  ;;  %v5024_v52 = vpack.c.bf16 %v4668_v47, %v4667_v49  ;;  %v4657_v0 = vadd.f32 %v4646_v50, %v4630_v44  ;;  %v4658_v2 = vadd.f32 %v4646_v50, %v4631_v45 }
 0x462   :  { %v4659_v1 = vadd.f32 %v4646_v50, %v4632_v48  ;;  %v4660_v54 = vadd.f32 %v4646_v50, %v4633_v55 }
 0x463   :  { %4717 = vst [vmem:[%s6819_s5] sm:$0xff] %v5023_v4  ;;  %4718 = vst [vmem:[%s6819_s5 + $0x8] sm:$0xff] %v5024_v52  ;;  %v4669_v51 = vmax.f32 %v4657_v0, 0.0  ;;  %v4670_v53 = vmax.f32 %v4658_v2, 0.0 }
 0x464   :  { %v4671_v62 = vmax.f32 %v4659_v1, 0.0  ;;  %v4672_v3 = vmax.f32 %v4660_v54, 0.0  ;;  %v4624_v14 = vpop.permute.xlu1 %4623 }
 0x465   :  { %v5025_v56 = vpack.c.bf16 %v4670_v53, %v4669_v51  ;;  %v4634_v58 = vmul.f32 %v4624_v14, %v6748_v20  ;;  %v4635_v59 = vmul.f32 %v4624_v14, %v6752_v26  ;;  %v4636_v60 = vmul.f32 %v4624_v14, %v6758_v34 }
 0x466   :  { %v5026_v57 = vpack.c.bf16 %v4672_v3, %v4671_v62  ;;  %v4637_v61 = vmul.f32 %v4624_v14, %v6761_v8 }
 0x467   :  { %4719 = vst [vmem:[%s6819_s5 + $0x10] sm:$0xff] %v5025_v56 }
 0x468   :  { %4720 = vst [vmem:[%s6819_s5 + $0x18] sm:$0xff] %v5026_v57  ;;  %v4651_v63 = vpop.permute.xlu1 %4650 }
 0x469   :  { %v4661_v5 = vadd.f32 %v4651_v63, %v4634_v58  ;;  %v4662_v6 = vadd.f32 %v4651_v63, %v4635_v59  ;;  %v4663_v15 = vadd.f32 %v4651_v63, %v4636_v60  ;;  %v4664_v16 = vadd.f32 %v4651_v63, %v4637_v61 }
 0x46b   :  { %v4673_v18 = vmax.f32 %v4661_v5, 0.0  ;;  %v4674_v21 = vmax.f32 %v4662_v6, 0.0  ;;  %v4675_v22 = vmax.f32 %v4663_v15, 0.0  ;;  %v4676_v24 = vmax.f32 %v4664_v16, 0.0 }
 0x46d   :  { %v5027_v20 = vpack.c.bf16 %v4674_v21, %v4673_v18  ;;  %v5028_v25 = vpack.c.bf16 %v4676_v24, %v4675_v22 }
 0x46f   :  { %4721 = vst [vmem:[%s6819_s5 + $0x20] sm:$0xff] %v5027_v20  ;;  %4722 = vst [vmem:[%s6819_s5 + $0x28] sm:$0xff] %v5028_v25 }

// kernel: network_forward.9
= control target key start
LH: loop header
LB: loop body
LE: loop exit
PB: predicated region body
PF: predicated region fallthrough
CT: control target
= control target key end

     0   :  { %v2335_v1 = vmov 0   ;;  %vm2337_vm0 = vmmov 0   ;;  %vm1342_vm1 = vcmask 785408   ;;  %s2877_s1 = inlined_call_operand.vmem [shape: bf16[2400,128], index: 1, kind: input, shape index: {}]   ;;  %s2878_s0 = inlined_call_operand.vmem [shape: bf16[16,2400], index: 0, kind: input, shape index: {}]   ;;  %s2879_s2 = inlined_call_operand.vmem [shape: f32[16,1], index: 2, kind: input, shape index: {}]   ;;  %s2880_s3 = inlined_call_operand.vmem [shape: f32[16,128], index: 3, kind: output, shape index: {}]  }
   0x1   :  { %v2157_v0 = vld [vmem:[%s2877_s1 + $0x40] sm:$0xff]   ;;  %2156 = vset.pattern.permute.xlu0 %v2335_v1  ;;  %v2161_v5 = vld [vmem:[%s2877_s1 + $0x48] sm:$0xff]   ;;  %v2165_v9 = vld [vmem:[%s2877_s1 + $0x50] sm:$0xff]  }
   0x2   :  { %v2158_v2 = vld [vmem:[%s2877_s1] sm:$0xff]   ;;  %1932 = vmatprep.subr.bf16.mxu0 %v2157_v0  ;;  %v2162_v6 = vld [vmem:[%s2877_s1 + $0x8] sm:$0xff]   ;;  %v2166_v10 = vld [vmem:[%s2877_s1 + $0x10] sm:$0xff]  }
   0x3   :  { %v2159_v3 = vld [vmem:[%s2877_s1 + $0xc0] sm:$0xff]   ;;  %1933 = vmatpush3.bf16.msra.mxu0 %v2158_v2  ;;  %v2163_v7 = vld [vmem:[%s2877_s1 + $0xc8] sm:$0xff]   ;;  %v2167_v11 = vld [vmem:[%s2877_s1 + $0xd0] sm:$0xff]  }
   0x4   :  { %v2160_v4 = vld [vmem:[%s2877_s1 + $0x80] sm:$0xff]   ;;  %1954 = vmatprep.subr.bf16.mxu1 %v2159_v3  ;;  %1934 = vmatprep.subr.bf16.mxu0 %v2161_v5  ;;  %v2164_v8 = vld [vmem:[%s2877_s1 + $0x88] sm:$0xff]   ;;  %v2168_v12 = vld [vmem:[%s2877_s1 + $0x90] sm:$0xff]  }
   0x5   :  { %1955 = vmatpush3.bf16.msra.mxu1 %v2160_v4  ;;  %v2169_v13 = vld [vmem:[%s2877_s1 + $0x58] sm:$0xff]   ;;  %v2173_v17 = vld [vmem:[%s2877_s1 + $0x60] sm:$0xff]   ;;  %v2177_v21 = vld [vmem:[%s2877_s1 + $0x68] sm:$0xff]  }
   0x6   :  { %1956 = vmatprep.subr.bf16.mxu1 %v2163_v7  ;;  %v2170_v14 = vld [vmem:[%s2877_s1 + $0x18] sm:$0xff]   ;;  %v2174_v18 = vld [vmem:[%s2877_s1 + $0x20] sm:$0xff]   ;;  %v2178_v22 = vld [vmem:[%s2877_s1 + $0x28] sm:$0xff]  }
   0x7   :  { %1935 = vmatpush3.bf16.msra.mxu0 %v2162_v6  ;;  %v2171_v15 = vld [vmem:[%s2877_s1 + $0xd8] sm:$0xff]   ;;  %v2175_v19 = vld [vmem:[%s2877_s1 + $0xe0] sm:$0xff]   ;;  %v2179_v23 = vld [vmem:[%s2877_s1 + $0xe8] sm:$0xff]  }
   0x8   :  { %1936 = vmatprep.subr.bf16.mxu0 %v2165_v9  ;;  %v2172_v16 = vld [vmem:[%s2877_s1 + $0x98] sm:$0xff]   ;;  %v2176_v20 = vld [vmem:[%s2877_s1 + $0xa0] sm:$0xff]   ;;  %v2180_v24 = vld [vmem:[%s2877_s1 + $0xa8] sm:$0xff]  }
   0x9   :  { %1957 = vmatpush3.bf16.msra.mxu1 %v2164_v8  ;;  %v2181_v25 = vld [vmem:[%s2877_s1 + $0x70] sm:$0xff]   ;;  %v2185_v29 = vld [vmem:[%s2877_s1 + $0x78] sm:$0xff]   ;;  %v2188_v32 = vld [vmem:[%s2878_s0] ss:$76 sps:$4 sm:$0xff]  }
   0xa   :  { %1958 = vmatprep.subr.bf16.mxu1 %v2167_v11  ;;  %v2182_v26 = vld [vmem:[%s2877_s1 + $0x30] sm:$0xff]   ;;  %v2186_v30 = vld [vmem:[%s2877_s1 + $0x38] sm:$0xff]   ;;  %v2192_v35 = vld [vmem:[%s2877_s1 + $0x140] sm:$0xff]  }
   0xb   :  { %1937 = vmatpush3.bf16.msra.mxu0 %v2166_v10  ;;  %v2183_v27 = vld [vmem:[%s2877_s1 + $0xf0] sm:$0xff]   ;;  %v2187_v31 = vld [vmem:[%s2877_s1 + $0xf8] sm:$0xff]   ;;  %v2196_v38 = vld [vmem:[%s2877_s1 + $0x100] sm:$0xff]  }
   0xc   :  { %1938 = vmatprep.subr.bf16.mxu0 %v2169_v13  ;;  %v2184_v28 = vld [vmem:[%s2877_s1 + $0xb0] sm:$0xff]   ;;  %v2191_v34 = vld [vmem:[%s2877_s1 + $0xb8] sm:$0xff]   ;;  %v2197_v39 = vld [vmem:[%s2877_s1 + $0x1c0] sm:$0xff]  }
   0xd   :  { %1959 = vmatpush3.bf16.msra.mxu1 %v2168_v12  ;;  %v2190_v33 = vld [vmem:[%s2878_s0 + $0x4] ss:$76 sps:$4 sm:$0xff]   ;;  %v2193_v36 = vld [vmem:[%s2878_s0 + $0x8] ss:$76 sps:$4 sm:$0xff]   ;;  %v2195_v37 = vld [vmem:[%s2878_s0 + $0xc] ss:$76 sps:$4 sm:$0xff]  }
   0xe   :  { %1960 = vmatprep.subr.bf16.mxu1 %v2171_v15  ;;  %1378 = vmatprep.mubr.bf16.mxu0 %v2190_v33  ;;  %v2198_v40 = vld [vmem:[%s2877_s1 + $0x180] sm:$0xff]   ;;  %v2199_v41 = vld [vmem:[%s2877_s1 + $0x148] sm:$0xff]   ;;  %v2203_v45 = vld [vmem:[%s2877_s1 + $0x150] sm:$0xff]  }
   0xf   :  { %1939 = vmatpush3.bf16.msra.mxu0 %v2170_v14  ;;  %1419 = vmatprep.mubr.bf16.mxu1 %v2195_v37  ;;  %v2200_v42 = vld [vmem:[%s2877_s1 + $0x108] sm:$0xff]   ;;  %v2204_v46 = vld [vmem:[%s2877_s1 + $0x110] sm:$0xff]   ;;  %v2207_v49 = vld [vmem:[%s2877_s1 + $0x158] sm:$0xff]  }
  0x10   :  { %1940 = vmatprep.subr.bf16.mxu0 %v2173_v17  ;;  %v2201_v43 = vld [vmem:[%s2877_s1 + $0x1c8] sm:$0xff]   ;;  %v2205_v47 = vld [vmem:[%s2877_s1 + $0x1d0] sm:$0xff]   ;;  %v2208_v50 = vld [vmem:[%s2877_s1 + $0x118] sm:$0xff]  }
  0x11   :  { %1961 = vmatpush3.bf16.msra.mxu1 %v2172_v16  ;;  %v2202_v44 = vld [vmem:[%s2877_s1 + $0x188] sm:$0xff]   ;;  %v2206_v48 = vld [vmem:[%s2877_s1 + $0x190] sm:$0xff]   ;;  %v2209_v51 = vld [vmem:[%s2877_s1 + $0x1d8] sm:$0xff]  }
  0x12   :  { %1962 = vmatprep.subr.bf16.mxu1 %v2175_v19  ;;  %v2210_v52 = vld [vmem:[%s2877_s1 + $0x198] sm:$0xff]   ;;  %v2211_v53 = vld [vmem:[%s2877_s1 + $0x160] sm:$0xff]   ;;  %v2215_v57 = vld [vmem:[%s2877_s1 + $0x168] sm:$0xff]  }
  0x13   :  { %1941 = vmatpush3.bf16.msra.mxu0 %v2174_v18  ;;  %v2212_v54 = vld [vmem:[%s2877_s1 + $0x120] sm:$0xff]   ;;  %v2216_v58 = vld [vmem:[%s2877_s1 + $0x128] sm:$0xff]   ;;  %v2219_v61 = vld [vmem:[%s2877_s1 + $0x170] sm:$0xff]  }
  0x14   :  { %1942 = vmatprep.subr.bf16.mxu0 %v2177_v21  ;;  %v2213_v55 = vld [vmem:[%s2877_s1 + $0x1e0] sm:$0xff]   ;;  %v2217_v59 = vld [vmem:[%s2877_s1 + $0x1e8] sm:$0xff]   ;;  %v2220_v62 = vld [vmem:[%s2877_s1 + $0x130] sm:$0xff]  }
  0x15   :  { %1963 = vmatpush3.bf16.msra.mxu1 %v2176_v20  ;;  %v2214_v56 = vld [vmem:[%s2877_s1 + $0x1a0] sm:$0xff]   ;;  %v2218_v60 = vld [vmem:[%s2877_s1 + $0x1a8] sm:$0xff]   ;;  %v2221_v63 = vld [vmem:[%s2877_s1 + $0x1f0] sm:$0xff]  }
  0x16   :  { %1964 = vmatprep.subr.bf16.mxu1 %v2179_v23  ;;  %v2222_v0 = vld [vmem:[%s2877_s1 + $0x1b0] sm:$0xff]   ;;  %v2223_v1 = vld [vmem:[%s2877_s1 + $0x178] sm:$0xff]   ;;  %v2230_v7 = vld [vmem:[%s2877_s1 + $0x240] sm:$0xff]  }
  0x17   :  { %1943 = vmatpush3.bf16.msra.mxu0 %v2178_v22  ;;  %v2224_v2 = vld [vmem:[%s2877_s1 + $0x138] sm:$0xff]   ;;  %v2228_v5 = vld [vmem:[%s2878_s0 + $0x14] ss:$76 sps:$4 sm:$0xff]   ;;  %v2237_v13 = vld [vmem:[%s2877_s1 + $0x248] sm:$0xff]  }
  0x18   :  { %1944 = vmatprep.subr.bf16.mxu0 %v2181_v25  ;;  %v2225_v3 = vld [vmem:[%s2877_s1 + $0x1f8] sm:$0xff]   ;;  %v2234_v10 = vld [vmem:[%s2877_s1 + $0x200] sm:$0xff]   ;;  %v2238_v14 = vld [vmem:[%s2877_s1 + $0x208] sm:$0xff]  }
  0x19   :  { %1965 = vmatpush3.bf16.msra.mxu1 %v2180_v24  ;;  %v2226_v4 = vld [vmem:[%s2878_s0 + $0x10] ss:$76 sps:$4 sm:$0xff]   ;;  %v2231_v8 = vld [vmem:[%s2878_s0 + $0x18] ss:$76 sps:$4 sm:$0xff]   ;;  %v2239_v15 = vld [vmem:[%s2877_s1 + $0x2c8] sm:$0xff]  }
  0x1a   :  { %1966 = vmatprep.subr.bf16.mxu1 %v2183_v27  ;;  %v2229_v6 = vld [vmem:[%s2877_s1 + $0x1b8] sm:$0xff]   ;;  %v2235_v11 = vld [vmem:[%s2877_s1 + $0x2c0] sm:$0xff]   ;;  %v2240_v16 = vld [vmem:[%s2877_s1 + $0x288] sm:$0xff]  }
  0x1b   :  { %1945 = vmatpush3.bf16.msra.mxu0 %v2182_v26  ;;  %v2233_v9 = vld [vmem:[%s2878_s0 + $0x1c] ss:$76 sps:$4 sm:$0xff]   ;;  %v2236_v12 = vld [vmem:[%s2877_s1 + $0x280] sm:$0xff]   ;;  %v2241_v17 = vld [vmem:[%s2877_s1 + $0x250] sm:$0xff]  }
  0x1c   :  { %1946 = vmatprep.subr.bf16.mxu0 %v2185_v29  ;;  %v2242_v18 = vld [vmem:[%s2877_s1 + $0x210] sm:$0xff]   ;;  %v2245_v21 = vld [vmem:[%s2877_s1 + $0x258] sm:$0xff]   ;;  %v2249_v25 = vld [vmem:[%s2877_s1 + $0x260] sm:$0xff]  }
  0x1d   :  { %1967 = vmatpush3.bf16.msra.mxu1 %v2184_v28  ;;  %v2243_v19 = vld [vmem:[%s2877_s1 + $0x2d0] sm:$0xff]   ;;  %v2246_v22 = vld [vmem:[%s2877_s1 + $0x218] sm:$0xff]   ;;  %v2250_v26 = vld [vmem:[%s2877_s1 + $0x220] sm:$0xff]  }
  0x1e   :  { %1968 = vmatprep.subr.bf16.mxu1 %v2187_v31  ;;  %v2244_v20 = vld [vmem:[%s2877_s1 + $0x290] sm:$0xff]   ;;  %v2247_v23 = vld [vmem:[%s2877_s1 + $0x2d8] sm:$0xff]   ;;  %v2251_v27 = vld [vmem:[%s2877_s1 + $0x2e0] sm:$0xff]  }
  0x1f   :  { %1947 = vmatpush3.bf16.msra.mxu0 %v2186_v30  ;;  %v2248_v24 = vld [vmem:[%s2877_s1 + $0x298] sm:$0xff]   ;;  %v2252_v28 = vld [vmem:[%s2877_s1 + $0x2a0] sm:$0xff]   ;;  %v2253_v29 = vld [vmem:[%s2877_s1 + $0x268] sm:$0xff]  }
  0x20   :  { %1976 = vmatprep.subr.bf16.mxu0 %v2192_v35  ;;  %v2254_v30 = vld [vmem:[%s2877_s1 + $0x228] sm:$0xff]   ;;  %v2257_v33 = vld [vmem:[%s2877_s1 + $0x270] sm:$0xff]   ;;  %v2261_v37 = vld [vmem:[%s2877_s1 + $0x278] sm:$0xff]  }
  0x21   :  { %1969 = vmatpush3.bf16.msra.mxu1 %v2191_v34  ;;  %v2255_v31 = vld [vmem:[%s2877_s1 + $0x2e8] sm:$0xff]   ;;  %v2258_v34 = vld [vmem:[%s2877_s1 + $0x230] sm:$0xff]  }
  0x22   :  { %1379 = vmatmul.mubr.bf16.vlgmr.msra.gmra.mrb[0].mxu0 %v2188_v32  ;;  %1998 = vmatprep.subr.bf16.mxu1 %v2197_v39  ;;  %v2256_v32 = vld [vmem:[%s2877_s1 + $0x2a8] sm:$0xff]   ;;  %v2259_v35 = vld [vmem:[%s2877_s1 + $0x2f0] sm:$0xff]   ;;  %v2263_v39 = vld [vmem:[%s2877_s1 + $0x2f8] sm:$0xff]  }
  0x23   :  { %1977 = vmatpush3.bf16.msra.mxu0 %v2196_v38  ;;  %1460 = vmatprep.mubr.bf16.mxu0 %v2228_v5  ;;  %v2262_v38 = vld [vmem:[%s2877_s1 + $0x238] sm:$0xff]   ;;  %v2294_v5 = vld [vmem:[%s2877_s1 + $0x3a8] sm:$0xff]  }
  0x24   :  { %1420 = vmatmul.mubr.bf16.vlgmr.msra.gmra.mrb[0].mxu1 %v2193_v36  ;;  %1978 = vmatprep.subr.bf16.mxu0 %v2199_v41  ;;  %v2260_v36 = vld [vmem:[%s2877_s1 + $0x2b0] sm:$0xff]  }
  0x25   :  { %1999 = vmatpush3.bf16.msra.mxu1 %v2198_v40  ;;  %1501 = vmatprep.mubr.bf16.mxu1 %v2233_v9  ;;  %v2264_v40 = vld [vmem:[%s2878_s0 + $0x20] ss:$76 sps:$4 sm:$0xff]   ;;  %v2266_v41 = vld [vmem:[%s2878_s0 + $0x24] ss:$76 sps:$4 sm:$0xff]  }
  0x26   :  { %2000 = vmatprep.subr.bf16.mxu1 %v2201_v43  ;;  %v2268_v43 = vld [vmem:[%s2877_s1 + $0x340] sm:$0xff]   ;;  %v2297_v9 = vld [vmem:[%s2877_s1 + $0x3f0] sm:$0xff]  }
  0x27   :  { %1979 = vmatpush3.bf16.msra.mxu0 %v2200_v42  ;;  %v2267_v42 = vld [vmem:[%s2877_s1 + $0x2b8] sm:$0xff]  }
  0x28   :  { %1980 = vmatprep.subr.bf16.mxu0 %v2203_v45  ;;  %v2271_v45 = vld [vmem:[%s2878_s0 + $0x2c] ss:$76 sps:$4 sm:$0xff]  }
  0x29   :  { %2001 = vmatpush3.bf16.msra.mxu1 %v2202_v44  ;;  %v2269_v44 = vld [vmem:[%s2878_s0 + $0x28] ss:$76 sps:$4 sm:$0xff]  }
  0x2a   :  { %2002 = vmatprep.subr.bf16.mxu1 %v2205_v47  ;;  %v2273_v47 = vld [vmem:[%s2877_s1 + $0x3c0] sm:$0xff]  }
  0x2b   :  { %1981 = vmatpush3.bf16.msra.mxu0 %v2204_v46  ;;  %v2272_v46 = vld [vmem:[%s2877_s1 + $0x300] sm:$0xff]  }
  0x2c   :  { %1982 = vmatprep.subr.bf16.mxu0 %v2207_v49  ;;  %v2275_v49 = vld [vmem:[%s2877_s1 + $0x348] sm:$0xff]  }
  0x2d   :  { %2003 = vmatpush3.bf16.msra.mxu1 %v2206_v48  ;;  %v2274_v48 = vld [vmem:[%s2877_s1 + $0x380] sm:$0xff]  }
  0x2e   :  { %2004 = vmatprep.subr.bf16.mxu1 %v2209_v51  ;;  %v2277_v51 = vld [vmem:[%s2877_s1 + $0x3c8] sm:$0xff]  }
  0x2f   :  { %1983 = vmatpush3.bf16.msra.mxu0 %v2208_v50  ;;  %v2276_v50 = vld [vmem:[%s2877_s1 + $0x308] sm:$0xff]  }
  0x30   :  { %1984 = vmatprep.subr.bf16.mxu0 %v2211_v53  ;;  %v2279_v53 = vld [vmem:[%s2877_s1 + $0x350] sm:$0xff]  }
  0x31   :  { %2005 = vmatpush3.bf16.msra.mxu1 %v2210_v52  ;;  %v2278_v52 = vld [vmem:[%s2877_s1 + $0x388] sm:$0xff]  }
  0x32   :  { %2006 = vmatprep.subr.bf16.mxu1 %v2213_v55  ;;  %v2281_v55 = vld [vmem:[%s2877_s1 + $0x3d0] sm:$0xff]  }
  0x33   :  { %1985 = vmatpush3.bf16.msra.mxu0 %v2212_v54  ;;  %v2280_v54 = vld [vmem:[%s2877_s1 + $0x310] sm:$0xff]  }
  0x34   :  { %1986 = vmatprep.subr.bf16.mxu0 %v2215_v57  ;;  %v2283_v57 = vld [vmem:[%s2877_s1 + $0x358] sm:$0xff]  }
  0x35   :  { %2007 = vmatpush3.bf16.msra.mxu1 %v2214_v56  ;;  %v2282_v56 = vld [vmem:[%s2877_s1 + $0x390] sm:$0xff]  }
  0x36   :  { %2008 = vmatprep.subr.bf16.mxu1 %v2217_v59  ;;  %v2285_v59 = vld [vmem:[%s2877_s1 + $0x3d8] sm:$0xff]  }
  0x37   :  { %1987 = vmatpush3.bf16.msra.mxu0 %v2216_v58  ;;  %v2284_v58 = vld [vmem:[%s2877_s1 + $0x318] sm:$0xff]  }
  0x38   :  { %1988 = vmatprep.subr.bf16.mxu0 %v2219_v61  ;;  %v2287_v61 = vld [vmem:[%s2877_s1 + $0x360] sm:$0xff]  }
  0x39   :  { %2009 = vmatpush3.bf16.msra.mxu1 %v2218_v60  ;;  %v2286_v60 = vld [vmem:[%s2877_s1 + $0x398] sm:$0xff]  }
  0x3a   :  { %2010 = vmatprep.subr.bf16.mxu1 %v2221_v63  ;;  %v2289_v63 = vld [vmem:[%s2877_s1 + $0x3e0] sm:$0xff]  }
  0x3b   :  { %1989 = vmatpush3.bf16.msra.mxu0 %v2220_v62  ;;  %v2288_v62 = vld [vmem:[%s2877_s1 + $0x320] sm:$0xff]  }
  0x3c   :  { %1990 = vmatprep.subr.bf16.mxu0 %v2223_v1  ;;  %v2291_v1 = vld [vmem:[%s2877_s1 + $0x368] sm:$0xff]  }
  0x3d   :  { %2011 = vmatpush3.bf16.msra.mxu1 %v2222_v0  ;;  %v2290_v0 = vld [vmem:[%s2877_s1 + $0x3a0] sm:$0xff]  }
  0x3e   :  { %2012 = vmatprep.subr.bf16.mxu1 %v2225_v3  ;;  %v2292_v3 = vld [vmem:[%s2877_s1 + $0x328] sm:$0xff]  }
  0x3f   :  { %1991 = vmatpush3.bf16.msra.mxu0 %v2224_v2  ;;  %v335_v2 = vld [vmem:[%s2879_s2] sm:$0xff] }
  0x40   :  { %2020 = vmatprep.subr.bf16.mxu0 %v2230_v7  ;;  %339 = vperm.xlu0 %2156, %v335_v2   ;;  %v336_v7 = vld [vmem:[%s2879_s2 + $0x8] sm:$0xff] }
  0x41   :  { %2013 = vmatpush3.bf16.msra.mxu1 %v2229_v6  ;;  %v2295_v6 = vld [vmem:[%s2877_s1 + $0x370] sm:$0xff]  }
  0x42   :  { %1461 = vmatmul.mubr.bf16.vlgmr.msra.gmra.mrb[4].mxu0 %v2226_v4  ;;  %2042 = vmatprep.subr.bf16.mxu1 %v2235_v11  ;;  %v2293_v4 = vld [vmem:[%s2877_s1 + $0x3e8] sm:$0xff]   ;;  %v2299_v11 = vld [vmem:[%s2877_s1 + $0x378] sm:$0xff]  }
  0x43   :  { %2021 = vmatpush3.bf16.msra.mxu0 %v2234_v10  ;;  %1542 = vmatprep.mubr.bf16.mxu0 %v2266_v41  ;;  %v2298_v10 = vld [vmem:[%s2877_s1 + $0x3b0] sm:$0xff]   ;;  %v2333_v41 = vld [vmem:[%s2877_s1 + $0x4a8] sm:$0xff]  }
  0x44   :  { %1502 = vmatmul.mubr.bf16.vlgmr.msra.gmra.mrb[4].mxu1 %v2231_v8  ;;  %2022 = vmatprep.subr.bf16.mxu0 %v2237_v13  ;;  %v2296_v8 = vld [vmem:[%s2877_s1 + $0x330] sm:$0xff]   ;;  %v2301_v13 = vld [vmem:[%s2877_s1 + $0x3f8] sm:$0xff]  }
  0x45   :  { %2043 = vmatpush3.bf16.msra.mxu1 %v2236_v12  ;;  %1583 = vmatprep.mubr.bf16.mxu1 %v2271_v45  ;;  %v2300_v12 = vld [vmem:[%s2877_s1 + $0x338] sm:$0xff]  }
  0x46   :  { %2044 = vmatprep.subr.bf16.mxu1 %v2239_v15  ;;  %344 = vperm.xlu0 %2156, %v336_v7   ;;  %v2304_v15 = vld [vmem:[%s2878_s0 + $0x34] ss:$76 sps:$4 sm:$0xff]  }
  0x47   :  { %2023 = vmatpush3.bf16.msra.mxu0 %v2238_v14  ;;  %v2302_v14 = vld [vmem:[%s2878_s0 + $0x30] ss:$76 sps:$4 sm:$0xff]  }
  0x48   :  { %2024 = vmatprep.subr.bf16.mxu0 %v2241_v17  ;;  %v2306_v17 = vld [vmem:[%s2877_s1 + $0x440] sm:$0xff]  }
  0x49   :  { %2045 = vmatpush3.bf16.msra.mxu1 %v2240_v16  ;;  %v2305_v16 = vld [vmem:[%s2877_s1 + $0x3b8] sm:$0xff]  }
  0x4a   :  { %2046 = vmatprep.subr.bf16.mxu1 %v2243_v19  ;;  %v2309_v19 = vld [vmem:[%s2878_s0 + $0x3c] ss:$76 sps:$4 sm:$0xff]  }
  0x4b   :  { %2025 = vmatpush3.bf16.msra.mxu0 %v2242_v18  ;;  %v2307_v18 = vld [vmem:[%s2878_s0 + $0x38] ss:$76 sps:$4 sm:$0xff]  }
  0x4c   :  { %2026 = vmatprep.subr.bf16.mxu0 %v2245_v21  ;;  %v2310_v21 = vld [vmem:[%s2877_s1 + $0x400] sm:$0xff]  }
  0x4d   :  { %2047 = vmatpush3.bf16.msra.mxu1 %v2244_v20  ;;  %v2336_v20 = vmov 0.0  }
  0x4e   :  { %2048 = vmatprep.subr.bf16.mxu1 %v2247_v23  ;;  %v2312_v23 = vld [vmem:[%s2877_s1 + $0x408] sm:$0xff]  }
  0x4f   :  { %2027 = vmatpush3.bf16.msra.mxu0 %v2246_v22  ;;  %v2311_v22 = vld [vmem:[%s2877_s1 + $0x448] sm:$0xff]  }
  0x50   :  { %2028 = vmatprep.subr.bf16.mxu0 %v2249_v25  ;;  %v2315_v25 = vld [vmem:[%s2877_s1 + $0x480] sm:$0xff]  }
  0x51   :  { %2049 = vmatpush3.bf16.msra.mxu1 %v2248_v24  ;;  %v2313_v24 = vld [vmem:[%s2877_s1 + $0x450] sm:$0xff]  }
  0x52   :  { %2050 = vmatprep.subr.bf16.mxu1 %v2251_v27  ;;  %v2316_v27 = vld [vmem:[%s2877_s1 + $0x458] sm:$0xff]  }
  0x53   :  { %2029 = vmatpush3.bf16.msra.mxu0 %v2250_v26  ;;  %v2314_v26 = vld [vmem:[%s2877_s1 + $0x410] sm:$0xff]  }
  0x54   :  { %2030 = vmatprep.subr.bf16.mxu0 %v2253_v29  ;;  %v2317_v29 = vld [vmem:[%s2877_s1 + $0x418] sm:$0xff]  }
  0x55   :  { %2051 = vmatpush3.bf16.msra.mxu1 %v2252_v28  ;;  %v2318_v28 = vld [vmem:[%s2877_s1 + $0x488] sm:$0xff]  }
  0x56   :  { %2052 = vmatprep.subr.bf16.mxu1 %v2255_v31  ;;  %v2321_v31 = vld [vmem:[%s2877_s1 + $0x490] sm:$0xff]  }
  0x57   :  { %2031 = vmatpush3.bf16.msra.mxu0 %v2254_v30  ;;  %v2319_v30 = vld [vmem:[%s2877_s1 + $0x460] sm:$0xff]  }
  0x58   :  { %2032 = vmatprep.subr.bf16.mxu0 %v2257_v33  ;;  %v2322_v33 = vld [vmem:[%s2877_s1 + $0x468] sm:$0xff]  }
  0x59   :  { %2053 = vmatpush3.bf16.msra.mxu1 %v2256_v32  ;;  %v2320_v32 = vld [vmem:[%s2877_s1 + $0x420] sm:$0xff]  }
  0x5a   :  { %2054 = vmatprep.subr.bf16.mxu1 %v2259_v35  ;;  %v2323_v35 = vld [vmem:[%s2877_s1 + $0x428] sm:$0xff]  }
  0x5b   :  { %2033 = vmatpush3.bf16.msra.mxu0 %v2258_v34  ;;  %v2324_v34 = vld [vmem:[%s2877_s1 + $0x498] sm:$0xff]  }
  0x5c   :  { %2034 = vmatprep.subr.bf16.mxu0 %v2261_v37  ;;  %v2327_v37 = vld [vmem:[%s2877_s1 + $0x4a0] sm:$0xff]  }
  0x5d   :  { %2055 = vmatpush3.bf16.msra.mxu1 %v2260_v36  ;;  %v2325_v36 = vld [vmem:[%s2877_s1 + $0x470] sm:$0xff]  }
  0x5e   :  { %2056 = vmatprep.subr.bf16.mxu1 %v2263_v39  ;;  %v2326_v39 = vld [vmem:[%s2877_s1 + $0x430] sm:$0xff]  }
  0x5f   :  { %2035 = vmatpush3.bf16.msra.mxu0 %v2262_v38  ;;  %v2332_v38 = vld [vmem:[%s2878_s0 + $0x44] ss:$76 sps:$4 sm:$0xff]  }
  0x60   :  { %2064 = vmatprep.subr.bf16.mxu0 %v2268_v43  ;;  %v2334_v43 = vld [vmem:[%s2878_s0 + $0x48] ss:$76 sps:$4 sm:$0xff]  }
  0x61   :  { %2057 = vmatpush3.bf16.msra.mxu1 %v2267_v42  ;;  %v2329_v42 = vld [vmem:[%s2877_s1 + $0x438] sm:$0xff]  }
  0x62   :  { %1543 = vmatmul.mubr.bf16.vlgmr.msra.gmra.mrb[8].mxu0 %v2264_v40  ;;  %2086 = vmatprep.subr.bf16.mxu1 %v2273_v47  ;;  %v2328_v40 = vld [vmem:[%s2877_s1 + $0x478] sm:$0xff]  }
  0x63   :  { %2065 = vmatpush3.bf16.msra.mxu0 %v2272_v46  ;;  %1624 = vmatprep.mubr.bf16.mxu0 %v2304_v15 }
  0x64   :  { %1584 = vmatmul.mubr.bf16.vlgmr.msra.gmra.mrb[8].mxu1 %v2269_v44  ;;  %2066 = vmatprep.subr.bf16.mxu0 %v2275_v49  ;;  %v2330_v44 = vld [vmem:[%s2878_s0 + $0x40] ss:$76 sps:$4 sm:$0xff]  }
  0x65   :  { %2087 = vmatpush3.bf16.msra.mxu1 %v2274_v48  ;;  %1665 = vmatprep.mubr.bf16.mxu1 %v2309_v19 }
  0x66   :  { %2088 = vmatprep.subr.bf16.mxu1 %v2277_v51 }
  0x67   :  { %2067 = vmatpush3.bf16.msra.mxu0 %v2276_v50 }
  0x68   :  { %2068 = vmatprep.subr.bf16.mxu0 %v2279_v53 }
  0x69   :  { %2089 = vmatpush3.bf16.msra.mxu1 %v2278_v52 }
  0x6a   :  { %2090 = vmatprep.subr.bf16.mxu1 %v2281_v55 }
  0x6b   :  { %2069 = vmatpush3.bf16.msra.mxu0 %v2280_v54 }
  0x6c   :  { %2070 = vmatprep.subr.bf16.mxu0 %v2283_v57 }
  0x6d   :  { %2091 = vmatpush3.bf16.msra.mxu1 %v2282_v56 }
  0x6e   :  { %2092 = vmatprep.subr.bf16.mxu1 %v2285_v59 }
  0x6f   :  { %2071 = vmatpush3.bf16.msra.mxu0 %v2284_v58 }
  0x70   :  { %2072 = vmatprep.subr.bf16.mxu0 %v2287_v61 }
  0x71   :  { %2093 = vmatpush3.bf16.msra.mxu1 %v2286_v60 }
  0x72   :  { %2094 = vmatprep.subr.bf16.mxu1 %v2289_v63 }
  0x73   :  { %2073 = vmatpush3.bf16.msra.mxu0 %v2288_v62 }
  0x74   :  { %2074 = vmatprep.subr.bf16.mxu0 %v2291_v1 }
  0x75   :  { %2095 = vmatpush3.bf16.msra.mxu1 %v2290_v0 }
  0x76   :  { %2096 = vmatprep.subr.bf16.mxu1 %v2293_v4 }
  0x77   :  { %2075 = vmatpush3.bf16.msra.mxu0 %v2292_v3 }
  0x78   :  { %2076 = vmatprep.subr.bf16.mxu0 %v2295_v6 }
  0x79   :  { %2097 = vmatpush3.bf16.msra.mxu1 %v2294_v5 }
  0x7a   :  { %2098 = vmatprep.subr.bf16.mxu1 %v2297_v9 }
  0x7b   :  { %2077 = vmatpush3.bf16.msra.mxu0 %v2296_v8 }
  0x7c   :  { %2078 = vmatprep.subr.bf16.mxu0 %v2299_v11 }
  0x7d   :  { %2099 = vmatpush3.bf16.msra.mxu1 %v2298_v10 }
  0x7e   :  { %2100 = vmatprep.subr.bf16.mxu1 %v2301_v13 }
  0x7f   :  { %2079 = vmatpush3.bf16.msra.mxu0 %v2300_v12 }
  0x80   :  { %2108 = vmatprep.subr.bf16.mxu0 %v2306_v17 }
  0x81   :  { %2101 = vmatpush3.bf16.msra.mxu1 %v2305_v16 }
  0x82   :  { %1625 = vmatmul.mubr.bf16.vlgmr.msra.gmra.mrb[12].mxu0 %v2302_v14  ;;  %2137 = vmatprep.subr.bf16.mxu1 %v2336_v20 }
  0x83   :  { %2109 = vmatpush3.bf16.msra.mxu0 %v2310_v21  ;;  %1706 = vmatprep.mubr.bf16.mxu0 %v2332_v38 }
  0x84   :  { %1666 = vmatmul.mubr.bf16.vlgmr.msra.gmra.mrb[12].mxu1 %v2307_v18  ;;  %2110 = vmatprep.subr.bf16.mxu0 %v2311_v22 }
  0x85   :  { %2149 = vmatprep.mubr.msk.bf16.mxu1 %vm2337_vm0, %v2336_v20  ;;  %2138 = vmatpush3.bf16.msra.mxu1 %v2315_v25 }
  0x86   :  { %2139 = vmatprep.subr.bf16.mxu1 %v2336_v20 }
  0x87   :  { %2111 = vmatpush3.bf16.msra.mxu0 %v2312_v23 }
  0x88   :  { %2112 = vmatprep.subr.bf16.mxu0 %v2313_v24 }
  0x89   :  { %2140 = vmatpush3.bf16.msra.mxu1 %v2318_v28 }
  0x8a   :  { %2141 = vmatprep.subr.bf16.mxu1 %v2336_v20 }
  0x8b   :  { %2113 = vmatpush3.bf16.msra.mxu0 %v2314_v26 }
  0x8c   :  { %2114 = vmatprep.subr.bf16.mxu0 %v2316_v27 }
  0x8d   :  { %2142 = vmatpush3.bf16.msra.mxu1 %v2321_v31 }
  0x8e   :  { %2143 = vmatprep.subr.bf16.mxu1 %v2336_v20 }
  0x8f   :  { %2115 = vmatpush3.bf16.msra.mxu0 %v2317_v29 }
  0x90   :  { %2116 = vmatprep.subr.bf16.mxu0 %v2319_v30 }
  0x91   :  { %2144 = vmatpush3.bf16.msra.mxu1 %v2324_v34 }
  0x92   :  { %2145 = vmatprep.subr.bf16.mxu1 %v2336_v20 }
  0x93   :  { %2117 = vmatpush3.bf16.msra.mxu0 %v2320_v32 }
  0x94   :  { %2118 = vmatprep.subr.bf16.mxu0 %v2322_v33 }
  0x95   :  { %2146 = vmatpush3.bf16.msra.mxu1 %v2327_v37 }
  0x96   :  { %2147 = vmatprep.subr.bf16.mxu1 %v2336_v20 }
  0x97   :  { %2119 = vmatpush3.bf16.msra.mxu0 %v2323_v35 }
  0x98   :  { %2120 = vmatprep.subr.bf16.mxu0 %v2325_v36 }
  0x99   :  { %2148 = vmatpush3.bf16.msra.mxu1 %v2333_v41 }
  0x9b   :  { %2121 = vmatpush3.bf16.msra.mxu0 %v2326_v39 }
  0x9c   :  { %2122 = vmatprep.subr.bf16.mxu0 %v2328_v40  ;;  %2150 = vmatmul.mubr.msk.bf16.vlgmr.msra.gmra.mrb[16].mxu1 %vm1342_vm1, %v2334_v43 }
  0x9f   :  { %2123 = vmatpush3.bf16.msra.mxu0 %v2329_v42 }
  0xa2   :  { %1707 = vmatmul.mubr.bf16.vlgmr.msra.gmra.mrb[16].mxu0 %v2330_v44 }
  0xbf   :  { %v340_v56 = vpop.permute.xlu0 %339 }
  0xc5   :  { %v345_v60 = vpop.permute.xlu0 %344 }
  0xf5   :  { %v1948_v45 = vpop.f32.mrb[0].mxu0 }
  0xf6   :  { %v1949_v46 = vpop.f32.mrb[1].mxu0 }
  0xf7   :  { %v1950_v47 = vadd.f32 %v1949_v46, %v1948_v45  ;;  %v1951_v48 = vpop.f32.mrb[2].mxu0  ;;  %v1970_v49 = vpop.f32.mrb[0].mxu1 }
  0xf8   :  { %v1952_v50 = vpop.f32.mrb[3].mxu0  ;;  %v1971_v52 = vpop.f32.mrb[1].mxu1 }
  0xf9   :  { %v1953_v51 = vadd.f32 %v1952_v50, %v1951_v48  ;;  %v1972_v53 = vadd.f32 %v1971_v52, %v1970_v49  ;;  %v1973_v54 = vpop.f32.mrb[2].mxu1  ;;  %v1381_v58 = vadd.f32 %v1950_v47, %v340_v56 }
  0xfa   :  { %v1974_v55 = vpop.f32.mrb[3].mxu1 }
  0xfb   :  { %v1975_v57 = vadd.f32 %v1974_v55, %v1973_v54  ;;  %v1422_v59 = vadd.f32 %v1972_v53, %v1381_v58  ;;  %v1384_v61 = vadd.f32 %v1953_v51, %v345_v60 }
  0xfd   :  { %v1425_v62 = vadd.f32 %v1975_v57, %v1384_v61 }
 0x115   :  { %v1992_v63 = vpop.f32.mrb[4].mxu0 }
 0x116   :  { %v1993_v0 = vpop.f32.mrb[5].mxu0 }
 0x117   :  { %v1994_v1 = vadd.f32 %v1993_v0, %v1992_v63  ;;  %v1995_v2 = vpop.f32.mrb[6].mxu0  ;;  %v2014_v5 = vpop.f32.mrb[4].mxu1 }
 0x118   :  { %v1996_v3 = vpop.f32.mrb[7].mxu0  ;;  %v2015_v7 = vpop.f32.mrb[5].mxu1 }
 0x119   :  { %v1463_v4 = vadd.f32 %v1994_v1, %v1422_v59  ;;  %v1997_v6 = vadd.f32 %v1996_v3, %v1995_v2  ;;  %v2016_v9 = vadd.f32 %v2015_v7, %v2014_v5  ;;  %v2017_v10 = vpop.f32.mrb[6].mxu1 }
 0x11a   :  { %v2018_v11 = vpop.f32.mrb[7].mxu1 }
 0x11b   :  { %v1466_v8 = vadd.f32 %v1997_v6, %v1425_v62  ;;  %v1504_v12 = vadd.f32 %v2016_v9, %v1463_v4  ;;  %v2019_v13 = vadd.f32 %v2018_v11, %v2017_v10 }
 0x11d   :  { %v1507_v14 = vadd.f32 %v2019_v13, %v1466_v8 }
 0x135   :  { %v2036_v15 = vpop.f32.mrb[8].mxu0 }
 0x136   :  { %v2037_v16 = vpop.f32.mrb[9].mxu0 }
 0x137   :  { %v2038_v17 = vadd.f32 %v2037_v16, %v2036_v15  ;;  %v2039_v18 = vpop.f32.mrb[10].mxu0  ;;  %v2058_v19 = vpop.f32.mrb[8].mxu1 }
 0x138   :  { %v2040_v20 = vpop.f32.mrb[11].mxu0  ;;  %v2059_v23 = vpop.f32.mrb[9].mxu1 }
 0x139   :  { %v1545_v21 = vadd.f32 %v2038_v17, %v1504_v12  ;;  %v2041_v22 = vadd.f32 %v2040_v20, %v2039_v18  ;;  %v2060_v24 = vadd.f32 %v2059_v23, %v2058_v19  ;;  %v2061_v25 = vpop.f32.mrb[10].mxu1 }
 0x13a   :  { %v2062_v27 = vpop.f32.mrb[11].mxu1 }
 0x13b   :  { %v1548_v26 = vadd.f32 %v2041_v22, %v1507_v14  ;;  %v1586_v28 = vadd.f32 %v2060_v24, %v1545_v21  ;;  %v2063_v29 = vadd.f32 %v2062_v27, %v2061_v25 }
 0x13d   :  { %v1589_v30 = vadd.f32 %v2063_v29, %v1548_v26 }
 0x155   :  { %v2080_v31 = vpop.f32.mrb[12].mxu0 }
 0x156   :  { %v2081_v32 = vpop.f32.mrb[13].mxu0 }
 0x157   :  { %v2082_v33 = vadd.f32 %v2081_v32, %v2080_v31  ;;  %v2083_v34 = vpop.f32.mrb[14].mxu0  ;;  %v2102_v37 = vpop.f32.mrb[12].mxu1 }
 0x158   :  { %v2084_v35 = vpop.f32.mrb[15].mxu0  ;;  %v2103_v39 = vpop.f32.mrb[13].mxu1 }
 0x159   :  { %v1627_v36 = vadd.f32 %v2082_v33, %v1586_v28  ;;  %v2085_v38 = vadd.f32 %v2084_v35, %v2083_v34  ;;  %v2104_v41 = vadd.f32 %v2103_v39, %v2102_v37  ;;  %v2105_v42 = vpop.f32.mrb[14].mxu1 }
 0x15a   :  { %v2106_v43 = vpop.f32.mrb[15].mxu1 }
 0x15b   :  { %v1630_v40 = vadd.f32 %v2085_v38, %v1589_v30  ;;  %v1668_v44 = vadd.f32 %v2104_v41, %v1627_v36  ;;  %v2107_v45 = vadd.f32 %v2106_v43, %v2105_v42 }
 0x15d   :  { %v1671_v46 = vadd.f32 %v2107_v45, %v1630_v40 }
 0x16f   :  { %v1749_v47 = vpop.f32.mrb[16].mxu1 }
 0x170   :  { %v2151_v48 = vpop.f32.mrb[17].mxu1 }
 0x171   :  { %v1752_v49 = vpop.f32.mrb[18].mxu1 }
 0x172   :  { %v2152_v51 = vpop.f32.mrb[19].mxu1 }
 0x175   :  { %v2124_v50 = vpop.f32.mrb[16].mxu0 }
 0x176   :  { %v2125_v52 = vpop.f32.mrb[17].mxu0 }
 0x177   :  { %v2126_v53 = vadd.f32 %v2125_v52, %v2124_v50  ;;  %v2127_v54 = vpop.f32.mrb[18].mxu0 }
 0x178   :  { %v2128_v55 = vpop.f32.mrb[19].mxu0 }
 0x179   :  { %v1709_v56 = vadd.f32 %v2126_v53, %v1668_v44  ;;  %v2129_v57 = vadd.f32 %v2128_v55, %v2127_v54 }
 0x17b   :  { %v1750_v58 = vadd.f32 %v1749_v47, %v1709_v56  ;;  %v1712_v59 = vadd.f32 %v2129_v57, %v1671_v46 }
 0x17d   :  { %1756 = vst [vmem:[%s2880_s3] sm:$0xff] %v1750_v58  ;;  %v1753_v60 = vadd.f32 %v1752_v49, %v1712_v59 }
 0x17f   :  { %1757 = vst [vmem:[%s2880_s3 + $0x8] sm:$0xff] %v1753_v60 }

</bundles_post_ra>
